<compile_context>
chip_gen: v6e
topology: v6e:2x2x1
jax: 0.10.0
libtpu: 0.0.40
codegen_flags: <defaults>
</compile_context>

<pallas_src>
import functools

import jax
import jax.numpy as jnp
import numpy as np
from jax.experimental import pallas as pl
from jax.experimental.pallas import tpu as pltpu

LANE = 128


def _round_up(x, m):
    return (x + m - 1) // m * m


# ----------------------------- Pallas kernels -------------------------------

def _accum_conv3x3(plane_ref, w_ref, Ho, Wo, stride, acc):
    """acc += sum_{kh,kw} shifted_window(plane) @ w[kh*3+kw].

    plane_ref: (1, Hp, Wp, C)      spatially zero-padded input plane (bf16)
    w_ref    : (9, C, Cp)          weights, BN scale already folded in (bf16)
    acc      : (Ho*Wo, Cp) f32     accumulator
    """
    C = plane_ref.shape[3]
    for idx in range(9):
        kh, kw = divmod(idx, 3)
        if stride == 1:
            xs = plane_ref[0, kh:kh + Ho, kw:kw + Wo, :]
        else:
            # strided window (only used for stride > 1 blocks; tests use stride=1)
            xs = plane_ref[0, pl.ds(kh, Ho, stride=stride),
                           pl.ds(kw, Wo, stride=stride), :]
        acc = acc + jnp.dot(xs.reshape(Ho * Wo, C), w_ref[idx],
                            preferred_element_type=jnp.float32)
    return acc


def _basic_block_proj_kernel(xp_ref, w1_ref, b1_ref, w2_ref, b2_ref,
                             xs_ref, ws_ref, bs_ref, o_ref, mid_ref, *, stride):
    """Fused BasicBlock with a 1x1-projection shortcut. One batch element per step.

    xp_ref : (1, H+2, W+2, Cin)   bf16  spatially padded input plane
    w1_ref : (9, Cin, Cp)         bf16  conv1 weight (BN1 scale folded)
    b1_ref : (1, Cp)              f32   folded BN1 bias
    w2_ref : (9, Cp, Cp)          bf16  conv2 weight (BN2 scale folded)
    b2_ref : (1, Cp)              f32
    xs_ref : (1, Ho, Wo, Cin)     bf16  stride-sampled input for the 1x1 shortcut
    ws_ref : (Cin, Cp)            bf16  shortcut weight (BN scale folded)
    bs_ref : (1, Cp)              f32
    o_ref  : (1, Ho, Wo, Cp)      f32
    mid_ref: (1, Ho+2, Wo+2, Cp)  bf16  VMEM scratch: conv1 output, zero-padded
    """
    _, Ho, Wo, Cp = o_ref.shape

    # ---- conv1 + bn1 + relu -> zero-padded plane held only in VMEM ----
    acc1 = jnp.zeros((Ho * Wo, Cp), jnp.float32)
    acc1 = _accum_conv3x3(xp_ref, w1_ref, Ho, Wo, stride, acc1)
    h1 = jnp.maximum(acc1 + b1_ref[...], 0.0)
    mid_ref[0] = jnp.zeros(mid_ref.shape[1:], mid_ref.dtype)
    mid_ref[0, 1:1 + Ho, 1:1 + Wo, :] = h1.reshape(Ho, Wo, Cp).astype(mid_ref.dtype)

    # ---- conv2 + bn2 + fused 1x1 shortcut (+bn) + relu ----
    acc2 = jnp.zeros((Ho * Wo, Cp), jnp.float32)
    acc2 = _accum_conv3x3(mid_ref, w2_ref, Ho, Wo, 1, acc2)
    cin = xs_ref.shape[3]
    acc2 = acc2 + jnp.dot(xs_ref[0].reshape(Ho * Wo, cin), ws_ref[...],
                          preferred_element_type=jnp.float32)
    out = jnp.maximum(acc2 + b2_ref[...] + bs_ref[...], 0.0)
    o_ref[0] = out.reshape(Ho, Wo, Cp).astype(o_ref.dtype)


def _basic_block_id_kernel(xp_ref, w1_ref, b1_ref, w2_ref, b2_ref, o_ref, mid_ref):
    """Fused BasicBlock with identity shortcut (stride=1, cin==planes).

    The input plane is channel-padded to Cp in the wrapper, so the residual is
    read straight from xp_ref (native bf16, cast at the add) -- no extra stream.
    """
    _, Ho, Wo, Cp = o_ref.shape

    acc1 = jnp.zeros((Ho * Wo, Cp), jnp.float32)
    acc1 = _accum_conv3x3(xp_ref, w1_ref, Ho, Wo, 1, acc1)
    h1 = jnp.maximum(acc1 + b1_ref[...], 0.0)
    mid_ref[0] = jnp.zeros(mid_ref.shape[1:], mid_ref.dtype)
    mid_ref[0, 1:1 + Ho, 1:1 + Wo, :] = h1.reshape(Ho, Wo, Cp).astype(mid_ref.dtype)

    acc2 = jnp.zeros((Ho * Wo, Cp), jnp.float32)
    acc2 = _accum_conv3x3(mid_ref, w2_ref, Ho, Wo, 1, acc2)
    res = xp_ref[0, 1:1 + Ho, 1:1 + Wo, :].reshape(Ho * Wo, Cp).astype(jnp.float32)
    out = jnp.maximum(acc2 + b2_ref[...] + res, 0.0)
    o_ref[0] = out.reshape(Ho, Wo, Cp).astype(o_ref.dtype)


# --------------------------- wrapper (plain JAX glue) ------------------------

def _fold_bn(gamma, beta, mean, var, eps=1e-5):
    scale = gamma / jnp.sqrt(var + eps)
    return scale, beta - mean * scale


def basic_block_forward(x_nchw, params, stride):
    """Pallas implementation of BasicBlock.forward. Input/output are NCHW f32."""
    x = jnp.transpose(x_nchw, (0, 2, 3, 1))            # -> NHWC
    N, H, W, cin = x.shape
    planes = params["conv1_w"].shape[0]
    Ho = (H + 2 - 3) // stride + 1
    Wo = (W + 2 - 3) // stride + 1
    Cp = _round_up(planes, LANE)                        # lane-dense output channels
    proj = (stride != 1) or (cin != planes)
    cin_k = cin if proj else Cp                         # conv1 K-dim (identity path pads x channels)

    # ---- fold inference BN into weights (scale) + f32 bias; pad channels; bf16 ----
    s1, b1 = _fold_bn(params["bn1_gamma"], params["bn1_beta"],
                      params["bn1_mean"], params["bn1_var"])
    s2, b2 = _fold_bn(params["bn2_gamma"], params["bn2_beta"],
                      params["bn2_mean"], params["bn2_var"])

    w1 = jnp.transpose(params["conv1_w"], (2, 3, 1, 0)).reshape(9, cin, planes)
    w1 = (w1 * s1[None, None, :])
    w1 = jnp.pad(w1, ((0, 0), (0, cin_k - cin), (0, Cp - planes))).astype(jnp.bfloat16)
    b1 = jnp.pad(b1, (0, Cp - planes)).reshape(1, Cp).astype(jnp.float32)

    w2 = jnp.transpose(params["conv2_w"], (2, 3, 1, 0)).reshape(9, planes, planes)
    w2 = (w2 * s2[None, None, :])
    w2 = jnp.pad(w2, ((0, 0), (0, Cp - planes), (0, Cp - planes))).astype(jnp.bfloat16)
    b2 = jnp.pad(b2, (0, Cp - planes)).reshape(1, Cp).astype(jnp.float32)

    # ---- activations: bf16 NHWC, spatially zero-padded by 1 ----
    x_bf = x.astype(jnp.bfloat16)
    if not proj:
        # pad channels so the identity residual (and conv1 K) are Cp wide
        x_bf = jnp.pad(x_bf, ((0, 0), (0, 0), (0, 0), (0, Cp - cin)))
    xp = jnp.pad(x_bf, ((0, 0), (1, 1), (1, 1), (0, 0)))
    Hp, Wp = H + 2, W + 2

    flops = 2 * N * Ho * Wo * 9 * (cin_k * Cp + Cp * Cp)

    if proj:
        ss, bs = _fold_bn(params["sc_gamma"], params["sc_beta"],
                          params["sc_mean"], params["sc_var"])
        ws = jnp.transpose(params["sc_w"], (2, 3, 1, 0)).reshape(cin, planes)
        ws = (ws * ss[None, :])
        ws = jnp.pad(ws, ((0, 0), (0, Cp - planes))).astype(jnp.bfloat16)
        bs = jnp.pad(bs, (0, Cp - planes)).reshape(1, Cp).astype(jnp.float32)
        xs = x_bf[:, ::stride, ::stride, :]             # (N, Ho, Wo, cin), native bf16
        flops += 2 * N * Ho * Wo * cin * Cp

        args = (xp, w1, b1, w2, b2, xs, ws, bs)
        in_specs = [
            pl.BlockSpec((1, Hp, Wp, cin_k), lambda n: (n, 0, 0, 0)),
            pl.BlockSpec((9, cin_k, Cp), lambda n: (0, 0, 0)),
            pl.BlockSpec((1, Cp), lambda n: (0, 0)),
            pl.BlockSpec((9, Cp, Cp), lambda n: (0, 0, 0)),
            pl.BlockSpec((1, Cp), lambda n: (0, 0)),
            pl.BlockSpec((1, Ho, Wo, cin), lambda n: (n, 0, 0, 0)),
            pl.BlockSpec((cin, Cp), lambda n: (0, 0)),
            pl.BlockSpec((1, Cp), lambda n: (0, 0)),
        ]
        kernel = functools.partial(_basic_block_proj_kernel, stride=stride)
    else:
        args = (xp, w1, b1, w2, b2)
        in_specs = [
            pl.BlockSpec((1, Hp, Wp, cin_k), lambda n: (n, 0, 0, 0)),
            pl.BlockSpec((9, cin_k, Cp), lambda n: (0, 0, 0)),
            pl.BlockSpec((1, Cp), lambda n: (0, 0)),
            pl.BlockSpec((9, Cp, Cp), lambda n: (0, 0, 0)),
            pl.BlockSpec((1, Cp), lambda n: (0, 0)),
        ]
        kernel = _basic_block_id_kernel

    bytes_accessed = sum(int(np.prod(a.shape)) * a.dtype.itemsize for a in args)
    bytes_accessed += N * Ho * Wo * Cp * 4              # f32 output

    out = pl.pallas_call(
        kernel,
        out_shape=jax.ShapeDtypeStruct((N, Ho, Wo, Cp), jnp.float32),
        grid=(N,),
        in_specs=in_specs,
        out_specs=pl.BlockSpec((1, Ho, Wo, Cp), lambda n: (n, 0, 0, 0)),
        scratch_shapes=[pltpu.VMEM((1, Ho + 2, Wo + 2, Cp), jnp.bfloat16)],
        compiler_params=pltpu.CompilerParams(
            dimension_semantics=("parallel",),
            vmem_limit_bytes=48 * 1024 * 1024),
        cost_estimate=pl.CostEstimate(flops=int(flops), transcendentals=0,
                                      bytes_accessed=int(bytes_accessed)),
    )(*args)

    out = out[:, :, :, :planes]                         # drop channel padding
    return jnp.transpose(out, (0, 3, 1, 2))             # -> NCHW


# ------------------------- pure-JAX reference --------------------------------

def reference_forward(x, params, stride, eps=1e-5):
    def conv(x, w, s, pad):
        return jax.lax.conv_general_dilated(
            x, w, (s, s), [(pad, pad), (pad, pad)],
            dimension_numbers=("NCHW", "OIHW", "NCHW"))

    def bn(x, g, b, m, v):
        g, b, m, v = (t[None, :, None, None] for t in (g, b, m, v))
        return (x - m) / jnp.sqrt(v + eps) * g + b

    out = jax.nn.relu(bn(conv(x, params["conv1_w"], stride, 1),
                         params["bn1_gamma"], params["bn1_beta"],
                         params["bn1_mean"], params["bn1_var"]))
    out = bn(conv(out, params["conv2_w"], 1, 1),
             params["bn2_gamma"], params["bn2_beta"],
             params["bn2_mean"], params["bn2_var"])
    if stride != 1 or x.shape[1] != params["conv1_w"].shape[0]:
        sc = bn(conv(x, params["sc_w"], stride, 0),
                params["sc_gamma"], params["sc_beta"],
                params["sc_mean"], params["sc_var"])
    else:
        sc = x
    return jax.nn.relu(out + sc)


# --------------------------------- main ---------------------------------------

def _make_params(key, in_planes, planes):
    ks = jax.random.split(key, 6)

    def bn_params(k, c):
        k1, k2, k3, k4 = jax.random.split(k, 4)
        return (1.0 + 0.1 * jax.random.normal(k1, (c,), jnp.float32),   # gamma
                0.1 * jax.random.normal(k2, (c,), jnp.float32),          # beta
                0.1 * jax.random.normal(k3, (c,), jnp.float32),          # running_mean
                jax.random.uniform(k4, (c,), jnp.float32, 0.5, 1.5))     # running_var

    g1, b1, m1, v1 = bn_params(ks[1], planes)
    g2, b2, m2, v2 = bn_params(ks[3], planes)
    gs, bs, ms, vs = bn_params(ks[5], planes)
    return {
        "conv1_w": 0.1 * jax.random.normal(ks[0], (planes, in_planes, 3, 3), jnp.float32),
        "bn1_gamma": g1, "bn1_beta": b1, "bn1_mean": m1, "bn1_var": v1,
        "conv2_w": 0.1 * jax.random.normal(ks[2], (planes, planes, 3, 3), jnp.float32),
        "bn2_gamma": g2, "bn2_beta": b2, "bn2_mean": m2, "bn2_var": v2,
        "sc_w": 0.1 * jax.random.normal(ks[4], (planes, in_planes, 1, 1), jnp.float32),
        "sc_gamma": gs, "sc_beta": bs, "sc_mean": ms, "sc_var": vs,
    }


def _run_case(key, N, in_planes, planes, H, W, stride):
    kx, kp = jax.random.split(key)
    x = jax.random.normal(kx, (N, in_planes, H, W), jnp.float32)
    params = _make_params(kp, in_planes, planes)

    fwd = jax.jit(functools.partial(basic_block_forward, stride=stride))
    out = jax.block_until_ready(fwd(x, params))

    ref = reference_forward(x, params, stride)
    # bf16 MXU inputs + bf16 intermediate plane -> relaxed tolerance (accum stays f32)
    np.testing.assert_allclose(np.asarray(out), np.asarray(ref), rtol=3e-2, atol=3e-2)
    Ho = (H + 2 - 3) // stride + 1
    Wo = (W + 2 - 3) // stride + 1
    assert out.shape == (N, planes, Ho, Wo)


if __name__ == "__main__":
    key = jax.random.PRNGKey(0)
    k1, k2 = jax.random.split(key)
    # projection-shortcut path (in_planes != planes)
    _run_case(k1, N=2, in_planes=4, planes=8, H=16, W=16, stride=1)
    # identity-shortcut path (in_planes == planes, stride == 1)
    _run_case(k2, N=2, in_planes=8, planes=8, H=16, W=16, stride=1)
    print("KERNEL_OK")
</pallas_src>

<mosaic_0001>
module attributes {stable_mosaic.version = 11 : i64} {
  func.func @_basic_block_proj_kernel(%arg0: i32, %arg1: memref<1x18x18x4xbf16, #tpu.memory_space<vmem>>, %arg2: memref<9x4x128xbf16, #tpu.memory_space<vmem>>, %arg3: memref<1x128xf32, #tpu.memory_space<vmem>>, %arg4: memref<9x128x128xbf16, #tpu.memory_space<vmem>>, %arg5: memref<1x128xf32, #tpu.memory_space<vmem>>, %arg6: memref<1x16x16x4xbf16, #tpu.memory_space<vmem>>, %arg7: memref<4x128xbf16, #tpu.memory_space<vmem>>, %arg8: memref<1x128xf32, #tpu.memory_space<vmem>>, %arg9: memref<1x16x16x128xf32, #tpu.memory_space<vmem>>, %arg10: memref<1x18x18x128xbf16, #tpu.memory_space<vmem>>) attributes {dimension_semantics = [#tpu.dimension_semantics<parallel>], iteration_bounds = array<i64: 2>, scalar_prefetch = 0 : i64, scratch_operands = 1 : i64, tpu.core_type = #tpu.core_type<tc>, window_params = [{transform_indices = @transform_0, window_bounds = array<i64: 1, 18, 18, 4>}, {pipeline_mode = #tpu.pipeline_mode<synchronous>, transform_indices = @transform_1, window_bounds = array<i64: 9, 4, 128>}, {pipeline_mode = #tpu.pipeline_mode<synchronous>, transform_indices = @transform_2, window_bounds = array<i64: 1, 128>}, {pipeline_mode = #tpu.pipeline_mode<synchronous>, transform_indices = @transform_3, window_bounds = array<i64: 9, 128, 128>}, {pipeline_mode = #tpu.pipeline_mode<synchronous>, transform_indices = @transform_4, window_bounds = array<i64: 1, 128>}, {transform_indices = @transform_5, window_bounds = array<i64: 1, 16, 16, 4>}, {pipeline_mode = #tpu.pipeline_mode<synchronous>, transform_indices = @transform_6, window_bounds = array<i64: 4, 128>}, {pipeline_mode = #tpu.pipeline_mode<synchronous>, transform_indices = @transform_7, window_bounds = array<i64: 1, 128>}, {transform_indices = @transform_8, window_bounds = array<i64: 1, 16, 16, 128>}]} {
    %cst = arith.constant 0.000000e+00 : f32
    %0 = vector.broadcast %cst : f32 to vector<256x128xf32>
    %c0 = arith.constant 0 : index
    %c0_0 = arith.constant 0 : index
    %c0_1 = arith.constant 0 : index
    %c0_2 = arith.constant 0 : index
    %1 = vector.load %arg1[%c0, %c0_0, %c0_1, %c0_2] : memref<1x18x18x4xbf16, #tpu.memory_space<vmem>>, vector<1x16x16x4xbf16>
    %2 = vector.shape_cast %1 : vector<1x16x16x4xbf16> to vector<16x16x4xbf16>
    %3 = vector.shape_cast %2 : vector<16x16x4xbf16> to vector<256x4xbf16>
    %c0_3 = arith.constant 0 : index
    %c0_4 = arith.constant 0 : index
    %c0_5 = arith.constant 0 : index
    %4 = vector.load %arg2[%c0_3, %c0_4, %c0_5] : memref<9x4x128xbf16, #tpu.memory_space<vmem>>, vector<1x4x128xbf16>
    %5 = vector.shape_cast %4 : vector<1x4x128xbf16> to vector<4x128xbf16>
    %cst_6 = arith.constant dense<0.000000e+00> : vector<256x128xf32>
    %6 = tpu.matmul %3, %5, %cst_6 {dimension_numbers = #tpu.dot_dimension_numbers<[1], [0], [0], [1], [0, 0, 1, 1], [], []>} : vector<256x4xbf16>, vector<4x128xbf16>, vector<256x128xf32> -> vector<256x128xf32>
    %7 = arith.addf %0, %6 : vector<256x128xf32>
    %c0_7 = arith.constant 0 : index
    %c0_8 = arith.constant 0 : index
    %c1 = arith.constant 1 : index
    %c0_9 = arith.constant 0 : index
    %8 = vector.load %arg1[%c0_7, %c0_8, %c1, %c0_9] : memref<1x18x18x4xbf16, #tpu.memory_space<vmem>>, vector<1x16x16x4xbf16>
    %9 = vector.shape_cast %8 : vector<1x16x16x4xbf16> to vector<16x16x4xbf16>
    %10 = vector.shape_cast %9 : vector<16x16x4xbf16> to vector<256x4xbf16>
    %c1_10 = arith.constant 1 : index
    %c0_11 = arith.constant 0 : index
    %c0_12 = arith.constant 0 : index
    %11 = vector.load %arg2[%c1_10, %c0_11, %c0_12] : memref<9x4x128xbf16, #tpu.memory_space<vmem>>, vector<1x4x128xbf16>
    %12 = vector.shape_cast %11 : vector<1x4x128xbf16> to vector<4x128xbf16>
    %cst_13 = arith.constant dense<0.000000e+00> : vector<256x128xf32>
    %13 = tpu.matmul %10, %12, %cst_13 {dimension_numbers = #tpu.dot_dimension_numbers<[1], [0], [0], [1], [0, 0, 1, 1], [], []>} : vector<256x4xbf16>, vector<4x128xbf16>, vector<256x128xf32> -> vector<256x128xf32>
    %14 = arith.addf %7, %13 : vector<256x128xf32>
    %c0_14 = arith.constant 0 : index
    %c0_15 = arith.constant 0 : index
    %c2 = arith.constant 2 : index
    %c0_16 = arith.constant 0 : index
    %15 = vector.load %arg1[%c0_14, %c0_15, %c2, %c0_16] : memref<1x18x18x4xbf16, #tpu.memory_space<vmem>>, vector<1x16x16x4xbf16>
    %16 = vector.shape_cast %15 : vector<1x16x16x4xbf16> to vector<16x16x4xbf16>
    %17 = vector.shape_cast %16 : vector<16x16x4xbf16> to vector<256x4xbf16>
    %c2_17 = arith.constant 2 : index
    %c0_18 = arith.constant 0 : index
    %c0_19 = arith.constant 0 : index
    %18 = vector.load %arg2[%c2_17, %c0_18, %c0_19] : memref<9x4x128xbf16, #tpu.memory_space<vmem>>, vector<1x4x128xbf16>
    %19 = vector.shape_cast %18 : vector<1x4x128xbf16> to vector<4x128xbf16>
    %cst_20 = arith.constant dense<0.000000e+00> : vector<256x128xf32>
    %20 = tpu.matmul %17, %19, %cst_20 {dimension_numbers = #tpu.dot_dimension_numbers<[1], [0], [0], [1], [0, 0, 1, 1], [], []>} : vector<256x4xbf16>, vector<4x128xbf16>, vector<256x128xf32> -> vector<256x128xf32>
    %21 = arith.addf %14, %20 : vector<256x128xf32>
    %c0_21 = arith.constant 0 : index
    %c1_22 = arith.constant 1 : index
    %c0_23 = arith.constant 0 : index
    %c0_24 = arith.constant 0 : index
    %22 = vector.load %arg1[%c0_21, %c1_22, %c0_23, %c0_24] : memref<1x18x18x4xbf16, #tpu.memory_space<vmem>>, vector<1x16x16x4xbf16>
    %23 = vector.shape_cast %22 : vector<1x16x16x4xbf16> to vector<16x16x4xbf16>
    %24 = vector.shape_cast %23 : vector<16x16x4xbf16> to vector<256x4xbf16>
    %c3 = arith.constant 3 : index
    %c0_25 = arith.constant 0 : index
    %c0_26 = arith.constant 0 : index
    %25 = vector.load %arg2[%c3, %c0_25, %c0_26] : memref<9x4x128xbf16, #tpu.memory_space<vmem>>, vector<1x4x128xbf16>
    %26 = vector.shape_cast %25 : vector<1x4x128xbf16> to vector<4x128xbf16>
    %cst_27 = arith.constant dense<0.000000e+00> : vector<256x128xf32>
    %27 = tpu.matmul %24, %26, %cst_27 {dimension_numbers = #tpu.dot_dimension_numbers<[1], [0], [0], [1], [0, 0, 1, 1], [], []>} : vector<256x4xbf16>, vector<4x128xbf16>, vector<256x128xf32> -> vector<256x128xf32>
    %28 = arith.addf %21, %27 : vector<256x128xf32>
    %c0_28 = arith.constant 0 : index
    %c1_29 = arith.constant 1 : index
    %c1_30 = arith.constant 1 : index
    %c0_31 = arith.constant 0 : index
    %29 = vector.load %arg1[%c0_28, %c1_29, %c1_30, %c0_31] : memref<1x18x18x4xbf16, #tpu.memory_space<vmem>>, vector<1x16x16x4xbf16>
    %30 = vector.shape_cast %29 : vector<1x16x16x4xbf16> to vector<16x16x4xbf16>
    %31 = vector.shape_cast %30 : vector<16x16x4xbf16> to vector<256x4xbf16>
    %c4 = arith.constant 4 : index
    %c0_32 = arith.constant 0 : index
    %c0_33 = arith.constant 0 : index
    %32 = vector.load %arg2[%c4, %c0_32, %c0_33] : memref<9x4x128xbf16, #tpu.memory_space<vmem>>, vector<1x4x128xbf16>
    %33 = vector.shape_cast %32 : vector<1x4x128xbf16> to vector<4x128xbf16>
    %cst_34 = arith.constant dense<0.000000e+00> : vector<256x128xf32>
    %34 = tpu.matmul %31, %33, %cst_34 {dimension_numbers = #tpu.dot_dimension_numbers<[1], [0], [0], [1], [0, 0, 1, 1], [], []>} : vector<256x4xbf16>, vector<4x128xbf16>, vector<256x128xf32> -> vector<256x128xf32>
    %35 = arith.addf %28, %34 : vector<256x128xf32>
    %c0_35 = arith.constant 0 : index
    %c1_36 = arith.constant 1 : index
    %c2_37 = arith.constant 2 : index
    %c0_38 = arith.constant 0 : index
    %36 = vector.load %arg1[%c0_35, %c1_36, %c2_37, %c0_38] : memref<1x18x18x4xbf16, #tpu.memory_space<vmem>>, vector<1x16x16x4xbf16>
    %37 = vector.shape_cast %36 : vector<1x16x16x4xbf16> to vector<16x16x4xbf16>
    %38 = vector.shape_cast %37 : vector<16x16x4xbf16> to vector<256x4xbf16>
    %c5 = arith.constant 5 : index
    %c0_39 = arith.constant 0 : index
    %c0_40 = arith.constant 0 : index
    %39 = vector.load %arg2[%c5, %c0_39, %c0_40] : memref<9x4x128xbf16, #tpu.memory_space<vmem>>, vector<1x4x128xbf16>
    %40 = vector.shape_cast %39 : vector<1x4x128xbf16> to vector<4x128xbf16>
    %cst_41 = arith.constant dense<0.000000e+00> : vector<256x128xf32>
    %41 = tpu.matmul %38, %40, %cst_41 {dimension_numbers = #tpu.dot_dimension_numbers<[1], [0], [0], [1], [0, 0, 1, 1], [], []>} : vector<256x4xbf16>, vector<4x128xbf16>, vector<256x128xf32> -> vector<256x128xf32>
    %42 = arith.addf %35, %41 : vector<256x128xf32>
    %c0_42 = arith.constant 0 : index
    %c2_43 = arith.constant 2 : index
    %c0_44 = arith.constant 0 : index
    %c0_45 = arith.constant 0 : index
    %43 = vector.load %arg1[%c0_42, %c2_43, %c0_44, %c0_45] : memref<1x18x18x4xbf16, #tpu.memory_space<vmem>>, vector<1x16x16x4xbf16>
    %44 = vector.shape_cast %43 : vector<1x16x16x4xbf16> to vector<16x16x4xbf16>
    %45 = vector.shape_cast %44 : vector<16x16x4xbf16> to vector<256x4xbf16>
    %c6 = arith.constant 6 : index
    %c0_46 = arith.constant 0 : index
    %c0_47 = arith.constant 0 : index
    %46 = vector.load %arg2[%c6, %c0_46, %c0_47] : memref<9x4x128xbf16, #tpu.memory_space<vmem>>, vector<1x4x128xbf16>
    %47 = vector.shape_cast %46 : vector<1x4x128xbf16> to vector<4x128xbf16>
    %cst_48 = arith.constant dense<0.000000e+00> : vector<256x128xf32>
    %48 = tpu.matmul %45, %47, %cst_48 {dimension_numbers = #tpu.dot_dimension_numbers<[1], [0], [0], [1], [0, 0, 1, 1], [], []>} : vector<256x4xbf16>, vector<4x128xbf16>, vector<256x128xf32> -> vector<256x128xf32>
    %49 = arith.addf %42, %48 : vector<256x128xf32>
    %c0_49 = arith.constant 0 : index
    %c2_50 = arith.constant 2 : index
    %c1_51 = arith.constant 1 : index
    %c0_52 = arith.constant 0 : index
    %50 = vector.load %arg1[%c0_49, %c2_50, %c1_51, %c0_52] : memref<1x18x18x4xbf16, #tpu.memory_space<vmem>>, vector<1x16x16x4xbf16>
    %51 = vector.shape_cast %50 : vector<1x16x16x4xbf16> to vector<16x16x4xbf16>
    %52 = vector.shape_cast %51 : vector<16x16x4xbf16> to vector<256x4xbf16>
    %c7 = arith.constant 7 : index
    %c0_53 = arith.constant 0 : index
    %c0_54 = arith.constant 0 : index
    %53 = vector.load %arg2[%c7, %c0_53, %c0_54] : memref<9x4x128xbf16, #tpu.memory_space<vmem>>, vector<1x4x128xbf16>
    %54 = vector.shape_cast %53 : vector<1x4x128xbf16> to vector<4x128xbf16>
    %cst_55 = arith.constant dense<0.000000e+00> : vector<256x128xf32>
    %55 = tpu.matmul %52, %54, %cst_55 {dimension_numbers = #tpu.dot_dimension_numbers<[1], [0], [0], [1], [0, 0, 1, 1], [], []>} : vector<256x4xbf16>, vector<4x128xbf16>, vector<256x128xf32> -> vector<256x128xf32>
    %56 = arith.addf %49, %55 : vector<256x128xf32>
    %c0_56 = arith.constant 0 : index
    %c2_57 = arith.constant 2 : index
    %c2_58 = arith.constant 2 : index
    %c0_59 = arith.constant 0 : index
    %57 = vector.load %arg1[%c0_56, %c2_57, %c2_58, %c0_59] : memref<1x18x18x4xbf16, #tpu.memory_space<vmem>>, vector<1x16x16x4xbf16>
    %58 = vector.shape_cast %57 : vector<1x16x16x4xbf16> to vector<16x16x4xbf16>
    %59 = vector.shape_cast %58 : vector<16x16x4xbf16> to vector<256x4xbf16>
    %c8 = arith.constant 8 : index
    %c0_60 = arith.constant 0 : index
    %c0_61 = arith.constant 0 : index
    %60 = vector.load %arg2[%c8, %c0_60, %c0_61] : memref<9x4x128xbf16, #tpu.memory_space<vmem>>, vector<1x4x128xbf16>
    %61 = vector.shape_cast %60 : vector<1x4x128xbf16> to vector<4x128xbf16>
    %cst_62 = arith.constant dense<0.000000e+00> : vector<256x128xf32>
    %62 = tpu.matmul %59, %61, %cst_62 {dimension_numbers = #tpu.dot_dimension_numbers<[1], [0], [0], [1], [0, 0, 1, 1], [], []>} : vector<256x4xbf16>, vector<4x128xbf16>, vector<256x128xf32> -> vector<256x128xf32>
    %63 = arith.addf %56, %62 : vector<256x128xf32>
    %c0_63 = arith.constant 0 : index
    %c0_64 = arith.constant 0 : index
    %64 = vector.load %arg3[%c0_63, %c0_64] : memref<1x128xf32, #tpu.memory_space<vmem>>, vector<1x128xf32>
    %65 = vector.broadcast %64 : vector<1x128xf32> to vector<256x128xf32>
    %66 = arith.addf %63, %65 : vector<256x128xf32>
    %cst_65 = arith.constant 0.000000e+00 : f32
    %67 = vector.broadcast %cst_65 : f32 to vector<256x128xf32>
    %68 = arith.maximumf %66, %67 : vector<256x128xf32>
    %cst_66 = arith.constant 0.000000e+00 : bf16
    %69 = vector.broadcast %cst_66 : bf16 to vector<18x18x128xbf16>
    %c0_67 = arith.constant 0 : index
    %c0_68 = arith.constant 0 : index
    %c0_69 = arith.constant 0 : index
    %c0_70 = arith.constant 0 : index
    %70 = vector.load %arg10[%c0_67, %c0_68, %c0_69, %c0_70] : memref<1x18x18x128xbf16, #tpu.memory_space<vmem>>, vector<1x18x18x128xbf16>
    %71 = vector.shape_cast %70 : vector<1x18x18x128xbf16> to vector<18x18x128xbf16>
    %72 = vector.shape_cast %69 : vector<18x18x128xbf16> to vector<1x18x18x128xbf16>
    tpu.vector_store %arg10[%c0_67, %c0_68, %c0_69, %c0_70], %72 {strides = array<i32>} : memref<1x18x18x128xbf16, #tpu.memory_space<vmem>>, vector<1x18x18x128xbf16>,
    %73 = vector.shape_cast %68 : vector<256x128xf32> to vector<16x16x128xf32>
    %74 = arith.truncf %73 : vector<16x16x128xf32> to vector<16x16x128xbf16>
    %c0_71 = arith.constant 0 : index
    %c1_72 = arith.constant 1 : index
    %c1_73 = arith.constant 1 : index
    %c0_74 = arith.constant 0 : index
    %75 = vector.load %arg10[%c0_71, %c1_72, %c1_73, %c0_74] : memref<1x18x18x128xbf16, #tpu.memory_space<vmem>>, vector<1x16x16x128xbf16>
    %76 = vector.shape_cast %75 : vector<1x16x16x128xbf16> to vector<16x16x128xbf16>
    %77 = vector.shape_cast %74 : vector<16x16x128xbf16> to vector<1x16x16x128xbf16>
    tpu.vector_store %arg10[%c0_71, %c1_72, %c1_73, %c0_74], %77 {strides = array<i32>} : memref<1x18x18x128xbf16, #tpu.memory_space<vmem>>, vector<1x16x16x128xbf16>,
    %cst_75 = arith.constant 0.000000e+00 : f32
    %78 = vector.broadcast %cst_75 : f32 to vector<256x128xf32>
    %c0_76 = arith.constant 0 : index
    %c0_77 = arith.constant 0 : index
    %c0_78 = arith.constant 0 : index
    %c0_79 = arith.constant 0 : index
    %79 = vector.load %arg10[%c0_76, %c0_77, %c0_78, %c0_79] : memref<1x18x18x128xbf16, #tpu.memory_space<vmem>>, vector<1x16x16x128xbf16>
    %80 = vector.shape_cast %79 : vector<1x16x16x128xbf16> to vector<16x16x128xbf16>
    %81 = vector.shape_cast %80 : vector<16x16x128xbf16> to vector<256x128xbf16>
    %c0_80 = arith.constant 0 : index
    %c0_81 = arith.constant 0 : index
    %c0_82 = arith.constant 0 : index
    %82 = vector.load %arg4[%c0_80, %c0_81, %c0_82] : memref<9x128x128xbf16, #tpu.memory_space<vmem>>, vector<1x128x128xbf16>
    %83 = vector.shape_cast %82 : vector<1x128x128xbf16> to vector<128x128xbf16>
    %cst_83 = arith.constant dense<0.000000e+00> : vector<256x128xf32>
    %84 = tpu.matmul %81, %83, %cst_83 {dimension_numbers = #tpu.dot_dimension_numbers<[1], [0], [0], [1], [0, 0, 1, 1], [], []>} : vector<256x128xbf16>, vector<128x128xbf16>, vector<256x128xf32> -> vector<256x128xf32>
    %85 = arith.addf %78, %84 : vector<256x128xf32>
    %c0_84 = arith.constant 0 : index
    %c0_85 = arith.constant 0 : index
    %c1_86 = arith.constant 1 : index
    %c0_87 = arith.constant 0 : index
    %86 = vector.load %arg10[%c0_84, %c0_85, %c1_86, %c0_87] : memref<1x18x18x128xbf16, #tpu.memory_space<vmem>>, vector<1x16x16x128xbf16>
    %87 = vector.shape_cast %86 : vector<1x16x16x128xbf16> to vector<16x16x128xbf16>
    %88 = vector.shape_cast %87 : vector<16x16x128xbf16> to vector<256x128xbf16>
    %c1_88 = arith.constant 1 : index
    %c0_89 = arith.constant 0 : index
    %c0_90 = arith.constant 0 : index
    %89 = vector.load %arg4[%c1_88, %c0_89, %c0_90] : memref<9x128x128xbf16, #tpu.memory_space<vmem>>, vector<1x128x128xbf16>
    %90 = vector.shape_cast %89 : vector<1x128x128xbf16> to vector<128x128xbf16>
    %cst_91 = arith.constant dense<0.000000e+00> : vector<256x128xf32>
    %91 = tpu.matmul %88, %90, %cst_91 {dimension_numbers = #tpu.dot_dimension_numbers<[1], [0], [0], [1], [0, 0, 1, 1], [], []>} : vector<256x128xbf16>, vector<128x128xbf16>, vector<256x128xf32> -> vector<256x128xf32>
    %92 = arith.addf %85, %91 : vector<256x128xf32>
    %c0_92 = arith.constant 0 : index
    %c0_93 = arith.constant 0 : index
    %c2_94 = arith.constant 2 : index
    %c0_95 = arith.constant 0 : index
    %93 = vector.load %arg10[%c0_92, %c0_93, %c2_94, %c0_95] : memref<1x18x18x128xbf16, #tpu.memory_space<vmem>>, vector<1x16x16x128xbf16>
    %94 = vector.shape_cast %93 : vector<1x16x16x128xbf16> to vector<16x16x128xbf16>
    %95 = vector.shape_cast %94 : vector<16x16x128xbf16> to vector<256x128xbf16>
    %c2_96 = arith.constant 2 : index
    %c0_97 = arith.constant 0 : index
    %c0_98 = arith.constant 0 : index
    %96 = vector.load %arg4[%c2_96, %c0_97, %c0_98] : memref<9x128x128xbf16, #tpu.memory_space<vmem>>, vector<1x128x128xbf16>
    %97 = vector.shape_cast %96 : vector<1x128x128xbf16> to vector<128x128xbf16>
    %cst_99 = arith.constant dense<0.000000e+00> : vector<256x128xf32>
    %98 = tpu.matmul %95, %97, %cst_99 {dimension_numbers = #tpu.dot_dimension_numbers<[1], [0], [0], [1], [0, 0, 1, 1], [], []>} : vector<256x128xbf16>, vector<128x128xbf16>, vector<256x128xf32> -> vector<256x128xf32>
    %99 = arith.addf %92, %98 : vector<256x128xf32>
    %c0_100 = arith.constant 0 : index
    %c1_101 = arith.constant 1 : index
    %c0_102 = arith.constant 0 : index
    %c0_103 = arith.constant 0 : index
    %100 = vector.load %arg10[%c0_100, %c1_101, %c0_102, %c0_103] : memref<1x18x18x128xbf16, #tpu.memory_space<vmem>>, vector<1x16x16x128xbf16>
    %101 = vector.shape_cast %100 : vector<1x16x16x128xbf16> to vector<16x16x128xbf16>
    %102 = vector.shape_cast %101 : vector<16x16x128xbf16> to vector<256x128xbf16>
    %c3_104 = arith.constant 3 : index
    %c0_105 = arith.constant 0 : index
    %c0_106 = arith.constant 0 : index
    %103 = vector.load %arg4[%c3_104, %c0_105, %c0_106] : memref<9x128x128xbf16, #tpu.memory_space<vmem>>, vector<1x128x128xbf16>
    %104 = vector.shape_cast %103 : vector<1x128x128xbf16> to vector<128x128xbf16>
    %cst_107 = arith.constant dense<0.000000e+00> : vector<256x128xf32>
    %105 = tpu.matmul %102, %104, %cst_107 {dimension_numbers = #tpu.dot_dimension_numbers<[1], [0], [0], [1], [0, 0, 1, 1], [], []>} : vector<256x128xbf16>, vector<128x128xbf16>, vector<256x128xf32> -> vector<256x128xf32>
    %106 = arith.addf %99, %105 : vector<256x128xf32>
    %c0_108 = arith.constant 0 : index
    %c1_109 = arith.constant 1 : index
    %c1_110 = arith.constant 1 : index
    %c0_111 = arith.constant 0 : index
    %107 = vector.load %arg10[%c0_108, %c1_109, %c1_110, %c0_111] : memref<1x18x18x128xbf16, #tpu.memory_space<vmem>>, vector<1x16x16x128xbf16>
    %108 = vector.shape_cast %107 : vector<1x16x16x128xbf16> to vector<16x16x128xbf16>
    %109 = vector.shape_cast %108 : vector<16x16x128xbf16> to vector<256x128xbf16>
    %c4_112 = arith.constant 4 : index
    %c0_113 = arith.constant 0 : index
    %c0_114 = arith.constant 0 : index
    %110 = vector.load %arg4[%c4_112, %c0_113, %c0_114] : memref<9x128x128xbf16, #tpu.memory_space<vmem>>, vector<1x128x128xbf16>
    %111 = vector.shape_cast %110 : vector<1x128x128xbf16> to vector<128x128xbf16>
    %cst_115 = arith.constant dense<0.000000e+00> : vector<256x128xf32>
    %112 = tpu.matmul %109, %111, %cst_115 {dimension_numbers = #tpu.dot_dimension_numbers<[1], [0], [0], [1], [0, 0, 1, 1], [], []>} : vector<256x128xbf16>, vector<128x128xbf16>, vector<256x128xf32> -> vector<256x128xf32>
    %113 = arith.addf %106, %112 : vector<256x128xf32>
    %c0_116 = arith.constant 0 : index
    %c1_117 = arith.constant 1 : index
    %c2_118 = arith.constant 2 : index
    %c0_119 = arith.constant 0 : index
    %114 = vector.load %arg10[%c0_116, %c1_117, %c2_118, %c0_119] : memref<1x18x18x128xbf16, #tpu.memory_space<vmem>>, vector<1x16x16x128xbf16>
    %115 = vector.shape_cast %114 : vector<1x16x16x128xbf16> to vector<16x16x128xbf16>
    %116 = vector.shape_cast %115 : vector<16x16x128xbf16> to vector<256x128xbf16>
    %c5_120 = arith.constant 5 : index
    %c0_121 = arith.constant 0 : index
    %c0_122 = arith.constant 0 : index
    %117 = vector.load %arg4[%c5_120, %c0_121, %c0_122] : memref<9x128x128xbf16, #tpu.memory_space<vmem>>, vector<1x128x128xbf16>
    %118 = vector.shape_cast %117 : vector<1x128x128xbf16> to vector<128x128xbf16>
    %cst_123 = arith.constant dense<0.000000e+00> : vector<256x128xf32>
    %119 = tpu.matmul %116, %118, %cst_123 {dimension_numbers = #tpu.dot_dimension_numbers<[1], [0], [0], [1], [0, 0, 1, 1], [], []>} : vector<256x128xbf16>, vector<128x128xbf16>, vector<256x128xf32> -> vector<256x128xf32>
    %120 = arith.addf %113, %119 : vector<256x128xf32>
    %c0_124 = arith.constant 0 : index
    %c2_125 = arith.constant 2 : index
    %c0_126 = arith.constant 0 : index
    %c0_127 = arith.constant 0 : index
    %121 = vector.load %arg10[%c0_124, %c2_125, %c0_126, %c0_127] : memref<1x18x18x128xbf16, #tpu.memory_space<vmem>>, vector<1x16x16x128xbf16>
    %122 = vector.shape_cast %121 : vector<1x16x16x128xbf16> to vector<16x16x128xbf16>
    %123 = vector.shape_cast %122 : vector<16x16x128xbf16> to vector<256x128xbf16>
    %c6_128 = arith.constant 6 : index
    %c0_129 = arith.constant 0 : index
    %c0_130 = arith.constant 0 : index
    %124 = vector.load %arg4[%c6_128, %c0_129, %c0_130] : memref<9x128x128xbf16, #tpu.memory_space<vmem>>, vector<1x128x128xbf16>
    %125 = vector.shape_cast %124 : vector<1x128x128xbf16> to vector<128x128xbf16>
    %cst_131 = arith.constant dense<0.000000e+00> : vector<256x128xf32>
    %126 = tpu.matmul %123, %125, %cst_131 {dimension_numbers = #tpu.dot_dimension_numbers<[1], [0], [0], [1], [0, 0, 1, 1], [], []>} : vector<256x128xbf16>, vector<128x128xbf16>, vector<256x128xf32> -> vector<256x128xf32>
    %127 = arith.addf %120, %126 : vector<256x128xf32>
    %c0_132 = arith.constant 0 : index
    %c2_133 = arith.constant 2 : index
    %c1_134 = arith.constant 1 : index
    %c0_135 = arith.constant 0 : index
    %128 = vector.load %arg10[%c0_132, %c2_133, %c1_134, %c0_135] : memref<1x18x18x128xbf16, #tpu.memory_space<vmem>>, vector<1x16x16x128xbf16>
    %129 = vector.shape_cast %128 : vector<1x16x16x128xbf16> to vector<16x16x128xbf16>
    %130 = vector.shape_cast %129 : vector<16x16x128xbf16> to vector<256x128xbf16>
    %c7_136 = arith.constant 7 : index
    %c0_137 = arith.constant 0 : index
    %c0_138 = arith.constant 0 : index
    %131 = vector.load %arg4[%c7_136, %c0_137, %c0_138] : memref<9x128x128xbf16, #tpu.memory_space<vmem>>, vector<1x128x128xbf16>
    %132 = vector.shape_cast %131 : vector<1x128x128xbf16> to vector<128x128xbf16>
    %cst_139 = arith.constant dense<0.000000e+00> : vector<256x128xf32>
    %133 = tpu.matmul %130, %132, %cst_139 {dimension_numbers = #tpu.dot_dimension_numbers<[1], [0], [0], [1], [0, 0, 1, 1], [], []>} : vector<256x128xbf16>, vector<128x128xbf16>, vector<256x128xf32> -> vector<256x128xf32>
    %134 = arith.addf %127, %133 : vector<256x128xf32>
    %c0_140 = arith.constant 0 : index
    %c2_141 = arith.constant 2 : index
    %c2_142 = arith.constant 2 : index
    %c0_143 = arith.constant 0 : index
    %135 = vector.load %arg10[%c0_140, %c2_141, %c2_142, %c0_143] : memref<1x18x18x128xbf16, #tpu.memory_space<vmem>>, vector<1x16x16x128xbf16>
    %136 = vector.shape_cast %135 : vector<1x16x16x128xbf16> to vector<16x16x128xbf16>
    %137 = vector.shape_cast %136 : vector<16x16x128xbf16> to vector<256x128xbf16>
    %c8_144 = arith.constant 8 : index
    %c0_145 = arith.constant 0 : index
    %c0_146 = arith.constant 0 : index
    %138 = vector.load %arg4[%c8_144, %c0_145, %c0_146] : memref<9x128x128xbf16, #tpu.memory_space<vmem>>, vector<1x128x128xbf16>
    %139 = vector.shape_cast %138 : vector<1x128x128xbf16> to vector<128x128xbf16>
    %cst_147 = arith.constant dense<0.000000e+00> : vector<256x128xf32>
    %140 = tpu.matmul %137, %139, %cst_147 {dimension_numbers = #tpu.dot_dimension_numbers<[1], [0], [0], [1], [0, 0, 1, 1], [], []>} : vector<256x128xbf16>, vector<128x128xbf16>, vector<256x128xf32> -> vector<256x128xf32>
    %141 = arith.addf %134, %140 : vector<256x128xf32>
    %c0_148 = arith.constant 0 : index
    %c0_149 = arith.constant 0 : index
    %c0_150 = arith.constant 0 : index
    %c0_151 = arith.constant 0 : index
    %142 = vector.load %arg6[%c0_148, %c0_149, %c0_150, %c0_151] : memref<1x16x16x4xbf16, #tpu.memory_space<vmem>>, vector<1x16x16x4xbf16>
    %143 = vector.shape_cast %142 : vector<1x16x16x4xbf16> to vector<16x16x4xbf16>
    %144 = vector.shape_cast %143 : vector<16x16x4xbf16> to vector<256x4xbf16>
    %c0_152 = arith.constant 0 : index
    %c0_153 = arith.constant 0 : index
    %145 = vector.load %arg7[%c0_152, %c0_153] : memref<4x128xbf16, #tpu.memory_space<vmem>>, vector<4x128xbf16>
    %cst_154 = arith.constant dense<0.000000e+00> : vector<256x128xf32>
    %146 = tpu.matmul %144, %145, %cst_154 {dimension_numbers = #tpu.dot_dimension_numbers<[1], [0], [0], [1], [0, 0, 1, 1], [], []>} : vector<256x4xbf16>, vector<4x128xbf16>, vector<256x128xf32> -> vector<256x128xf32>
    %147 = arith.addf %141, %146 : vector<256x128xf32>
    %c0_155 = arith.constant 0 : index
    %c0_156 = arith.constant 0 : index
    %148 = vector.load %arg5[%c0_155, %c0_156] : memref<1x128xf32, #tpu.memory_space<vmem>>, vector<1x128xf32>
    %149 = vector.broadcast %148 : vector<1x128xf32> to vector<256x128xf32>
    %150 = arith.addf %147, %149 : vector<256x128xf32>
    %c0_157 = arith.constant 0 : index
    %c0_158 = arith.constant 0 : index
    %151 = vector.load %arg8[%c0_157, %c0_158] : memref<1x128xf32, #tpu.memory_space<vmem>>, vector<1x128xf32>
    %152 = vector.broadcast %151 : vector<1x128xf32> to vector<256x128xf32>
    %153 = arith.addf %150, %152 : vector<256x128xf32>
    %cst_159 = arith.constant 0.000000e+00 : f32
    %154 = vector.broadcast %cst_159 : f32 to vector<256x128xf32>
    %155 = arith.maximumf %153, %154 : vector<256x128xf32>
    %156 = vector.shape_cast %155 : vector<256x128xf32> to vector<16x16x128xf32>
    %c0_160 = arith.constant 0 : index
    %c0_161 = arith.constant 0 : index
    %c0_162 = arith.constant 0 : index
    %c0_163 = arith.constant 0 : index
    %157 = vector.load %arg9[%c0_160, %c0_161, %c0_162, %c0_163] : memref<1x16x16x128xf32, #tpu.memory_space<vmem>>, vector<1x16x16x128xf32>
    %158 = vector.shape_cast %157 : vector<1x16x16x128xf32> to vector<16x16x128xf32>
    %159 = vector.shape_cast %156 : vector<16x16x128xf32> to vector<1x16x16x128xf32>
    tpu.vector_store %arg9[%c0_160, %c0_161, %c0_162, %c0_163], %159 {strides = array<i32>} : memref<1x16x16x128xf32, #tpu.memory_space<vmem>>, vector<1x16x16x128xf32>,
    return
  }
  func.func @transform_0(%arg0: i32) -> (i32, i32, i32, i32) {
    %c0_i32 = arith.constant 0 : i32
    %c0_i32_0 = arith.constant 0 : i32
    %c0_i32_1 = arith.constant 0 : i32
    %c0_i32_2 = arith.constant 0 : i32
    return %arg0, %c0_i32, %c0_i32_0, %c0_i32_1 : i32, i32, i32, i32
  }
  func.func @transform_1(%arg0: i32) -> (i32, i32, i32) {
    %c0_i32 = arith.constant 0 : i32
    %c0_i32_0 = arith.constant 0 : i32
    %c0_i32_1 = arith.constant 0 : i32
    %c0_i32_2 = arith.constant 0 : i32
    return %c0_i32, %c0_i32_0, %c0_i32_1 : i32, i32, i32
  }
  func.func @transform_2(%arg0: i32) -> (i32, i32) {
    %c0_i32 = arith.constant 0 : i32
    %c0_i32_0 = arith.constant 0 : i32
    %c0_i32_1 = arith.constant 0 : i32
    return %c0_i32, %c0_i32_0 : i32, i32
  }
  func.func @transform_3(%arg0: i32) -> (i32, i32, i32) {
    %c0_i32 = arith.constant 0 : i32
    %c0_i32_0 = arith.constant 0 : i32
    %c0_i32_1 = arith.constant 0 : i32
    %c0_i32_2 = arith.constant 0 : i32
    return %c0_i32, %c0_i32_0, %c0_i32_1 : i32, i32, i32
  }
  func.func @transform_4(%arg0: i32) -> (i32, i32) {
    %c0_i32 = arith.constant 0 : i32
    %c0_i32_0 = arith.constant 0 : i32
    %c0_i32_1 = arith.constant 0 : i32
    return %c0_i32, %c0_i32_0 : i32, i32
  }
  func.func @transform_5(%arg0: i32) -> (i32, i32, i32, i32) {
    %c0_i32 = arith.constant 0 : i32
    %c0_i32_0 = arith.constant 0 : i32
    %c0_i32_1 = arith.constant 0 : i32
    %c0_i32_2 = arith.constant 0 : i32
    return %arg0, %c0_i32, %c0_i32_0, %c0_i32_1 : i32, i32, i32, i32
  }
  func.func @transform_6(%arg0: i32) -> (i32, i32) {
    %c0_i32 = arith.constant 0 : i32
    %c0_i32_0 = arith.constant 0 : i32
    %c0_i32_1 = arith.constant 0 : i32
    return %c0_i32, %c0_i32_0 : i32, i32
  }
  func.func @transform_7(%arg0: i32) -> (i32, i32) {
    %c0_i32 = arith.constant 0 : i32
    %c0_i32_0 = arith.constant 0 : i32
    %c0_i32_1 = arith.constant 0 : i32
    return %c0_i32, %c0_i32_0 : i32, i32
  }
  func.func @transform_8(%arg0: i32) -> (i32, i32, i32, i32) {
    %c0_i32 = arith.constant 0 : i32
    %c0_i32_0 = arith.constant 0 : i32
    %c0_i32_1 = arith.constant 0 : i32
    %c0_i32_2 = arith.constant 0 : i32
    return %arg0, %c0_i32, %c0_i32_0, %c0_i32_1 : i32, i32, i32, i32
  }
}

</mosaic_0001>

<bundles_post_ra>
// kernel: basic_block_forward.1
= control target key start
LH: loop header
LB: loop body
LE: loop exit
PB: predicated region body
PF: predicated region fallthrough
CT: control target
= control target key end

     0   :  { %s13392_s27 = smov 0   ;;  %s18665_s0 = inlined_call_operand.vmem [shape: bf16[2,18,18,4], index: 0, kind: input, shape index: {}]   ;;  %s18666_s1 = inlined_call_operand.vmem [shape: bf16[9,4,128], index: 1, kind: input, shape index: {}]   ;;  %s18667_s2 = inlined_call_operand.vmem [shape: f32[1,128], index: 2, kind: input, shape index: {}]   ;;  %s18668_s3 = inlined_call_operand.vmem [shape: bf16[9,128,128], index: 3, kind: input, shape index: {}]   ;;  %s18669_s4 = inlined_call_operand.vmem [shape: f32[1,128], index: 4, kind: input, shape index: {}]   ;;  %s18670_s5 = inlined_call_operand.vmem [shape: bf16[2,16,16,4], index: 5, kind: input, shape index: {}]   ;;  %s18671_s6 = inlined_call_operand.vmem [shape: bf16[4,128], index: 6, kind: input, shape index: {}]   ;;  %s18672_s7 = inlined_call_operand.vmem [shape: f32[1,128], index: 7, kind: input, shape index: {}]   ;;  %s18673_s8 = inlined_call_operand.vmem [shape: f32[2,16,16,128], index: 8, kind: output, shape index: {}]  }
   0x1 LB: > { %s10916_s28 = sadd.s32 4294967295, %s13344_s27   ;;  %p10920_p0 = scmp.ge.s32.totalorder %s13344_s27, 1  ;;  %s13344_s27 = sphi %s13392_s27, %s18_s27  }
   0x2   : > { %p272_p1 = scmp.lt.s32.totalorder %s13344_s27, 3 }
   0x4   : > { %p273_p2 = pnand %p10920_p0, %p272_p1 }
   0x6   : > { %276 = sbr.rel (%p273_p2) target bundleno = 1129 (0x469), region = 52 }
   0xb   : > { %v10926_v0 = vld [vmem:[%s18666_s1 + $0x2] sm:$0x3]  ;;  %vm862_vm0 = vcmask 1041408   ;;  %p311_p3 = scmp.lt.s32.totalorder %s10916_s28, 1  ;;  %v359_v2 = vld [vmem:[%s18666_s1] sm:$0x3] }
   0xc   : > { %13118 = vmatprep.subr.msk.bf16.mxu1 %vm862_vm0, %v10926_v0  ;;  %13117 = vmatprep.subr.msk.bf16.mxu0 %vm862_vm0, %v10926_v0  ;;  %v864_v1 = vsel %vm862_vm0, %v10926_v0, 0  ;;  %v11007_v3 = vld [vmem:[%s18666_s1 + $0x4] sm:$0x3]  ;;  %vm376_vm1 = vsmask.f32 3328  ;;  %v13418_v4 = vsel %vm862_vm0, %v359_v2, 0 }
   0xd   : > { %13116 = vmatpush3.bf16.msra.mxu1 %v864_v1  ;;  %12344 = vmatpush3.bf16.msra.mxu0 %v864_v1  ;;  %s19118_s28 = smov (!%p311_p3, %s10916_s28), 1  ;;  %vm377_vm2 = vsmask.f32 7440  ;;  %vm813_vm3 = vcmask 31744   ;;  %v13449_v16 = vsel %vm862_vm0, %v11007_v3, 0  ;;  %v18722_v31 = vmov 0 }
   0xe   : > { %13119 = vmatprep.subr.msk.bf16.mxu1 %vm862_vm0, %v359_v2  ;;  %13120 = vmatprep.subr.msk.bf16.mxu0 %vm862_vm0, %v11007_v3  ;;  %s13128_s13 = smul.u32 216, %s19118_s28  ;;  %vm13464_vm4 = vmor %vm376_vm1, %vm377_vm2  ;;  %vm1367_vm5 = vcmask 1042432   ;;  %vm1368_vm6 = vcmask 1046532   ;;  %vm5431_vm8 = vcmask 1043456   ;;  %vm5432_vm9 = vsmask.f32 7938 }
   0xf   : > { %v18723_v31 = vsel %vm13464_vm4, 4294967295, %v18722_v31  ;;  %vm13750_vm7 = vmor %vm1367_vm5, %vm1368_vm6  ;;  %vm5107_vm10 = vsmask.f32 256  ;;  %vm5108_vm11 = vsmask.f32 4368  ;;  %vm5438_vm12 = vcmask 1040384  }
  0x10   : > { %s13423_s16 = scalar_lea.vmem %s18665_s0, %s13128_s13  ;;  %18724 = vst [vmem:[#allocation3_spill] sm:$0xff] %v18723_v31  ;;  %vm16079_vm13 = vmand %vm5431_vm8, %vm5432_vm9  ;;  %s11923_s29 = sshll.u32 %s19118_s28, 7 }
  0x11   : > { %v13426_v5 = vld [vmem:[%s13423_s16] sm:$0xf]  ;;  %v13429_v6 = vld [vmem:[%s13423_s16 + $0x4] sm:$0xf]  ;;  %v13432_v7 = vld [vmem:[%s13423_s16 + $0x8] sm:$0x1]  ;;  %s17226_s10 = scalar_lea.vmem %s18670_s5, %s11923_s29 }
  0x12   : > { %v380_v8 = vshrl.u32 %v13426_v5, 16  ;;  %v383_v9 = vshll.u32 %v13426_v5, 16  ;;  %v389_v10 = vshll.u32 %v13429_v6, 16  ;;  %v393_v11 = vshrl.u32 %v13429_v6, 16  ;;  %v13439_v12 = vld [vmem:[%s13423_s16 + $0x60] sm:$0xf]  ;;  %vm16092_vm14 = vmor %vm5107_vm10, %vm5108_vm11 }
  0x13   : > { %v399_v13 = vshll.u32 %v13432_v7, 16  ;;  %v13443_v14 = vld [vmem:[%s13423_s16 + $0x64] sm:$0xf]  ;;  %v13446_v15 = vld [vmem:[%s13423_s16 + $0x68] sm:$0x1]  ;;  %v572_v22 = vshrl.u32 %v13439_v12, 16  ;;  %vm16098_vm15 = vmand %vm5438_vm12, %vm5107_vm10 }
  0x14   : > { %v382_v17 = vrot.slane %v380_v8, 4  ;;  %v385_v18 = vrot.slane %v383_v9, 5  ;;  %v391_v19 = vrot.slane %v389_v10, 5  ;;  %v395_v20 = vrot.slane %v393_v11, 4  ;;  %v13457_v29 = vld [vmem:[%s13423_s16 + $0xc] sm:$0xf] }
  0x15   : > { %v401_v21 = vrot.slane %v399_v13, 5  ;;  %v575_v23 = vshll.u32 %v13439_v12, 16  ;;  %v581_v24 = vshll.u32 %v13443_v14, 16  ;;  %v585_v27 = vshrl.u32 %v13443_v14, 16  ;;  %v13460_v30 = vld [vmem:[%s13423_s16 + $0x10] sm:$0xf] }
  0x16   : > { %v386_v25 = vor.u32 %v385_v18, %v382_v17  ;;  %v396_v26 = vor.u32 %v395_v20, %v391_v19  ;;  %v591_v28 = vshll.u32 %v13446_v15, 16  ;;  %v574_v33 = vrot.slane %v572_v22, 4  ;;  %v13470_v41 = vld [vmem:[%s13423_s16 + $0x14] sm:$0x1]  ;;  %v13481_v53 = vld [vmem:[%s13423_s16 + $0x6c] sm:$0xf] }
  0x17   : > { %v577_v34 = vrot.slane %v575_v23, 5  ;;  %v583_v35 = vrot.slane %v581_v24, 5  ;;  %v587_v38 = vrot.slane %v585_v27, 4  ;;  %v404_v42 = vshrl.u32 %v13457_v29, 16  ;;  %v13485_v58 = vld [vmem:[%s13423_s16 + $0x70] sm:$0xf] }
  0x18   : > { %v387_v36 = vrot.slane %v386_v25, 4  ;;  %v397_v37 = vrot.slane %v396_v26, 4  ;;  %v593_v39 = vrot.slane %v591_v28, 5  ;;  %v407_v43 = vshll.u32 %v13457_v29, 16  ;;  %v13493_v63 = vld [vmem:[%s13423_s16 + $0x74] sm:$0x1] }
  0x19   : > { %v578_v40 = vor.u32 %v577_v34, %v574_v33  ;;  %v413_v44 = vshll.u32 %v13460_v30, 16  ;;  %v588_v47 = vor.u32 %v587_v38, %v583_v35  ;;  %v417_v48 = vshrl.u32 %v13460_v30, 16  ;;  %v13499_v8 = vld [vmem:[%s13423_s16 + $0x18] sm:$0xf]  ;;  %v13512_v25 = vld [vmem:[%s13423_s16 + $0x20] sm:$0x1] }
  0x1a   : > { %v392_v45 = vsel %vm13464_vm4, %v387_v36, %v391_v19  ;;  %v402_v46 = vsel %vm13464_vm4, %v397_v37, %v401_v21  ;;  %v406_v51 = vrot.slane %v404_v42, 4  ;;  %v409_v52 = vrot.slane %v407_v43, 5  ;;  %v13506_v21 = vld [vmem:[%s13423_s16 + $0x1c] sm:$0xf]  ;;  %s11924_s12 = sshll.u32 %s19118_s28, 8 }
  0x1b   : > { %v10927_v49 = vcombine.low %v392_v45, %v402_v46  ;;  %v579_v50 = vrot.slane %v578_v40, 4  ;;  %v589_v54 = vrot.slane %v588_v47, 4  ;;  %v415_v55 = vrot.slane %v413_v44, 5  ;;  %v13525_v40 = vld [vmem:[%s18666_s1 + $0x8] sm:$0x3]  ;;  %s18491_s14 = scalar_lea.vmem %s18673_s8, %s11924_s12 }
  0x1c   : > { %v419_v56 = vrot.slane %v417_v48, 4  ;;  %v423_v57 = vshll.u32 %v13470_v41, 16  ;;  %v410_v60 = vor.u32 %v409_v52, %v406_v51  ;;  %v596_v3 = vshrl.u32 %v13481_v53, 16  ;;  %v13530_v46 = vld [vmem:[%s13423_s16 + $0x7c] sm:$0xf] }
  0x1d   : > { %12345 = vmatprep.mubr.msk.bf16.mxu0 %vm813_vm3, %v10927_v49  ;;  %v584_v59 = vsel %vm13464_vm4, %v579_v50, %v583_v35  ;;  %v594_v0 = vsel %vm13464_vm4, %v589_v54, %v593_v39  ;;  %v599_v11 = vshll.u32 %v13481_v53, 16  ;;  %v605_v13 = vshll.u32 %v13485_v58, 16  ;;  %v13519_v35 = vld [vmem:[%s13423_s16 + $0x78] sm:$0xf] }
  0x1e   : > { %v420_v1 = vor.u32 %v419_v56, %v415_v55  ;;  %v425_v2 = vrot.slane %v423_v57, 5  ;;  %v10935_v9 = vcombine.low %v584_v59, %v594_v0  ;;  %v411_v10 = vrot.slane %v410_v60, 4  ;;  %v13537_v56 = vld [vmem:[%s13423_s16 + $0x80] sm:$0x1] }
  0x1f   : > { %v598_v18 = vrot.slane %v596_v3, 4  ;;  %v609_v19 = vshrl.u32 %v13485_v58, 16  ;;  %v615_v20 = vshll.u32 %v13493_v63, 16  ;;  %v601_v23 = vrot.slane %v599_v11, 5  ;;  %18725 = vst [vmem:[#allocation4_spill] sm:$0xff] %v13537_v56 }
  0x20   : > { %v421_v17 = vrot.slane %v420_v1, 4  ;;  %12361 = vmatprep.mubr.msk.bf16.mxu1 %vm813_vm3, %v10935_v9  ;;  %v416_v22 = vsel %vm13464_vm4, %v411_v10, %v415_v55  ;;  %v607_v24 = vrot.slane %v605_v13, 5  ;;  %v428_v26 = vshrl.u32 %v13499_v8, 16  ;;  %v13543_v1 = vld [vmem:[%s13423_s16 + $0x24] sm:$0xf] }
  0x21   : > { %v611_v28 = vrot.slane %v609_v19, 4  ;;  %v617_v33 = vrot.slane %v615_v20, 5  ;;  %v431_v34 = vshll.u32 %v13499_v8, 16  ;;  %v602_v37 = vor.u32 %v601_v23, %v598_v18  ;;  %v13551_v10 = vld [vmem:[%s13423_s16 + $0x28] sm:$0xf] }
  0x22   : > { %v426_v27 = vsel %vm13464_vm4, %v421_v17, %v425_v2  ;;  %v430_v38 = vrot.slane %v428_v26, 4  ;;  %v437_v39 = vshll.u32 %v13506_v21, 16  ;;  %v441_v44 = vshrl.u32 %v13506_v21, 16  ;;  %v13557_v19 = vld [vmem:[%s18666_s1 + $0x6] sm:$0x3] }
  0x23   : > { %v10928_v36 = vcombine.low %v416_v22, %v426_v27  ;;  %v612_v42 = vor.u32 %v611_v28, %v607_v24  ;;  %v433_v43 = vrot.slane %v431_v34, 5  ;;  %v447_v45 = vshll.u32 %v13512_v25, 16 }
  0x24   : > { %v603_v47 = vrot.slane %v602_v37, 4  ;;  %v439_v48 = vrot.slane %v437_v39, 5  ;;  %v620_v49 = vshrl.u32 %v13519_v35, 16  ;;  %v623_v50 = vshll.u32 %v13519_v35, 16 }
  0x25   : > { %12346 = vmatmul.mubr.msk.bf16.vlgmr.msra.gmra.mxu0 %vm813_vm3, %v10928_v36  ;;  %v613_v51 = vrot.slane %v612_v42, 4  ;;  %v434_v52 = vor.u32 %v433_v43, %v430_v38  ;;  %v443_v54 = vrot.slane %v441_v44, 4  ;;  %v449_v55 = vrot.slane %v447_v45, 5  ;;  %v13569_v36 = vld [vmem:[%s13423_s16 + $0x84] sm:$0xf] }
  0x26   : > { %12412 = vmatpush3.bf16.msra.mxu0 %v13449_v16  ;;  %v608_v57 = vsel %vm13464_vm4, %v603_v47, %v607_v24  ;;  %v622_v59 = vrot.slane %v620_v49, 4  ;;  %v625_v60 = vrot.slane %v623_v50, 5  ;;  %v629_v0 = vshll.u32 %v13530_v46, 16  ;;  %v13562_v24 = vld [vmem:[%s13423_s16 + $0x2c] sm:$0x1] }
  0x27   : > { %13122 = vmatprep.subr.msk.bf16.mxu0 %vm862_vm0, %v13525_v40  ;;  %v618_v16 = vsel %vm13464_vm4, %v613_v51, %v617_v33  ;;  %v435_v2 = vrot.slane %v434_v52, 4  ;;  %v444_v3 = vor.u32 %v443_v54, %v439_v48  ;;  %v633_v9 = vshrl.u32 %v13530_v46, 16  ;;  %v13576_v43 = vld [vmem:[%s13423_s16 + $0x88] sm:$0xf]  ;;  %v13584_v51 = vld [vmem:[%s13423_s16 + $0x8c] sm:$0x1] }
  0x28   : > { %v10936_v11 = vcombine.low %v608_v57, %v618_v16  ;;  %v626_v13 = vor.u32 %v625_v60, %v622_v59  ;;  %v631_v17 = vrot.slane %v629_v0, 5  ;;  %v639_v18 = vshll.u32 %v13537_v56, 16  ;;  %18726 = vst [vmem:[#allocation5_spill] sm:$0xff] %v13584_v51  ;;  %v13592_v60 = vld [vmem:[%s13423_s16 + $0x30] sm:$0xf] }
  0x29   : > { %v440_v20 = vsel %vm13464_vm4, %v435_v2, %v439_v48  ;;  %v445_v22 = vrot.slane %v444_v3, 4  ;;  %v635_v23 = vrot.slane %v633_v9, 4  ;;  %v452_v26 = vshrl.u32 %v13543_v1, 16  ;;  %v13597_v9 = vld [vmem:[%s13423_s16 + $0x34] sm:$0xf] }
  0x2a   : > { %12362 = vmatmul.mubr.msk.bf16.vlgmr.msra.gmra.mxu1 %vm813_vm3, %v10936_v11  ;;  %v627_v27 = vrot.slane %v626_v13, 4  ;;  %v641_v28 = vrot.slane %v639_v18, 5  ;;  %v455_v33 = vshll.u32 %v13543_v1, 16  ;;  %v461_v34 = vshll.u32 %v13551_v10, 16 }
  0x2b   : > { %12378 = vmatpush3.bf16.msra.mxu1 %v13418_v4  ;;  %v450_v37 = vsel %vm13464_vm4, %v445_v22, %v449_v55  ;;  %v636_v38 = vor.u32 %v635_v23, %v631_v17  ;;  %v454_v39 = vrot.slane %v452_v26, 4  ;;  %v465_v42 = vshrl.u32 %v13551_v10, 16 }
  0x2c   : > { %v10929_v44 = vcombine.low %v440_v20, %v450_v37  ;;  %v632_v45 = vsel %vm13464_vm4, %v627_v27, %v631_v17  ;;  %v457_v47 = vrot.slane %v455_v33, 5  ;;  %v463_v48 = vrot.slane %v461_v34, 5  ;;  %13121 = vmatprep.subr.msk.bf16.mxu1 %vm862_vm0, %v13557_v19  ;;  %v13605_v33 = vld [vmem:[%s13423_s16 + $0x38] sm:$0x1] }
  0x2d   : > { %v637_v4 = vrot.slane %v636_v38, 4  ;;  %v467_v49 = vrot.slane %v465_v42, 4  ;;  %v471_v50 = vshll.u32 %v13562_v24, 16  ;;  %v644_v52 = vshrl.u32 %v13569_v36, 16  ;;  %v13610_v38 = vld [vmem:[%s13423_s16 + $0x90] sm:$0xf] }
  0x2e   : > { %12349 = vmatprep.mubr.msk.bf16.mxu0 %vm813_vm3, %v10929_v44  ;;  %v458_v54 = vor.u32 %v457_v47, %v454_v39  ;;  %v647_v55 = vshll.u32 %v13569_v36, 16  ;;  %v653_v57 = vshll.u32 %v13576_v43, 16  ;;  %v657_v59 = vshrl.u32 %v13576_v43, 16  ;;  %18727 = vst [vmem:[#allocation6_spill] sm:$0xff] %v13610_v38  ;;  %v13615_v47 = vld [vmem:[%s13423_s16 + $0x94] sm:$0xf] }
  0x2f   : > { %v642_v0 = vsel %vm13464_vm4, %v637_v4, %v641_v28  ;;  %v468_v16 = vor.u32 %v467_v49, %v463_v48  ;;  %v473_v2 = vrot.slane %v471_v50, 5  ;;  %v646_v3 = vrot.slane %v644_v52, 4  ;;  %18728 = vst [vmem:[#allocation7_spill] sm:$0xff] %v13615_v47 }
  0x30   : > { %v10937_v11 = vcombine.low %v632_v45, %v642_v0  ;;  %v459_v13 = vrot.slane %v458_v54, 4  ;;  %v649_v17 = vrot.slane %v647_v55, 5  ;;  %v655_v18 = vrot.slane %v653_v57, 5 }
  0x31   : > { %v469_v20 = vrot.slane %v468_v16, 4  ;;  %v659_v22 = vrot.slane %v657_v59, 4  ;;  %v663_v23 = vshll.u32 %v13584_v51, 16  ;;  %v476_v26 = vshrl.u32 %v13592_v60, 16  ;;  %v13624_v16 = vld [vmem:[%s13423_s16 + $0x98] sm:$0x1] }
  0x32   : > { %12365 = vmatprep.mubr.msk.bf16.mxu1 %vm813_vm3, %v10937_v11  ;;  %v464_v27 = vsel %vm13464_vm4, %v459_v13, %v463_v48  ;;  %v650_v28 = vor.u32 %v649_v17, %v646_v3  ;;  %v479_v34 = vshll.u32 %v13592_v60, 16  ;;  %v485_v37 = vshll.u32 %v13597_v9, 16  ;;  %18729 = vst [vmem:[#allocation8_spill] sm:$0xff] %v13624_v16  ;;  %v13629_v11 = vld [vmem:[%s13423_s16 + $0x3c] sm:$0xf] }
  0x33   : > { %v474_v39 = vsel %vm13464_vm4, %v469_v20, %v473_v2  ;;  %v660_v42 = vor.u32 %v659_v22, %v655_v18  ;;  %v665_v44 = vrot.slane %v663_v23, 5  ;;  %v478_v45 = vrot.slane %v476_v26, 4  ;;  %v13634_v23 = vld [vmem:[%s13423_s16 + $0x40] sm:$0xf]  ;;  %v1320_v51 = vld [vmem:[%s13423_s16 + $0xc] sm:$0xe] }
  0x34   : > { %v10930_v48 = vcombine.low %v464_v27, %v474_v39  ;;  %v651_v4 = vrot.slane %v650_v28, 4  ;;  %v481_v49 = vrot.slane %v479_v34, 5  ;;  %v487_v50 = vrot.slane %v485_v37, 5 }
  0x35   : > { %v661_v52 = vrot.slane %v660_v42, 4  ;;  %v489_v54 = vshrl.u32 %v13597_v9, 16  ;;  %v495_v55 = vshll.u32 %v13605_v33, 16  ;;  %v668_v57 = vshrl.u32 %v13610_v38, 16 }
  0x36   : > { %12350 = vmatmul.mubr.msk.bf16.gmra.mxu0 %vm813_vm3, %v10930_v48  ;;  %v656_v59 = vsel %vm13464_vm4, %v651_v4, %v655_v18  ;;  %v482_v0 = vor.u32 %v481_v49, %v478_v45  ;;  %v671_v2 = vshll.u32 %v13610_v38, 16  ;;  %v677_v3 = vshll.u32 %v13615_v47, 16  ;;  %v13643_v48 = vld [vmem:[%s13423_s16 + $0x44] sm:$0x1] }
  0x37   : > { %v666_v13 = vsel %vm13464_vm4, %v661_v52, %v665_v44  ;;  %v491_v17 = vrot.slane %v489_v54, 4  ;;  %v497_v20 = vrot.slane %v495_v55, 5  ;;  %v670_v22 = vrot.slane %v668_v57, 4  ;;  %v13648_v52 = vld [vmem:[%s13423_s16 + $0x9c] sm:$0xf] }
  0x38   : > { %v10938_v18 = vcombine.low %v656_v59, %v666_v13  ;;  %v483_v26 = vrot.slane %v482_v0, 4  ;;  %v673_v27 = vrot.slane %v671_v2, 5  ;;  %v679_v28 = vrot.slane %v677_v3, 5  ;;  %18730 = vst [vmem:[#allocation9_spill] sm:$0xff] %v13648_v52  ;;  %v13652_v13 = vld [vmem:[%s13423_s16 + $0xa0] sm:$0xf] }
  0x39   : > { %v492_v34 = vor.u32 %v491_v17, %v487_v50  ;;  %v681_v37 = vshrl.u32 %v13615_v47, 16  ;;  %v687_v39 = vshll.u32 %v13624_v16, 16  ;;  %v500_v42 = vshrl.u32 %v13629_v11, 16  ;;  %18731 = vst [vmem:[#allocation10_spill] sm:$0xff] %v13652_v13 }
  0x3a   : > { %12366 = vmatmul.mubr.msk.bf16.gmra.mxu1 %vm813_vm3, %v10938_v18  ;;  %v488_v44 = vsel %vm13464_vm4, %v483_v26, %v487_v50  ;;  %v674_v45 = vor.u32 %v673_v27, %v670_v22  ;;  %v503_v4 = vshll.u32 %v13629_v11, 16  ;;  %v509_v49 = vshll.u32 %v13634_v23, 16  ;;  %v13658_v26 = vld [vmem:[%s13423_s16 + $0xa4] sm:$0x1] }
  0x3b   : > { %v493_v54 = vrot.slane %v492_v34, 4  ;;  %v683_v55 = vrot.slane %v681_v37, 4  ;;  %v689_v57 = vrot.slane %v687_v39, 5  ;;  %v502_v59 = vrot.slane %v500_v42, 4  ;;  %18732 = vst [vmem:[#allocation11_spill] sm:$0xff] %v13658_v26 }
  0x3c   : > { %v675_v0 = vrot.slane %v674_v45, 4  ;;  %v505_v2 = vrot.slane %v503_v4, 5  ;;  %v511_v3 = vrot.slane %v509_v49, 5  ;;  %v513_v50 = vshrl.u32 %v13634_v23, 16  ;;  %v13662_v34 = vld [vmem:[%s13423_s16 + $0x48] sm:$0xf] }
  0x3d   : > { %v498_v17 = vsel %vm13464_vm4, %v493_v54, %v497_v20  ;;  %v684_v22 = vor.u32 %v683_v55, %v679_v28  ;;  %v519_v18 = vshll.u32 %v13643_v48, 16  ;;  %v692_v27 = vshrl.u32 %v13648_v52, 16 }
  0x3e   : > { %v10931_v37 = vcombine.low %v488_v44, %v498_v17  ;;  %v680_v39 = vsel %vm13464_vm4, %v675_v0, %v679_v28  ;;  %v506_v42 = vor.u32 %v505_v2, %v502_v59  ;;  %v515_v45 = vrot.slane %v513_v50, 4  ;;  %v13671_v17 = vld [vmem:[%s13423_s16 + $0x4c] sm:$0xf]  ;;  %v13677_v2 = vld [vmem:[%s13423_s16 + $0x50] sm:$0x1] }
  0x3f   : > { %v685_v4 = vrot.slane %v684_v22, 4  ;;  %v521_v49 = vrot.slane %v519_v18, 5  ;;  %v694_v20 = vrot.slane %v692_v27, 4  ;;  %v695_v54 = vshll.u32 %v13648_v52, 16 }
  0x40   : > { %12353 = vmatprep.mubr.msk.bf16.mxu0 %vm813_vm3, %v10931_v37  ;;  %v507_v55 = vrot.slane %v506_v42, 4  ;;  %v516_v62 = vor.u32 %v515_v45, %v511_v3  ;;  %v701_v32 = vshll.u32 %v13652_v13, 16  ;;  %v705_v44 = vshrl.u32 %v13652_v13, 16  ;;  %v13683_v42 = vld [vmem:[%s13423_s16 + $0xa8] sm:$0xf] }
  0x41   : > { %v690_v28 = vsel %vm13464_vm4, %v685_v4, %v689_v57  ;;  %v697_v59 = vrot.slane %v695_v54, 5  ;;  %v711_v0 = vshll.u32 %v13658_v26, 16  ;;  %v524_v50 = vshrl.u32 %v13662_v34, 16  ;;  %18733 = vst [vmem:[#allocation12_spill] sm:$0xff] %v13683_v42 }
  0x42   : > { %v10939_v22 = vcombine.low %v680_v39, %v690_v28  ;;  %v512_v18 = vsel %vm13464_vm4, %v507_v55, %v511_v3  ;;  %v517_v27 = vrot.slane %v516_v62, 4  ;;  %v703_v37 = vrot.slane %v701_v32, 5 }
  0x43   : > { %v698_v45 = vor.u32 %v697_v59, %v694_v20  ;;  %v707_v61 = vrot.slane %v705_v44, 4  ;;  %v713_v57 = vrot.slane %v711_v0, 5  ;;  %v526_v4 = vrot.slane %v524_v50, 4  ;;  %v13693_v44 = vld [vmem:[%s13423_s16 + $0xac] sm:$0xf] }
  0x44   : > { %12369 = vmatprep.mubr.msk.bf16.mxu1 %vm813_vm3, %v10939_v22  ;;  %v522_v54 = vsel %vm13464_vm4, %v517_v27, %v521_v49  ;;  %v527_v39 = vshll.u32 %v13662_v34, 16  ;;  %v533_v28 = vshll.u32 %v13671_v17, 16  ;;  %v537_v62 = vshrl.u32 %v13671_v17, 16  ;;  %18734 = vst [vmem:[#allocation13_spill] sm:$0xff] %v13693_v44  ;;  %v13696_v22 = vld [vmem:[%s13423_s16 + $0xb0] sm:$0x1] }
  0x45   : > { %v10932_v3 = vcombine.low %v512_v18, %v522_v54  ;;  %v699_v32 = vrot.slane %v698_v45, 4  ;;  %v708_v55 = vor.u32 %v707_v61, %v703_v37  ;;  %v543_v20 = vshll.u32 %v13677_v2, 16  ;;  %18735 = vst [vmem:[#allocation14_spill] sm:$0xff] %v13696_v22 }
  0x46   : > { %v529_v59 = vrot.slane %v527_v39, 5  ;;  %v535_v0 = vrot.slane %v533_v28, 5  ;;  %v539_v50 = vrot.slane %v537_v62, 4  ;;  %v716_v49 = vshrl.u32 %v13683_v42, 16  ;;  %v13705_v62 = vld [vmem:[%s13423_s16 + $0x54] sm:$0xf] }
  0x47   : > { %12354 = vmatmul.mubr.msk.bf16.gmra.mxu0 %vm813_vm3, %v10932_v3  ;;  %v704_v18 = vsel %vm13464_vm4, %v699_v32, %v703_v37  ;;  %v709_v27 = vrot.slane %v708_v55, 4  ;;  %v545_v61 = vrot.slane %v543_v20, 5  ;;  %v719_v45 = vshll.u32 %v13683_v42, 16  ;;  %v13712_v55 = vld [vmem:[%s13423_s16 + $0x58] sm:$0xf] }
  0x48   : > { %v530_v54 = vor.u32 %v529_v59, %v526_v4  ;;  %v540_v56 = vor.u32 %v539_v50, %v535_v0  ;;  %v718_v39 = vrot.slane %v716_v49, 4  ;;  %v725_v28 = vshll.u32 %v13693_v44, 16  ;;  %v13715_v49 = vld [vmem:[%s13423_s16 + $0x5c] sm:$0x1] }
  0x49   : > { %v714_v3 = vsel %vm13464_vm4, %v709_v27, %v713_v57  ;;  %v721_v26 = vrot.slane %v719_v45, 5  ;;  %v729_v37 = vshrl.u32 %v13693_v44, 16  ;;  %v735_v32 = vshll.u32 %v13696_v22, 16  ;;  %v1319_v22 = vld [vmem:[%s13423_s16] sm:$0xe] }
  0x4a   : > { %v10940_v4 = vcombine.low %v704_v18, %v714_v3  ;;  %v531_v20 = vrot.slane %v530_v54, 4  ;;  %v541_v59 = vrot.slane %v540_v56, 4  ;;  %v727_v50 = vrot.slane %v725_v28, 5  ;;  %v13726_v54 = vld [vmem:[%s13423_s16 + $0xb4] sm:$0xf] }
  0x4b   : > { %v722_v42 = vor.u32 %v721_v26, %v718_v39  ;;  %v731_v52 = vrot.slane %v729_v37, 4  ;;  %v737_v13 = vrot.slane %v735_v32, 5  ;;  %v548_v57 = vshrl.u32 %v13705_v62, 16  ;;  %18736 = vst [vmem:[#allocation15_spill] sm:$0xff] %v13726_v54  ;;  %v13729_v37 = vld [vmem:[%s13423_s16 + $0xb8] sm:$0xf] }
  0x4c   : > { %12370 = vmatmul.mubr.msk.bf16.gmra.mxu1 %vm813_vm3, %v10940_v4  ;;  %v536_v27 = vsel %vm13464_vm4, %v531_v20, %v535_v0  ;;  %v546_v18 = vsel %vm13464_vm4, %v541_v59, %v545_v61  ;;  %v551_v56 = vshll.u32 %v13705_v62, 16  ;;  %v557_v45 = vshll.u32 %v13712_v55, 16  ;;  %v13734_v61 = vld [vmem:[%s13423_s16 + $0xbc] sm:$0x1] }
  0x4d   : > { %v10933_v26 = vcombine.low %v536_v27, %v546_v18  ;;  %v723_v39 = vrot.slane %v722_v42, 4  ;;  %v732_v28 = vor.u32 %v731_v52, %v727_v50  ;;  %v550_v3 = vrot.slane %v548_v57, 4 }
  0x4e   : > { %v553_v32 = vrot.slane %v551_v56, 5  ;;  %v559_v4 = vrot.slane %v557_v45, 5  ;;  %v561_v0 = vshrl.u32 %v13712_v55, 16  ;;  %v567_v20 = vshll.u32 %v13715_v49, 16 }
  0x4f   : > { %12357 = vmatprep.mubr.msk.bf16.mxu0 %vm813_vm3, %v10933_v26  ;;  %v728_v59 = vsel %vm13464_vm4, %v723_v39, %v727_v50  ;;  %v733_v27 = vrot.slane %v732_v28, 4  ;;  %v740_v52 = vshrl.u32 %v13726_v54, 16  ;;  %v743_v42 = vshll.u32 %v13726_v54, 16 }
  0x50   : > { %v554_v57 = vor.u32 %v553_v32, %v550_v3  ;;  %v563_v18 = vrot.slane %v561_v0, 4  ;;  %v569_v56 = vrot.slane %v567_v20, 5  ;;  %v749_v45 = vshll.u32 %v13729_v37, 16 }
  0x51   : > { %v738_v44 = vsel %vm13464_vm4, %v733_v27, %v737_v13  ;;  %v742_v16 = vrot.slane %v740_v52, 4  ;;  %v745_v26 = vrot.slane %v743_v42, 5  ;;  %v753_v38 = vshrl.u32 %v13729_v37, 16 }
  0x52   : > { %v10941_v50 = vcombine.low %v728_v59, %v738_v44  ;;  %v555_v39 = vrot.slane %v554_v57, 4  ;;  %v564_v28 = vor.u32 %v563_v18, %v559_v4  ;;  %v751_v47 = vrot.slane %v749_v45, 5  ;;  %v1321_v57 = vld [vmem:[%s13423_s16 + $0x18] sm:$0xe] }
  0x53   : > { %v746_v54 = vor.u32 %v745_v26, %v742_v16  ;;  %v755_v3 = vrot.slane %v753_v38, 4  ;;  %v759_v32 = vshll.u32 %v13734_v61, 16  ;;  %v18737_v0 = vmov 0 }
  0x54   : > { %v18738_v0 = vsel %vm13750_vm7, 4294967295, %v18737_v0  ;;  %v10991_v13 = vrot.slane %v1319_v22, 9  ;;  %12373 = vmatprep.mubr.msk.bf16.mxu1 %vm813_vm3, %v10941_v50  ;;  %v560_v44 = vsel %vm13464_vm4, %v555_v39, %v559_v4  ;;  %v565_v20 = vrot.slane %v564_v28, 4 }
  0x55   : > { %18739 = vst [vmem:[#allocation16_spill] sm:$0xff] %v18738_v0  ;;  %v1372_v59 = vrot.slane %v13429_v6, 5  ;;  %v10960_v38 = vcombine.low %v13457_v29, %v13460_v30  ;;  %v747_v16 = vrot.slane %v746_v54, 4  ;;  %v756_v27 = vor.u32 %v755_v3, %v751_v47 }
  0x56   : > { %v761_v52 = vrot.slane %v759_v32, 5  ;;  %v10992_v42 = vrot.slane %v1320_v51, 9  ;;  %v570_v18 = vsel %vm13464_vm4, %v565_v20, %v569_v56  ;;  %v18740_v4 = vrot.slane %v13460_v30, 5 }
  0x57   : > { %v1373_v22 = vsel %vm13750_vm7, %v10991_v13, %v1372_v59  ;;  %v1374_v45 = vrot.slane %v1372_v59, 4  ;;  %v10934_v50 = vcombine.low %v560_v44, %v570_v18  ;;  %v752_v54 = vsel %vm13464_vm4, %v747_v16, %v751_v47 }
  0x58   : > { %v1381_v26 = vrot.slane %v18740_v4, 4  ;;  %v757_v39 = vrot.slane %v756_v27, 4  ;;  %v10959_v51 = vcombine.low %v13426_v5, %v13429_v6  ;;  %v18741_v28 = vrot.slane %v13432_v7, 5  ;;  %v1322_v27 = vld [vmem:[%s13423_s16 + $0x24] sm:$0xe] }
  0x59   : > { %v18742_v3 = vmov %v18740_v4  ;;  %v10961_v13 = vcombine.low %v13499_v8, %v13506_v21  ;;  %v10993_v44 = vrot.slane %v1321_v57, 9  ;;  %12358 = vmatmul.mubr.msk.bf16.gmra.mxu0 %vm813_vm3, %v10934_v50  ;;  %v18743_v6 = vrot.slane %v13470_v41, 5  ;;  %v1324_v4 = vld [vmem:[%s13423_s16 + $0x3c] sm:$0xe] }
  0x5a   : > { %v1376_v56 = vsel %vm13750_vm7, %v1374_v45, %v18741_v28  ;;  %v1380_v32 = vsel %vm13750_vm7, %v10992_v42, %v18742_v3  ;;  %v762_v47 = vsel %vm13464_vm4, %v757_v39, %v761_v52  ;;  %v1386_v20 = vrot.slane %v13506_v21, 5  ;;  %v1323_v42 = vld [vmem:[%s13423_s16 + $0x30] sm:$0xe]  ;;  %v1325_v39 = vld [vmem:[%s13423_s16 + $0x48] sm:$0xe] }
  0x5b   : > { %v11008_v5 = vcombine.low %v1373_v22, %v1376_v56  ;;  %v1383_v7 = vsel %vm13750_vm7, %v1381_v26, %v18743_v6  ;;  %v10942_v59 = vcombine.low %v752_v54, %v762_v47  ;;  %v1389_v16 = vrot.slane %v13512_v25, 5  ;;  %v1326_v47 = vld [vmem:[%s13423_s16 + $0x54] sm:$0xe]  ;;  %v14045_v21 = vld [vmem:[%s13423_s16 + $0x2c] sm:$0x1] }
  0x5c   : > { %v1940_v52 = vsel %vm862_vm0, %v13557_v19, 0  ;;  %v1387_v41 = vsel %vm13750_vm7, %v10993_v44, %v1386_v20  ;;  %v1388_v57 = vrot.slane %v1386_v20, 4  ;;  %v1393_v18 = vrot.slane %v13551_v10, 5 }
  0x5d   : > { %12413 = vmatprep.mubr.msk.bf16.mxu0 %vm813_vm3, %v11008_v5  ;;  %12374 = vmatmul.mubr.msk.bf16.gmra.mxu1 %vm813_vm3, %v10942_v59  ;;  %v11009_v22 = vcombine.low %v1380_v32, %v1383_v7  ;;  %v2666_v25 = vsel %vm862_vm0, %v13525_v40, 0  ;;  %v1400_v45 = vrot.slane %v13597_v9, 5  ;;  %v10994_v26 = vrot.slane %v1322_v27, 9 }
  0x5e   : > { %12379 = vmatprep.mubr.msk.bf16.mxu1 %vm813_vm3, %v10959_v51  ;;  %v1390_v19 = vsel %vm13750_vm7, %v1388_v57, %v1389_v16  ;;  %v1396_v50 = vrot.slane %v13562_v24, 5  ;;  %v10995_v54 = vrot.slane %v1323_v42, 9  ;;  %v1395_v56 = vrot.slane %v1393_v18, 4  ;;  %v13817_v24 = vld [vmem:[%s18666_s1 + $0xc] sm:$0x3] }
  0x5f   : > { %v11010_v28 = vcombine.low %v1387_v41, %v1390_v19  ;;  %v1402_v3 = vrot.slane %v1400_v45, 4  ;;  %v1403_v32 = vrot.slane %v13605_v33, 5  ;;  %v10996_v44 = vrot.slane %v1324_v4, 9 }
  0x60   : > { %v1407_v40 = vrot.slane %v13634_v23, 5  ;;  %v1431_v5 = vrot.slane %v13446_v15, 5  ;;  %v1410_v51 = vrot.slane %v13643_v48, 5  ;;  %v10997_v6 = vrot.slane %v1325_v39, 9  ;;  %v1330_v39 = vld [vmem:[%s13423_s16 + $0x84] sm:$0xe] }
  0x61   : > { %v1414_v7 = vrot.slane %v13671_v17, 5  ;;  %12414 = vmatmul.mubr.msk.bf16.vlgmr.msra.gmra.mxu0 %vm813_vm3, %v11009_v22  ;;  %v10962_v33 = vcombine.low %v13543_v1, %v13551_v10  ;;  %v1394_v20 = vsel %vm13750_vm7, %v10994_v26, %v1393_v18  ;;  %v1417_v16 = vrot.slane %v13677_v2, 5  ;;  %v1327_v1 = vld [vmem:[%s13423_s16 + $0x60] sm:$0xe]  ;;  %v13845_v22 = vld [vmem:[%s18666_s1 + $0xa] sm:$0x3] }
  0x62   : > { %v1409_v59 = vrot.slane %v1407_v40, 4  ;;  %12480 = vmatpush3.bf16.msra.mxu0 %v2666_v25  ;;  %12417 = vmatprep.mubr.msk.bf16.mxu0 %vm813_vm3, %v11010_v28  ;;  %v1397_v48 = vsel %vm13750_vm7, %v1395_v56, %v1396_v50  ;;  %v1401_v27 = vsel %vm13750_vm7, %v10995_v54, %v1400_v45  ;;  %v1404_v42 = vsel %vm13750_vm7, %v1402_v3, %v1403_v32  ;;  %v13870_v50 = vld [vmem:[%s13423_s16 + $0x6c] sm:$0xe] }
  0x63   : > { %v1416_v41 = vrot.slane %v1414_v7, 4  ;;  %v13835_v10 = vsel %vm13750_vm7, %v10996_v44, %v1407_v40  ;;  %v13839_v2 = vsel %vm13750_vm7, %v10997_v6, %v1414_v7  ;;  %v10998_v57 = vrot.slane %v1326_v47, 9  ;;  %13124 = vmatprep.subr.msk.bf16.mxu0 %vm862_vm0, %v13817_v24  ;;  %v13899_v44 = vld [vmem:[%s13423_s16 + $0x78] sm:$0xe]  ;;  %v1331_v40 = vld [vmem:[%s13423_s16 + $0x90] sm:$0xe] }
  0x64   : > { %v1421_v18 = vrot.slane %v13712_v55, 5  ;;  %v13855_v25 = vsel %vm13750_vm7, %v1409_v59, %v1410_v51  ;;  %v1424_v4 = vrot.slane %v13715_v49, 5  ;;  %v1428_v19 = vrot.slane %v13443_v14, 5 }
  0x65   : > { %12380 = vmatmul.mubr.msk.bf16.vlgmr.msra.gmra.mxu1 %vm813_vm3, %v10960_v38  ;;  %v13859_v45 = vsel %vm13750_vm7, %v1416_v41, %v1417_v16  ;;  %v11011_v29 = vcombine.low %v1394_v20, %v1397_v48  ;;  %v10963_v30 = vcombine.low %v13592_v60, %v13597_v9  ;;  %v10999_v26 = vrot.slane %v1327_v1, 9  ;;  %v18744_v48 = vld [vmem:[#allocation5_spill] sm:$0xff] }
  0x66   : > { %12446 = vmatpush3.bf16.msra.mxu1 %v1940_v52  ;;  %12383 = vmatprep.mubr.msk.bf16.mxu1 %vm813_vm3, %v10961_v13  ;;  %v1423_v38 = vrot.slane %v1421_v18, 4  ;;  %v11012_v49 = vcombine.low %v1401_v27, %v1404_v42  ;;  %v10964_v52 = vcombine.low %v13629_v11, %v13634_v23  ;;  %v10965_v8 = vcombine.low %v13662_v34, %v13671_v17  ;;  %v1332_v42 = vld [vmem:[%s13423_s16 + $0x9c] sm:$0xe] }
  0x67   : > { %13123 = vmatprep.subr.msk.bf16.mxu1 %vm862_vm0, %v13845_v22  ;;  %v11013_v60 = vcombine.low %v13835_v10, %v13855_v25  ;;  %v11014_v9 = vcombine.low %v13839_v2, %v13859_v45  ;;  %v1430_v54 = vrot.slane %v1428_v19, 4  ;;  %v13889_v28 = vsel %vm13750_vm7, %v10998_v57, %v1421_v18  ;;  %v18745_v10 = vld [vmem:[#allocation7_spill] sm:$0xff]  ;;  %v18746_v2 = vld [vmem:[#allocation6_spill] sm:$0xff]  ;;  %v1333_v18 = vld [vmem:[%s13423_s16 + $0xa8] sm:$0xe] }
  0x68   : > { %v13893_v56 = vsel %vm13750_vm7, %v1423_v38, %v1424_v4  ;;  %v11000_v32 = vrot.slane %v13870_v50, 9  ;;  %v13905_v47 = vsel %vm13750_vm7, %v10999_v26, %v1428_v19  ;;  %v1435_v51 = vrot.slane %v13485_v58, 5  ;;  %v18747_v19 = vld [vmem:[#allocation8_spill] sm:$0xff]  ;;  %v18748_v38 = vld [vmem:[#allocation10_spill] sm:$0xff]  ;;  %v18749_v26 = vld [vmem:[#allocation9_spill] sm:$0xff] }
  0x69   : > { %12418 = vmatmul.mubr.msk.bf16.gmra.mxu0 %vm813_vm3, %v11011_v29  ;;  %v1438_v6 = vrot.slane %v13493_v63, 5  ;;  %v11002_v59 = vrot.slane %v1330_v39, 9  ;;  %v1449_v16 = vrot.slane %v13576_v43, 5  ;;  %v1452_v27 = vrot.slane %v18744_v48, 5  ;;  %v18751_v48 = vld [vmem:[#allocation13_spill] sm:$0xff] }
  0x6a   : > { %12421 = vmatprep.mubr.msk.bf16.mxu0 %vm813_vm3, %v11012_v49  ;;  %v11015_v41 = vcombine.low %v13889_v28, %v13893_v56  ;;  %v13923_v63 = vsel %vm13750_vm7, %v1430_v54, %v1431_v5  ;;  %v11001_v1 = vrot.slane %v13899_v44, 9  ;;  %v11003_v4 = vrot.slane %v1331_v40, 9  ;;  %v11105_v57 = vld [vmem:[%s13423_s16 + $0xc] sm:$0xf] }
  0x6b   : > { %v13932_v25 = vsel %vm13750_vm7, %v11002_v59, %v1449_v16  ;;  %v1451_v45 = vrot.slane %v1449_v16, 4  ;;  %v1456_v15 = vrot.slane %v18745_v10, 5  ;;  %v1437_v5 = vrot.slane %v1435_v51, 4  ;;  %v18750_v59 = vld [vmem:[#allocation11_spill] sm:$0xff] }
  0x6c   : > { %v1459_v29 = vrot.slane %v18747_v19, 5  ;;  %v11004_v49 = vrot.slane %v1332_v42, 9  ;;  %v1463_v40 = vrot.slane %v18748_v38, 5  ;;  %v1466_v16 = vrot.slane %v18750_v59, 5  ;;  %v18752_v42 = vld [vmem:[#allocation12_spill] sm:$0xff] }
  0x6d   : > { %12384 = vmatmul.mubr.msk.bf16.gmra.mxu1 %vm813_vm3, %v10962_v33  ;;  %v1442_v33 = vrot.slane %v13530_v46, 5  ;;  %v13942_v54 = vsel %vm13750_vm7, %v1451_v45, %v1452_v27  ;;  %v13946_v39 = vsel %vm13750_vm7, %v11003_v4, %v1456_v15  ;;  %v1458_v44 = vrot.slane %v1456_v15, 4  ;;  %v18753_v15 = vld [vmem:[#allocation14_spill] sm:$0xff] }
  0x6e   : > { %12387 = vmatprep.mubr.msk.bf16.mxu1 %vm813_vm3, %v10963_v30  ;;  %v11005_v45 = vrot.slane %v1333_v18, 9  ;;  %v1470_v4 = vrot.slane %v18751_v48, 5  ;;  %v1473_v50 = vrot.slane %v18753_v15, 5  ;;  %v13966_v19 = vsel %vm13750_vm7, %v11004_v49, %v1463_v40  ;;  %v18755_v15 = vld [vmem:[#allocation4_spill] sm:$0xff]  ;;  %v13981_v49 = vld [vmem:[%s13423_s16 + $0x10] sm:$0xf] }
  0x6f   : > { %v13956_v27 = vsel %vm13750_vm7, %v1458_v44, %v1459_v29  ;;  %v1465_v7 = vrot.slane %v1463_v40, 4  ;;  %v18754_v29 = vld [vmem:[#allocation15_spill] sm:$0xff]  ;;  %v13973_v18 = vsel %vm13750_vm7, %v11000_v32, %v1435_v51  ;;  %v1444_v20 = vrot.slane %v1442_v33, 4 }
  0x70   : > { %v13978_v59 = vsel %vm13750_vm7, %v11005_v45, %v1470_v4  ;;  %v1472_v30 = vrot.slane %v1470_v4, 4  ;;  %v11108_v40 = vld [vmem:[%s13423_s16 + $0x18] sm:$0xf]  ;;  %v2184_v44 = vshrl.u32 %v11105_v57, 16  ;;  %v2187_v32 = vshll.u32 %v11105_v57, 16 }
  0x71   : > { %12422 = vmatmul.mubr.msk.bf16.gmra.mxu0 %vm813_vm3, %v11013_v60  ;;  %v1445_v60 = vrot.slane %v18755_v15, 5  ;;  %v11016_v51 = vcombine.low %v13905_v47, %v13923_v63  ;;  %v13996_v45 = vsel %vm13750_vm7, %v1437_v5, %v1438_v6  ;;  %v1334_v57 = vld [vmem:[%s13423_s16 + $0xb4] sm:$0xe]  ;;  %v14011_v11 = vsel %vm13750_vm7, %v11001_v1, %v1442_v33  ;;  %v14017_v47 = vld [vmem:[%s13423_s16 + $0x14] sm:$0x1] }
  0x72   : > { %12425 = vmatprep.mubr.msk.bf16.mxu0 %vm813_vm3, %v11014_v9  ;;  %v13986_v9 = vsel %vm13750_vm7, %v1465_v7, %v1466_v16  ;;  %v14002_v7 = vsel %vm13750_vm7, %v1472_v30, %v1473_v50  ;;  %v2193_v6 = vshll.u32 %v13981_v49, 16  ;;  %v11109_v63 = vld [vmem:[%s13423_s16 + $0x1c] sm:$0xf]  ;;  %v2186_v5 = vrot.slane %v2184_v44, 4  ;;  %v11111_v15 = vld [vmem:[%s13423_s16 + $0x24] sm:$0xf] }
  0x73   : > { %v2189_v34 = vrot.slane %v2187_v32, 5  ;;  %v2197_v17 = vshrl.u32 %v13981_v49, 16  ;;  %v2208_v50 = vshrl.u32 %v11108_v40, 16  ;;  %v1446_v1 = vsel %vm13750_vm7, %v1444_v20, %v1445_v60  ;;  %v14030_v44 = vld [vmem:[%s13423_s16 + $0x28] sm:$0xf] }
  0x74   : > { %v11006_v33 = vrot.slane %v1334_v57, 9  ;;  %v14025_v30 = vrot.slane %v2193_v6, 5  ;;  %v2211_v16 = vshll.u32 %v11108_v40, 16  ;;  %v1480_v23 = vrot.slane %v13734_v61, 5 }
  0x75   : > { %12388 = vmatmul.mubr.msk.bf16.gmra.mxu1 %vm813_vm3, %v10964_v52  ;;  %v1477_v52 = vrot.slane %v13729_v37, 5  ;;  %v2199_v4 = vrot.slane %v2197_v17, 4  ;;  %v2210_v3 = vrot.slane %v2208_v50, 4  ;;  %v2217_v13 = vshll.u32 %v11109_v63, 16 }
  0x76   : > { %12391 = vmatprep.mubr.msk.bf16.mxu1 %vm813_vm3, %v10965_v8  ;;  %v11110_v8 = vld [vmem:[%s13423_s16 + $0x20] sm:$0x1]  ;;  %v2203_v20 = vshll.u32 %v14017_v47, 16  ;;  %v2213_v60 = vrot.slane %v2211_v16, 5  ;;  %v2221_v57 = vshrl.u32 %v11109_v63, 16  ;;  %v11017_v61 = vcombine.low %v13973_v18, %v13996_v45 }
  0x77   : > { %v1479_v32 = vrot.slane %v1477_v52, 4  ;;  %v11018_v40 = vcombine.low %v14011_v11, %v1446_v1  ;;  %v2190_v6 = vor.u32 %v2189_v34, %v2186_v5  ;;  %v14041_v17 = vrot.slane %v2217_v13, 5  ;;  %v14068_v5 = vld [vmem:[%s13423_s16 + $0x34] sm:$0xf] }
  0x78   : > { %v2200_v28 = vor.u32 %v2199_v4, %v14025_v30  ;;  %v2214_v56 = vor.u32 %v2213_v60, %v2210_v3  ;;  %v2227_v50 = vshll.u32 %v11110_v8, 16  ;;  %v14053_v18 = vsel %vm13750_vm7, %v11006_v33, %v1477_v52  ;;  %v11114_v52 = vld [vmem:[%s13423_s16 + $0x30] sm:$0xf] }
  0x79   : > { %12426 = vmatmul.mubr.msk.bf16.gmra.mxu0 %vm813_vm3, %v11015_v41  ;;  %v2223_v41 = vrot.slane %v2221_v57, 4  ;;  %v2232_v13 = vshrl.u32 %v11111_v15, 16  ;;  %v2235_v45 = vshll.u32 %v11111_v15, 16  ;;  %v2241_v11 = vshll.u32 %v14030_v44, 16 }
  0x7a   : > { %12429 = vmatprep.mubr.msk.bf16.mxu0 %vm813_vm3, %v11016_v51  ;;  %v18756_v51 = vcombine.low %v13705_v62, %v13712_v55  ;;  %v18757_v3 = vcombine.low %v13439_v12, %v13443_v14  ;;  %v14062_v4 = vsel %vm13750_vm7, %v1479_v32, %v1480_v23  ;;  %v2205_v62 = vrot.slane %v2203_v20, 5 }
  0x7b   : > { %v2224_v55 = vor.u32 %v2223_v41, %v14041_v17  ;;  %v2245_v63 = vshrl.u32 %v14030_v44, 16  ;;  %v2191_v34 = vrot.slane %v2190_v6, 4  ;;  %v2234_v8 = vrot.slane %v2232_v13, 4  ;;  %v14076_v41 = vld [vmem:[%s13423_s16 + $0x38] sm:$0x1] }
  0x7c   : > { %v2237_v1 = vrot.slane %v2235_v45, 5  ;;  %v14070_v33 = vrot.slane %v2241_v11, 5  ;;  %v2201_v12 = vrot.slane %v2200_v28, 4  ;;  %v2215_v14 = vrot.slane %v2214_v56, 4  ;;  %v11117_v13 = vld [vmem:[%s13423_s16 + $0x3c] sm:$0xf] }
  0x7d   : > { %12392 = vmatmul.mubr.msk.bf16.gmra.mxu1 %vm813_vm3, %v18756_v51  ;;  %v2229_v16 = vrot.slane %v2227_v50, 5  ;;  %v2247_v23 = vrot.slane %v2245_v63, 4  ;;  %v2225_v15 = vrot.slane %v2224_v55, 4  ;;  %v2251_v32 = vshll.u32 %v14045_v21, 16 }
  0x7e   : > { %12395 = vmatprep.mubr.msk.bf16.mxu1 %vm813_vm3, %v18757_v3  ;;  %v2256_v20 = vshrl.u32 %v11114_v52, 16  ;;  %v2259_v60 = vshll.u32 %v11114_v52, 16  ;;  %v2238_v57 = vor.u32 %v2237_v1, %v2234_v8  ;;  %v2265_v28 = vshll.u32 %v14068_v5, 16  ;;  %v11120_v8 = vld [vmem:[%s13423_s16 + $0x48] sm:$0xf] }
  0x7f   : > { %v2248_v6 = vor.u32 %v2247_v23, %v14070_v33  ;;  %v2269_v56 = vshrl.u32 %v14068_v5, 16  ;;  %v18758_v3 = vcombine.low %v13481_v53, %v13485_v58  ;;  %v11023_v55 = vcombine.low %v14053_v18, %v14062_v4  ;;  %v14103_v1 = vld [vmem:[%s13423_s16 + $0x4c] sm:$0xf] }
  0x80   : > { %v2258_v50 = vrot.slane %v2256_v20, 4  ;;  %v2261_v51 = vrot.slane %v2259_v60, 5  ;;  %v14082_v45 = vrot.slane %v2265_v28, 5  ;;  %v2206_v63 = vsel %vm13464_vm4, %v2201_v12, %v2205_v62 }
  0x81   : > { %12430 = vmatmul.mubr.msk.bf16.gmra.mxu0 %vm813_vm3, %v11017_v61  ;;  %v2271_v11 = vrot.slane %v2269_v56, 4  ;;  %v14085_v61 = vld [vmem:[%s13423_s16 + $0x40] sm:$0xf]  ;;  %v2220_v52 = vsel %vm13464_vm4, %v2215_v14, %v14041_v17  ;;  %v18759_v53 = vcombine.low %v13519_v35, %v13530_v46  ;;  %v2230_v58 = vsel %vm13464_vm4, %v2225_v15, %v2229_v16 }
  0x82   : > { %12433 = vmatprep.mubr.msk.bf16.mxu0 %vm813_vm3, %v11018_v40  ;;  %v2196_v40 = vsel %vm13464_vm4, %v2191_v34, %v14025_v30  ;;  %v2239_v23 = vrot.slane %v2238_v57, 4  ;;  %v2249_v30 = vrot.slane %v2248_v6, 4  ;;  %v2253_v34 = vrot.slane %v2251_v32, 5 }
  0x83   : > { %v2262_v20 = vor.u32 %v2261_v51, %v2258_v50  ;;  %v2275_v62 = vshll.u32 %v14076_v41, 16  ;;  %v2280_v12 = vshrl.u32 %v11117_v13, 16  ;;  %v2283_v17 = vshll.u32 %v11117_v13, 16  ;;  %v14137_v50 = vld [vmem:[%s13423_s16 + $0x44] sm:$0x1] }
  0x84   : > { %v14114_v14 = vsel %vm862_vm0, %v13845_v22, 0  ;;  %v2272_v35 = vor.u32 %v2271_v11, %v14082_v45  ;;  %v2289_v46 = vshll.u32 %v14085_v61, 16  ;;  %v2293_v16 = vshrl.u32 %v14085_v61, 16  ;;  %v11123_v51 = vld [vmem:[%s13423_s16 + $0x54] sm:$0xf] }
  0x85   : > { %12396 = vmatmul.mubr.msk.bf16.gmra.mxu1 %vm813_vm3, %v18758_v3  ;;  %v14119_v15 = vcombine.low %v2196_v40, %v2206_v63  ;;  %v14123_v32 = vsel %vm862_vm0, %v13817_v24, 0  ;;  %v2304_v60 = vshrl.u32 %v11120_v8, 16  ;;  %v2307_v57 = vshll.u32 %v11120_v8, 16  ;;  %v14146_v40 = vld [vmem:[%s13423_s16 + $0x58] sm:$0xf] }
  0x86   : > { %12399 = vmatprep.mubr.msk.bf16.mxu1 %vm813_vm3, %v18759_v53  ;;  %v18760_v6 = vcombine.low %v13932_v25, %v13942_v54  ;;  %v14129_v22 = vcombine.low %v2220_v52, %v2230_v58  ;;  %v2244_v28 = vsel %vm13464_vm4, %v2239_v23, %v14070_v33  ;;  %v2254_v56 = vsel %vm13464_vm4, %v2249_v30, %v2253_v34  ;;  %v14151_v8 = vld [vmem:[%s13423_s16 + $0x50] sm:$0x1]  ;;  %v11126_v34 = vld [vmem:[%s13423_s16 + $0x60] sm:$0xf] }
  0x87   : > { %v2313_v24 = vshll.u32 %v14103_v1, 16  ;;  %v18761_v25 = vcombine.low %v13946_v39, %v13956_v27  ;;  %v2263_v54 = vrot.slane %v2262_v20, 4  ;;  %v2277_v13 = vrot.slane %v2275_v62, 5 }
  0x88   : > { %v2282_v11 = vrot.slane %v2280_v12, 4  ;;  %v2285_v3 = vrot.slane %v2283_v17, 5  ;;  %v2273_v33 = vrot.slane %v2272_v35, 4  ;;  %v14148_v63 = vrot.slane %v2289_v46, 5  ;;  %v14168_v35 = vld [vmem:[%s13423_s16 + $0x5c] sm:$0x1] }
  0x89   : > { %12434 = vmatmul.mubr.msk.bf16.gmra.mxu0 %vm813_vm3, %v18760_v6  ;;  %v2295_v52 = vrot.slane %v2293_v16, 4  ;;  %v2317_v53 = vshrl.u32 %v14103_v1, 16  ;;  %v18762_v39 = vcombine.low %v13569_v36, %v13576_v43  ;;  %v2306_v27 = vrot.slane %v2304_v60, 4 }
  0x8a   : > { %12437 = vmatprep.mubr.msk.bf16.mxu0 %vm813_vm3, %v18761_v25  ;;  %v2309_v58 = vrot.slane %v2307_v57, 5  ;;  %v2328_v23 = vshrl.u32 %v11123_v51, 16  ;;  %v2331_v30 = vshll.u32 %v11123_v51, 16  ;;  %v18763_v20 = vcombine.low %v18746_v2, %v18745_v10 }
  0x8b   : > { %v14163_v62 = vcombine.low %v2244_v28, %v2254_v56  ;;  %v14165_v12 = vrot.slane %v2313_v24, 5  ;;  %v2319_v17 = vrot.slane %v2317_v53, 4  ;;  %v2337_v36 = vshll.u32 %v14146_v40, 16  ;;  %v14181_v28 = vld [vmem:[%s13423_s16 + $0x64] sm:$0xf] }
  0x8c   : > { %v2299_v43 = vshll.u32 %v14137_v50, 16  ;;  %v2330_v46 = vrot.slane %v2328_v23, 4  ;;  %v2333_v16 = vrot.slane %v2331_v30, 5  ;;  %v2341_v60 = vshrl.u32 %v14146_v40, 16  ;;  %v14203_v30 = vld [vmem:[%s13423_s16 + $0x68] sm:$0x1] }
  0x8d   : > { %12400 = vmatmul.mubr.msk.bf16.gmra.mxu1 %vm813_vm3, %v18762_v39  ;;  %v2268_v10 = vsel %vm13464_vm4, %v2263_v54, %v14082_v45  ;;  %v2278_v2 = vsel %vm13464_vm4, %v2273_v33, %v2277_v13  ;;  %v2286_v57 = vor.u32 %v2285_v3, %v2282_v11  ;;  %v14178_v6 = vrot.slane %v2337_v36, 5  ;;  %v11129_v3 = vld [vmem:[%s13423_s16 + $0x6c] sm:$0xf] }
  0x8e   : > { %12403 = vmatprep.mubr.msk.bf16.mxu1 %vm813_vm3, %v18763_v20  ;;  %v2296_v56 = vor.u32 %v2295_v52, %v14148_v63  ;;  %v2310_v24 = vor.u32 %v2309_v58, %v2306_v27  ;;  %v2323_v51 = vshll.u32 %v14151_v8, 16  ;;  %v2343_v25 = vrot.slane %v2341_v60, 4  ;;  %v14200_v27 = vld [vmem:[%s13423_s16 + $0x70] sm:$0xf] }
  0x8f   : > { %v18764_v53 = vcombine.low %v13966_v19, %v13986_v9  ;;  %v2320_v45 = vor.u32 %v2319_v17, %v14165_v12  ;;  %v2334_v54 = vor.u32 %v2333_v16, %v2330_v46  ;;  %v2352_v13 = vshrl.u32 %v11126_v34, 16  ;;  %v11132_v16 = vld [vmem:[%s13423_s16 + $0x78] sm:$0xf] }
  0x90   : > { %v2355_v11 = vshll.u32 %v11126_v34, 16  ;;  %v18765_v33 = vcombine.low %v13978_v59, %v14002_v7  ;;  %v2344_v52 = vor.u32 %v2343_v25, %v14178_v6  ;;  %v2347_v39 = vshll.u32 %v14168_v35, 16 }
  0x91   : > { %12438 = vmatmul.mubr.msk.bf16.gmra.mxu0 %vm813_vm3, %v18764_v53  ;;  %v2361_v19 = vshll.u32 %v14181_v28, 16  ;;  %v2365_v9 = vshrl.u32 %v14181_v28, 16  ;;  %v2287_v58 = vrot.slane %v2286_v57, 4  ;;  %v2301_v23 = vrot.slane %v2299_v43, 5 }
  0x92   : > { %12441 = vmatprep.mubr.msk.bf16.mxu0 %vm813_vm3, %v18765_v33  ;;  %v2354_v34 = vrot.slane %v2352_v13, 4  ;;  %v2357_v20 = vrot.slane %v2355_v11, 5  ;;  %v18766_v59 = vcombine.low %v18749_v26, %v18748_v38  ;;  %v14209_v7 = vcombine.low %v2268_v10, %v2278_v2  ;;  %v14219_v2 = vld [vmem:[%s13423_s16 + $0x7c] sm:$0xf] }
  0x93   : > { %v2297_v17 = vrot.slane %v2296_v56, 4  ;;  %v2311_v36 = vrot.slane %v2310_v24, 4  ;;  %v14211_v46 = vrot.slane %v2361_v19, 5  ;;  %v18767_v43 = vcombine.low %v18752_v42, %v18751_v48  ;;  %18768 = vst [vmem:[#allocation5_spill] sm:$0xff] %v14219_v2  ;;  %v11135_v19 = vld [vmem:[%s13423_s16 + $0x84] sm:$0xf] }
  0x94   : > { %v2321_v60 = vrot.slane %v2320_v45, 4  ;;  %v2325_v57 = vrot.slane %v2323_v51, 5  ;;  %v2335_v25 = vrot.slane %v2334_v54, 4  ;;  %v2367_v38 = vrot.slane %v2365_v9, 4 }
  0x95   : > { %12404 = vmatmul.mubr.msk.bf16.gmra.mxu1 %vm813_vm3, %v18766_v59  ;;  %v2345_v26 = vrot.slane %v2344_v52, 4  ;;  %v2349_v53 = vrot.slane %v2347_v39, 5  ;;  %v2358_v13 = vor.u32 %v2357_v20, %v2354_v34  ;;  %v2376_v10 = vshrl.u32 %v11129_v3, 16  ;;  %v14253_v34 = vld [vmem:[%s13423_s16 + $0x88] sm:$0xf] }
  0x96   : > { %12407 = vmatprep.mubr.msk.bf16.mxu1 %vm813_vm3, %v18767_v43  ;;  %v2292_v56 = vsel %vm13464_vm4, %v2287_v58, %v14148_v63  ;;  %v2379_v24 = vshll.u32 %v11129_v3, 16  ;;  %v2385_v48 = vshll.u32 %v14200_v27, 16  ;;  %v2389_v42 = vshrl.u32 %v14200_v27, 16  ;;  %v13154_v63 = vld [vmem:[%s13423_s16 + $0xc] sm:$0xff]   ;;  %18769 = vst [vmem:[#allocation7_spill] sm:$0xff] %v14253_v34 }
  0x97   : > { %v2302_v51 = vsel %vm13464_vm4, %v2297_v17, %v2301_v23  ;;  %v2316_v45 = vsel %vm13464_vm4, %v2311_v36, %v14165_v12  ;;  %v2368_v54 = vor.u32 %v2367_v38, %v14211_v46  ;;  %v2371_v11 = vshll.u32 %v14203_v30, 16  ;;  %v14262_v36 = vld [vmem:[%s13423_s16 + $0x74] sm:$0x1]  ;;  %v14266_v43 = vld [vmem:[%s13423_s16 + $0x80] sm:$0x1] }
  0x98   : > { %v2326_v3 = vsel %vm13464_vm4, %v2321_v60, %v2325_v57  ;;  %v2340_v33 = vsel %vm13464_vm4, %v2335_v25, %v14178_v6  ;;  %v2400_v52 = vshrl.u32 %v11132_v16, 16  ;;  %v2403_v12 = vshll.u32 %v11132_v16, 16  ;;  %18771 = vst [vmem:[#allocation6_spill] sm:$0xff] %v14262_v36  ;;  %18772 = vst [vmem:[#allocation8_spill] sm:$0xff] %v14266_v43 }
  0x99   : > { %12442 = vmatmul.mubr.msk.bf16.gmra.mxu0 %vm813_vm3, %v11023_v55  ;;  %v2350_v18 = vsel %vm13464_vm4, %v2345_v26, %v2349_v53  ;;  %v2359_v4 = vrot.slane %v2358_v13, 4  ;;  %v2378_v55 = vrot.slane %v2376_v10, 4  ;;  %v2409_v39 = vshll.u32 %v14219_v2, 16  ;;  %v14275_v26 = vld [vmem:[%s13423_s16 + $0x8c] sm:$0x1]  ;;  %v13155_v10 = vld [vmem:[%s13423_s16 + $0x18] sm:$0xff]  }
  0x9a   : > { %12481 = vmatprep.mubr.msk.bf16.mxu0 %vm813_vm3, %v14119_v15  ;;  %v2381_v9 = vrot.slane %v2379_v24, 5  ;;  %v14249_v58 = vrot.slane %v2385_v48, 5  ;;  %v2391_v23 = vrot.slane %v2389_v42, 4  ;;  %v2413_v6 = vshrl.u32 %v14219_v2, 16  ;;  %18773 = vst [vmem:[#allocation10_spill] sm:$0xff] %v14275_v26 }
  0x9b   : > { %v18770_v15 = vcombine.low %v18754_v29, %v13729_v37  ;;  %v14259_v20 = vcombine.low %v2292_v56, %v2302_v51  ;;  %v2369_v59 = vrot.slane %v2368_v54, 4  ;;  %v2373_v17 = vrot.slane %v2371_v11, 5  ;;  %v11138_v51 = vld [vmem:[%s13423_s16 + $0x90] sm:$0xf] }
  0x9c   : > { %v2402_v16 = vrot.slane %v2400_v52, 4  ;;  %v2405_v60 = vrot.slane %v2403_v12, 5  ;;  %v14268_v57 = vrot.slane %v2409_v39, 5  ;;  %v2415_v37 = vrot.slane %v2413_v6, 4 }
  0x9d   : > { %12408 = vmatmul.mubr.msk.bf16.gmra.mxu1 %vm813_vm3, %v18770_v15  ;;  %v2424_v29 = vshrl.u32 %v11135_v19, 16  ;;  %v14270_v25 = vcombine.low %v2316_v45, %v2326_v3  ;;  %v14272_v38 = vcombine.low %v2340_v33, %v2350_v18  ;;  %v2427_v53 = vshll.u32 %v11135_v19, 16  ;;  %v14286_v45 = vld [vmem:[%s13423_s16 + $0x94] sm:$0xf]  ;;  %v14294_v33 = vld [vmem:[%s18666_s1 + $0x10] sm:$0x3] }
  0x9e   : > { %12447 = vmatprep.mubr.msk.bf16.mxu1 %vm813_vm3, %v13154_v63  ;;  %v2433_v13 = vshll.u32 %v14253_v34, 16  ;;  %v2364_v56 = vsel %vm13464_vm4, %v2359_v4, %v14211_v46  ;;  %v2382_v24 = vor.u32 %v2381_v9, %v2378_v55  ;;  %v2392_v48 = vor.u32 %v2391_v23, %v14249_v58  ;;  %18774 = vst [vmem:[#allocation9_spill] sm:$0xff] %v14286_v45  ;;  %v13156_v46 = vld [vmem:[%s13423_s16 + $0x24] sm:$0xff]   ;;  %v11141_v55 = vld [vmem:[%s13423_s16 + $0x9c] sm:$0xf] }
  0x9f   : > { %v2395_v42 = vshll.u32 %v14262_v36, 16  ;;  %v2426_v54 = vrot.slane %v2424_v29, 4  ;;  %v2429_v11 = vrot.slane %v2427_v53, 5  ;;  %v2437_v3 = vshrl.u32 %v14253_v34, 16  ;;  %18775 = vst [vmem:[#allocation11_spill] sm:$0xff] %v14294_v33 }
  0xa0   : > { %v14288_v63 = vrot.slane %v2433_v13, 5  ;;  %v2374_v52 = vsel %vm13464_vm4, %v2369_v59, %v2373_v17  ;;  %v2406_v12 = vor.u32 %v2405_v60, %v2402_v16  ;;  %v2416_v18 = vor.u32 %v2415_v37, %v14268_v57  ;;  %v14328_v37 = vld [vmem:[%s13423_s16 + $0xa0] sm:$0xf] }
  0xa1   : > { %12482 = vmatmul.mubr.msk.bf16.vlgmr.msra.gmra.mxu0 %vm813_vm3, %v14129_v22  ;;  %v2419_v4 = vshll.u32 %v14266_v43, 16  ;;  %v2430_v39 = vor.u32 %v2429_v11, %v2426_v54  ;;  %v2439_v19 = vrot.slane %v2437_v3, 4  ;;  %v2448_v9 = vshrl.u32 %v11138_v51, 16  ;;  %18777 = vst [vmem:[#allocation12_spill] sm:$0xff] %v14328_v37 }
  0xa2   : > { %12548 = vmatpush3.bf16.msra.mxu0 %v14123_v32  ;;  %12485 = vmatprep.mubr.msk.bf16.mxu0 %vm813_vm3, %v14163_v62  ;;  %v2451_v22 = vshll.u32 %v11138_v51, 16  ;;  %v14307_v23 = vrot.slane %v2382_v24, 4  ;;  %v14309_v6 = vrot.slane %v2395_v42, 5  ;;  %v2443_v15 = vshll.u32 %v14275_v26, 16  ;;  %v14316_v32 = vld [vmem:[%s18666_s1 + $0xe] sm:$0x3] }
  0xa3   : > { %v2457_v59 = vshll.u32 %v14286_v45, 16  ;;  %18776 = vst [vmem:[#allocation13_spill] sm:$0xff] %v14316_v32  ;;  %13126 = vmatprep.subr.msk.bf16.mxu0 %vm862_vm0, %v14294_v33  ;;  %v14321_v62 = vcombine.low %v2364_v56, %v2374_v52  ;;  %v14323_v17 = vrot.slane %v2392_v48, 4  ;;  %v2440_v16 = vor.u32 %v2439_v19, %v14288_v63  ;;  %v14341_v56 = vld [vmem:[%s13423_s16 + $0x98] sm:$0x1]  ;;  %v13158_v19 = vld [vmem:[%s13423_s16 + $0x3c] sm:$0xff]  }
  0xa4   : > { %v2461_v60 = vshrl.u32 %v14286_v45, 16  ;;  %v14332_v29 = vrot.slane %v2406_v12, 4  ;;  %v14334_v53 = vrot.slane %v2416_v18, 4  ;;  %v14336_v13 = vrot.slane %v2419_v4, 5  ;;  %18778 = vst [vmem:[#allocation14_spill] sm:$0xff] %v14341_v56 }
  0xa5   : > { %12448 = vmatmul.mubr.msk.bf16.vlgmr.msra.gmra.mxu1 %vm813_vm3, %v13155_v10  ;;  %v14338_v10 = vrot.slane %v2430_v39, 4  ;;  %v2450_v24 = vrot.slane %v2448_v9, 4  ;;  %v2453_v48 = vrot.slane %v2451_v22, 5  ;;  %v2472_v42 = vshrl.u32 %v11141_v55, 16  ;;  %v11144_v52 = vld [vmem:[%s13423_s16 + $0xa8] sm:$0xf] }
  0xa6   : > { %12514 = vmatpush3.bf16.msra.mxu1 %v14114_v14  ;;  %12451 = vmatprep.mubr.msk.bf16.mxu1 %vm813_vm3, %v13156_v46  ;;  %v2475_v51 = vshll.u32 %v11141_v55, 16  ;;  %v13157_v14 = vld [vmem:[%s13423_s16 + $0x30] sm:$0xff]   ;;  %v14350_v11 = vrot.slane %v2443_v15, 5  ;;  %v14352_v3 = vrot.slane %v2457_v59, 5  ;;  %v2481_v46 = vshll.u32 %v14328_v37, 16 }
  0xa7   : > { %13125 = vmatprep.subr.msk.bf16.mxu1 %vm862_vm0, %v14316_v32  ;;  %v14356_v12 = vrot.slane %v2440_v16, 4  ;;  %v2463_v18 = vrot.slane %v2461_v60, 4  ;;  %v2467_v4 = vshll.u32 %v14341_v56, 16  ;;  %v2485_v55 = vshrl.u32 %v14328_v37, 16  ;;  %v14361_v39 = vld [vmem:[%s13423_s16 + $0xac] sm:$0xf] }
  0xa8   : > { %18779 = vst [vmem:[#allocation15_spill] sm:$0xff] %v14361_v39  ;;  %v14383_v59 = vld [vmem:[%s13423_s16 + $0xa4] sm:$0x1]  ;;  %v2454_v16 = vor.u32 %v2453_v48, %v2450_v24  ;;  %v2474_v60 = vrot.slane %v2472_v42, 4  ;;  %v2477_v54 = vrot.slane %v2475_v51, 5  ;;  %v2496_v9 = vshrl.u32 %v11144_v52, 16 }
  0xa9   : > { %12486 = vmatmul.mubr.msk.bf16.gmra.mxu0 %vm813_vm3, %v14209_v7  ;;  %18780 = vst [vmem:[#allocation4_spill] sm:$0xff] %v14383_v59  ;;  %v14388_v22 = vld [vmem:[%s13423_s16 + $0xb0] sm:$0x1]  ;;  %v14390_v32 = vrot.slane %v2481_v46, 5  ;;  %v2487_v15 = vrot.slane %v2485_v55, 4  ;;  %v2499_v33 = vshll.u32 %v11144_v52, 16  ;;  %v2464_v24 = vor.u32 %v2463_v18, %v14352_v3 }
  0xaa   : > { %12489 = vmatprep.mubr.msk.bf16.mxu0 %vm813_vm3, %v14259_v20  ;;  %18781 = vst [vmem:[#allocation17_spill] sm:$0xff] %v14388_v22  ;;  %v2505_v37 = vshll.u32 %v14361_v39, 16  ;;  %v11147_v7 = vld [vmem:[%s13423_s16 + $0xb4] sm:$0xf]  ;;  %v2446_v20 = vsel %vm13464_vm4, %v14356_v12, %v14350_v11  ;;  %v14400_v48 = vrot.slane %v2467_v4, 5  ;;  %v2498_v42 = vrot.slane %v2496_v9, 4 }
  0xab   : > { %v14403_v51 = vld [vmem:[%s13423_s16 + $0xb8] sm:$0xf]  ;;  %v2491_v46 = vshll.u32 %v14383_v59, 16  ;;  %v2501_v52 = vrot.slane %v2499_v33, 5  ;;  %v2509_v55 = vshrl.u32 %v14361_v39, 16  ;;  %v14410_v11 = vrot.slane %v2454_v16, 4 }
  0xac   : > { %18782 = vst [vmem:[#allocation18_spill] sm:$0xff] %v14403_v51  ;;  %v2478_v12 = vor.u32 %v2477_v54, %v2474_v60  ;;  %v14413_v18 = vld [vmem:[%s13423_s16 + $0xbc] sm:$0x1]  ;;  %v2520_v4 = vshrl.u32 %v11147_v7, 16  ;;  %v2523_v9 = vshll.u32 %v11147_v7, 16  ;;  %v2488_v56 = vor.u32 %v2487_v15, %v14390_v32  ;;  %v13159_v59 = vld [vmem:[%s13423_s16 + $0x48] sm:$0xff]  }
  0xad   : > { %12452 = vmatmul.mubr.msk.bf16.gmra.mxu1 %vm813_vm3, %v13157_v14  ;;  %v14407_v14 = vrot.slane %v2505_v37, 5  ;;  %v2511_v45 = vrot.slane %v2509_v55, 4  ;;  %v2529_v33 = vshll.u32 %v14403_v51, 16  ;;  %v11150_v37 = vld [vmem:[%s13423_s16 + $0xc0] sm:$0xf]  ;;  %v2502_v26 = vor.u32 %v2501_v52, %v2498_v42  ;;  %v13160_v7 = vld [vmem:[%s13423_s16 + $0x54] sm:$0xff]  }
  0xae   : > { %12455 = vmatprep.mubr.msk.bf16.mxu1 %vm813_vm3, %v13158_v19  ;;  %v2515_v19 = vshll.u32 %v14388_v22, 16  ;;  %v2522_v39 = vrot.slane %v2520_v4, 4  ;;  %v2525_v34 = vrot.slane %v2523_v9, 5  ;;  %v2533_v16 = vshrl.u32 %v14403_v51, 16  ;;  %v14422_v54 = vld [vmem:[%s13423_s16 + $0xc4] sm:$0xf] }
  0xaf   : > { %v2465_v60 = vrot.slane %v2464_v24, 4  ;;  %v2493_v15 = vrot.slane %v2491_v46, 5  ;;  %v2512_v55 = vor.u32 %v2511_v45, %v14407_v14  ;;  %v2531_v22 = vrot.slane %v2529_v33, 5  ;;  %v14434_v45 = vld [vmem:[%s13423_s16 + $0xc8] sm:$0x1] }
  0xb0   : > { %v2526_v42 = vor.u32 %v2525_v34, %v2522_v39  ;;  %v2535_v52 = vrot.slane %v2533_v16, 4  ;;  %v2539_v4 = vshll.u32 %v14413_v18, 16  ;;  %v2544_v9 = vshrl.u32 %v11150_v37, 16 }
  0xb1   : > { %12490 = vmatmul.mubr.msk.bf16.gmra.mxu0 %vm813_vm3, %v14270_v25  ;;  %v2479_v51 = vrot.slane %v2478_v12, 4  ;;  %v2489_v43 = vrot.slane %v2488_v56, 4  ;;  %v2547_v2 = vshll.u32 %v11150_v37, 16  ;;  %v2553_v25 = vshll.u32 %v14422_v54, 16 }
  0xb2   : > { %12493 = vmatprep.mubr.msk.bf16.mxu0 %vm813_vm3, %v14272_v38  ;;  %v2503_v24 = vrot.slane %v2502_v26, 4  ;;  %v2517_v46 = vrot.slane %v2515_v19, 5  ;;  %v2536_v36 = vor.u32 %v2535_v52, %v2531_v22  ;;  %v2546_v33 = vrot.slane %v2544_v9, 4  ;;  %v11190_v9 = vld [vmem:[%s13423_s16 + $0x3c] sm:$0xe] }
  0xb3   : > { %v2513_v34 = vrot.slane %v2512_v55, 4  ;;  %v2549_v38 = vrot.slane %v2547_v2, 5  ;;  %v14437_v39 = vrot.slane %v2553_v25, 5  ;;  %v2557_v56 = vshrl.u32 %v14422_v54, 16 }
  0xb4   : > { %v18783_v26 = vsel %vm13464_vm4, %v14323_v17, %v14309_v6  ;;  %v2527_v19 = vrot.slane %v2526_v42, 4  ;;  %v2537_v37 = vrot.slane %v2536_v36, 4  ;;  %v2541_v2 = vrot.slane %v2539_v4, 5 }
  0xb5   : > { %12456 = vmatmul.mubr.msk.bf16.gmra.mxu1 %vm813_vm3, %v13159_v59  ;;  %v18784_v59 = vsel %vm13464_vm4, %v14307_v23, %v14249_v58  ;;  %v18785_v16 = vsel %vm13464_vm4, %v14334_v53, %v14336_v13  ;;  %v18786_v6 = vsel %vm13464_vm4, %v14332_v29, %v14268_v57  ;;  %v2559_v55 = vrot.slane %v2557_v56, 4  ;;  %v13161_v23 = vld [vmem:[%s13423_s16 + $0x60] sm:$0xff]  }
  0xb6   : > { %12459 = vmatprep.mubr.msk.bf16.mxu1 %vm813_vm3, %v13160_v7  ;;  %v11162_v12 = vcombine.low %v18784_v59, %v18783_v26  ;;  %v11163_v17 = vcombine.low %v18786_v6, %v18785_v16  ;;  %v2550_v7 = vor.u32 %v2549_v38, %v2546_v33  ;;  %v2563_v58 = vshll.u32 %v14434_v45, 16  ;;  %v11188_v13 = vld [vmem:[%s13423_s16 + $0x24] sm:$0xe]  ;;  %v11191_v33 = vld [vmem:[%s13423_s16 + $0x48] sm:$0xe] }
  0xb7   : > { %v18787_v36 = vsel %vm13464_vm4, %v14338_v10, %v14288_v63  ;;  %v2460_v53 = vsel %vm13464_vm4, %v14410_v11, %v14352_v3  ;;  %v2470_v57 = vsel %vm13464_vm4, %v2465_v60, %v14400_v48  ;;  %v2484_v29 = vsel %vm13464_vm4, %v2479_v51, %v14390_v32  ;;  %v13162_v63 = vld [vmem:[%s13423_s16 + $0x6c] sm:$0xff]   ;;  %v11192_v6 = vld [vmem:[%s13423_s16 + $0x54] sm:$0xe] }
  0xb8   : > { %v11164_v42 = vcombine.low %v18787_v36, %v2446_v20  ;;  %v2494_v10 = vsel %vm13464_vm4, %v2489_v43, %v2493_v15  ;;  %v2508_v3 = vsel %vm13464_vm4, %v2503_v24, %v14407_v14  ;;  %v2518_v20 = vsel %vm13464_vm4, %v2513_v34, %v2517_v46  ;;  %v14490_v11 = vld [vmem:[%s13423_s16 + $0xc] sm:$0xe]  ;;  %v11189_v14 = vld [vmem:[%s13423_s16 + $0x30] sm:$0xe] }
  0xb9   : > { %12494 = vmatmul.mubr.msk.bf16.gmra.mxu0 %vm813_vm3, %v14321_v62  ;;  %v2560_v48 = vor.u32 %v2559_v55, %v14437_v39  ;;  %v2532_v32 = vsel %vm13464_vm4, %v2527_v19, %v2531_v22  ;;  %v2542_v43 = vsel %vm13464_vm4, %v2537_v37, %v2541_v2  ;;  %v14497_v62 = vrot.slane %v2550_v7, 4  ;;  %v13163_v7 = vld [vmem:[%s13423_s16 + $0x78] sm:$0xff]  }
  0xba   : > { %12497 = vmatprep.mubr.msk.bf16.mxu0 %vm813_vm3, %v11162_v12  ;;  %v2927_v51 = vrot.slane %v13981_v49, 5  ;;  %v14501_v60 = vcombine.low %v2460_v53, %v2470_v57  ;;  %v14505_v52 = vrot.slane %v2563_v58, 5  ;;  %v11204_v4 = vrot.slane %v11188_v13, 9  ;;  %v13164_v53 = vld [vmem:[%s13423_s16 + $0x84] sm:$0xff]   ;;  %v11193_v13 = vld [vmem:[%s13423_s16 + $0x60] sm:$0xe] }
  0xbb   : > { %v14503_v15 = vrot.slane %v2560_v48, 4  ;;  %v14509_v25 = vcombine.low %v2484_v29, %v2494_v10  ;;  %v14511_v22 = vcombine.low %v2508_v3, %v2518_v20  ;;  %v11202_v24 = vrot.slane %v14490_v11, 9  ;;  %v13170_v49 = vld [vmem:[%s13423_s16 + $0x18] sm:$0xff]   ;;  %v14858_v11 = vld [vmem:[%s13423_s16 + $0x30] sm:$0xe] }
  0xbc   : > { %v2941_v46 = vrot.slane %v14030_v44, 5  ;;  %v14517_v34 = vcombine.low %v2532_v32, %v2542_v43  ;;  %v2930_v38 = vrot.slane %v14017_v47, 5  ;;  %v2944_v56 = vrot.slane %v14045_v21, 5 }
  0xbd   : > { %12460 = vmatmul.mubr.msk.bf16.gmra.mxu1 %vm813_vm3, %v13161_v23  ;;  %v11205_v26 = vrot.slane %v11189_v14, 9  ;;  %v2556_v59 = vsel %vm13464_vm4, %v14497_v62, %v14437_v39  ;;  %v14527_v44 = vrot.slane %v2927_v51, 4  ;;  %v2566_v21 = vsel %vm13464_vm4, %v14503_v15, %v14505_v52  ;;  %v11195_v14 = vld [vmem:[%s13423_s16 + $0x78] sm:$0xe]  ;;  %v13169_v52 = vld [vmem:[%s13423_s16 + $0xc0] sm:$0xff]  }
  0xbe   : > { %12463 = vmatprep.mubr.msk.bf16.mxu1 %vm813_vm3, %v13162_v63  ;;  %v14531_v12 = vsel %vm13750_vm7, %v11204_v4, %v2941_v46  ;;  %v2943_v19 = vrot.slane %v2941_v46, 4  ;;  %v2948_v37 = vrot.slane %v14068_v5, 5  ;;  %v2951_v2 = vrot.slane %v14076_v41, 5 }
  0xbf   : > { %v11206_v16 = vrot.slane %v11190_v9, 9  ;;  %v2955_v58 = vrot.slane %v14085_v61, 5  ;;  %v2958_v23 = vrot.slane %v14137_v50, 5  ;;  %v11207_v36 = vrot.slane %v11191_v33, 9 }
  0xc0   : > { %v14543_v55 = vsel %vm13750_vm7, %v2943_v19, %v2944_v56  ;;  %v14553_v41 = vsel %vm13750_vm7, %v11205_v26, %v2948_v37  ;;  %v2950_v57 = vrot.slane %v2948_v37, 4  ;;  %v2962_v29 = vrot.slane %v14103_v1, 5  ;;  %v11196_v19 = vld [vmem:[%s13423_s16 + $0x84] sm:$0xe] }
  0xc1   : > { %12498 = vmatmul.mubr.msk.bf16.gmra.mxu0 %vm813_vm3, %v11163_v17  ;;  %v11221_v5 = vcombine.low %v14531_v12, %v14543_v55  ;;  %v14560_v61 = vsel %vm13750_vm7, %v11206_v16, %v2955_v58  ;;  %v2957_v50 = vrot.slane %v2955_v58, 4  ;;  %v2965_v17 = vrot.slane %v14151_v8, 5  ;;  %v18788_v16 = vld [vmem:[#allocation6_spill] sm:$0xff]  ;;  %v14802_v55 = vld [vmem:[%s13423_s16 + $0x2c] sm:$0x1] }
  0xc2   : > { %12501 = vmatprep.mubr.msk.bf16.mxu0 %vm813_vm3, %v11164_v42  ;;  %v11208_v63 = vrot.slane %v11192_v6, 9  ;;  %v14565_v10 = vsel %vm13750_vm7, %v2950_v57, %v2951_v2  ;;  %v14569_v3 = vsel %vm13750_vm7, %v11207_v36, %v2962_v29  ;;  %v2964_v1 = vrot.slane %v2962_v29, 4  ;;  %v11194_v42 = vld [vmem:[%s13423_s16 + $0x6c] sm:$0xe]  ;;  %v13165_v58 = vld [vmem:[%s13423_s16 + $0x90] sm:$0xff]  }
  0xc3   : > { %v2969_v20 = vrot.slane %v14146_v40, 5  ;;  %v11222_v48 = vcombine.low %v14553_v41, %v14565_v10  ;;  %v14578_v8 = vsel %vm13750_vm7, %v2957_v50, %v2958_v23  ;;  %v2972_v32 = vrot.slane %v14168_v35, 5  ;;  %v18789_v36 = vld [vmem:[#allocation5_spill] sm:$0xff]  ;;  %v11197_v57 = vld [vmem:[%s13423_s16 + $0x90] sm:$0xe]  ;;  %v18790_v50 = vld [vmem:[#allocation8_spill] sm:$0xff] }
  0xc4   : > { %v11209_v43 = vrot.slane %v11193_v13, 9  ;;  %v11223_v40 = vcombine.low %v14560_v61, %v14578_v8  ;;  %v14587_v4 = vsel %vm13750_vm7, %v2964_v1, %v2965_v17  ;;  %v2976_v33 = vrot.slane %v14181_v28, 5  ;;  %v11198_v1 = vld [vmem:[%s13423_s16 + $0x9c] sm:$0xe] }
  0xc5   : > { %12464 = vmatmul.mubr.msk.bf16.gmra.mxu1 %vm813_vm3, %v13163_v7  ;;  %v14591_v9 = vsel %vm13750_vm7, %v11208_v63, %v2969_v20  ;;  %v2971_v46 = vrot.slane %v2969_v20, 4  ;;  %v11224_v35 = vcombine.low %v14569_v3, %v14587_v4  ;;  %v2979_v56 = vrot.slane %v14203_v30, 5  ;;  %v11325_v8 = vld [vmem:[%s13423_s16 + $0x3c] sm:$0xf] }
  0xc6   : > { %12467 = vmatprep.mubr.msk.bf16.mxu1 %vm813_vm3, %v13164_v53  ;;  %v11210_v26 = vrot.slane %v11194_v42, 9  ;;  %v2983_v2 = vrot.slane %v14200_v27, 5  ;;  %v2986_v6 = vrot.slane %v18788_v16, 5  ;;  %v11211_v7 = vrot.slane %v11195_v14, 9  ;;  %v13166_v27 = vld [vmem:[%s13423_s16 + $0x9c] sm:$0xff]   ;;  %v18799_v14 = vld [vmem:[#allocation18_spill] sm:$0xff] }
  0xc7   : > { %v14600_v37 = vsel %vm13750_vm7, %v2971_v46, %v2972_v32  ;;  %v14609_v28 = vsel %vm13750_vm7, %v11209_v43, %v2976_v33  ;;  %v2978_v30 = vrot.slane %v2976_v33, 4  ;;  %v2990_v53 = vrot.slane %v18789_v36, 5  ;;  %v18791_v32 = vld [vmem:[#allocation7_spill] sm:$0xff]  ;;  %v18794_v36 = vld [vmem:[#allocation14_spill] sm:$0xff] }
  0xc8   : > { %v11225_v23 = vcombine.low %v14591_v9, %v14600_v37  ;;  %v14618_v29 = vsel %vm13750_vm7, %v11210_v26, %v2983_v2  ;;  %v2985_v13 = vrot.slane %v2983_v2, 4  ;;  %v2993_v17 = vrot.slane %v18790_v50, 5  ;;  %v13178_v3 = vld [vmem:[%s13423_s16 + $0x78] sm:$0xff]  }
  0xc9   : > { %12502 = vmatmul.mubr.msk.bf16.gmra.mxu0 %vm813_vm3, %v14501_v60  ;;  %v11212_v63 = vrot.slane %v11196_v19, 9  ;;  %v14626_v20 = vsel %vm13750_vm7, %v2978_v30, %v2979_v56  ;;  %v14630_v60 = vsel %vm13750_vm7, %v11211_v7, %v2990_v53  ;;  %v2992_v42 = vrot.slane %v2990_v53, 4  ;;  %v11199_v56 = vld [vmem:[%s13423_s16 + $0xa8] sm:$0xe]  ;;  %v11201_v7 = vld [vmem:[%s13423_s16 + $0xc0] sm:$0xe] }
  0xca   : > { %12505 = vmatprep.mubr.msk.bf16.mxu0 %vm813_vm3, %v14509_v25  ;;  %v2997_v43 = vrot.slane %v18791_v32, 5  ;;  %v14637_v46 = vsel %vm13750_vm7, %v2985_v13, %v2986_v6  ;;  %v18792_v25 = vld [vmem:[#allocation10_spill] sm:$0xff]  ;;  %v11213_v26 = vrot.slane %v11197_v57, 9  ;;  %v3007_v53 = vrot.slane %v18794_v36, 5  ;;  %v13167_v19 = vld [vmem:[%s13423_s16 + $0xa8] sm:$0xff]  }
  0xcb   : > { %v3000_v33 = vrot.slane %v18792_v25, 5  ;;  %v14646_v2 = vsel %vm13750_vm7, %v2992_v42, %v2993_v17  ;;  %v11214_v57 = vrot.slane %v11198_v1, 9  ;;  %v11200_v13 = vld [vmem:[%s13423_s16 + $0xb4] sm:$0xe]  ;;  %v18795_v17 = vld [vmem:[#allocation12_spill] sm:$0xff]  ;;  %v18797_v1 = vld [vmem:[#allocation15_spill] sm:$0xff]  ;;  %v2931_v39 = vsel %vm13750_vm7, %v14527_v44, %v2930_v38 }
  0xcc   : > { %v14650_v16 = vsel %vm13750_vm7, %v11212_v63, %v2997_v43  ;;  %v2999_v6 = vrot.slane %v2997_v43, 4  ;;  %v3011_v63 = vrot.slane %v18795_v17, 5  ;;  %v18796_v42 = vld [vmem:[#allocation4_spill] sm:$0xff]  ;;  %v11215_v43 = vrot.slane %v11199_v56, 9  ;;  %v18798_v17 = vld [vmem:[#allocation17_spill] sm:$0xff] }
  0xcd   : > { %12468 = vmatmul.mubr.msk.bf16.gmra.mxu1 %vm813_vm3, %v13165_v58  ;;  %v18793_v58 = vld [vmem:[#allocation9_spill] sm:$0xff]  ;;  %v3014_v32 = vrot.slane %v18796_v42, 5  ;;  %v3018_v36 = vrot.slane %v18797_v1, 5  ;;  %v3021_v42 = vrot.slane %v18798_v17, 5  ;;  %v11216_v56 = vrot.slane %v11200_v13, 9 }
  0xce   : > { %12471 = vmatprep.mubr.msk.bf16.mxu1 %vm813_vm3, %v13166_v27  ;;  %v3004_v30 = vrot.slane %v18793_v58, 5  ;;  %v14660_v50 = vsel %vm13750_vm7, %v2999_v6, %v3000_v33  ;;  %v14675_v33 = vsel %vm13750_vm7, %v11214_v57, %v3011_v63  ;;  %v3013_v6 = vrot.slane %v3011_v63, 4  ;;  %v13168_v27 = vld [vmem:[%s13423_s16 + $0xb4] sm:$0xff]   ;;  %v13323_v44 = vld [vmem:[%s13423_s16 + $0x20] sm:$0x1]  ;;  %v13171_v17 = vld [vmem:[%s13423_s16 + $0x24] sm:$0xff]  }
  0xcf   : > { %v3020_v1 = vrot.slane %v3018_v36, 4  ;;  %v3025_v57 = vrot.slane %v18799_v14, 5  ;;  %v11217_v63 = vrot.slane %v11201_v7, 9  ;;  %v3032_v7 = vrot.slane %v14422_v54, 5 }
  0xd0   : > { %v14668_v25 = vsel %vm13750_vm7, %v11213_v26, %v3004_v30  ;;  %v3006_v58 = vrot.slane %v3004_v30, 4  ;;  %v14687_v30 = vsel %vm13750_vm7, %v11215_v43, %v3018_v36  ;;  %v2928_v54 = vsel %vm13750_vm7, %v11202_v24, %v2927_v51  ;;  %v13177_v43 = vld [vmem:[%s13423_s16 + $0x6c] sm:$0xff]  }
  0xd1   : > { %12506 = vmatmul.mubr.msk.bf16.gmra.mxu0 %vm813_vm3, %v14511_v22  ;;  %v14696_v22 = vsel %vm13750_vm7, %v3013_v6, %v3014_v32  ;;  %v14703_v14 = vsel %vm13750_vm7, %v3020_v1, %v3021_v42  ;;  %v3035_v32 = vrot.slane %v14434_v45, 5  ;;  %v11187_v45 = vld [vmem:[%s13423_s16 + $0x18] sm:$0xe]  ;;  %v14747_v62 = vsel %vm13750_vm7, %v11217_v63, %v3032_v7 }
  0xd2   : > { %v14683_v26 = vsel %vm13750_vm7, %v3006_v58, %v3007_v53  ;;  %12509 = vmatprep.mubr.msk.bf16.mxu0 %vm813_vm3, %v14517_v34  ;;  %v3028_v53 = vrot.slane %v14413_v18, 5  ;;  %v14707_v34 = vsel %vm13750_vm7, %v11216_v56, %v3025_v57  ;;  %v3027_v58 = vrot.slane %v3025_v57, 4  ;;  %v11316_v42 = vld [vmem:[%s13423_s16 + $0x18] sm:$0xf]  ;;  %v14768_v57 = vld [vmem:[%s13423_s16 + $0x1c] sm:$0xf] }
  0xd3   : > { %v3034_v51 = vrot.slane %v3032_v7, 4  ;;  %v11203_v24 = vrot.slane %v11187_v45, 9  ;;  %v11219_v38 = vcombine.low %v2928_v54, %v2931_v39  ;;  %v18800_v63 = vld [vmem:[#allocation11_spill] sm:$0xff]  ;;  %v3739_v7 = vshrl.u32 %v11316_v42, 16  ;;  %v11328_v18 = vld [vmem:[%s13423_s16 + $0x48] sm:$0xf] }
  0xd4   : > { %v14735_v15 = vsel %vm13750_vm7, %v3027_v58, %v3028_v53  ;;  %v13172_v53 = vld [vmem:[%s13423_s16 + $0x30] sm:$0xff]   ;;  %v4691_v58 = vsel %vm862_vm0, %v18800_v63, 0  ;;  %v3748_v54 = vshll.u32 %v14768_v57, 16  ;;  %v3752_v45 = vshrl.u32 %v14768_v57, 16 }
  0xd5   : > { %12472 = vmatmul.mubr.msk.bf16.gmra.mxu1 %vm813_vm3, %v13167_v19  ;;  %v11169_v19 = vcombine.low %v2556_v59, %v2566_v21  ;;  %v14752_v47 = vsel %vm13750_vm7, %v3034_v51, %v3035_v32  ;;  %v2937_v21 = vrot.slane %v13323_v44, 5  ;;  %v3742_v32 = vshll.u32 %v11316_v42, 16  ;;  %v13173_v51 = vld [vmem:[%s13423_s16 + $0x3c] sm:$0xff]   ;;  %v13174_v42 = vld [vmem:[%s13423_s16 + $0x48] sm:$0xff]  }
  0xd6   : > { %12475 = vmatprep.mubr.msk.bf16.mxu1 %vm813_vm3, %v13168_v27  ;;  %v13322_v27 = vld [vmem:[%s13423_s16 + $0x1c] sm:$0xf]  ;;  %v3754_v44 = vrot.slane %v3752_v45, 4  ;;  %v3811_v13 = vshrl.u32 %v11325_v8, 16 }
  0xd7   : > { %v2934_v36 = vrot.slane %v13322_v27, 5  ;;  %v11319_v27 = vld [vmem:[%s13423_s16 + $0x24] sm:$0xf] }
  0xd9   : > { %12510 = vmatmul.mubr.msk.bf16.gmra.mxu0 %vm813_vm3, %v11169_v19  ;;  %v2936_v59 = vrot.slane %v2934_v36, 4  ;;  %v2935_v56 = vsel %vm13750_vm7, %v11203_v24, %v2934_v36  ;;  %v18801_v36 = vld [vmem:[#allocation13_spill] sm:$0xff]  ;;  %v3741_v24 = vrot.slane %v3739_v7, 4 }
  0xda   : > { %12549 = vmatprep.mubr.msk.bf16.mxu0 %vm813_vm3, %v13170_v49  ;;  %v4221_v39 = vsel %vm862_vm0, %v18801_v36, 0  ;;  %v14781_v49 = vld [vmem:[%s13423_s16 + $0x28] sm:$0xf]  ;;  %v11322_v36 = vld [vmem:[%s13423_s16 + $0x30] sm:$0xf] }
  0xdb   : > { %v2938_v1 = vsel %vm13750_vm7, %v2936_v59, %v2937_v21  ;;  %v14786_v59 = vrot.slane %v3748_v54, 5  ;;  %v3763_v21 = vshrl.u32 %v11319_v27, 16  ;;  %v4489_v41 = vrot.slane %v14781_v49, 5 }
  0xdc   : > { %v11220_v19 = vcombine.low %v2935_v56, %v2938_v1  ;;  %v3772_v56 = vshll.u32 %v14781_v49, 16  ;;  %v3776_v1 = vshrl.u32 %v14781_v49, 16  ;;  %v3787_v10 = vshrl.u32 %v11322_v36, 16 }
  0xdd   : > { %12476 = vmatmul.mubr.msk.bf16.gmra.mxu1 %vm813_vm3, %v13169_v52  ;;  %v11318_v52 = vld [vmem:[%s13423_s16 + $0x20] sm:$0x1] }
  0xde   : > { %12515 = vmatprep.mubr.msk.bf16.mxu1 %vm813_vm3, %v11219_v38  ;;  %v3744_v38 = vrot.slane %v3742_v32, 5  ;;  %v3758_v7 = vshll.u32 %v11318_v52, 16  ;;  %v4482_v32 = vrot.slane %v14768_v57, 5  ;;  %v14805_v54 = vrot.slane %v3772_v56, 5  ;;  %v14810_v57 = vld [vmem:[%s13423_s16 + $0x34] sm:$0xf] }
  0xdf   : > { %v3778_v45 = vrot.slane %v3776_v1, 4  ;;  %v13176_v1 = vld [vmem:[%s13423_s16 + $0x60] sm:$0xff]   ;;  %v3800_v61 = vshrl.u32 %v14810_v57, 16 }
  0xe0   : > { %v3745_v63 = vor.u32 %v3744_v38, %v3741_v24  ;;  %v4485_v24 = vrot.slane %v11318_v52, 5  ;;  %v13175_v52 = vld [vmem:[%s13423_s16 + $0x54] sm:$0xff]  }
  0xe1   : > { %12550 = vmatmul.mubr.msk.bf16.vlgmr.msra.gmra.mxu0 %vm813_vm3, %v13171_v17  ;;  %v3766_v17 = vshll.u32 %v11319_v27, 16  ;;  %v11398_v27 = vld [vmem:[%s13423_s16 + $0x24] sm:$0xe] }
  0xe2   : > { %12616 = vmatpush3.bf16.msra.mxu0 %v4691_v58  ;;  %12553 = vmatprep.mubr.msk.bf16.mxu0 %vm813_vm3, %v13172_v53  ;;  %v11397_v53 = vld [vmem:[%s13423_s16 + $0x18] sm:$0xe]  ;;  %v3755_v58 = vor.u32 %v3754_v44, %v14786_v59  ;;  %v3746_v38 = vrot.slane %v3745_v63, 4  ;;  %v3782_v63 = vshll.u32 %v14802_v55, 16 }
  0xe4   : > { %v3756_v44 = vrot.slane %v3755_v58, 4  ;;  %v3796_v58 = vshll.u32 %v14810_v57, 16 }
  0xe5   : > { %12516 = vmatmul.mubr.msk.bf16.vlgmr.msra.gmra.mxu1 %vm813_vm3, %v11220_v19  ;;  %v14799_v12 = vpop.f32.mrf.mxu0  ;;  %v3768_v19 = vrot.slane %v3766_v17, 5  ;;  %v4484_v17 = vrot.slane %v4482_v32, 4 }
  0xe6   : > { %12582 = vmatpush3.bf16.msra.mxu1 %v4221_v39  ;;  %12519 = vmatprep.mubr.msk.bf16.mxu1 %vm813_vm3, %v11221_v5  ;;  %18802 = vst [vmem:[#allocation6_spill] sm:$0xff] %v14799_v12  ;;  %v3765_v5 = vrot.slane %v3763_v21, 4  ;;  %v11413_v39 = vrot.slane %v11397_v53, 9  ;;  %v3760_v21 = vrot.slane %v3758_v7, 5  ;;  %v3779_v53 = vor.u32 %v3778_v45, %v14805_v54 }
  0xe7   : > { %v4492_v7 = vrot.slane %v14802_v55, 5  ;;  %v14849_v55 = vsel %vm13750_vm7, %v4484_v17, %v4485_v24  ;;  %v14861_v24 = vrot.slane %v3796_v58, 5  ;;  %v3802_v17 = vrot.slane %v3800_v61, 4 }
  0xe8   : > { %v3769_v56 = vor.u32 %v3768_v19, %v3765_v5  ;;  %v14834_v5 = vld [vmem:[%s13423_s16 + $0x40] sm:$0xf]  ;;  %v3751_v19 = vsel %vm13464_vm4, %v3746_v38, %v14786_v59  ;;  %v3761_v45 = vsel %vm13464_vm4, %v3756_v44, %v3760_v21  ;;  %v4491_v38 = vrot.slane %v4489_v41, 4 }
  0xe9   : > { %12554 = vmatmul.mubr.msk.bf16.gmra.mxu0 %vm813_vm3, %v13173_v51  ;;  %v3789_v44 = vrot.slane %v3787_v10, 4  ;;  %v14868_v10 = vld [vmem:[%s13423_s16 + $0x4c] sm:$0xf]  ;;  %v3824_v58 = vshrl.u32 %v14834_v5, 16  ;;  %v3803_v37 = vor.u32 %v3802_v17, %v14861_v24  ;;  %v14915_v17 = vld [vmem:[%s13423_s16 + $0x58] sm:$0xf] }
  0xea   : > { %12557 = vmatprep.mubr.msk.bf16.mxu0 %vm813_vm3, %v13174_v42  ;;  %v14816_v51 = vpop.f32.mrf.mxu1  ;;  %v14823_v42 = vpop.f32.mrf.mxu0  ;;  %v3770_v59 = vrot.slane %v3769_v56, 4  ;;  %v3814_v56 = vshll.u32 %v11325_v8, 16 }
  0xeb   : > { %18803 = vst [vmem:[#allocation5_spill] sm:$0xff] %v14816_v51  ;;  %18804 = vst [vmem:[#allocation8_spill] sm:$0xff] %v14823_v42 }
  0xec   : > { %v14836_v49 = vpop.f32.mrf.mxu1  ;;  %v14855_v6 = vpop.f32.mrf.mxu0 }
  0xed   : > { %12520 = vmatmul.mubr.msk.bf16.gmra.mxu1 %vm813_vm3, %v11222_v48  ;;  %v3790_v48 = vshll.u32 %v11322_v36, 16  ;;  %18805 = vst [vmem:[#allocation7_spill] sm:$0xff] %v14836_v49  ;;  %v14845_v36 = vsel %vm13750_vm7, %v11413_v39, %v4482_v32  ;;  %18806 = vst [vmem:[#allocation10_spill] sm:$0xff] %v14855_v6  ;;  %v3780_v32 = vrot.slane %v3779_v53, 4  ;;  %v3784_v39 = vrot.slane %v3782_v63, 5  ;;  %v13179_v49 = vld [vmem:[%s13423_s16 + $0x84] sm:$0xff]  }
  0xee   : > { %12523 = vmatprep.mubr.msk.bf16.mxu1 %vm813_vm3, %v11223_v40  ;;  %v11414_v40 = vrot.slane %v11398_v27, 9  ;;  %v14852_v27 = vld [vmem:[%s13423_s16 + $0x38] sm:$0x1]  ;;  %v3820_v63 = vshll.u32 %v14834_v5, 16  ;;  %v14889_v4 = vpop.f32.mrf.mxu0 }
  0xef   : > { %v3792_v21 = vrot.slane %v3790_v48, 5  ;;  %v14874_v48 = vpop.f32.mrf.mxu1  ;;  %18808 = vst [vmem:[#allocation14_spill] sm:$0xff] %v14889_v4  ;;  %v3806_v8 = vshll.u32 %v14852_v27, 16  ;;  %v3785_v9 = vsel %vm13464_vm4, %v3780_v32, %v3784_v39  ;;  %v3848_v32 = vshrl.u32 %v14868_v10, 16  ;;  %v11331_v39 = vld [vmem:[%s13423_s16 + $0x54] sm:$0xf] }
  0xf0   : > { %18807 = vst [vmem:[#allocation9_spill] sm:$0xff] %v14874_v48  ;;  %v14880_v53 = vsel %vm13750_vm7, %v11414_v40, %v4489_v41  ;;  %v14896_v41 = vsel %vm13750_vm7, %v4491_v38, %v4492_v7  ;;  %v14900_v40 = vld [vmem:[%s13423_s16 + $0x44] sm:$0x1]  ;;  %v3835_v7 = vshrl.u32 %v11328_v18, 16  ;;  %v4503_v48 = vrot.slane %v14834_v5, 5 }
  0xf1   : > { %12558 = vmatmul.mubr.msk.bf16.gmra.mxu0 %vm813_vm3, %v13175_v52  ;;  %v3793_v61 = vor.u32 %v3792_v21, %v3789_v44  ;;  %v14907_v38 = vpop.f32.mrf.mxu1  ;;  %v14909_v44 = vrot.slane %v3820_v63, 5  ;;  %v3826_v21 = vrot.slane %v3824_v58, 4  ;;  %v3844_v52 = vshll.u32 %v14868_v10, 16  ;;  %v11400_v63 = vld [vmem:[%s13423_s16 + $0x3c] sm:$0xe] }
  0xf2   : > { %12561 = vmatprep.mubr.msk.bf16.mxu0 %vm813_vm3, %v13176_v1  ;;  %v14876_v1 = vcombine.low %v3751_v19, %v3761_v45  ;;  %v3813_v19 = vrot.slane %v3811_v13, 4  ;;  %v3816_v45 = vrot.slane %v3814_v56, 5  ;;  %18809 = vst [vmem:[#allocation12_spill] sm:$0xff] %v14907_v38  ;;  %v4499_v56 = vrot.slane %v14852_v27, 5 }
  0xf3   : > { %v14929_v58 = vrot.slane %v3803_v37, 4  ;;  %v18812_v27 = vcombine.low %v14609_v28, %v14626_v20  ;;  %v3859_v20 = vshrl.u32 %v11331_v39, 16 }
  0xf5   : > { %12524 = vmatmul.mubr.msk.bf16.gmra.mxu1 %vm813_vm3, %v11224_v35  ;;  %v3775_v35 = vsel %vm13464_vm4, %v3770_v59, %v14805_v54  ;;  %v4496_v54 = vrot.slane %v14810_v57, 5  ;;  %v3838_v59 = vshll.u32 %v11328_v18, 16  ;;  %v14924_v57 = vrot.slane %v3806_v8, 5  ;;  %v14937_v18 = vld [vmem:[%s13423_s16 + $0x50] sm:$0x1] }
  0xf6   : > { %12527 = vmatprep.mubr.msk.bf16.mxu1 %vm813_vm3, %v11225_v23  ;;  %v11415_v23 = vrot.slane %v14858_v11, 9  ;;  %v14918_v13 = vpop.f32.mrf.mxu0  ;;  %v14922_v11 = vrot.slane %v3793_v61, 4  ;;  %v14934_v51 = vcombine.low %v3775_v35, %v3785_v9  ;;  %v3817_v61 = vor.u32 %v3816_v45, %v3813_v19 }
  0xf7   : > { %18810 = vst [vmem:[#allocation4_spill] sm:$0xff] %v14918_v13  ;;  %v4498_v38 = vrot.slane %v4496_v54, 4  ;;  %v3837_v8 = vrot.slane %v3835_v7, 4  ;;  %v3840_v13 = vrot.slane %v3838_v59, 5  ;;  %v3827_v35 = vor.u32 %v3826_v21, %v14909_v44  ;;  %v11334_v21 = vld [vmem:[%s13423_s16 + $0x60] sm:$0xf] }
  0xf8   : > { %18811 = vst [vmem:[#allocation15_spill] sm:$0xff] %v14934_v51  ;;  %v14948_v5 = vsel %vm13750_vm7, %v11415_v23, %v4496_v54  ;;  %v14951_v9 = vrot.slane %v3844_v52, 5  ;;  %v3850_v19 = vrot.slane %v3848_v32, 4  ;;  %v18814_v45 = vcombine.low %v14618_v29, %v14637_v46  ;;  %v14957_v28 = vpop.f32.mrf.mxu0  ;;  %v11401_v54 = vld [vmem:[%s13423_s16 + $0x48] sm:$0xe] }
  0xf9   : > { %12562 = vmatmul.mubr.msk.bf16.gmra.mxu0 %vm813_vm3, %v13177_v43  ;;  %v3830_v43 = vshll.u32 %v14900_v40, 16  ;;  %18815 = vst [vmem:[#allocation18_spill] sm:$0xff] %v14957_v28  ;;  %v3862_v7 = vshll.u32 %v11331_v39, 16  ;;  %v3868_v59 = vshll.u32 %v14915_v17, 16  ;;  %v14967_v29 = vsel %vm13750_vm7, %v4498_v38, %v4499_v56 }
  0xfa   : > { %12565 = vmatprep.mubr.msk.bf16.mxu0 %vm813_vm3, %v13178_v3  ;;  %v13180_v3 = vld [vmem:[%s13423_s16 + $0x90] sm:$0xff]   ;;  %v14944_v37 = vpop.f32.mrf.mxu1  ;;  %v11416_v23 = vrot.slane %v11400_v63, 9  ;;  %v14973_v32 = vrot.slane %v3817_v61, 4  ;;  %v4505_v39 = vrot.slane %v4503_v48, 4  ;;  %v14978_v52 = vrot.slane %v3827_v35, 4 }
  0xfb   : > { %18813 = vst [vmem:[#allocation17_spill] sm:$0xff] %v14944_v37  ;;  %v14969_v46 = vrot.slane %v3830_v43, 5  ;;  %v3841_v37 = vor.u32 %v3840_v13, %v3837_v8  ;;  %v3851_v4 = vor.u32 %v3850_v19, %v14951_v9  ;;  %v3854_v38 = vshll.u32 %v14937_v18, 16  ;;  %v14984_v63 = vld [vmem:[%s13423_s16 + $0x5c] sm:$0x1] }
  0xfc   : > { %v14976_v28 = vpop.f32.mrf.mxu1  ;;  %v4510_v56 = vrot.slane %v14868_v10, 5  ;;  %v14987_v43 = vld [vmem:[%s13423_s16 + $0x64] sm:$0xf]  ;;  %v3861_v13 = vrot.slane %v3859_v20, 4  ;;  %v3864_v61 = vrot.slane %v3862_v7, 5  ;;  %v14992_v8 = vrot.slane %v3868_v59, 5 }
  0xfd   : > { %12528 = vmatmul.mubr.msk.bf16.gmra.mxu1 %vm813_vm3, %v18812_v27  ;;  %v3872_v27 = vshrl.u32 %v14915_v17, 16  ;;  %18816 = vst [vmem:[#allocation11_spill] sm:$0xff] %v14976_v28  ;;  %v15001_v19 = vsel %vm13750_vm7, %v11416_v23, %v4503_v48  ;;  %v3883_v28 = vshrl.u32 %v11334_v21, 16  ;;  %v3886_v20 = vshll.u32 %v11334_v21, 16  ;;  %v13181_v7 = vld [vmem:[%s13423_s16 + $0x9c] sm:$0xff]  }
  0xfe   : > { %12531 = vmatprep.mubr.msk.bf16.mxu1 %vm813_vm3, %v18814_v45  ;;  %v4506_v45 = vrot.slane %v14900_v40, 5  ;;  %v14990_v40 = vpop.f32.mrf.mxu0  ;;  %v11417_v48 = vrot.slane %v11401_v54, 9  ;;  %v11337_v23 = vld [vmem:[%s13423_s16 + $0x6c] sm:$0xf]  ;;  %v18818_v10 = vcombine.low %v14630_v60, %v14646_v2  ;;  %v15022_v21 = vpop.f32.mrf.mxu1  ;;  %v15026_v6 = vrot.slane %v3854_v38, 5 }
  0xff   : > { %18817 = vst [vmem:[#allocation13_spill] sm:$0xff] %v14990_v40  ;;  %v3874_v35 = vrot.slane %v3872_v27, 4  ;;  %v15015_v27 = vrot.slane %v3841_v37, 4  ;;  %18819 = vst [vmem:[#allocation19_spill] sm:$0xff] %v15022_v21  ;;  %v15024_v40 = vrot.slane %v3851_v4, 4  ;;  %v18820_v54 = vcombine.low %v14650_v16, %v14660_v50  ;;  %v13182_v2 = vld [vmem:[%s13423_s16 + $0xa8] sm:$0xff]  }
 0x100   : > { %v15013_v59 = vsel %vm13750_vm7, %v4505_v39, %v4506_v45  ;;  %v4513_v39 = vrot.slane %v14937_v18, 5  ;;  %v15030_v37 = vld [vmem:[%s13423_s16 + $0x54] sm:$0xe]  ;;  %v15036_v60 = vpop.f32.mrf.mxu0  ;;  %v3865_v45 = vor.u32 %v3864_v61, %v3861_v13  ;;  %v3878_v4 = vshll.u32 %v14984_v63, 16  ;;  %v15043_v21 = vld [vmem:[%s13423_s16 + $0x60] sm:$0xe] }
 0x101   : > { %12566 = vmatmul.mubr.msk.bf16.gmra.mxu0 %vm813_vm3, %v13179_v49  ;;  %v15004_v49 = vld [vmem:[%s13423_s16 + $0x68] sm:$0x1]  ;;  %18821 = vst [vmem:[#allocation20_spill] sm:$0xff] %v15036_v60  ;;  %v3833_v16 = vsel %vm13464_vm4, %v14978_v52, %v14969_v46  ;;  %v3875_v50 = vor.u32 %v3874_v35, %v14992_v8  ;;  %v3885_v18 = vrot.slane %v3883_v28, 4  ;;  %v15051_v60 = vld [vmem:[%s13423_s16 + $0x70] sm:$0xf]  ;;  %v3847_v13 = vsel %vm13464_vm4, %v15015_v27, %v14951_v9  ;;  %v15063_v52 = vpop.f32.mrf.mxu1 }
 0x102   : > { %12569 = vmatprep.mubr.msk.bf16.mxu0 %vm813_vm3, %v13180_v3  ;;  %v4512_v3 = vrot.slane %v4510_v56, 4  ;;  %v15059_v61 = vsel %vm13750_vm7, %v11417_v48, %v4510_v56  ;;  %v3896_v38 = vshrl.u32 %v14987_v43, 16  ;;  %v3902_v42 = vshll.u32 %v15004_v49, 16  ;;  %18822 = vst [vmem:[#allocation21_spill] sm:$0xff] %v15063_v52  ;;  %v11340_v56 = vld [vmem:[%s13423_s16 + $0x78] sm:$0xf] }
 0x103   : > { %v3857_v28 = vsel %vm13464_vm4, %v15024_v40, %v15026_v6  ;;  %v3907_v9 = vshrl.u32 %v11337_v23, 16  ;;  %v3910_v35 = vshll.u32 %v11337_v23, 16  ;;  %v15077_v27 = vrot.slane %v3865_v45, 4  ;;  %v13183_v52 = vld [vmem:[%s13423_s16 + $0xb4] sm:$0xff]   ;;  %v15111_v45 = vld [vmem:[%s13423_s16 + $0x80] sm:$0x1] }
 0x104   : > { %v15071_v46 = vsel %vm13750_vm7, %v4512_v3, %v4513_v39  ;;  %v15079_v48 = vrot.slane %v3878_v4, 5  ;;  %v11418_v6 = vrot.slane %v15030_v37, 9  ;;  %v4520_v40 = vrot.slane %v14984_v63, 5  ;;  %v15095_v37 = vld [vmem:[%s13423_s16 + $0x74] sm:$0x1] }
 0x105   : > { %12532 = vmatmul.mubr.msk.bf16.gmra.mxu1 %vm813_vm3, %v18818_v10  ;;  %v3892_v10 = vshll.u32 %v14987_v43, 16  ;;  %18823 = vst [vmem:[#allocation22_spill] sm:$0xff] %v15071_v46  ;;  %v15084_v3 = vrot.slane %v3875_v50, 4  ;;  %v18825_v23 = vrot.slane %v14915_v17, 5  ;;  %v15092_v12 = vrot.slane %v3902_v42, 5 }
 0x106   : > { %12535 = vmatprep.mubr.msk.bf16.mxu1 %vm813_vm3, %v18820_v54  ;;  %v3888_v54 = vrot.slane %v3886_v20, 5  ;;  %v3916_v63 = vshll.u32 %v15051_v60, 16  ;;  %v18826_v50 = vcombine.low %v14668_v25, %v14683_v26  ;;  %v3909_v42 = vrot.slane %v3907_v9, 4  ;;  %v15232_v46 = vld [vmem:[%s13423_s16 + $0x94] sm:$0xf] }
 0x107   : > { %v15075_v20 = vpop.f32.mrf.mxu0  ;;  %v4519_v39 = vrot.slane %v18825_v23, 4  ;;  %v13184_v23 = vld [vmem:[%s13423_s16 + $0xc0] sm:$0xff]   ;;  %v18828_v51 = vcombine.low %v14675_v33, %v14696_v22  ;;  %v18830_v26 = vsel %vm13464_vm4, %v14929_v58, %v14924_v57  ;;  %v18831_v9 = vsel %vm13464_vm4, %v14922_v11, %v14861_v24 }
 0x108   : > { %18824 = vst [vmem:[#allocation23_spill] sm:$0xff] %v15075_v20  ;;  %v3889_v4 = vor.u32 %v3888_v54, %v3885_v18  ;;  %v3898_v20 = vrot.slane %v3896_v38, 4  ;;  %v3912_v38 = vrot.slane %v3910_v35, 5  ;;  %v3920_v54 = vshrl.u32 %v15051_v60, 16 }
 0x109   : > { %12570 = vmatmul.mubr.msk.bf16.gmra.mxu0 %vm813_vm3, %v13181_v7  ;;  %v15088_v7 = vrot.slane %v3892_v10, 5  ;;  %v15117_v25 = vpop.f32.mrf.mxu0  ;;  %v15129_v35 = vcombine.low %v18831_v9, %v18830_v26  ;;  %v3931_v33 = vshrl.u32 %v11340_v56, 16  ;;  %v3934_v22 = vshll.u32 %v11340_v56, 16  ;;  %v15148_v26 = vld [vmem:[%s13423_s16 + $0x88] sm:$0xf] }
 0x10a   : > { %12573 = vmatprep.mubr.msk.bf16.mxu0 %vm813_vm3, %v13182_v2  ;;  %v15099_v2 = vld [vmem:[%s13423_s16 + $0x7c] sm:$0xf]  ;;  %18829 = vst [vmem:[#allocation25_spill] sm:$0xff] %v15117_v25  ;;  %v18832_v18 = vsel %vm13464_vm4, %v14973_v32, %v14909_v44  ;;  %v15143_v24 = vcombine.low %v3847_v13, %v3857_v28  ;;  %v15150_v9 = vrot.slane %v3889_v4, 4  ;;  %v3922_v32 = vrot.slane %v3920_v54, 4 }
 0x10b   : > { %v15139_v57 = vcombine.low %v18832_v18, %v3833_v16  ;;  %v3899_v56 = vor.u32 %v3898_v20, %v15088_v7  ;;  %v3926_v16 = vshll.u32 %v15095_v37, 16  ;;  %v15160_v13 = vld [vmem:[%s13423_s16 + $0x6c] sm:$0xe]  ;;  %v3940_v28 = vshll.u32 %v15099_v2, 16  ;;  %v15165_v4 = vpop.f32.mrf.mxu0 }
 0x10c   : > { %v15105_v10 = vpop.f32.mrf.mxu1  ;;  %18834 = vst [vmem:[#allocation27_spill] sm:$0xff] %v15143_v24  ;;  %v3944_v18 = vshrl.u32 %v15099_v2, 16  ;;  %18836 = vst [vmem:[#allocation29_spill] sm:$0xff] %v15165_v4  ;;  %v3933_v20 = vrot.slane %v3931_v33, 4  ;;  %v3950_v11 = vshll.u32 %v15111_v45, 16  ;;  %v18837_v54 = vrot.slane %v14915_v17, 5 }
 0x10d   : > { %12536 = vmatmul.mubr.msk.bf16.gmra.mxu1 %vm813_vm3, %v18826_v50  ;;  %18827 = vst [vmem:[#allocation24_spill] sm:$0xff] %v15105_v10  ;;  %18833 = vst [vmem:[#allocation26_spill] sm:$0xff] %v15139_v57  ;;  %v4527_v50 = vrot.slane %v15004_v49, 5  ;;  %v15154_v10 = vrot.slane %v3916_v63, 5  ;;  %v18708_v49 = vrot.slane %v15051_v60, 5  ;;  %v3936_v63 = vrot.slane %v3934_v22, 5 }
 0x10e   : > { %12539 = vmatprep.mubr.msk.bf16.mxu1 %vm813_vm3, %v18828_v51  ;;  %v11343_v51 = vld [vmem:[%s13423_s16 + $0x84] sm:$0xf]  ;;  %v15156_v44 = vpop.f32.mrf.mxu1  ;;  %v15174_v58 = vsel %vm13750_vm7, %v11418_v6, %v18837_v54  ;;  %v13185_v24 = vld [vmem:[%s13423_s16 + $0xcc] sm:$0xff]   ;;  %v3871_v33 = vsel %vm13464_vm4, %v15077_v27, %v14992_v8  ;;  %v3964_v17 = vshll.u32 %v15148_v26, 16  ;;  %v3968_v6 = vshrl.u32 %v15148_v26, 16 }
 0x10f   : > { %18835 = vst [vmem:[#allocation28_spill] sm:$0xff] %v15156_v44  ;;  %v3913_v44 = vor.u32 %v3912_v38, %v3909_v42  ;;  %v3955_v25 = vshrl.u32 %v11343_v51, 16  ;;  %v18838_v42 = vcombine.low %v14687_v30, %v14703_v14  ;;  %v15195_v8 = vsel %vm13750_vm7, %v4519_v39, %v4520_v40  ;;  %v11405_v22 = vld [vmem:[%s13423_s16 + $0x78] sm:$0xe] }
 0x110   : > { %v15191_v38 = vpop.f32.mrf.mxu1  ;;  %v3923_v27 = vor.u32 %v3922_v32, %v15154_v10  ;;  %v18841_v30 = vcombine.low %v14707_v34, %v14735_v15  ;;  %v15207_v14 = vrot.slane %v3899_v56, 4  ;;  %v18842_v54 = vrot.slane %v14987_v43, 5  ;;  %v11346_v56 = vld [vmem:[%s13423_s16 + $0x90] sm:$0xf] }
 0x111   : > { %12574 = vmatmul.mubr.msk.bf16.gmra.mxu0 %vm813_vm3, %v13183_v52  ;;  %v3958_v52 = vshll.u32 %v11343_v51, 16  ;;  %18839 = vst [vmem:[#allocation30_spill] sm:$0xff] %v15191_v38  ;;  %v15201_v51 = vpop.f32.mrf.mxu0  ;;  %v15211_v39 = vrot.slane %v3926_v16, 5  ;;  %v11420_v32 = vrot.slane %v15160_v13, 9  ;;  %v4534_v34 = vrot.slane %v15095_v37, 5 }
 0x112   : > { %12577 = vmatprep.mubr.msk.bf16.mxu0 %vm813_vm3, %v13184_v23  ;;  %v3881_v23 = vsel %vm13464_vm4, %v15084_v3, %v15079_v48  ;;  %v15198_v48 = vrot.slane %v3940_v28, 5  ;;  %v3946_v3 = vrot.slane %v3944_v18, 4  ;;  %18840 = vst [vmem:[#allocation31_spill] sm:$0xff] %v15201_v51  ;;  %v4526_v40 = vrot.slane %v18842_v54, 4  ;;  %v15215_v28 = vld [vmem:[%s13423_s16 + $0x8c] sm:$0x1]  ;;  %v15226_v51 = vpop.f32.mrf.mxu1 }
 0x113   : > { %v15217_v18 = vrot.slane %v3913_v44, 4  ;;  %v4538_v15 = vrot.slane %v15099_v2, 5  ;;  %v3960_v38 = vrot.slane %v3958_v52, 5  ;;  %v15224_v54 = vrot.slane %v3964_v17, 5  ;;  %18843 = vst [vmem:[#allocation32_spill] sm:$0xff] %v15226_v51 }
 0x114   : > { %v3970_v16 = vrot.slane %v3968_v6, 4  ;;  %v3924_v13 = vrot.slane %v3923_v27, 4  ;;  %v3937_v4 = vor.u32 %v3936_v63, %v3933_v20  ;;  %v3947_v44 = vor.u32 %v3946_v3, %v15198_v48 }
 0x115   : > { %12540 = vmatmul.mubr.msk.bf16.gmra.mxu1 %vm813_vm3, %v18838_v42  ;;  %v4533_v42 = vrot.slane %v18708_v49, 4  ;;  %v15229_v57 = vrot.slane %v3950_v11, 5  ;;  %v15237_v37 = vcombine.low %v3871_v33, %v3881_v23  ;;  %v18844_v2 = vrot.slane %v14987_v43, 5 }
 0x116   : > { %12543 = vmatprep.mubr.msk.bf16.mxu1 %vm813_vm3, %v18841_v30  ;;  %v3957_v30 = vrot.slane %v3955_v25, 4  ;;  %v18845_v25 = vrot.slane %v15043_v21, 9  ;;  %v11421_v20 = vrot.slane %v11405_v22, 9  ;;  %v4541_v11 = vrot.slane %v15111_v45, 5 }
 0x117   : > { %v18846_v63 = vcombine.low %v14845_v36, %v14849_v55  ;;  %v15258_v43 = vsel %vm13750_vm7, %v4526_v40, %v4527_v50  ;;  %v4540_v21 = vrot.slane %v4538_v15, 4  ;;  %v3974_v33 = vshll.u32 %v15215_v28, 16  ;;  %v11406_v40 = vld [vmem:[%s13423_s16 + $0x84] sm:$0xe] }
 0x118   : > { %v15245_v52 = vsel %vm13750_vm7, %v18845_v25, %v18844_v2  ;;  %v3961_v45 = vor.u32 %v3960_v38, %v3957_v30  ;;  %v3971_v36 = vor.u32 %v3970_v16, %v15224_v54  ;;  %v3979_v55 = vshrl.u32 %v11346_v56, 16 }
 0x119   : > { %v15234_v49 = vpop.f32.mrf.mxu0  ;;  %12578 = vmatmul.mubr.msk.bf16.gmra.mxu0 %vm813_vm3, %v13185_v24  ;;  %v3895_v24 = vsel %vm13464_vm4, %v15150_v9, %v15088_v7  ;;  %v3982_v17 = vshll.u32 %v11346_v56, 16  ;;  %v18847_v7 = vcombine.low %v14747_v62, %v14752_v47  ;;  %v3938_v50 = vrot.slane %v3937_v4, 4 }
 0x11a   : > { %12617 = vmatprep.mubr.msk.bf16.mxu0 %vm813_vm3, %v18846_v63  ;;  %v3948_v9 = vrot.slane %v3947_v44, 4  ;;  %v3988_v27 = vshll.u32 %v15232_v46, 16  ;;  %v3992_v3 = vshrl.u32 %v15232_v46, 16  ;;  %v3905_v22 = vsel %vm13464_vm4, %v15207_v14, %v15092_v12  ;;  %v11349_v44 = vld [vmem:[%s13423_s16 + $0x9c] sm:$0xf] }
 0x11b   : > { %v15261_v23 = vpop.f32.mrf.mxu0  ;;  %v3919_v62 = vsel %vm13464_vm4, %v15217_v18, %v15154_v10  ;;  %v18848_v47 = vrot.slane %v15051_v60, 5  ;;  %v3929_v12 = vsel %vm13464_vm4, %v3924_v13, %v15211_v39  ;;  %v15302_v10 = vsel %vm13750_vm7, %v11421_v20, %v4538_v15 }
 0x11c   : > { %v15306_v60 = vsel %vm13750_vm7, %v4540_v21, %v4541_v11  ;;  %v3976_v14 = vrot.slane %v3974_v33, 5  ;;  %v3981_v30 = vrot.slane %v3979_v55, 4  ;;  %v3984_v16 = vrot.slane %v3982_v17, 5  ;;  %v15348_v17 = vld [vmem:[%s13423_s16 + $0xa0] sm:$0xf]  ;;  %v18855_v55 = vld [vmem:[#allocation10_spill] sm:$0xff] }
 0x11d   : > { %v15264_v6 = vpop.f32.mrf.mxu1  ;;  %12544 = vmatmul.mubr.msk.bf16.gmra.mxu1 %vm813_vm3, %v18847_v7  ;;  %v15272_v38 = vpop.f32.mrf.mxu0  ;;  %v15288_v4 = vsel %vm13750_vm7, %v11420_v32, %v18848_v47  ;;  %v15309_v32 = vld [vmem:[%s13423_s16 + $0x98] sm:$0x1]  ;;  %v3943_v39 = vsel %vm13464_vm4, %v3938_v50, %v15198_v48  ;;  %v3953_v15 = vsel %vm13464_vm4, %v3948_v9, %v15229_v57  ;;  %v15322_v13 = vrot.slane %v3988_v27, 5  ;;  %v11407_v50 = vld [vmem:[%s13423_s16 + $0x90] sm:$0xe] }
 0x11e   : > { %12583 = vmatprep.mubr.msk.bf16.mxu1 %vm813_vm3, %v14876_v1  ;;  %v15292_v1 = vsel %vm13750_vm7, %v4533_v42, %v4534_v34  ;;  %v3962_v42 = vrot.slane %v3961_v45, 4  ;;  %v3972_v34 = vrot.slane %v3971_v36, 4  ;;  %v3994_v25 = vrot.slane %v3992_v3, 4  ;;  %v18852_v27 = vld [vmem:[#allocation15_spill] sm:$0xff] }
 0x11f   : > { %v15295_v56 = vpop.f32.mrf.mxu1  ;;  %v15311_v18 = vpop.f32.mrf.mxu0  ;;  %v18849_v11 = vcombine.low %v14880_v53, %v14896_v41  ;;  %v11422_v21 = vrot.slane %v11406_v40, 9  ;;  %v4545_v33 = vrot.slane %v15148_v26, 5  ;;  %v18851_v45 = vcombine.low %v14948_v5, %v14967_v29  ;;  %v18853_v40 = vld [vmem:[#allocation6_spill] sm:$0xff] }
 0x120   : > { %v15339_v53 = vcombine.low %v3895_v24, %v3905_v22  ;;  %v15341_v41 = vcombine.low %v3919_v62, %v3929_v12  ;;  %v15350_v7 = vcombine.low %v3943_v39, %v3953_v15  ;;  %v3967_v5 = vsel %vm13464_vm4, %v3962_v42, %v15224_v54 }
 0x121   : > { %v15314_v2 = vpop.f32.mrf.mxu1  ;;  %v12415_v20 = vpop.f32.mrf.mxu0  ;;  %12618 = vmatmul.mubr.msk.bf16.vlgmr.msra.gmra.mxu0 %vm813_vm3, %v18849_v11  ;;  %v3985_v29 = vor.u32 %v3984_v16, %v3981_v30  ;;  %v3998_v24 = vshll.u32 %v15309_v32, 16  ;;  %v3977_v3 = vsel %vm13464_vm4, %v3972_v34, %v3976_v14  ;;  %v3995_v22 = vor.u32 %v3994_v25, %v15322_v13  ;;  %v18854_v11 = vld [vmem:[#allocation8_spill] sm:$0xff] }
 0x122   : > { %12621 = vmatprep.mubr.msk.bf16.mxu0 %vm813_vm3, %v18851_v45  ;;  %v4003_v62 = vshrl.u32 %v11349_v44, 16  ;;  %v4006_v47 = vshll.u32 %v11349_v44, 16  ;;  %v15367_v54 = vsel %vm13750_vm7, %v11422_v21, %v4545_v33  ;;  %v4547_v42 = vrot.slane %v4545_v33, 4 }
 0x123   : > { %v15333_v57 = vpop.f32.mrf.mxu1  ;;  %v1617_v26 = vpop.f32.mrf.mxu0  ;;  %v4548_v30 = vrot.slane %v15215_v28, 5  ;;  %v11423_v15 = vrot.slane %v11407_v50, 9  ;;  %v4552_v14 = vrot.slane %v15232_v46, 5  ;;  %v4012_v34 = vshll.u32 %v15348_v17, 16 }
 0x124   : > { %18850 = vst [vmem:[#allocation33_spill] sm:$0xff] %v15333_v57  ;;  %v4016_v44 = vshrl.u32 %v15348_v17, 16  ;;  %v15378_v21 = vrot.slane %v3985_v29, 4  ;;  %v3996_v28 = vrot.slane %v3995_v22, 4  ;;  %v4005_v50 = vrot.slane %v4003_v62, 4 }
 0x125   : > { %v12381_v9 = vpop.f32.mrf.mxu1  ;;  %12584 = vmatmul.mubr.msk.bf16.vlgmr.msra.gmra.mxu1 %vm813_vm3, %v18852_v27  ;;  %v12416_v39 = vpop.f32.mrf.mxu0  ;;  %v4000_v27 = vrot.slane %v3998_v24, 5  ;;  %v4008_v46 = vrot.slane %v4006_v47, 5  ;;  %v4555_v29 = vrot.slane %v15309_v32, 5  ;;  %v11352_v24 = vld [vmem:[%s13423_s16 + $0xa8] sm:$0xf]  ;;  %v18859_v32 = vld [vmem:[#allocation14_spill] sm:$0xff] }
 0x126   : > { %v1201_v12 = vadd.f32 %v12381_v9, %v18853_v40  ;;  %12587 = vmatprep.mubr.msk.bf16.mxu1 %vm813_vm3, %v15129_v35  ;;  %v15376_v9 = vcombine.low %v3967_v5, %v3977_v3  ;;  %v15389_v5 = vsel %vm13750_vm7, %v4547_v42, %v4548_v30  ;;  %v4018_v62 = vrot.slane %v4016_v44, 4  ;;  %v15404_v47 = vld [vmem:[%s13423_s16 + $0xac] sm:$0xf] }
 0x127   : > { %v1192_v16 = vpop.f32.mrf.mxu1  ;;  %v1620_v45 = vpop.f32.mrf.mxu0  ;;  %v4027_v44 = vshrl.u32 %v11352_v24, 16 }
 0x128   : > { %v15373_v25 = vadd.f32 %v12415_v20, %v1201_v12  ;;  %v1193_v35 = vadd.f32 %v1192_v16, %v18854_v11  ;;  %v18856_v12 = vcombine.low %v15001_v19, %v15013_v59  ;;  %v15399_v19 = vsel %vm13750_vm7, %v11423_v15, %v4552_v14  ;;  %v11351_v11 = vld [vmem:[%s13423_s16 + $0xa4] sm:$0x1] }
 0x129   : > { %v12382_v33 = vpop.f32.mrf.mxu1  ;;  %v12419_v20 = vpop.f32.mrf.mxu0  ;;  %v4554_v59 = vrot.slane %v4552_v14, 4  ;;  %v4559_v15 = vrot.slane %v15348_v17, 5  ;;  %v4036_v17 = vshll.u32 %v15404_v47, 16 }
 0x12a   : > { %v15380_v40 = vadd.f32 %v1617_v26, %v1193_v35  ;;  %v1204_v36 = vadd.f32 %v12382_v33, %v18855_v55  ;;  %12622 = vmatmul.mubr.msk.bf16.gmra.mxu0 %vm813_vm3, %v18856_v12  ;;  %v18857_v26 = vld [vmem:[#allocation22_spill] sm:$0xff]  ;;  %v15401_v55 = vrot.slane %v4012_v34, 5  ;;  %v11408_v35 = vld [vmem:[%s13423_s16 + $0x9c] sm:$0xe]  ;;  %v4030_v33 = vshll.u32 %v11352_v24, 16 }
 0x12b   : > { %v1195_v3 = vpop.f32.mrf.mxu1  ;;  %v18858_v22 = vcombine.low %v15059_v61, %v18857_v26  ;;  %v1633_v16 = vpop.f32.mrf.mxu0  ;;  %v3991_v61 = vsel %vm13464_vm4, %v15378_v21, %v15322_v13  ;;  %v18860_v34 = vld [vmem:[#allocation26_spill] sm:$0xff]  ;;  %v18863_v13 = vld [vmem:[#allocation27_spill] sm:$0xff]  ;;  %v4040_v21 = vshrl.u32 %v15404_v47, 16 }
 0x12c   : > { %v15406_v42 = vadd.f32 %v12416_v39, %v1204_v36  ;;  %v1196_v30 = vadd.f32 %v1195_v3, %v18859_v32  ;;  %v4001_v36 = vsel %vm13464_vm4, %v3996_v28, %v4000_v27  ;;  %v4009_v39 = vor.u32 %v4008_v46, %v4005_v50  ;;  %v18862_v3 = vld [vmem:[#allocation4_spill] sm:$0xff]  ;;  %v18864_v46 = vld [vmem:[#allocation18_spill] sm:$0xff] }
 0x12d   : > { %12625 = vmatprep.mubr.msk.bf16.mxu0 %vm813_vm3, %v18858_v22  ;;  %v12385_v14 = vpop.f32.mrf.mxu1  ;;  %12588 = vmatmul.mubr.msk.bf16.gmra.mxu1 %vm813_vm3, %v18860_v34  ;;  %v12420_v22 = vpop.f32.mrf.mxu0  ;;  %v15429_v34 = vsel %vm13750_vm7, %v4554_v59, %v4555_v29  ;;  %v4019_v28 = vor.u32 %v4018_v62, %v15401_v55  ;;  %v4022_v27 = vshll.u32 %v11351_v11, 16  ;;  %v4029_v29 = vrot.slane %v4027_v44, 4 }
 0x12e   : > { %v15420_v12 = vadd.f32 %v1620_v45, %v1196_v30  ;;  %v1217_v26 = vadd.f32 %v12385_v14, %v18862_v3  ;;  %12591 = vmatprep.mubr.msk.bf16.mxu1 %vm813_vm3, %v18863_v13  ;;  %v11424_v45 = vrot.slane %v11408_v35, 9  ;;  %v4561_v14 = vrot.slane %v4559_v15, 4 }
 0x12f   : > { %v1208_v32 = vpop.f32.mrf.mxu1  ;;  %v1636_v30 = vpop.f32.mrf.mxu0  ;;  %v4562_v3 = vrot.slane %v11351_v11, 5  ;;  %v15437_v63 = vrot.slane %v4009_v39, 4  ;;  %v4032_v59 = vrot.slane %v4030_v33, 5  ;;  %v15447_v11 = vld [vmem:[%s13423_s16 + $0xb0] sm:$0x1]  ;;  %v4042_v39 = vrot.slane %v4040_v21, 4 }
 0x130   : > { %18861 = vst [vmem:[#allocation15_spill] sm:$0xff] %v15420_v12  ;;  %v15432_v50 = vadd.f32 %v12419_v20, %v1217_v26  ;;  %v1209_v24 = vadd.f32 %v1208_v32, %v18864_v46  ;;  %v18865_v12 = vld [vmem:[#allocation13_spill] sm:$0xff]  ;;  %v18866_v26 = vcombine.low %v15174_v58, %v15195_v8  ;;  %v15449_v32 = vrot.slane %v4036_v17, 5  ;;  %v18868_v21 = vld [vmem:[#allocation20_spill] sm:$0xff] }
 0x131   : > { %v12386_v13 = vpop.f32.mrf.mxu1  ;;  %v12423_v20 = vpop.f32.mrf.mxu0  ;;  %v18867_v44 = vcombine.low %v15245_v52, %v15258_v43  ;;  %v15459_v58 = vrot.slane %v4019_v28, 4  ;;  %v15461_v8 = vrot.slane %v4022_v27, 5  ;;  %v15469_v52 = vsel %vm13750_vm7, %v11424_v45, %v4559_v15  ;;  %v15485_v45 = vld [vmem:[%s13423_s16 + $0xb8] sm:$0xf] }
 0x132   : > { %v15439_v62 = vadd.f32 %v1633_v16, %v1209_v24  ;;  %v1220_v35 = vadd.f32 %v12386_v13, %v18865_v12  ;;  %12626 = vmatmul.mubr.msk.bf16.gmra.mxu0 %vm813_vm3, %v18866_v26  ;;  %v15455_v16 = vcombine.low %v3991_v61, %v4001_v36  ;;  %v11409_v12 = vld [vmem:[%s13423_s16 + $0xa8] sm:$0xe]  ;;  %v15473_v43 = vsel %vm13750_vm7, %v4561_v14, %v4562_v3  ;;  %v11355_v61 = vld [vmem:[%s13423_s16 + $0xb4] sm:$0xf]  ;;  %v18870_v14 = vld [vmem:[#allocation23_spill] sm:$0xff] }
 0x133   : > { %v1211_v46 = vpop.f32.mrf.mxu1  ;;  %12629 = vmatprep.mubr.msk.bf16.mxu0 %vm813_vm3, %v18867_v44  ;;  %v1649_v13 = vpop.f32.mrf.mxu0  ;;  %v4033_v28 = vor.u32 %v4032_v59, %v4029_v29  ;;  %v4046_v27 = vshll.u32 %v15447_v11, 16  ;;  %v4566_v15 = vrot.slane %v15404_v47, 5  ;;  %v4025_v47 = vsel %vm13464_vm4, %v15459_v58, %v15461_v8 }
 0x134   : > { %v15464_v17 = vadd.f32 %v12420_v22, %v1220_v35  ;;  %v1212_v24 = vadd.f32 %v1211_v46, %v18868_v21  ;;  %v11425_v46 = vrot.slane %v11409_v12, 9  ;;  %v4051_v29 = vshrl.u32 %v11355_v61, 16 }
 0x135   : > { %v12389_v36 = vpop.f32.mrf.mxu1  ;;  %12592 = vmatmul.mubr.msk.bf16.gmra.mxu1 %vm813_vm3, %v15237_v37  ;;  %v12424_v26 = vpop.f32.mrf.mxu0  ;;  %v4043_v37 = vor.u32 %v4042_v39, %v15449_v32  ;;  %v4054_v59 = vshll.u32 %v11355_v61, 16  ;;  %v4060_v39 = vshll.u32 %v15485_v45, 16  ;;  %v4064_v12 = vshrl.u32 %v15485_v45, 16 }
 0x136   : > { %v15487_v35 = vadd.f32 %v1636_v30, %v1212_v24  ;;  %v1233_v3 = vadd.f32 %v12389_v36, %v18870_v14  ;;  %12595 = vmatprep.mubr.msk.bf16.mxu1 %vm813_vm3, %v15339_v53  ;;  %v18871_v24 = vld [vmem:[#allocation25_spill] sm:$0xff]  ;;  %v11358_v14 = vld [vmem:[%s13423_s16 + $0xc0] sm:$0xf]  ;;  %v4034_v48 = vrot.slane %v4033_v28, 4  ;;  %v4048_v58 = vrot.slane %v4046_v27, 5 }
 0x137   : > { %v1224_v44 = vpop.f32.mrf.mxu1  ;;  %v1652_v53 = vpop.f32.mrf.mxu0  ;;  %v4568_v8 = vrot.slane %v4566_v15, 4  ;;  %v4569_v30 = vrot.slane %v15447_v11, 5  ;;  %v15518_v28 = vld [vmem:[%s13423_s16 + $0xc4] sm:$0xf]  ;;  %v18874_v11 = vcombine.low %v15302_v10, %v15306_v60  ;;  %v4066_v57 = vrot.slane %v4064_v12, 4 }
 0x138   : > { %18869 = vst [vmem:[#allocation6_spill] sm:$0xff] %v15487_v35  ;;  %v15499_v21 = vadd.f32 %v12423_v20, %v1233_v3  ;;  %v1225_v36 = vadd.f32 %v1224_v44, %v18871_v24  ;;  %v18872_v20 = vld [vmem:[#allocation29_spill] sm:$0xff]  ;;  %v18873_v44 = vcombine.low %v15288_v4, %v15292_v1  ;;  %v4044_v24 = vrot.slane %v4043_v37, 4  ;;  %v18875_v37 = vld [vmem:[#allocation31_spill] sm:$0xff] }
 0x139   : > { %v12390_v33 = vpop.f32.mrf.mxu1  ;;  %v12427_v3 = vpop.f32.mrf.mxu0  ;;  %v15515_v35 = vsel %vm13750_vm7, %v11425_v46, %v4566_v15  ;;  %v4075_v4 = vshrl.u32 %v11358_v14, 16  ;;  %v4078_v1 = vshll.u32 %v11358_v14, 16  ;;  %v15530_v46 = vrot.slane %v4060_v39, 5  ;;  %v11410_v14 = vld [vmem:[%s13423_s16 + $0xb4] sm:$0xe] }
 0x13a   : > { %v15506_v22 = vadd.f32 %v1649_v13, %v1225_v36  ;;  %v1236_v61 = vadd.f32 %v12390_v33, %v18872_v20  ;;  %12630 = vmatmul.mubr.msk.bf16.gmra.mxu0 %vm813_vm3, %v18873_v44  ;;  %v15525_v33 = vld [vmem:[%s13423_s16 + $0xbc] sm:$0x1]  ;;  %v4053_v13 = vrot.slane %v4051_v29, 4  ;;  %v4056_v36 = vrot.slane %v4054_v59, 5 }
 0x13b   : > { %v1227_v27 = vpop.f32.mrf.mxu1  ;;  %12633 = vmatprep.mubr.msk.bf16.mxu0 %vm813_vm3, %v18874_v11  ;;  %v1665_v15 = vpop.f32.mrf.mxu0  ;;  %v4039_v10 = vsel %vm13464_vm4, %v4034_v48, %v15449_v32  ;;  %v15539_v60 = vsel %vm13750_vm7, %v4568_v8, %v4569_v30  ;;  %v4088_v29 = vshrl.u32 %v15518_v28, 16  ;;  %v4070_v48 = vshll.u32 %v15525_v33, 16 }
 0x13c   : > { %v15527_v20 = vadd.f32 %v12424_v26, %v1236_v61  ;;  %v1228_v44 = vadd.f32 %v1227_v27, %v18875_v37  ;;  %v4084_v26 = vshll.u32 %v15518_v28, 16  ;;  %v4057_v30 = vor.u32 %v4056_v36, %v4053_v13 }
 0x13d   : > { %v12393_v51 = vpop.f32.mrf.mxu1  ;;  %12596 = vmatmul.mubr.msk.bf16.gmra.mxu1 %vm813_vm3, %v15341_v41  ;;  %v12428_v12 = vpop.f32.mrf.mxu0  ;;  %v4049_v41 = vsel %vm13464_vm4, %v4044_v24, %v4048_v58  ;;  %v4573_v8 = vrot.slane %v15485_v45, 5  ;;  %v4077_v61 = vrot.slane %v4075_v4, 4  ;;  %v4080_v27 = vrot.slane %v4078_v1, 5 }
 0x13e   : > { %v15543_v59 = vadd.f32 %v1652_v53, %v1228_v44  ;;  %v1249_v39 = vadd.f32 %v12393_v51, %v15234_v49  ;;  %12599 = vmatprep.mubr.msk.bf16.mxu1 %vm813_vm3, %v15350_v7  ;;  %v18876_v7 = vsel %vm13464_vm4, %v15437_v63, %v15401_v55  ;;  %v4067_v24 = vor.u32 %v4066_v57, %v15530_v46 }
 0x13f   : > { %v1240_v32 = vpop.f32.mrf.mxu1  ;;  %v1668_v51 = vpop.f32.mrf.mxu0  ;;  %v15561_v58 = vcombine.low %v18876_v7, %v4025_v47  ;;  %v15564_v45 = vcombine.low %v4039_v10, %v4049_v41  ;;  %v15568_v13 = vrot.slane %v4084_v26, 5  ;;  %v18877_v63 = vcombine.low %v15367_v54, %v15389_v5  ;;  %v11360_v47 = vld [vmem:[%s13423_s16 + $0xc8] sm:$0x1]  ;;  %v15589_v5 = vld [vmem:[%s13423_s16 + $0xd0] sm:$0xf] }
 0x140   : > { %v15553_v53 = vadd.f32 %v12427_v3, %v1249_v39  ;;  %v1241_v49 = vadd.f32 %v1240_v32, %v15261_v23  ;;  %v11442_v3 = vcombine.low %v15515_v35, %v15539_v60  ;;  %v4090_v23 = vrot.slane %v4088_v29, 4  ;;  %v11361_v35 = vld [vmem:[%s13423_s16 + $0xcc] sm:$0xf]  ;;  %v11411_v41 = vld [vmem:[%s13423_s16 + $0xc0] sm:$0xe] }
 0x141   : > { %v12394_v11 = vpop.f32.mrf.mxu1  ;;  %v12431_v1 = vpop.f32.mrf.mxu0  ;;  %v15577_v57 = vrot.slane %v4070_v48, 5  ;;  %v11426_v55 = vrot.slane %v11410_v14, 9  ;;  %v18878_v44 = vcombine.low %v15399_v19, %v15429_v34  ;;  %v4576_v10 = vrot.slane %v15525_v33, 5 }
 0x142   : > { %v15570_v36 = vadd.f32 %v1665_v15, %v1241_v49  ;;  %v1252_v4 = vadd.f32 %v12394_v11, %v15272_v38  ;;  %12634 = vmatmul.mubr.msk.bf16.gmra.mxu0 %vm813_vm3, %v18877_v63  ;;  %v15585_v15 = vrot.slane %v4057_v30, 4  ;;  %v4575_v38 = vrot.slane %v4573_v8, 4 }
 0x143   : > { %v1243_v37 = vpop.f32.mrf.mxu1  ;;  %12637 = vmatprep.mubr.msk.bf16.mxu0 %vm813_vm3, %v18878_v44  ;;  %v4081_v54 = vor.u32 %v4080_v27, %v4077_v61  ;;  %v1681_v29 = vpop.f32.mrf.mxu0  ;;  %v15594_v39 = vrot.slane %v4067_v24, 4  ;;  %v4580_v19 = vrot.slane %v15518_v28, 5  ;;  %v4091_v48 = vor.u32 %v4090_v23, %v15568_v13  ;;  %v18880_v23 = vld [vmem:[#allocation7_spill] sm:$0xff] }
 0x144   : > { %v15591_v60 = vadd.f32 %v12428_v12, %v1252_v4  ;;  %v1244_v26 = vadd.f32 %v1243_v37, %v15311_v18  ;;  %v4094_v33 = vshll.u32 %v11360_v47, 16  ;;  %v4099_v32 = vshrl.u32 %v11361_v35, 16  ;;  %v18879_v12 = vld [vmem:[#allocation5_spill] sm:$0xff] }
 0x145   : > { %v12397_v34 = vpop.f32.mrf.mxu1  ;;  %12600 = vmatmul.mubr.msk.bf16.gmra.mxu1 %vm813_vm3, %v15376_v9  ;;  %v4102_v30 = vshll.u32 %v11361_v35, 16  ;;  %v12432_v18 = vpop.f32.mrf.mxu0  ;;  %v4108_v27 = vshll.u32 %v15589_v5, 16  ;;  %v4112_v28 = vshrl.u32 %v15589_v5, 16  ;;  %v4574_v9 = vsel %vm13750_vm7, %v11426_v55, %v4573_v8  ;;  %v18881_v55 = vld [vmem:[#allocation9_spill] sm:$0xff] }
 0x146   : > { %v15601_v14 = vadd.f32 %v1668_v51, %v1244_v26  ;;  %v1265_v61 = vadd.f32 %v12397_v34, %v18879_v12  ;;  %12603 = vmatprep.mubr.msk.bf16.mxu1 %vm813_vm3, %v15455_v16  ;;  %v4577_v7 = vsel %vm13750_vm7, %v4575_v38, %v4576_v10  ;;  %v4082_v24 = vrot.slane %v4081_v54, 4 }
 0x147   : > { %v1256_v49 = vpop.f32.mrf.mxu1  ;;  %v11427_v51 = vrot.slane %v11411_v41, 9  ;;  %v15615_v63 = vpop.f32.mrf.mxu0  ;;  %v4582_v16 = vrot.slane %v4580_v19, 4  ;;  %v4583_v35 = vrot.slane %v11360_v47, 5  ;;  %v4092_v44 = vrot.slane %v4091_v48, 4  ;;  %v11363_v48 = vld [vmem:[%s13423_s16 + $0xd4] sm:$0x1] }
 0x148   : > { %v15612_v11 = vadd.f32 %v12431_v1, %v1265_v61  ;;  %v1257_v4 = vadd.f32 %v1256_v49, %v18880_v23  ;;  %v4096_v26 = vrot.slane %v4094_v33, 5  ;;  %v4101_v34 = vrot.slane %v4099_v32, 4  ;;  %v11412_v61 = vld [vmem:[%s13423_s16 + $0xcc] sm:$0xe] }
 0x149   : > { %v12398_v37 = vpop.f32.mrf.mxu1  ;;  %v4104_v12 = vrot.slane %v4102_v30, 5  ;;  %v12435_v10 = vpop.f32.mrf.mxu0  ;;  %v18882_v1 = vcombine.low %v15469_v52, %v15473_v43  ;;  %v15624_v54 = vrot.slane %v4108_v27, 5  ;;  %v4114_v41 = vrot.slane %v4112_v28, 4 }
 0x14a   : > { %v15617_v8 = vadd.f32 %v1681_v29, %v1257_v4  ;;  %v1268_v38 = vadd.f32 %v12398_v37, %v18881_v55  ;;  %v4587_v33 = vrot.slane %v15589_v5, 5  ;;  %v4063_v52 = vsel %vm13464_vm4, %v15585_v15, %v15530_v46 }
 0x14b   : > { %12638 = vmatmul.mubr.msk.bf16.gmra.mxu0 %vm813_vm3, %v18882_v1  ;;  %v15626_v47 = vpop.f32.mrf.mxu1  ;;  %v1697_v32 = vpop.f32.mrf.mxu0  ;;  %v4581_v43 = vsel %vm13750_vm7, %v11427_v51, %v4580_v19  ;;  %v4584_v30 = vsel %vm13750_vm7, %v4582_v16, %v4583_v35  ;;  %v11443_v5 = vcombine.low %v4574_v9, %v4577_v7  ;;  %v4087_v46 = vsel %vm13464_vm4, %v4082_v24, %v15568_v13  ;;  %v18883_v19 = vld [vmem:[#allocation17_spill] sm:$0xff]  ;;  %v18884_v13 = vld [vmem:[#allocation11_spill] sm:$0xff] }
 0x14c   : > { %12641 = vmatprep.mubr.msk.bf16.mxu0 %vm813_vm3, %v11442_v3  ;;  %v15631_v29 = vadd.f32 %v12432_v18, %v1268_v38  ;;  %v4073_v3 = vsel %vm13464_vm4, %v15594_v39, %v15577_v57  ;;  %v4105_v15 = vor.u32 %v4104_v12, %v4101_v34  ;;  %v4115_v49 = vor.u32 %v4114_v41, %v15624_v54 }
 0x14d   : > { %v12401_v27 = vpop.f32.mrf.mxu1  ;;  %12604 = vmatmul.mubr.msk.bf16.gmra.mxu1 %vm813_vm3, %v15561_v58  ;;  %v12436_v28 = vpop.f32.mrf.mxu0  ;;  %v4097_v58 = vsel %vm13464_vm4, %v4092_v44, %v4096_v26  ;;  %v4118_v51 = vshll.u32 %v11363_v48, 16  ;;  %v11444_v57 = vcombine.low %v4581_v43, %v4584_v30  ;;  %v11428_v39 = vrot.slane %v11412_v61, 9  ;;  %v18885_v44 = vld [vmem:[#allocation19_spill] sm:$0xff] }
 0x14e   : > { %v1281_v18 = vadd.f32 %v12401_v27, %v18883_v19  ;;  %12607 = vmatprep.mubr.msk.bf16.mxu1 %vm813_vm3, %v15564_v45  ;;  %v4589_v9 = vrot.slane %v4587_v33, 4  ;;  %v4590_v7 = vrot.slane %v11363_v48, 5  ;;  %v11378_v37 = vcombine.low %v4063_v52, %v4073_v3  ;;  %v13187_v30 = vld [vmem:[%s18668_s3 + $0x38] sm:$0xff]   ;;  %v18886_v3 = vld [vmem:[#allocation24_spill] sm:$0xff] }
 0x14f   : > { %v1272_v23 = vpop.f32.mrf.mxu1  ;;  %v15660_v16 = vpop.f32.mrf.mxu0  ;;  %v11379_v45 = vcombine.low %v4087_v46, %v4097_v58  ;;  %v4106_v34 = vrot.slane %v4105_v15, 4  ;;  %v4116_v38 = vrot.slane %v4115_v49, 4  ;;  %v4120_v1 = vrot.slane %v4118_v51, 5  ;;  %12697 = vmatprep.subr.bf16.mxu0 %v13187_v30 }
 0x150   : > { %v15657_v4 = vadd.f32 %v12435_v10, %v1281_v18  ;;  %v1273_v24 = vadd.f32 %v1272_v23, %v18884_v13  ;;  %v13186_v10 = vld [vmem:[%s18668_s3 + $0x78] sm:$0xff]   ;;  %v4588_v48 = vsel %vm13750_vm7, %v11428_v39, %v4587_v33  ;;  %12698 = vmatpush3.bf16.msra.mxu0 %v13187_v30 }
 0x151   : > { %v12402_v35 = vpop.f32.mrf.mxu1  ;;  %v12439_v55 = vpop.f32.mrf.mxu0  ;;  %12649 = vmatprep.subr.bf16.mxu1 %v13186_v10  ;;  %v4111_v27 = vsel %vm13464_vm4, %v4106_v34, %v15624_v54  ;;  %v4121_v46 = vsel %vm13464_vm4, %v4116_v38, %v4120_v1 }
 0x152   : > { %v15662_v12 = vadd.f32 %v1697_v32, %v1273_v24  ;;  %v1284_v26 = vadd.f32 %v12402_v35, %v18885_v44  ;;  %v4591_v32 = vsel %vm13750_vm7, %v4589_v9, %v4590_v7  ;;  %12650 = vmatpush3.bf16.msra.mxu1 %v13186_v10  ;;  %v11380_v51 = vcombine.low %v4111_v27, %v4121_v46  ;;  %v13188_v7 = vld [vmem:[%s18668_s3 + $0x70] sm:$0xff]  }
 0x153   : > { %12642 = vmatmul.mubr.msk.bf16.gmra.mxu0 %vm813_vm3, %v11443_v5  ;;  %v15669_v41 = vpop.f32.mrf.mxu1  ;;  %v1713_v43 = vpop.f32.mrf.mxu0  ;;  %v11445_v15 = vcombine.low %v4588_v48, %v4591_v32  ;;  %12651 = vmatprep.subr.bf16.mxu1 %v13188_v7 }
 0x154   : > { %12645 = vmatprep.mubr.msk.bf16.mxu0 %vm813_vm3, %v11444_v57  ;;  %v15676_v52 = vadd.f32 %v12436_v28, %v1284_v26  ;;  %v18887_v28 = vld [vmem:[#allocation28_spill] sm:$0xff]  ;;  %v18888_v57 = vld [vmem:[#allocation30_spill] sm:$0xff] }
 0x155   : > { %v12405_v61 = vpop.f32.mrf.mxu1  ;;  %12608 = vmatmul.mubr.msk.bf16.gmra.mxu1 %vm813_vm3, %v11378_v37  ;;  %v12440_v5 = vpop.f32.mrf.mxu0  ;;  %v13189_v37 = vld [vmem:[%s18668_s3 + $0x30] sm:$0xff]  }
 0x156   : > { %v1297_v33 = vadd.f32 %v12405_v61, %v18886_v3  ;;  %12611 = vmatprep.mubr.msk.bf16.mxu1 %vm813_vm3, %v11379_v45  ;;  %12652 = vmatpush3.bf16.msra.mxu1 %v13188_v7  ;;  %v13346_v7 = vmov 0  }
 0x157   : > { %v1288_v19 = vpop.f32.mrf.mxu1  ;;  %v15692_v49 = vpop.f32.mrf.mxu0  ;;  %12699 = vmatprep.subr.bf16.mxu0 %v13189_v37  ;;  %4963 = vst [vmem:[#allocation2 + $0x18] sm:$0xf] %v13346_v7  ;;  %4957 = vst [vmem:[#allocation2] sm:$0xf] %v13346_v7 }
 0x158   : > { %v15689_v18 = vadd.f32 %v12439_v55, %v1297_v33  ;;  %v1289_v58 = vadd.f32 %v1288_v19, %v18887_v28  ;;  %12700 = vmatpush3.bf16.msra.mxu0 %v13189_v37  ;;  %4958 = vst [vmem:[#allocation2 + $0x4] sm:$0xf] %v13346_v7  ;;  %4959 = vst [vmem:[#allocation2 + $0x8] sm:$0x1] %v13346_v7 }
 0x159   : > { %v12406_v54 = vpop.f32.mrf.mxu1  ;;  %v12443_v9 = vpop.f32.mrf.mxu0  ;;  %4960 = vst [vmem:[#allocation2 + $0xc] sm:$0xf] %v13346_v7  ;;  %4961 = vst [vmem:[#allocation2 + $0x10] sm:$0xf] %v13346_v7 }
 0x15a   : > { %v15694_v23 = vadd.f32 %v1713_v43, %v1289_v58  ;;  %v1300_v39 = vadd.f32 %v12406_v54, %v18888_v57  ;;  %4962 = vst [vmem:[#allocation2 + $0x14] sm:$0x1] %v13346_v7  ;;  %4964 = vst [vmem:[#allocation2 + $0x1c] sm:$0xf] %v13346_v7 }
 0x15b   : > { %12646 = vmatmul.mubr.msk.bf16.gmra.mxu0 %vm813_vm3, %v11445_v15  ;;  %v15701_v13 = vpop.f32.mrf.mxu1  ;;  %v1729_v35 = vpop.f32.mrf.mxu0  ;;  %4965 = vst [vmem:[#allocation2 + $0x20] sm:$0x1] %v13346_v7  ;;  %4966 = vst [vmem:[#allocation2 + $0x24] sm:$0xf] %v13346_v7 }
 0x15c   : > { %v15703_v24 = vadd.f32 %v12440_v5, %v1300_v39  ;;  %4967 = vst [vmem:[#allocation2 + $0x28] sm:$0xf] %v13346_v7  ;;  %4968 = vst [vmem:[#allocation2 + $0x2c] sm:$0x1] %v13346_v7 }
 0x15d   : > { %v12409_v45 = vpop.f32.mrf.mxu1  ;;  %12612 = vmatmul.mubr.msk.bf16.gmra.mxu1 %vm813_vm3, %v11380_v51  ;;  %v12444_v44 = vpop.f32.mrf.mxu0  ;;  %4969 = vst [vmem:[#allocation2 + $0x30] sm:$0xf] %v13346_v7  ;;  %4970 = vst [vmem:[#allocation2 + $0x34] sm:$0xf] %v13346_v7 }
 0x15e   : > { %v1313_v34 = vadd.f32 %v12409_v45, %v15264_v6  ;;  %v13190_v6 = vld [vmem:[%s18668_s3 + $0x68] sm:$0xff]   ;;  %4971 = vst [vmem:[#allocation2 + $0x38] sm:$0x1] %v13346_v7  ;;  %4972 = vst [vmem:[#allocation2 + $0x3c] sm:$0xf] %v13346_v7 }
 0x15f   : > { %v1304_v26 = vpop.f32.mrf.mxu1  ;;  %v15713_v1 = vpop.f32.mrf.mxu0  ;;  %12653 = vmatprep.subr.bf16.mxu1 %v13190_v6  ;;  %4973 = vst [vmem:[#allocation2 + $0x40] sm:$0xf] %v13346_v7  ;;  %4974 = vst [vmem:[#allocation2 + $0x44] sm:$0x1] %v13346_v7 }
 0x160   : > { %v15710_v55 = vadd.f32 %v12443_v9, %v1313_v34  ;;  %v1305_v38 = vadd.f32 %v1304_v26, %v15295_v56  ;;  %v13191_v56 = vld [vmem:[%s18668_s3 + $0x28] sm:$0xff]   ;;  %12654 = vmatpush3.bf16.msra.mxu1 %v13190_v6  ;;  %4975 = vst [vmem:[#allocation2 + $0x48] sm:$0xf] %v13346_v7  ;;  %4976 = vst [vmem:[#allocation2 + $0x4c] sm:$0xf] %v13346_v7 }
 0x161   : > { %v12410_v10 = vpop.f32.mrf.mxu1  ;;  %v12483_v43 = vpop.f32.mrf.mxu0  ;;  %12701 = vmatprep.subr.bf16.mxu0 %v13191_v56  ;;  %4977 = vst [vmem:[#allocation2 + $0x50] sm:$0x1] %v13346_v7  ;;  %4978 = vst [vmem:[#allocation2 + $0x54] sm:$0xf] %v13346_v7 }
 0x162   : > { %v15715_v48 = vadd.f32 %v1729_v35, %v1305_v38  ;;  %v1316_v32 = vadd.f32 %v12410_v10, %v15314_v2  ;;  %12702 = vmatpush3.bf16.msra.mxu0 %v13191_v56  ;;  %4979 = vst [vmem:[#allocation2 + $0x58] sm:$0xf] %v13346_v7  ;;  %4980 = vst [vmem:[#allocation2 + $0x5c] sm:$0x1] %v13346_v7 }
 0x163   : > { %v15721_v30 = vpop.f32.mrf.mxu1  ;;  %v2702_v27 = vpop.f32.mrf.mxu0  ;;  %4981 = vst [vmem:[#allocation2 + $0x60] sm:$0xf] %v13346_v7  ;;  %4982 = vst [vmem:[#allocation2 + $0x64] sm:$0xf] %v13346_v7 }
 0x164   : > { %v15723_v61 = vadd.f32 %v12444_v44, %v1316_v32  ;;  %4983 = vst [vmem:[#allocation2 + $0x68] sm:$0x1] %v13346_v7  ;;  %4984 = vst [vmem:[#allocation2 + $0x6c] sm:$0xf] %v13346_v7 }
 0x165   : > { %v12449_v3 = vpop.f32.mrf.mxu1  ;;  %v12484_v2 = vpop.f32.mrf.mxu0  ;;  %4985 = vst [vmem:[#allocation2 + $0x70] sm:$0xf] %v13346_v7  ;;  %4986 = vst [vmem:[#allocation2 + $0x74] sm:$0x1] %v13346_v7 }
 0x166   : > { %v2105_v33 = vadd.f32 %v12449_v3, %v15373_v25  ;;  %4987 = vst [vmem:[#allocation2 + $0x78] sm:$0xf] %v13346_v7  ;;  %4988 = vst [vmem:[#allocation2 + $0x7c] sm:$0xf] %v13346_v7 }
 0x167   : > { %v1976_v5 = vpop.f32.mrf.mxu1  ;;  %v15732_v19 = vpop.f32.mrf.mxu0  ;;  %4989 = vst [vmem:[#allocation2 + $0x80] sm:$0x1] %v13346_v7  ;;  %4990 = vst [vmem:[#allocation2 + $0x84] sm:$0xf] %v13346_v7 }
 0x168   : > { %v15729_v46 = vadd.f32 %v12483_v43, %v2105_v33  ;;  %v2103_v15 = vadd.f32 %v1976_v5, %v15380_v40  ;;  %4991 = vst [vmem:[#allocation2 + $0x88] sm:$0xf] %v13346_v7  ;;  %4992 = vst [vmem:[#allocation2 + $0x8c] sm:$0x1] %v13346_v7 }
 0x169   : > { %v12450_v28 = vpop.f32.mrf.mxu1  ;;  %v15737_v51 = vpop.f32.mrf.mxu0  ;;  %4993 = vst [vmem:[#allocation2 + $0x90] sm:$0xf] %v13346_v7  ;;  %4994 = vst [vmem:[#allocation2 + $0x94] sm:$0xf] %v13346_v7 }
 0x16a   : > { %v15734_v58 = vadd.f32 %v2702_v27, %v2103_v15  ;;  %v2106_v54 = vadd.f32 %v12450_v28, %v15406_v42  ;;  %4995 = vst [vmem:[#allocation2 + $0x98] sm:$0x1] %v13346_v7  ;;  %4996 = vst [vmem:[#allocation2 + $0x9c] sm:$0xf] %v13346_v7  ;;  %v13192_v15 = vld [vmem:[%s18668_s3 + $0x60] sm:$0xff]   ;;  %v13195_v28 = vld [vmem:[%s18668_s3 + $0x18] sm:$0xff]  }
 0x16b   : > { %v15739_v57 = vpop.f32.mrf.mxu1  ;;  %v15743_v39 = vpop.f32.mrf.mxu0  ;;  %4997 = vst [vmem:[#allocation2 + $0xa0] sm:$0xf] %v13346_v7  ;;  %4998 = vst [vmem:[#allocation2 + $0xa4] sm:$0x1] %v13346_v7  ;;  %12655 = vmatprep.subr.bf16.mxu1 %v13192_v15 }
 0x16c   : > { %v15741_v25 = vadd.f32 %v12484_v2, %v2106_v54  ;;  %4999 = vst [vmem:[#allocation2 + $0xa8] sm:$0xf] %v13346_v7  ;;  %5000 = vst [vmem:[#allocation2 + $0xac] sm:$0xf] %v13346_v7  ;;  %12656 = vmatpush3.bf16.msra.mxu1 %v13192_v15 }
 0x16d   : > { %v12453_v9 = vpop.f32.mrf.mxu1  ;;  %5001 = vst [vmem:[#allocation2 + $0xb0] sm:$0x1] %v13346_v7  ;;  %5002 = vst [vmem:[#allocation2 + $0xb4] sm:$0xf] %v13346_v7  ;;  %v12488_v42 = vpop.f32.mrf.mxu0 }
 0x16e   : > { %5003 = vst [vmem:[#allocation2 + $0xb8] sm:$0xf] %v13346_v7  ;;  %5004 = vst [vmem:[#allocation2 + $0xbc] sm:$0x1] %v13346_v7  ;;  %v2109_v40 = vadd.f32 %v12453_v9, %v15432_v50  ;;  %v13193_v50 = vld [vmem:[%s18668_s3 + $0x20] sm:$0xff]  }
 0x16f   : > { %5005 = vst [vmem:[#allocation2 + $0xc0] sm:$0xf] %v13346_v7  ;;  %5006 = vst [vmem:[#allocation2 + $0xc4] sm:$0xf] %v13346_v7  ;;  %v1992_v35 = vpop.f32.mrf.mxu1  ;;  %v15750_v34 = vpop.f32.mrf.mxu0  ;;  %12703 = vmatprep.subr.bf16.mxu0 %v13193_v50 }
 0x170   : > { %5007 = vst [vmem:[#allocation2 + $0xc8] sm:$0x1] %v13346_v7  ;;  %5008 = vst [vmem:[#allocation2 + $0xcc] sm:$0xf] %v13346_v7  ;;  %v15747_v37 = vadd.f32 %v15737_v51, %v2109_v40  ;;  %v2107_v45 = vadd.f32 %v1992_v35, %v15439_v62  ;;  %12704 = vmatpush3.bf16.msra.mxu0 %v13193_v50  ;;  %v13197_v50 = vld [vmem:[%s18668_s3 + $0x10] sm:$0xff]  }
 0x171   : > { %5009 = vst [vmem:[#allocation2 + $0xd0] sm:$0xf] %v13346_v7  ;;  %5010 = vst [vmem:[#allocation2 + $0xd4] sm:$0x1] %v13346_v7  ;;  %v12454_v44 = vpop.f32.mrf.mxu1  ;;  %v12491_v10 = vpop.f32.mrf.mxu0  ;;  %12705 = vmatprep.subr.bf16.mxu0 %v13195_v28 }
 0x172   : > { %18889 = vst [vmem:[#allocation8_spill] sm:$0xff] %v15747_v37  ;;  %v15753_v26 = vadd.f32 %v15743_v39, %v2107_v45  ;;  %v2110_v38 = vadd.f32 %v12454_v44, %v15464_v17 }
 0x173   : > { %v15759_v32 = vpop.f32.mrf.mxu1  ;;  %v2734_v6 = vpop.f32.mrf.mxu0 }
 0x174   : > { %18890 = vst [vmem:[#allocation10_spill] sm:$0xff] %v15753_v26  ;;  %v15761_v43 = vadd.f32 %v12488_v42, %v2110_v38  ;;  %12706 = vmatpush3.bf16.msra.mxu0 %v13195_v28  ;;  %v13194_v38 = vld [vmem:[%s18668_s3 + $0x58] sm:$0xff]  }
 0x175   : > { %v12457_v62 = vpop.f32.mrf.mxu1  ;;  %v12492_v56 = vpop.f32.mrf.mxu0  ;;  %12657 = vmatprep.subr.bf16.mxu1 %v13194_v38  ;;  %12707 = vmatprep.subr.bf16.mxu0 %v13197_v50 }
 0x176   : > { %v2113_v27 = vadd.f32 %v12457_v62, %v15499_v21  ;;  %12658 = vmatpush3.bf16.msra.mxu1 %v13194_v38 }
 0x177   : > { %v2008_v3 = vpop.f32.mrf.mxu1  ;;  %v15767_v2 = vpop.f32.mrf.mxu0 }
 0x178   : > { %v15764_v33 = vadd.f32 %v12491_v10, %v2113_v27  ;;  %v2111_v17 = vadd.f32 %v2008_v3, %v15506_v22  ;;  %12708 = vmatpush3.bf16.msra.mxu0 %v13197_v50 }
 0x179   : > { %v12458_v5 = vpop.f32.mrf.mxu1  ;;  %v12495_v51 = vpop.f32.mrf.mxu0 }
 0x17a   : > { %v15775_v54 = vadd.f32 %v2734_v6, %v2111_v17  ;;  %v2114_v21 = vadd.f32 %v12458_v5, %v15527_v20 }
 0x17b   : > { %v15778_v39 = vpop.f32.mrf.mxu1  ;;  %v2750_v9 = vpop.f32.mrf.mxu0 }
 0x17c   : > { %v15780_v22 = vadd.f32 %v12492_v56, %v2114_v21 }
 0x17d   : > { %v12461_v7 = vpop.f32.mrf.mxu1  ;;  %v12496_v42 = vpop.f32.mrf.mxu0 }
 0x17e   : > { %v2117_v40 = vadd.f32 %v12461_v7, %v15553_v53 }
 0x17f   : > { %v2024_v35 = vpop.f32.mrf.mxu1  ;;  %v15786_v20 = vpop.f32.mrf.mxu0 }
 0x180   : > { %v15783_v45 = vadd.f32 %v12495_v51, %v2117_v40  ;;  %v2115_v44 = vadd.f32 %v2024_v35, %v15570_v36  ;;  %18891 = vst [vmem:[#allocation22_spill] sm:$0xff] %v15786_v20 }
 0x181   : > { %v12462_v10 = vpop.f32.mrf.mxu1  ;;  %v12499_v62 = vpop.f32.mrf.mxu0 }
 0x182   : > { %v15794_v6 = vadd.f32 %v2750_v9, %v2115_v44  ;;  %v2118_v53 = vadd.f32 %v12462_v10, %v15591_v60  ;;  %v13199_v9 = vld [vmem:[%s18668_s3 + $0x8] sm:$0xff]  }
 0x183   : > { %v15797_v27 = vpop.f32.mrf.mxu1  ;;  %v2766_v56 = vpop.f32.mrf.mxu0  ;;  %12709 = vmatprep.subr.bf16.mxu0 %v13199_v9 }
 0x184   : > { %v15799_v36 = vadd.f32 %v12496_v42, %v2118_v53  ;;  %12710 = vmatpush3.bf16.msra.mxu0 %v13199_v9 }
 0x185   : > { %v12465_v3 = vpop.f32.mrf.mxu1  ;;  %v12500_v5 = vpop.f32.mrf.mxu0 }
 0x186   : > { %v2121_v17 = vadd.f32 %v12465_v3, %v15612_v11  ;;  %v13196_v11 = vld [vmem:[%s18668_s3 + $0x50] sm:$0xff]   ;;  %v13200_v3 = vld [vmem:[%s18668_s3] sm:$0xff]  }
 0x187   : > { %v2040_v15 = vpop.f32.mrf.mxu1  ;;  %v15805_v60 = vpop.f32.mrf.mxu0  ;;  %12659 = vmatprep.subr.bf16.mxu1 %v13196_v11  ;;  %12711 = vmatprep.subr.bf16.mxu0 %v13200_v3 }
 0x188   : > { %v15802_v28 = vadd.f32 %v12499_v62, %v2121_v17  ;;  %v2119_v21 = vadd.f32 %v2040_v15, %v15617_v8  ;;  %18892 = vst [vmem:[#allocation14_spill] sm:$0xff] %v15805_v60  ;;  %12660 = vmatpush3.bf16.msra.mxu1 %v13196_v11  ;;  %12712 = vmatpush3.bf16.msra.mxu0 %v13200_v3 }
 0x189   : > { %v12466_v51 = vpop.f32.mrf.mxu1  ;;  %v12503_v42 = vpop.f32.mrf.mxu0 }
 0x18a   : > { %v15810_v7 = vadd.f32 %v2766_v56, %v2119_v21  ;;  %v2122_v40 = vadd.f32 %v12466_v51, %v15631_v29  ;;  %v5548_v51 = vld [vmem:[#allocation2] sm:$0xf] }
 0x18b   : > { %v15816_v35 = vpop.f32.mrf.mxu1  ;;  %v2782_v44 = vpop.f32.mrf.mxu0  ;;  %v5616_v26 = vshll.u32 %v5548_v51, 16 }
 0x18c   : > { %v15818_v8 = vadd.f32 %v12500_v5, %v2122_v40 }
 0x18d   : > { %v12469_v38 = vpop.f32.mrf.mxu1  ;;  %v12504_v50 = vpop.f32.mrf.mxu0  ;;  %v5618_v37 = vrot.slane %v5616_v26, 5 }
 0x18e   : > { %v2125_v10 = vadd.f32 %v12469_v38, %v15657_v4  ;;  %v13198_v4 = vld [vmem:[%s18668_s3 + $0x48] sm:$0xff]  }
 0x18f   : > { %v2056_v53 = vpop.f32.mrf.mxu1  ;;  %v15824_v56 = vpop.f32.mrf.mxu0  ;;  %12661 = vmatprep.subr.bf16.mxu1 %v13198_v4 }
 0x190   : > { %v15821_v29 = vadd.f32 %v12503_v42, %v2125_v10  ;;  %v2123_v62 = vadd.f32 %v2056_v53, %v15662_v12  ;;  %18893 = vst [vmem:[#allocation26_spill] sm:$0xff] %v15824_v56  ;;  %v5549_v12 = vld [vmem:[#allocation2 + $0x4] sm:$0xf]  ;;  %12662 = vmatpush3.bf16.msra.mxu1 %v13198_v4 }
 0x191   : > { %v12470_v17 = vpop.f32.mrf.mxu1  ;;  %v12507_v21 = vpop.f32.mrf.mxu0  ;;  %v11535_v11 = vcombine.low %v5548_v51, %v5549_v12 }
 0x192   : > { %v15829_v5 = vadd.f32 %v2782_v44, %v2123_v62  ;;  %v2126_v15 = vadd.f32 %v12470_v17, %v15676_v52 }
 0x193   : > { %v15835_v9 = vpop.f32.mrf.mxu1  ;;  %v2798_v42 = vpop.f32.mrf.mxu0  ;;  %12713 = vmatprep.mubr.bf16.mxu0 %v11535_v11 }
 0x194   : > { %v15837_v40 = vadd.f32 %v12504_v50, %v2126_v15  ;;  %v13202_v50 = vld [vmem:[%s18668_s3 + $0x40] sm:$0xff]  }
 0x195   : > { %v12473_v44 = vpop.f32.mrf.mxu1  ;;  %v12508_v38 = vpop.f32.mrf.mxu0  ;;  %12663 = vmatprep.subr.bf16.mxu1 %v13202_v50 }
 0x196   : > { %v2129_v52 = vadd.f32 %v12473_v44, %v15689_v18  ;;  %12664 = vmatpush3.bf16.msra.mxu1 %v13202_v50  ;;  %v5613_v44 = vshrl.u32 %v5548_v51, 16 }
 0x197   : > { %v2072_v10 = vpop.f32.mrf.mxu1  ;;  %v15843_v17 = vpop.f32.mrf.mxu0 }
 0x198   : > { %v15840_v53 = vadd.f32 %v12507_v21, %v2129_v52  ;;  %v2127_v62 = vadd.f32 %v2072_v10, %v15694_v23  ;;  %18894 = vst [vmem:[#allocation4_spill] sm:$0xff] %v15843_v17  ;;  %v5615_v60 = vrot.slane %v5613_v44, 4 }
 0x199   : > { %v12474_v3 = vpop.f32.mrf.mxu1  ;;  %v12511_v0 = vpop.f32.mrf.mxu0 }
 0x19a   : > { %v15848_v15 = vadd.f32 %v2798_v42, %v2127_v62  ;;  %v2130_v4 = vadd.f32 %v12474_v3, %v15703_v24  ;;  %v5626_v62 = vshrl.u32 %v5549_v12, 16 }
 0x19b   : > { %v15851_v18 = vpop.f32.mrf.mxu1  ;;  %v2814_v21 = vpop.f32.mrf.mxu0 }
 0x19c   : > { %v15853_v11 = vadd.f32 %v12508_v38, %v2130_v4 }
 0x19d   : > { %v12477_v23 = vpop.f32.mrf.mxu1  ;;  %v12512_v10 = vpop.f32.mrf.mxu0 }
 0x19e   : > { %v2133_v52 = vadd.f32 %v12477_v23, %v15710_v55  ;;  %v5622_v55 = vshll.u32 %v5549_v12, 16 }
 0x19f   : > { %v2088_v17 = vpop.f32.mrf.mxu1  ;;  %v15859_v24 = vpop.f32.mrf.mxu0 }
 0x1a0   : > { %v15856_v56 = vadd.f32 %v12511_v0, %v2133_v52  ;;  %v2131_v42 = vadd.f32 %v2088_v17, %v15715_v48  ;;  %18895 = vst [vmem:[#allocation27_spill] sm:$0xff] %v15859_v24  ;;  %v5624_v48 = vrot.slane %v5622_v55, 5  ;;  %v5628_v17 = vrot.slane %v5626_v62, 4  ;;  %v5596_v24 = vld [vmem:[#allocation2 + $0x8] sm:$0x1] }
 0x1a1   : > { %v12478_v3 = vpop.f32.mrf.mxu1  ;;  %v15864_v4 = vpop.f32.mrf.mxu0 }
 0x1a2   : > { %v15861_v38 = vadd.f32 %v2814_v21, %v2131_v42  ;;  %v2134_v50 = vadd.f32 %v12478_v3, %v15723_v61  ;;  %v5619_v21 = vor.u32 %v5618_v37, %v5615_v60  ;;  %v5629_v42 = vor.u32 %v5628_v17, %v5624_v48 }
 0x1a3   : > { %v15866_v23 = vpop.f32.mrf.mxu1  ;;  %v15870_v0 = vpop.f32.mrf.mxu0  ;;  %v5632_v3 = vshll.u32 %v5596_v24, 16 }
 0x1a4   : > { %v15868_v51 = vadd.f32 %v12512_v10, %v2134_v50  ;;  %18896 = vst [vmem:[#allocation18_spill] sm:$0xff] %v15870_v0  ;;  %v5620_v12 = vrot.slane %v5619_v21, 4  ;;  %v5630_v20 = vrot.slane %v5629_v42, 4 }
 0x1a5   : > { %v15872_v52 = vpop.f32.mrf.mxu1  ;;  %v15874_v44 = vpop.f32.mrf.mxu0  ;;  %v5634_v50 = vrot.slane %v5632_v3, 5 }
 0x1a6   : > { %18897 = vst [vmem:[#allocation13_spill] sm:$0xff] %v15874_v44  ;;  %v5625_v62 = vsel %vm13464_vm4, %v5620_v12, %v5624_v48 }
 0x1a7   : > { %v15876_v61 = vpop.f32.mrf.mxu1  ;;  %v15878_v26 = vpop.f32.mrf.mxu0  ;;  %v5635_v37 = vsel %vm13464_vm4, %v5630_v20, %v5634_v50  ;;  %v13206_v50 = vld [vmem:[%s18668_s3 + $0xb8] sm:$0xff]  }
 0x1a8   : > { %18898 = vst [vmem:[#allocation20_spill] sm:$0xff] %v15878_v26  ;;  %v11511_v24 = vcombine.low %v5625_v62, %v5635_v37  ;;  %12745 = vmatprep.subr.bf16.mxu1 %v13206_v50 }
 0x1a9   : > { %v15880_v10 = vpop.f32.mrf.mxu1  ;;  %v15882_v0 = vpop.f32.mrf.mxu0 }
 0x1aa   : > { %18899 = vst [vmem:[#allocation23_spill] sm:$0xff] %v15882_v0  ;;  %12665 = vmatprep.mubr.bf16.mxu1 %v11511_v24 }
 0x1ab   : > { %v15886_v55 = vpop.f32.mrf.mxu1  ;;  %v15890_v60 = vpop.f32.mrf.mxu0 }
 0x1ac   : > { %18900 = vst [vmem:[#allocation25_spill] sm:$0xff] %v15890_v60 }
 0x1ad   : > { %v15892_v17 = vpop.f32.mrf.mxu1  ;;  %v12556_v21 = vpop.f32.mrf.mxu0 }
 0x1af   : > { %v15894_v42 = vpop.f32.mrf.mxu1  ;;  %v15896_v3 = vpop.f32.mrf.mxu0 }
 0x1b0   : > { %18901 = vst [vmem:[#allocation29_spill] sm:$0xff] %v15894_v42  ;;  %18902 = vst [vmem:[#allocation31_spill] sm:$0xff] %v15896_v3 }
 0x1b1   : > { %v12522_v0 = vpop.f32.mrf.mxu1  ;;  %v12559_v48 = vpop.f32.mrf.mxu0 }
 0x1b2   : > { %v3306_v26 = vadd.f32 %v12522_v0, %v15761_v43 }
 0x1b3   : > { %v15899_v12 = vpop.f32.mrf.mxu1  ;;  %v3563_v20 = vpop.f32.mrf.mxu0 }
 0x1b4   : > { %18903 = vst [vmem:[#allocation5_spill] sm:$0xff] %v15899_v12  ;;  %v15901_v44 = vadd.f32 %v12556_v21, %v3306_v26 }
 0x1b5   : > { %v12525_v62 = vpop.f32.mrf.mxu1  ;;  %v12560_v24 = vpop.f32.mrf.mxu0 }
 0x1b6   : > { %18904 = vst [vmem:[#allocation7_spill] sm:$0xff] %v15901_v44  ;;  %v3309_v37 = vadd.f32 %v12525_v62, %v15764_v33 }
 0x1b7   : > { %v3204_v31 = vpop.f32.mrf.mxu1  ;;  %v15910_v0 = vpop.f32.mrf.mxu0 }
 0x1b8   : > { %v15907_v3 = vadd.f32 %v12559_v48, %v3309_v37  ;;  %v3307_v43 = vadd.f32 %v3204_v31, %v15775_v54 }
 0x1b9   : > { %v12526_v60 = vpop.f32.mrf.mxu1  ;;  %v12563_v44 = vpop.f32.mrf.mxu0 }
 0x1ba   : > { %18905 = vst [vmem:[#allocation9_spill] sm:$0xff] %v15907_v3  ;;  %v15912_v26 = vadd.f32 %v3563_v20, %v3307_v43  ;;  %v3310_v21 = vadd.f32 %v12526_v60, %v15780_v22 }
 0x1bb   : > { %v15915_v12 = vpop.f32.mrf.mxu1  ;;  %v3579_v33 = vpop.f32.mrf.mxu0 }
 0x1bc   : > { %v15917_v42 = vadd.f32 %v12560_v24, %v3310_v21 }
 0x1bd   : > { %v12529_v62 = vpop.f32.mrf.mxu1  ;;  %v12564_v48 = vpop.f32.mrf.mxu0 }
 0x1be   : > { %18906 = vst [vmem:[#allocation17_spill] sm:$0xff] %v15917_v42  ;;  %v3313_v50 = vadd.f32 %v12529_v62, %v15783_v45 }
 0x1bf   : > { %v3220_v37 = vpop.f32.mrf.mxu1  ;;  %v15923_v54 = vpop.f32.mrf.mxu0 }
 0x1c0   : > { %v15920_v3 = vadd.f32 %v12563_v44, %v3313_v50  ;;  %v3311_v31 = vadd.f32 %v3220_v37, %v15794_v6  ;;  %v15935_v44 = vld [vmem:[%s18668_s3 + $0xf8] sm:$0xff]  }
 0x1c1   : > { %v12530_v20 = vpop.f32.mrf.mxu1  ;;  %v12567_v60 = vpop.f32.mrf.mxu0  ;;  %18909 = vst [vmem:[#allocation24_spill] sm:$0xff] %v15935_v44  ;;  %12793 = vmatprep.subr.bf16.mxu0 %v15935_v44 }
 0x1c2   : > { %v15925_v43 = vadd.f32 %v3579_v33, %v3311_v31  ;;  %v3314_v22 = vadd.f32 %v12530_v20, %v15799_v36 }
 0x1c3   : > { %v15928_v24 = vpop.f32.mrf.mxu1  ;;  %v3595_v42 = vpop.f32.mrf.mxu0 }
 0x1c4   : > { %18907 = vst [vmem:[#allocation11_spill] sm:$0xff] %v15925_v43  ;;  %v15930_v21 = vadd.f32 %v12564_v48, %v3314_v22 }
 0x1c5   : > { %v12533_v45 = vpop.f32.mrf.mxu1  ;;  %v12568_v62 = vpop.f32.mrf.mxu0 }
 0x1c6   : > { %18908 = vst [vmem:[#allocation19_spill] sm:$0xff] %v15930_v21  ;;  %v3317_v6 = vadd.f32 %v12533_v45, %v15802_v28 }
 0x1c7   : > { %v3236_v50 = vpop.f32.mrf.mxu1  ;;  %v15942_v37 = vpop.f32.mrf.mxu0 }
 0x1c8   : > { %v15939_v33 = vadd.f32 %v12567_v60, %v3317_v6  ;;  %v3315_v36 = vadd.f32 %v3236_v50, %v15810_v7 }
 0x1c9   : > { %v12534_v48 = vpop.f32.mrf.mxu1  ;;  %v12571_v22 = vpop.f32.mrf.mxu0 }
 0x1ca   : > { %18910 = vst [vmem:[#allocation28_spill] sm:$0xff] %v15939_v33  ;;  %v15944_v31 = vadd.f32 %v3595_v42, %v3315_v36  ;;  %v3318_v20 = vadd.f32 %v12534_v48, %v15818_v8 }
 0x1cb   : > { %v15947_v21 = vpop.f32.mrf.mxu1  ;;  %v3611_v28 = vpop.f32.mrf.mxu0 }
 0x1cc   : > { %v15949_v43 = vadd.f32 %v12568_v62, %v3318_v20 }
 0x1cd   : > { %v12537_v45 = vpop.f32.mrf.mxu1  ;;  %v12572_v60 = vpop.f32.mrf.mxu0 }
 0x1ce   : > { %18911 = vst [vmem:[#allocation30_spill] sm:$0xff] %v15949_v43  ;;  %v3321_v44 = vadd.f32 %v12537_v45, %v15821_v29 }
 0x1cf   : > { %v3252_v6 = vpop.f32.mrf.mxu1  ;;  %v15955_v50 = vpop.f32.mrf.mxu0 }
 0x1d0   : > { %v15952_v33 = vadd.f32 %v12571_v22, %v3321_v44  ;;  %v3319_v7 = vadd.f32 %v3252_v6, %v15829_v5 }
 0x1d1   : > { %v12538_v42 = vpop.f32.mrf.mxu1  ;;  %v12575_v48 = vpop.f32.mrf.mxu0 }
 0x1d2   : > { %18912 = vst [vmem:[#allocation34_spill] sm:$0xff] %v15952_v33  ;;  %v15957_v36 = vadd.f32 %v3611_v28, %v3319_v7  ;;  %v3322_v8 = vadd.f32 %v12538_v42, %v15837_v40 }
 0x1d3   : > { %v15960_v62 = vpop.f32.mrf.mxu1  ;;  %v3627_v43 = vpop.f32.mrf.mxu0 }
 0x1d4   : > { %v15962_v20 = vadd.f32 %v12572_v60, %v3322_v8  ;;  %v18916_v60 = vld [vmem:[#allocation12_spill] sm:$0xff] }
 0x1d5   : > { %v12541_v29 = vpop.f32.mrf.mxu1  ;;  %v12576_v44 = vpop.f32.mrf.mxu0  ;;  %v1260_v8 = vadd.f32 %v15626_v47, %v18916_v60 }
 0x1d6   : > { %18913 = vst [vmem:[#allocation35_spill] sm:$0xff] %v15962_v20  ;;  %v3325_v45 = vadd.f32 %v12541_v29, %v15840_v53  ;;  %v18917_v20 = vld [vmem:[#allocation21_spill] sm:$0xff] }
 0x1d7   : > { %v3268_v22 = vpop.f32.mrf.mxu1  ;;  %v15968_v6 = vpop.f32.mrf.mxu0  ;;  %v1276_v53 = vadd.f32 %v15669_v41, %v18917_v20  ;;  %v1761_v41 = vadd.f32 %v15615_v63, %v1260_v8 }
 0x1d8   : > { %v15965_v33 = vadd.f32 %v12575_v48, %v3325_v45  ;;  %v3323_v5 = vadd.f32 %v3268_v22, %v15848_v15  ;;  %v18918_v48 = vld [vmem:[#allocation32_spill] sm:$0xff] }
 0x1d9   : > { %v12542_v28 = vpop.f32.mrf.mxu1  ;;  %v12579_v42 = vpop.f32.mrf.mxu0  ;;  %v1292_v45 = vadd.f32 %v15701_v13, %v18918_v48  ;;  %v1765_v20 = vadd.f32 %v15660_v16, %v1276_v53  ;;  %v18921_v48 = vld [vmem:[#allocation6_spill] sm:$0xff]  ;;  %v2112_v16 = vadd.f32 %v15778_v39, %v15543_v59 }
 0x1da   : > { %18914 = vst [vmem:[#allocation36_spill] sm:$0xff] %v15965_v33  ;;  %v15970_v7 = vadd.f32 %v3627_v43, %v3323_v5  ;;  %v3326_v40 = vadd.f32 %v12542_v28, %v15853_v11  ;;  %v18919_v33 = vld [vmem:[#allocation33_spill] sm:$0xff]  ;;  %v18920_v5 = vld [vmem:[#allocation15_spill] sm:$0xff]  ;;  %v2108_v63 = vadd.f32 %v15759_v32, %v18921_v48  ;;  %v18922_v53 = vld [vmem:[#allocation22_spill] sm:$0xff] }
 0x1db   : > { %v15977_v29 = vpop.f32.mrf.mxu1  ;;  %v3643_v22 = vpop.f32.mrf.mxu0  ;;  %v1308_v43 = vadd.f32 %v15721_v30, %v18919_v33  ;;  %v2104_v11 = vadd.f32 %v15739_v57, %v18920_v5  ;;  %v1769_v13 = vadd.f32 %v15692_v49, %v1292_v45  ;;  %v18923_v45 = vld [vmem:[#allocation18_spill] sm:$0xff] }
 0x1dc   : > { %18915 = vst [vmem:[#allocation37_spill] sm:$0xff] %v15970_v7  ;;  %v15981_v15 = vadd.f32 %v12576_v44, %v3326_v40  ;;  %v3301_v44 = vadd.f32 %v15872_v52, %v15729_v46  ;;  %v2116_v46 = vadd.f32 %v15797_v27, %v15601_v14  ;;  %v3299_v52 = vadd.f32 %v15876_v61, %v15734_v58  ;;  %v18931_v48 = vld [vmem:[#allocation10_spill] sm:$0xff] }
 0x1dd   : > { %v12545_v28 = vpop.f32.mrf.mxu1  ;;  %v12580_v60 = vpop.f32.mrf.mxu0  ;;  %v1773_v57 = vadd.f32 %v15713_v1, %v1308_v43  ;;  %v2128_v32 = vadd.f32 %v15851_v18, %v1769_v13  ;;  %v3302_v14 = vadd.f32 %v15880_v10, %v15741_v25  ;;  %v2834_v61 = vadd.f32 %v15750_v34, %v2108_v63  ;;  %v18925_v25 = vld [vmem:[#allocation14_spill] sm:$0xff]  ;;  %v18932_v63 = vld [vmem:[#allocation29_spill] sm:$0xff] }
 0x1de   : > { %v3329_v47 = vadd.f32 %v12545_v28, %v15856_v56  ;;  %v2830_v56 = vadd.f32 %v15732_v19, %v2104_v11  ;;  %v2120_v19 = vadd.f32 %v15816_v35, %v1761_v41  ;;  %v3660_v8 = vadd.f32 %v15864_v4, %v3301_v44  ;;  %v18927_v28 = vld [vmem:[#allocation4_spill] sm:$0xff] }
 0x1df   : > { %v3284_v7 = vpop.f32.mrf.mxu1  ;;  %v15996_v33 = vpop.f32.mrf.mxu0  ;;  %v2132_v59 = vadd.f32 %v15866_v23, %v1773_v57  ;;  %v2838_v35 = vadd.f32 %v15767_v2, %v2112_v16  ;;  %v2842_v18 = vadd.f32 %v18922_v53, %v2116_v46  ;;  %v3658_v23 = vadd.f32 %v18923_v45, %v3299_v52  ;;  %v16034_v2 = vld [vmem:[%s18667_s2] ss:$0 sm:$0xff] }
 0x1e0   : > { %v15993_v40 = vadd.f32 %v12579_v42, %v3329_v47  ;;  %v3327_v30 = vadd.f32 %v3284_v7, %v15861_v38  ;;  %v2124_v42 = vadd.f32 %v15835_v9, %v1765_v20  ;;  %v3300_v58 = vadd.f32 %v15886_v55, %v2830_v56  ;;  %v18926_v55 = vld [vmem:[#allocation26_spill] sm:$0xff]  ;;  %v18929_v20 = vld [vmem:[#allocation13_spill] sm:$0xff]  ;;  %v18930_v44 = vld [vmem:[#allocation20_spill] sm:$0xff] }
 0x1e1   : > { %v12546_v49 = vpop.f32.mrf.mxu1  ;;  %v12619_v1 = vpop.f32.mrf.mxu0  ;;  %v2846_v10 = vadd.f32 %v18925_v25, %v2120_v19  ;;  %v2854_v47 = vadd.f32 %v18927_v28, %v2128_v32  ;;  %v3661_v13 = vadd.f32 %v18929_v20, %v3302_v14  ;;  %v3303_v16 = vadd.f32 %v18932_v63, %v18931_v48 }
 0x1e2   : > { %v16008_v38 = vadd.f32 %v3643_v22, %v3327_v30  ;;  %v3330_v7 = vadd.f32 %v12546_v49, %v15868_v51  ;;  %v18924_v22 = vld [vmem:[#allocation8_spill] sm:$0xff]  ;;  %v2850_v11 = vadd.f32 %v18926_v55, %v2124_v42  ;;  %v18933_v49 = vld [vmem:[#allocation5_spill] sm:$0xff]  ;;  %v3308_v52 = vadd.f32 %v15915_v12, %v2838_v35  ;;  %v18934_v42 = vld [vmem:[#allocation23_spill] sm:$0xff] }
 0x1e3   : > { %v3287_v39 = vpop.f32.mrf.mxu1  ;;  %v4727_v51 = vpop.f32.mrf.mxu0  ;;  %v3305_v4 = vadd.f32 %v15892_v17, %v18924_v22  ;;  %v3659_v17 = vadd.f32 %v18930_v44, %v3300_v58  ;;  %v3304_v46 = vadd.f32 %v18933_v49, %v2834_v61  ;;  %v3316_v58 = vadd.f32 %v15947_v21, %v2846_v10 }
 0x1e4   : > { %v16019_v27 = vadd.f32 %v12580_v60, %v3330_v7  ;;  %v18928_v60 = vld [vmem:[#allocation27_spill] sm:$0xff]  ;;  %v3312_v7 = vadd.f32 %v15928_v24, %v2842_v18  ;;  %v3324_v53 = vadd.f32 %v15977_v29, %v2854_v47  ;;  %v16054_v21 = vadd.f32 %v15910_v0, %v3308_v52 }
 0x1e5   : > { %v12585_v9 = vpop.f32.mrf.mxu1  ;;  %v12620_v5 = vpop.f32.mrf.mxu0  ;;  %v2858_v34 = vadd.f32 %v18928_v60, %v2132_v59  ;;  %v3664_v32 = vadd.f32 %v18934_v42, %v3305_v4  ;;  %v18936_v4 = vld [vmem:[#allocation31_spill] sm:$0xff] }
 0x1e6   : > { %v4386_v43 = vadd.f32 %v12585_v9, %v3660_v8  ;;  %v3320_v9 = vadd.f32 %v15960_v62, %v2850_v11  ;;  %v16057_v62 = vadd.f32 %v15923_v54, %v3312_v7  ;;  %v16061_v11 = vadd.f32 %v15942_v37, %v3316_v58  ;;  %v18939_v7 = vld [vmem:[#allocation7_spill] sm:$0xff]  ;;  %v5434_v58 = vld [vmem:[#allocation2 + $0xc] sm:$0xf] }
 0x1e7   : > { %v4257_v41 = vpop.f32.mrf.mxu1  ;;  %v4730_v56 = vpop.f32.mrf.mxu0  ;;  %v3328_v45 = vadd.f32 %v3287_v39, %v2858_v34  ;;  %v16067_v47 = vadd.f32 %v15968_v6, %v3324_v53 }
 0x1e8   : > { %v4856_v30 = vadd.f32 %v12619_v1, %v4386_v43  ;;  %v4384_v57 = vadd.f32 %v4257_v41, %v3658_v23  ;;  %v16051_v43 = vadd.f32 %v18936_v4, %v3304_v46  ;;  %v16064_v28 = vadd.f32 %v15955_v50, %v3320_v9  ;;  %v5447_v4 = vld [vmem:[#allocation2 + $0x20] sm:$0x1] }
 0x1e9   : > { %v12586_v19 = vpop.f32.mrf.mxu1  ;;  %v16070_v54 = vadd.f32 %v15996_v33, %v3328_v45 }
 0x1ea   : > { %v4895_v59 = vadd.f32 %v16034_v2, %v4856_v30  ;;  %v4854_v8 = vadd.f32 %v4727_v51, %v4384_v57  ;;  %v4387_v1 = vadd.f32 %v12586_v19, %v3661_v13  ;;  %v12623_v14 = vpop.f32.mrf.mxu0  ;;  %v18935_v51 = vld [vmem:[#allocation25_spill] sm:$0xff] }
 0x1eb   : > { %v4260_v12 = vpop.f32.mrf.mxu1  ;;  %v3662_v22 = vadd.f32 %v18935_v51, %v3303_v16  ;;  %v5443_v16 = vld [vmem:[#allocation2 + $0x18] sm:$0xf] }
 0x1ec   : > { %v4927_v61 = vmax.f32 %v4895_v59, 0.0  ;;  %v4893_v24 = vadd.f32 %v16034_v2, %v4854_v8  ;;  %v4857_v35 = vadd.f32 %v12620_v5, %v4387_v1  ;;  %v4385_v18 = vadd.f32 %v4260_v12, %v3659_v17  ;;  %v4743_v23 = vpop.f32.mrf.mxu0 }
 0x1ed   : > { %v12589_v29 = vpop.f32.mrf.mxu1 }
 0x1ee   : > { %v11927_v39 = vpack.c.bf16 %v4927_v61, %v4927_v61  ;;  %v4925_v25 = vmax.f32 %v4893_v24, 0.0  ;;  %v4896_v10 = vadd.f32 %v16034_v2, %v4857_v35  ;;  %v4855_v5 = vadd.f32 %v4730_v56, %v4385_v18  ;;  %v12624_v55 = vpop.f32.mrf.mxu0 }
 0x1ef   : > { %v4390_v0 = vadd.f32 %v12589_v29, %v3664_v32  ;;  %v4273_v60 = vpop.f32.mrf.mxu1 }
 0x1f0   : > { %v5128_v34 = vshrl.u32 %v11927_v39, 16  ;;  %v11925_v41 = vpack.c.bf16 %v4925_v25, %v4925_v25  ;;  %v4928_v20 = vmax.f32 %v4896_v10, 0.0  ;;  %v16072_v13 = vpop.f32.mrf.mxu0  ;;  %v5131_v44 = vshll.u32 %v11927_v39, 16 }
 0x1f1   : > { %v4894_v37 = vadd.f32 %v16034_v2, %v4855_v5  ;;  %v4860_v17 = vadd.f32 %v12623_v14, %v4390_v0  ;;  %v4388_v30 = vadd.f32 %v4273_v60, %v3662_v22  ;;  %v12590_v50 = vpop.f32.mrf.mxu1 }
 0x1f2   : > { %v5130_v57 = vrot.slane %v5128_v34, 7  ;;  %v5111_v56 = vshrl.u32 %v11925_v41, 16  ;;  %v5114_v6 = vshll.u32 %v11925_v41, 16  ;;  %v11928_v48 = vpack.c.bf16 %v4928_v20, %v4928_v20  ;;  %v16075_v63 = vpop.f32.mrf.mxu0 }
 0x1f3   : > { %v4926_v49 = vmax.f32 %v4894_v37, 0.0  ;;  %v4899_v46 = vadd.f32 %v16034_v2, %v4860_v17  ;;  %v4858_v52 = vadd.f32 %v4743_v23, %v4388_v30  ;;  %v4391_v19 = vadd.f32 %v12590_v50, %v18939_v7  ;;  %v4276_v42 = vpop.f32.mrf.mxu1 }
 0x1f4   : > { %v5133_v32 = vor.u32 %v5131_v44, %v5130_v57  ;;  %v5134_v59 = vrot.slane %v5130_v57, 4  ;;  %v5113_v8 = vrot.slane %v5111_v56, 7  ;;  %v5136_v1 = vshrl.u32 %v11928_v48, 16  ;;  %v16085_v14 = vpop.f32.mrf.mxu0 }
 0x1f5   : > { %v5139_v9 = vshll.u32 %v11928_v48, 16  ;;  %v11926_v53 = vpack.c.bf16 %v4926_v49, %v4926_v49  ;;  %v4931_v45 = vmax.f32 %v4899_v46, 0.0  ;;  %v4897_v12 = vadd.f32 %v16034_v2, %v4858_v52  ;;  %v12593_v61 = vpop.f32.mrf.mxu1 }
 0x1f6   : > { %v5444_v24 = vsel %vm16079_vm13, %v5133_v32, %v5443_v16  ;;  %v5116_v35 = vor.u32 %v5114_v6, %v5113_v8  ;;  %v5117_v18 = vrot.slane %v5113_v8, 4  ;;  %v5138_v51 = vrot.slane %v5136_v1, 7  ;;  %v12628_v20 = vpop.f32.mrf.mxu0  ;;  %v5440_v6 = vld [vmem:[#allocation2 + $0x14] sm:$0x1]  ;;  %v18944_v1 = vld [vmem:[#allocation9_spill] sm:$0xff] }
 0x1f7   : > { %5445 = vst [vmem:[#allocation2 + $0x18] sm:$0xf] %v5444_v24  ;;  %v5119_v29 = vshrl.u32 %v11926_v53, 16  ;;  %v5122_v39 = vshll.u32 %v11926_v53, 16  ;;  %v11931_v25 = vpack.c.bf16 %v4931_v45, %v4931_v45  ;;  %v4929_v10 = vmax.f32 %v4897_v12, 0.0  ;;  %v4289_v5 = vpop.f32.mrf.mxu1 }
 0x1f8   : > { %v5435_v0 = vsel %vm16079_vm13, %v5116_v35, %v5434_v58  ;;  %v5141_v60 = vor.u32 %v5139_v9, %v5138_v51  ;;  %v5143_v34 = vrot.slane %v5138_v51, 4  ;;  %v4861_v41 = vadd.f32 %v12624_v55, %v4391_v19  ;;  %v5457_v19 = vld [vmem:[#allocation2 + $0x30] sm:$0xf]  ;;  %v4762_v9 = vpop.f32.mrf.mxu0 }
 0x1f9   : > { %5436 = vst [vmem:[#allocation2 + $0xc] sm:$0xf] %v5435_v0  ;;  %v5121_v44 = vrot.slane %v5119_v29, 7  ;;  %v5162_v37 = vshrl.u32 %v11931_v25, 16  ;;  %v5165_v17 = vshll.u32 %v11931_v25, 16  ;;  %v11929_v30 = vpack.c.bf16 %v4929_v10, %v4929_v10  ;;  %v12594_v50 = vpop.f32.mrf.mxu1  ;;  %v18945_v29 = vld [vmem:[#allocation17_spill] sm:$0xff] }
 0x1fa   : > { %v5142_v57 = vsel %vm16092_vm14, %v5134_v59, %v5141_v60  ;;  %v5448_v56 = vsel %vm16098_vm15, %v5143_v34, %v5447_v4  ;;  %v4900_v48 = vadd.f32 %v16034_v2, %v4861_v41  ;;  %v4389_v16 = vadd.f32 %v4276_v42, %v16051_v43  ;;  %v5450_v4 = vld [vmem:[#allocation2 + $0x24] sm:$0xf]  ;;  %v12631_v41 = vpop.f32.mrf.mxu0 }
 0x1fb   : > { %5446 = vst [vmem:[#allocation2 + $0x1c] sm:$0xf] %v5142_v57  ;;  %5449 = vst [vmem:[#allocation2 + $0x20] sm:$0x1] %v5448_v56  ;;  %v5124_v55 = vor.u32 %v5122_v39, %v5121_v44  ;;  %v5126_v49 = vrot.slane %v5121_v44, 4  ;;  %v5164_v46 = vrot.slane %v5162_v37, 7  ;;  %v4292_v7 = vpop.f32.mrf.mxu1  ;;  %v4394_v58 = vadd.f32 %v12593_v61, %v18944_v1 }
 0x1fc   : > { %v5145_v52 = vshrl.u32 %v11929_v30, 16  ;;  %v5148_v32 = vshll.u32 %v11929_v30, 16  ;;  %v4932_v8 = vmax.f32 %v4900_v48, 0.0  ;;  %v4859_v59 = vadd.f32 %v16072_v13, %v4389_v16 }
 0x1fd   : > { %v5125_v53 = vsel %vm16092_vm14, %v5117_v18, %v5124_v55  ;;  %v5441_v43 = vsel %vm16098_vm15, %v5126_v49, %v5440_v6  ;;  %v5167_v42 = vor.u32 %v5165_v17, %v5164_v46  ;;  %v5168_v45 = vrot.slane %v5164_v46, 4  ;;  %v12597_v12 = vpop.f32.mrf.mxu1  ;;  %v4775_v46 = vpop.f32.mrf.mxu0 }
 0x1fe   : > { %5437 = vst [vmem:[#allocation2 + $0x10] sm:$0xf] %v5125_v53  ;;  %5442 = vst [vmem:[#allocation2 + $0x14] sm:$0x1] %v5441_v43  ;;  %v16116_v24 = vrot.slane %v5145_v52, 7  ;;  %v11932_v35 = vpack.c.bf16 %v4932_v8, %v4932_v8  ;;  %v4898_v51 = vadd.f32 %v16034_v2, %v4859_v59  ;;  %v4864_v13 = vadd.f32 %v16075_v63, %v4394_v58 }
 0x1ff   : > { %v5458_v61 = vsel %vm16079_vm13, %v5167_v42, %v5457_v19  ;;  %v4392_v18 = vadd.f32 %v4289_v5, %v15912_v26  ;;  %v4395_v39 = vadd.f32 %v12594_v50, %v18945_v29  ;;  %v4393_v25 = vadd.f32 %v4292_v7, %v16054_v21  ;;  %v4305_v44 = vpop.f32.mrf.mxu1  ;;  %v5461_v21 = vld [vmem:[#allocation2 + $0x38] sm:$0x1] }
 0x200   : > { %5459 = vst [vmem:[#allocation2 + $0x30] sm:$0xf] %v5458_v61  ;;  %v5150_v10 = vor.u32 %v5148_v32, %v16116_v24  ;;  %v5151_v0 = vrot.slane %v16116_v24, 4  ;;  %v5170_v60 = vshrl.u32 %v11932_v35, 16  ;;  %v5173_v34 = vshll.u32 %v11932_v35, 16 }
 0x201   : > { %v4930_v63 = vmax.f32 %v4898_v51, 0.0  ;;  %v4903_v37 = vadd.f32 %v16034_v2, %v4864_v13  ;;  %v4862_v17 = vadd.f32 %v16085_v14, %v4392_v18  ;;  %v4865_v30 = vadd.f32 %v12628_v20, %v4395_v39  ;;  %v12598_v52 = vpop.f32.mrf.mxu1  ;;  %v18946_v13 = vld [vmem:[#allocation11_spill] sm:$0xff] }
 0x202   : > { %v5451_v26 = vsel %vm16079_vm13, %v5150_v10, %v5450_v4  ;;  %v5172_v5 = vrot.slane %v5170_v60, 7  ;;  %v4863_v50 = vadd.f32 %v4762_v9, %v4393_v25  ;;  %v4398_v57 = vadd.f32 %v12597_v12, %v15920_v3  ;;  %v5454_v12 = vld [vmem:[#allocation2 + $0x2c] sm:$0x1]  ;;  %v12632_v4 = vpop.f32.mrf.mxu0  ;;  %v5471_v10 = vld [vmem:[#allocation2 + $0x48] sm:$0xf] }
 0x203   : > { %5452 = vst [vmem:[#allocation2 + $0x24] sm:$0xf] %v5451_v26  ;;  %v11930_v56 = vpack.c.bf16 %v4930_v63, %v4930_v63  ;;  %v4935_v6 = vmax.f32 %v4903_v37, 0.0  ;;  %v4901_v48 = vadd.f32 %v16034_v2, %v4862_v17  ;;  %v4904_v16 = vadd.f32 %v16034_v2, %v4865_v30 }
 0x204   : > { %v5175_v55 = vor.u32 %v5173_v34, %v5172_v5  ;;  %v5177_v49 = vrot.slane %v5172_v5, 4  ;;  %v4902_v14 = vadd.f32 %v16034_v2, %v4863_v50  ;;  %v4868_v20 = vadd.f32 %v12631_v41, %v4398_v57 }
 0x205   : > { %v5153_v7 = vshrl.u32 %v11930_v56, 16  ;;  %v5156_v19 = vshll.u32 %v11930_v56, 16  ;;  %v11935_v32 = vpack.c.bf16 %v4935_v6, %v4935_v6  ;;  %v4933_v8 = vmax.f32 %v4901_v48, 0.0  ;;  %v4778_v56 = vpop.f32.mrf.mxu0 }
 0x206   : > { %v5176_v3 = vsel %vm16092_vm14, %v5168_v45, %v5175_v55  ;;  %v5462_v59 = vsel %vm16098_vm15, %v5177_v49, %v5461_v21  ;;  %v4936_v1 = vmax.f32 %v4904_v16, 0.0  ;;  %v4934_v58 = vmax.f32 %v4902_v14, 0.0  ;;  %v4308_v45 = vpop.f32.mrf.mxu1  ;;  %v5475_v16 = vld [vmem:[#allocation2 + $0x50] sm:$0x1]  ;;  %v18947_v49 = vld [vmem:[#allocation19_spill] sm:$0xff] }
 0x207   : > { %5460 = vst [vmem:[#allocation2 + $0x34] sm:$0xf] %v5176_v3  ;;  %5463 = vst [vmem:[#allocation2 + $0x38] sm:$0x1] %v5462_v59  ;;  %v5155_v9 = vrot.slane %v5153_v7, 7  ;;  %v5196_v53 = vshrl.u32 %v11935_v32, 16  ;;  %v11933_v42 = vpack.c.bf16 %v4933_v8, %v4933_v8  ;;  %v4907_v51 = vadd.f32 %v16034_v2, %v4868_v20 }
 0x208   : > { %v5199_v43 = vshll.u32 %v11935_v32, 16  ;;  %v11936_v24 = vpack.c.bf16 %v4936_v1, %v4936_v1  ;;  %v11934_v35 = vpack.c.bf16 %v4934_v58, %v4934_v58  ;;  %v4396_v61 = vadd.f32 %v4305_v44, %v18946_v13  ;;  %v5464_v44 = vld [vmem:[#allocation2 + $0x3c] sm:$0xf]  ;;  %v12601_v6 = vpop.f32.mrf.mxu1  ;;  %v5468_v8 = vld [vmem:[#allocation2 + $0x44] sm:$0x1] }
 0x209   : > { %v5158_v18 = vor.u32 %v5156_v19, %v5155_v9  ;;  %v5160_v29 = vrot.slane %v5155_v9, 4  ;;  %v5198_v39 = vrot.slane %v5196_v53, 7  ;;  %v5179_v25 = vshrl.u32 %v11933_v42, 16 }
 0x20a   : > { %v5182_v60 = vshll.u32 %v11933_v42, 16  ;;  %v5204_v34 = vshrl.u32 %v11936_v24, 16  ;;  %v5207_v41 = vshll.u32 %v11936_v24, 16  ;;  %v5187_v63 = vshrl.u32 %v11934_v35, 16  ;;  %v4321_v42 = vpop.f32.mrf.mxu1 }
 0x20b   : > { %v5159_v37 = vsel %vm16092_vm14, %v5151_v0, %v5158_v18  ;;  %v5455_v17 = vsel %vm16098_vm15, %v5160_v29, %v5454_v12  ;;  %v5201_v30 = vor.u32 %v5199_v43, %v5198_v39  ;;  %v5202_v26 = vrot.slane %v5198_v39, 4  ;;  %v12635_v43 = vpop.f32.mrf.mxu0  ;;  %v5550_v12 = vld [vmem:[#allocation2 + $0xc] sm:$0xf]  ;;  %v18948_v29 = vld [vmem:[#allocation28_spill] sm:$0xff] }
 0x20c   : > { %5453 = vst [vmem:[#allocation2 + $0x28] sm:$0xf] %v5159_v37  ;;  %5456 = vst [vmem:[#allocation2 + $0x2c] sm:$0x1] %v5455_v17  ;;  %v5181_v5 = vrot.slane %v5179_v25, 7  ;;  %v5206_v21 = vrot.slane %v5204_v34, 7  ;;  %v4866_v0 = vadd.f32 %v4775_v46, %v4396_v61  ;;  %v4399_v14 = vadd.f32 %v12598_v52, %v18947_v49 }
 0x20d   : > { %v5189_v50 = vrot.slane %v5187_v63, 7  ;;  %v5190_v57 = vshll.u32 %v11934_v35, 16  ;;  %v5472_v48 = vsel %vm16079_vm13, %v5201_v30, %v5471_v10  ;;  %v4939_v55 = vmax.f32 %v4907_v51, 0.0 }
 0x20e   : > { %5473 = vst [vmem:[#allocation2 + $0x48] sm:$0xf] %v5472_v48  ;;  %v5184_v20 = vor.u32 %v5182_v60, %v5181_v5  ;;  %v5185_v7 = vrot.slane %v5181_v5, 4  ;;  %v5209_v19 = vor.u32 %v5207_v41, %v5206_v21  ;;  %v5211_v32 = vrot.slane %v5206_v21, 4  ;;  %v5485_v41 = vld [vmem:[#allocation2 + $0x60] sm:$0xf] }
 0x20f   : > { %v5192_v3 = vor.u32 %v5190_v57, %v5189_v50  ;;  %v5194_v59 = vrot.slane %v5189_v50, 4  ;;  %v11939_v1 = vpack.c.bf16 %v4939_v55, %v4939_v55  ;;  %v4905_v58 = vadd.f32 %v16034_v2, %v4866_v0  ;;  %v16172_v48 = vld [vmem:[#allocation2 + $0x10] sm:$0xf] }
 0x210   : > { %v5465_v9 = vsel %vm16079_vm13, %v5184_v20, %v5464_v44  ;;  %v5210_v53 = vsel %vm16092_vm14, %v5202_v26, %v5209_v19  ;;  %v5476_v46 = vsel %vm16098_vm15, %v5211_v32, %v5475_v16  ;;  %v4869_v52 = vadd.f32 %v12632_v4, %v4399_v14  ;;  %v4791_v26 = vpop.f32.mrf.mxu0  ;;  %v16165_v44 = vpop.f32.mrf.mxu1  ;;  %v16182_v19 = vld [vmem:[#allocation2 + $0x18] sm:$0xf] }
 0x211   : > { %5466 = vst [vmem:[#allocation2 + $0x3c] sm:$0xf] %v5465_v9  ;;  %5474 = vst [vmem:[#allocation2 + $0x4c] sm:$0xf] %v5210_v53  ;;  %v5193_v24 = vsel %vm16092_vm14, %v5185_v7, %v5192_v3  ;;  %v5469_v35 = vsel %vm16098_vm15, %v5194_v59, %v5468_v8  ;;  %v5230_v51 = vshrl.u32 %v11939_v1, 16  ;;  %v5233_v13 = vshll.u32 %v11939_v1, 16 }
 0x212   : > { %5477 = vst [vmem:[#allocation2 + $0x50] sm:$0x1] %v5476_v46  ;;  %5467 = vst [vmem:[#allocation2 + $0x40] sm:$0xf] %v5193_v24  ;;  %v4937_v61 = vmax.f32 %v4905_v58, 0.0  ;;  %v4908_v18 = vadd.f32 %v16034_v2, %v4869_v52  ;;  %v4397_v4 = vadd.f32 %v4308_v45, %v16057_v62  ;;  %v4402_v39 = vadd.f32 %v12601_v6, %v18948_v29  ;;  %v16184_v32 = vpop.f32.mrf.mxu0  ;;  %v16186_v8 = vpop.f32.mrf.mxu1  ;;  %v13212_v53 = vld [vmem:[%s18668_s3 + $0xf0] sm:$0xff]  }
 0x213   : > { %5470 = vst [vmem:[#allocation2 + $0x44] sm:$0x1] %v5469_v35  ;;  %v16162_v25 = vrot.slane %v5230_v51, 7  ;;  %v4400_v10 = vadd.f32 %v4321_v42, %v15944_v31  ;;  %v5637_v60 = vshrl.u32 %v5550_v12, 16  ;;  %v5640_v34 = vshll.u32 %v5550_v12, 16 }
 0x214   : > { %v11937_v63 = vpack.c.bf16 %v4937_v61, %v4937_v61  ;;  %v4940_v37 = vmax.f32 %v4908_v18, 0.0  ;;  %v4867_v17 = vadd.f32 %v4778_v56, %v4397_v4  ;;  %v4872_v30 = vadd.f32 %v12635_v43, %v4402_v39  ;;  %v5478_v3 = vld [vmem:[#allocation2 + $0x54] sm:$0xf]  ;;  %v5489_v42 = vld [vmem:[#allocation2 + $0x68] sm:$0x1] }
 0x215   : > { %v5235_v5 = vor.u32 %v5233_v13, %v16162_v25  ;;  %v5236_v62 = vrot.slane %v16162_v25, 4  ;;  %v4870_v45 = vadd.f32 %v4791_v26, %v4400_v10  ;;  %v16169_v21 = vrot.slane %v5637_v60, 4  ;;  %v4794_v25 = vpop.f32.mrf.mxu0  ;;  %v12605_v10 = vpop.f32.mrf.mxu1  ;;  %v18949_v60 = vld [vmem:[#allocation24_spill] sm:$0xff] }
 0x216   : > { %v5213_v50 = vshrl.u32 %v11937_v63, 16  ;;  %v5216_v57 = vshll.u32 %v11937_v63, 16  ;;  %v11940_v31 = vpack.c.bf16 %v4940_v37, %v4940_v37  ;;  %v4906_v6 = vadd.f32 %v16034_v2, %v4867_v17  ;;  %v16203_v17 = vld [vmem:[#allocation2 + $0x1c] sm:$0xf] }
 0x217   : > { %v5486_v56 = vsel %vm16079_vm13, %v5235_v5, %v5485_v41  ;;  %v4911_v16 = vadd.f32 %v16034_v2, %v4872_v30  ;;  %v4909_v55 = vadd.f32 %v16034_v2, %v4870_v45  ;;  %v16178_v0 = vrot.slane %v5640_v34, 5  ;;  %v5482_v45 = vld [vmem:[#allocation2 + $0x5c] sm:$0x1] }
 0x218   : > { %5487 = vst [vmem:[#allocation2 + $0x60] sm:$0xf] %v5486_v56  ;;  %v16180_v49 = vrot.slane %v5213_v50, 7  ;;  %v5238_v14 = vshrl.u32 %v11940_v31, 16  ;;  %v5241_v20 = vshll.u32 %v11940_v31, 16  ;;  %v4938_v7 = vmax.f32 %v4906_v6, 0.0 }
 0x219   : > { %v4943_v59 = vmax.f32 %v4911_v16, 0.0  ;;  %v4941_v1 = vmax.f32 %v4909_v55, 0.0  ;;  %v5650_v58 = vshrl.u32 %v16172_v48, 16  ;;  %v11536_v9 = vcombine.low %v5550_v12, %v16172_v48  ;;  %v13216_v12 = vld [vmem:[%s18668_s3 + $0xe8] sm:$0xff]   ;;  %v5499_v50 = vld [vmem:[#allocation2 + $0x78] sm:$0xf] }
 0x21a   : > { %v5218_v46 = vor.u32 %v5216_v57, %v16180_v49  ;;  %v5219_v52 = vrot.slane %v16180_v49, 4  ;;  %v5240_v43 = vrot.slane %v5238_v14, 7  ;;  %v11938_v24 = vpack.c.bf16 %v4938_v7, %v4938_v7  ;;  %v5492_v56 = vld [vmem:[#allocation2 + $0x6c] sm:$0xf]  ;;  %v12639_v7 = vpop.f32.mrf.mxu0 }
 0x21b   : > { %v11943_v35 = vpack.c.bf16 %v4943_v59, %v4943_v59  ;;  %v11941_v51 = vpack.c.bf16 %v4941_v1, %v4941_v1  ;;  %12714 = vmatmul.mubr.bf16.vlgmr.msra.gmra.mxu0 %v11536_v9  ;;  %v5661_v13 = vshrl.u32 %v16182_v19, 16  ;;  %v5664_v61 = vshll.u32 %v16182_v19, 16  ;;  %v13220_v59 = vld [vmem:[%s18668_s3 + $0xe0] sm:$0xff]  }
 0x21c   : > { %v5479_v18 = vsel %vm16079_vm13, %v5218_v46, %v5478_v3  ;;  %v5243_v4 = vor.u32 %v5241_v20, %v5240_v43  ;;  %v5245_v29 = vrot.slane %v5240_v43, 4  ;;  %v5221_v39 = vshrl.u32 %v11938_v24, 16  ;;  %12794 = vmatpush3.bf16.msra.mxu0 %v18949_v60  ;;  %v4337_v3 = vpop.f32.mrf.mxu1  ;;  %v4807_v60 = vpop.f32.mrf.mxu0 }
 0x21d   : > { %5480 = vst [vmem:[#allocation2 + $0x54] sm:$0xf] %v5479_v18  ;;  %v5224_v34 = vshll.u32 %v11938_v24, 16  ;;  %v5264_v41 = vshrl.u32 %v11943_v35, 16  ;;  %v5267_v63 = vshll.u32 %v11943_v35, 16  ;;  %v5247_v37 = vshrl.u32 %v11941_v51, 16  ;;  %12795 = vmatprep.subr.bf16.mxu0 %v13212_v53 }
 0x21e   : > { %v5244_v30 = vsel %vm16092_vm14, %v5236_v62, %v5243_v4  ;;  %v5490_v26 = vsel %vm16098_vm15, %v5245_v29, %v5489_v42  ;;  %v5223_v5 = vrot.slane %v5221_v39, 7  ;;  %v5250_v57 = vshll.u32 %v11941_v51, 16  ;;  %v5554_v42 = vld [vmem:[#allocation2 + $0x24] sm:$0xf]  ;;  %v16227_v24 = vld [vmem:[#allocation2 + $0x28] sm:$0xf] }
 0x21f   : > { %5488 = vst [vmem:[#allocation2 + $0x64] sm:$0xf] %v5244_v30  ;;  %5491 = vst [vmem:[#allocation2 + $0x68] sm:$0x1] %v5490_v26  ;;  %v16209_v31 = vrot.slane %v5264_v41, 7  ;;  %v16211_v6 = vrot.slane %v5247_v37, 7  ;;  %v11537_v20 = vcombine.low %v16182_v19, %v16203_v17  ;;  %v4404_v29 = vadd.f32 %v4337_v3, %v15957_v36 }
 0x220   : > { %v16213_v16 = vrot.slane %v5661_v13, 4  ;;  %v16215_v55 = vrot.slane %v5664_v61, 5  ;;  %v5226_v49 = vor.u32 %v5224_v34, %v5223_v5  ;;  %v5228_v62 = vrot.slane %v5223_v5, 4  ;;  %12796 = vmatpush3.bf16.msra.mxu0 %v13212_v53  ;;  %v18950_v35 = vld [vmem:[#allocation30_spill] sm:$0xff]  ;;  %v13224_v36 = vld [vmem:[%s18668_s3 + $0xd8] sm:$0xff]  }
 0x221   : > { %v5674_v14 = vshrl.u32 %v16203_v17, 16  ;;  %v5269_v1 = vor.u32 %v5267_v63, %v16209_v31  ;;  %v5270_v9 = vrot.slane %v16209_v31, 4  ;;  %v5252_v46 = vor.u32 %v5250_v57, %v16211_v6  ;;  %12797 = vmatprep.subr.bf16.mxu0 %v13216_v12  ;;  %12717 = vmatprep.mubr.bf16.mxu0 %v11537_v20  ;;  %v18951_v4 = vld [vmem:[#allocation34_spill] sm:$0xff] }
 0x222   : > { %v5253_v43 = vrot.slane %v16211_v6, 4  ;;  %v5227_v19 = vsel %vm16092_vm14, %v5219_v52, %v5226_v49  ;;  %v5483_v53 = vsel %vm16098_vm15, %v5228_v62, %v5482_v45  ;;  %v4403_v51 = vadd.f32 %v16165_v44, %v18950_v35  ;;  %v5597_v30 = vld [vmem:[#allocation2 + $0x14] sm:$0x1]  ;;  %v16260_v57 = vld [vmem:[#allocation2 + $0x30] sm:$0xf] }
 0x223   : > { %v4401_v13 = vadd.f32 %v16186_v8, %v16061_v11  ;;  %5481 = vst [vmem:[#allocation2 + $0x58] sm:$0xf] %v5227_v19  ;;  %5484 = vst [vmem:[#allocation2 + $0x5c] sm:$0x1] %v5483_v53  ;;  %v5500_v61 = vsel %vm16079_vm13, %v5269_v1, %v5499_v50  ;;  %v5493_v18 = vsel %vm16079_vm13, %v5252_v46, %v5492_v56  ;;  %v5685_v34 = vshrl.u32 %v5554_v42, 16  ;;  %v16262_v56 = vpop.f32.mrf.mxu1 }
 0x224   : > { %v4406_v52 = vadd.f32 %v12605_v10, %v18951_v4  ;;  %5501 = vst [vmem:[#allocation2 + $0x78] sm:$0xf] %v5500_v61  ;;  %5494 = vst [vmem:[#allocation2 + $0x6c] sm:$0xf] %v5493_v18  ;;  %v4873_v39 = vadd.f32 %v16184_v32, %v4403_v51  ;;  %v5688_v11 = vshll.u32 %v5554_v42, 16  ;;  %12798 = vmatpush3.bf16.msra.mxu0 %v13216_v12  ;;  %v5698_v63 = vshrl.u32 %v16227_v24, 16  ;;  %v16281_v61 = vpop.f32.mrf.mxu0 }
 0x225   : > { %v4871_v44 = vadd.f32 %v4794_v25, %v4401_v13  ;;  %v4874_v41 = vadd.f32 %v4807_v60, %v4404_v29  ;;  %v11538_v37 = vcombine.low %v5554_v42, %v16227_v24  ;;  %12799 = vmatprep.subr.bf16.mxu0 %v13220_v59  ;;  %v16251_v25 = vrot.slane %v5685_v34, 4  ;;  %v16283_v18 = vpop.f32.mrf.mxu1  ;;  %v13231_v4 = vld [vmem:[%s18668_s3 + $0xc8] sm:$0xff]   ;;  %v16288_v60 = vld [vmem:[#allocation2 + $0x34] sm:$0xf]  ;;  %v5503_v34 = vld [vmem:[#allocation2 + $0x80] sm:$0x1] }
 0x226   : > { %v4876_v8 = vadd.f32 %v12639_v7, %v4406_v52  ;;  %v4912_v10 = vadd.f32 %v16034_v2, %v4873_v39  ;;  %v16253_v26 = vrot.slane %v5688_v11, 5  ;;  %v5643_v45 = vor.u32 %v16178_v0, %v16169_v21  ;;  %v13228_v21 = vld [vmem:[%s18668_s3 + $0xd0] sm:$0xff]  }
 0x227   : > { %v4910_v32 = vadd.f32 %v16034_v2, %v4871_v44  ;;  %v4913_v5 = vadd.f32 %v16034_v2, %v4874_v41  ;;  %12718 = vmatmul.mubr.bf16.gmra.mxu0 %v11538_v37  ;;  %v5646_v50 = vshll.u32 %v16172_v48, 16  ;;  %v5652_v20 = vrot.slane %v5650_v58, 4 }
 0x228   : > { %v4915_v12 = vadd.f32 %v16034_v2, %v4876_v8  ;;  %v4944_v49 = vmax.f32 %v4912_v10, 0.0  ;;  %v5656_v7 = vshll.u32 %v5597_v30, 16  ;;  %12800 = vmatpush3.bf16.msra.mxu0 %v13220_v59  ;;  %v16266_v46 = vrot.slane %v5643_v45, 4 }
 0x229   : > { %v4942_v62 = vmax.f32 %v4910_v32, 0.0  ;;  %v4945_v1 = vmax.f32 %v4913_v5, 0.0  ;;  %v16268_v42 = vrot.slane %v5646_v50, 5  ;;  %12801 = vmatprep.subr.bf16.mxu0 %v13224_v36  ;;  %v5709_v48 = vshrl.u32 %v16260_v57, 16  ;;  %v5496_v32 = vld [vmem:[#allocation2 + $0x74] sm:$0x1] }
 0x22a   : > { %v4947_v3 = vmax.f32 %v4915_v12, 0.0  ;;  %v11944_v0 = vpack.c.bf16 %v4944_v49, %v4944_v49  ;;  %v16273_v53 = vrot.slane %v5656_v7, 5  ;;  %v5712_v49 = vshll.u32 %v16260_v57, 16 }
 0x22b   : > { %v11942_v19 = vpack.c.bf16 %v4942_v62, %v4942_v62  ;;  %v11945_v35 = vpack.c.bf16 %v4945_v1, %v4945_v1  ;;  %v5649_v51 = vsel %vm13464_vm4, %v16266_v46, %v16268_v42  ;;  %v5653_v13 = vor.u32 %v5652_v20, %v16268_v42  ;;  %v4810_v62 = vpop.f32.mrf.mxu0  ;;  %v12609_v20 = vpop.f32.mrf.mxu1  ;;  %v5513_v42 = vld [vmem:[#allocation2 + $0x90] sm:$0xf] }
 0x22c   : > { %v11947_v58 = vpack.c.bf16 %v4947_v3, %v4947_v3  ;;  %v5272_v52 = vshrl.u32 %v11944_v0, 16  ;;  %v5275_v29 = vshll.u32 %v11944_v0, 16  ;;  %12802 = vmatpush3.bf16.msra.mxu0 %v13224_v36  ;;  %v16290_v5 = vrot.slane %v5709_v48, 4  ;;  %v5506_v0 = vld [vmem:[#allocation2 + $0x84] sm:$0xf] }
 0x22d   : > { %v5255_v39 = vshrl.u32 %v11942_v19, 16  ;;  %v5258_v44 = vshll.u32 %v11942_v19, 16  ;;  %v5281_v41 = vshrl.u32 %v11945_v35, 16  ;;  %v5284_v37 = vshll.u32 %v11945_v35, 16  ;;  %12803 = vmatprep.subr.bf16.mxu0 %v13228_v21 }
 0x22e   : > { %v5298_v11 = vshrl.u32 %v11947_v58, 16  ;;  %v5301_v8 = vshll.u32 %v11947_v58, 16  ;;  %v5274_v30 = vrot.slane %v5272_v52, 7  ;;  %v5654_v12 = vrot.slane %v5653_v13, 4  ;;  %v13233_v13 = vld [vmem:[%s18668_s3 + $0xc0] sm:$0xff]  }
 0x22f   : > { %v5257_v10 = vrot.slane %v5255_v39, 7  ;;  %v16294_v50 = vrot.slane %v5281_v41, 7  ;;  %v5722_v36 = vshrl.u32 %v16288_v60, 16  ;;  %v11539_v41 = vcombine.low %v16260_v57, %v16288_v60 }
 0x230   : > { %v16292_v45 = vrot.slane %v5298_v11, 7  ;;  %v5277_v7 = vor.u32 %v5275_v29, %v5274_v30  ;;  %v5279_v3 = vrot.slane %v5274_v30, 4  ;;  %12804 = vmatpush3.bf16.msra.mxu0 %v13228_v21  ;;  %v5659_v6 = vsel %vm13464_vm4, %v5654_v12, %v16273_v53  ;;  %v4353_v11 = vpop.f32.mrf.mxu1  ;;  %v13210_v53 = vld [vmem:[%s18668_s3 + $0xb0] sm:$0xff]  }
 0x231   : > { %v5260_v1 = vor.u32 %v5258_v44, %v5257_v10  ;;  %v5262_v46 = vrot.slane %v5257_v10, 4  ;;  %v5286_v58 = vor.u32 %v5284_v37, %v16294_v50  ;;  %v5287_v35 = vrot.slane %v16294_v50, 4  ;;  %12805 = vmatprep.subr.bf16.mxu0 %v13231_v4  ;;  %v5598_v44 = vld [vmem:[#allocation2 + $0x20] sm:$0x1]  ;;  %v18953_v37 = vld [vmem:[#allocation35_spill] sm:$0xff]  ;;  %12721 = vmatprep.mubr.bf16.mxu0 %v11539_v41 }
 0x232   : > { %v5303_v19 = vor.u32 %v5301_v8, %v16292_v45  ;;  %v5304_v48 = vrot.slane %v16292_v45, 4  ;;  %v5278_v52 = vsel %vm16092_vm14, %v5270_v9, %v5277_v7  ;;  %v5504_v21 = vsel %vm16098_vm15, %v5279_v3, %v5503_v34  ;;  %v18955_v3 = vld [vmem:[#allocation37_spill] sm:$0xff]  ;;  %v13226_v45 = vld [vmem:[%s18668_s3 + $0x90] sm:$0xff]  }
 0x233   : > { %v5261_v29 = vsel %vm16092_vm14, %v5253_v43, %v5260_v1  ;;  %v5497_v39 = vsel %vm16098_vm15, %v5262_v46, %v5496_v32  ;;  %5502 = vst [vmem:[#allocation2 + $0x7c] sm:$0xf] %v5278_v52  ;;  %5505 = vst [vmem:[#allocation2 + $0x80] sm:$0x1] %v5504_v21  ;;  %v5507_v9 = vsel %vm16079_vm13, %v5286_v58, %v5506_v0  ;;  %v16324_v34 = vrot.slane %v5712_v49, 5  ;;  %v12643_v43 = vpop.f32.mrf.mxu0 }
 0x234   : > { %5495 = vst [vmem:[#allocation2 + $0x70] sm:$0xf] %v5261_v29  ;;  %5498 = vst [vmem:[#allocation2 + $0x74] sm:$0x1] %v5497_v39  ;;  %v5514_v31 = vsel %vm16079_vm13, %v5303_v19, %v5513_v42  ;;  %v11512_v8 = vcombine.low %v5649_v51, %v5659_v6  ;;  %v4407_v30 = vadd.f32 %v16262_v56, %v18953_v37  ;;  %v5558_v32 = vld [vmem:[#allocation2 + $0x3c] sm:$0xf]  ;;  %12806 = vmatpush3.bf16.msra.mxu0 %v13231_v4 }
 0x235   : > { %5515 = vst [vmem:[#allocation2 + $0x90] sm:$0xf] %v5514_v31  ;;  %5508 = vst [vmem:[#allocation2 + $0x84] sm:$0xf] %v5507_v9  ;;  %v5667_v10 = vor.u32 %v16215_v55, %v16213_v16  ;;  %v5670_v12 = vshll.u32 %v16203_v17, 16  ;;  %v5676_v51 = vrot.slane %v5674_v14, 4  ;;  %v4405_v57 = vadd.f32 %v16283_v18, %v16064_v28  ;;  %12807 = vmatprep.subr.bf16.mxu0 %v13233_v13  ;;  %v4823_v46 = vpop.f32.mrf.mxu0 }
 0x236   : > { %v5680_v49 = vshll.u32 %v5598_v44, 16  ;;  %v13240_v16 = vld [vmem:[%s18668_s3 + $0x178] sm:$0xff]   ;;  %12666 = vmatmul.mubr.bf16.vlgmr.msra.gmra.mxu1 %v11512_v8  ;;  %v4877_v55 = vadd.f32 %v16281_v61, %v4407_v30  ;;  %v18954_v4 = vld [vmem:[#allocation36_spill] sm:$0xff]  ;;  %v4408_v1 = vadd.f32 %v4353_v11, %v18955_v3  ;;  %v5733_v42 = vshrl.u32 %v5558_v32, 16 }
 0x237   : > { %v5668_v56 = vrot.slane %v5667_v10, 4  ;;  %v4410_v7 = vadd.f32 %v12609_v20, %v18954_v4  ;;  %v13324_v17 = vld [vmem:[%s18668_s3 + $0xb8] sm:$0xff]   ;;  %v5672_v28 = vrot.slane %v5670_v12, 5  ;;  %v4875_v18 = vadd.f32 %v4810_v62, %v4405_v57  ;;  %v16350_v61 = vld [vmem:[#allocation2 + $0x40] sm:$0xf]  ;;  %v13214_v20 = vld [vmem:[%s18668_s3 + $0xa8] sm:$0xff]   ;;  %v16373_v12 = vpop.f32.mrf.mxu1 }
 0x238   : > { %12746 = vmatpush3.bf16.msra.mxu1 %v13324_v17  ;;  %v5682_v14 = vrot.slane %v5680_v49, 5  ;;  %v4916_v0 = vadd.f32 %v16034_v2, %v4877_v55  ;;  %v4878_v58 = vadd.f32 %v4823_v46, %v4408_v1  ;;  %v5736_v52 = vshll.u32 %v5558_v32, 16  ;;  %12808 = vmatpush3.bf16.msra.mxu0 %v13233_v13  ;;  %v16360_v62 = vld [vmem:[%s18667_s2] ss:$0 sm:$0xff]  ;;  %v13222_v17 = vld [vmem:[%s18668_s3 + $0x98] sm:$0xff]  }
 0x239   : > { %v4880_v19 = vadd.f32 %v12643_v43, %v4410_v7  ;;  %12747 = vmatprep.subr.bf16.mxu1 %v13210_v53  ;;  %v5673_v21 = vsel %vm13464_vm4, %v5668_v56, %v5672_v28  ;;  %v5677_v29 = vor.u32 %v5676_v51, %v5672_v28  ;;  %v4914_v2 = vadd.f32 %v16360_v62, %v4875_v18  ;;  %v13218_v51 = vld [vmem:[%s18668_s3 + $0xa0] sm:$0xff]   ;;  %v16383_v56 = vld [vmem:[#allocation2 + $0x2c] sm:$0x1]  ;;  %v16390_v18 = vpop.f32.mrf.mxu0  ;;  %v16392_v46 = vpop.f32.mrf.mxu1 }
 0x23a   : > { %v16363_v39 = vrot.slane %v5733_v42, 4  ;;  %12889 = vmatprep.subr.bf16.mxu0 %v13240_v16  ;;  %v4948_v44 = vmax.f32 %v4916_v0, 0.0  ;;  %v4917_v9 = vadd.f32 %v16360_v62, %v4878_v58  ;;  %v16367_v13 = vrot.slane %v5736_v52, 5  ;;  %v5517_v42 = vld [vmem:[#allocation2 + $0x98] sm:$0x1] }
 0x23b   : > { %v4919_v31 = vadd.f32 %v16360_v62, %v4880_v19  ;;  %v5678_v6 = vrot.slane %v5677_v29, 4  ;;  %v4946_v43 = vmax.f32 %v4914_v2, 0.0  ;;  %v5746_v11 = vshrl.u32 %v16350_v61, 16  ;;  %v5510_v29 = vld [vmem:[#allocation2 + $0x8c] sm:$0x1] }
 0x23c   : > { %v11540_v8 = vcombine.low %v5558_v32, %v16350_v61  ;;  %12748 = vmatpush3.bf16.msra.mxu1 %v13210_v53  ;;  %v11948_v41 = vpack.c.bf16 %v4948_v44, %v4948_v44  ;;  %v4949_v30 = vmax.f32 %v4917_v9, 0.0  ;;  %v5691_v10 = vor.u32 %v16253_v26, %v16251_v25 }
 0x23d   : > { %v4951_v37 = vmax.f32 %v4919_v31, 0.0  ;;  %12749 = vmatprep.subr.bf16.mxu1 %v13214_v20  ;;  %v5683_v49 = vsel %vm13464_vm4, %v5678_v6, %v5682_v14  ;;  %v11946_v57 = vpack.c.bf16 %v4946_v43, %v4946_v43  ;;  %v5694_v32 = vshll.u32 %v16227_v24, 16  ;;  %v5527_v6 = vld [vmem:[#allocation2 + $0xa8] sm:$0xf] }
 0x23e   : > { %12722 = vmatmul.mubr.bf16.gmra.mxu0 %v11540_v8  ;;  %v5700_v53 = vrot.slane %v5698_v63, 4  ;;  %v5306_v16 = vshrl.u32 %v11948_v41, 16  ;;  %v5309_v55 = vshll.u32 %v11948_v41, 16  ;;  %v11513_v25 = vcombine.low %v5673_v21, %v5683_v49  ;;  %v5560_v41 = vld [vmem:[#allocation2 + $0x48] sm:$0xf] }
 0x23f   : > { %v11951_v26 = vpack.c.bf16 %v4951_v37, %v4951_v37  ;;  %v5289_v4 = vshrl.u32 %v11946_v57, 16  ;;  %v5292_v7 = vshll.u32 %v11946_v57, 16  ;;  %v11949_v3 = vpack.c.bf16 %v4949_v30, %v4949_v30  ;;  %v5520_v57 = vld [vmem:[#allocation2 + $0x9c] sm:$0xf] }
 0x240   : > { %v16385_v1 = vrot.slane %v5691_v10, 4  ;;  %12750 = vmatpush3.bf16.msra.mxu1 %v13214_v20  ;;  %v5308_v28 = vrot.slane %v5306_v16, 7  ;;  %12669 = vmatprep.mubr.bf16.mxu1 %v11513_v25  ;;  %v5696_v14 = vrot.slane %v5694_v32, 5  ;;  %v5704_v52 = vshll.u32 %v16383_v56, 16  ;;  %v16410_v32 = vld [vmem:[#allocation2 + $0x4c] sm:$0xf]  ;;  %v4826_v16 = vpop.f32.mrf.mxu0 }
 0x241   : > { %v5332_v24 = vshrl.u32 %v11951_v26, 16  ;;  %v5335_v63 = vshll.u32 %v11951_v26, 16  ;;  %12751 = vmatprep.subr.bf16.mxu1 %v13218_v51  ;;  %v5291_v0 = vrot.slane %v5289_v4, 7  ;;  %v5315_v19 = vshrl.u32 %v11949_v3, 16 }
 0x242   : > { %v5318_v58 = vshll.u32 %v11949_v3, 16  ;;  %v5311_v20 = vor.u32 %v5309_v55, %v5308_v28  ;;  %v5313_v21 = vrot.slane %v5308_v28, 4  ;;  %v5697_v44 = vsel %vm13464_vm4, %v16385_v1, %v5696_v14  ;;  %v12613_v55 = vpop.f32.mrf.mxu1 }
 0x243   : > { %v16395_v2 = vrot.slane %v5332_v24, 7  ;;  %v5294_v31 = vor.u32 %v5292_v7, %v5291_v0  ;;  %v5296_v9 = vrot.slane %v5291_v0, 4  ;;  %v16400_v43 = vrot.slane %v5315_v19, 7  ;;  %v16429_v24 = vld [vmem:[#allocation2 + $0x38] sm:$0x1]  ;;  %v12647_v19 = vpop.f32.mrf.mxu0 }
 0x244   : > { %v5701_v8 = vor.u32 %v5700_v53, %v5696_v14  ;;  %12752 = vmatpush3.bf16.msra.mxu1 %v13218_v51  ;;  %v5312_v37 = vsel %vm16092_vm14, %v5304_v48, %v5311_v20  ;;  %v5518_v30 = vsel %vm16098_vm15, %v5313_v21, %v5517_v42  ;;  %v5706_v7 = vrot.slane %v5704_v52, 5  ;;  %v5562_v52 = vld [vmem:[#allocation2 + $0x54] sm:$0xf] }
 0x245   : > { %v5337_v10 = vor.u32 %v5335_v63, %v16395_v2  ;;  %v5338_v49 = vrot.slane %v16395_v2, 4  ;;  %12753 = vmatprep.subr.bf16.mxu1 %v13222_v17  ;;  %5516 = vst [vmem:[#allocation2 + $0x94] sm:$0xf] %v5312_v37  ;;  %5519 = vst [vmem:[#allocation2 + $0x98] sm:$0x1] %v5518_v30  ;;  %v5295_v48 = vsel %vm16092_vm14, %v5287_v35, %v5294_v31  ;;  %v5321_v25 = vrot.slane %v16400_v43, 4  ;;  %v4839_v37 = vpop.f32.mrf.mxu0 }
 0x246   : > { %v5511_v51 = vsel %vm16098_vm15, %v5296_v9, %v5510_v29  ;;  %v5320_v53 = vor.u32 %v5318_v58, %v16400_v43  ;;  %5509 = vst [vmem:[#allocation2 + $0x88] sm:$0xf] %v5295_v48  ;;  %v5702_v4 = vrot.slane %v5701_v8, 4  ;;  %v5757_v3 = vshrl.u32 %v5560_v41, 16  ;;  %v4369_v58 = vpop.f32.mrf.mxu1  ;;  %v16454_v30 = vld [vmem:[#allocation2 + $0x58] sm:$0xf] }
 0x247   : > { %5512 = vst [vmem:[#allocation2 + $0x8c] sm:$0x1] %v5511_v51  ;;  %v5528_v26 = vsel %vm16079_vm13, %v5337_v10, %v5527_v6  ;;  %v5760_v35 = vshll.u32 %v5560_v41, 16  ;;  %v5770_v1 = vshrl.u32 %v16410_v32, 16  ;;  %v11541_v28 = vcombine.low %v5560_v41, %v16410_v32 }
 0x248   : > { %5529 = vst [vmem:[#allocation2 + $0xa8] sm:$0xf] %v5528_v26  ;;  %v5521_v50 = vsel %vm16079_vm13, %v5320_v53, %v5520_v57  ;;  %12754 = vmatpush3.bf16.msra.mxu1 %v13222_v17  ;;  %v5707_v63 = vsel %vm13464_vm4, %v5702_v4, %v5706_v7  ;;  %v16433_v14 = vrot.slane %v5757_v3, 4  ;;  %v4411_v42 = vadd.f32 %v16373_v12, %v15981_v15  ;;  %v13230_v15 = vld [vmem:[%s18668_s3 + $0x88] sm:$0xff]  }
 0x249   : > { %5522 = vst [vmem:[#allocation2 + $0x9c] sm:$0xf] %v5521_v50  ;;  %v5715_v0 = vor.u32 %v16324_v34, %v16290_v5  ;;  %12755 = vmatprep.subr.bf16.mxu1 %v13226_v45  ;;  %v11514_v20 = vcombine.low %v5697_v44, %v5707_v63  ;;  %v16439_v21 = vrot.slane %v5760_v35, 5  ;;  %12725 = vmatprep.mubr.bf16.mxu0 %v11541_v28  ;;  %v5718_v17 = vshll.u32 %v16288_v60, 16 }
 0x24a   : > { %v5724_v29 = vrot.slane %v5722_v36, 4  ;;  %v4881_v12 = vadd.f32 %v16390_v18, %v4411_v42  ;;  %v5728_v34 = vshll.u32 %v16429_v24, 16  ;;  %v4409_v44 = vadd.f32 %v16392_v46, %v16067_v47 }
 0x24b   : > { %v5716_v5 = vrot.slane %v5715_v0, 4  ;;  %12670 = vmatmul.mubr.bf16.gmra.mxu1 %v11514_v20  ;;  %v5720_v31 = vrot.slane %v5718_v17, 5  ;;  %v4414_v9 = vadd.f32 %v12613_v55, %v15993_v40  ;;  %v4412_v6 = vadd.f32 %v4369_v58, %v16008_v38  ;;  %v13234_v40 = vld [vmem:[%s18668_s3 + $0x80] sm:$0xff]   ;;  %v16478_v0 = vld [vmem:[%s18668_s3 + $0x138] sm:$0xff]  }
 0x24c   : > { %v5781_v60 = vshrl.u32 %v5562_v52, 16  ;;  %v4920_v36 = vadd.f32 %v16360_v62, %v4881_v12  ;;  %v5730_v8 = vrot.slane %v5728_v34, 5  ;;  %v4879_v41 = vadd.f32 %v4826_v16, %v4409_v44  ;;  %12756 = vmatpush3.bf16.msra.mxu1 %v13226_v45  ;;  %v16480_v34 = vld [vmem:[#allocation2 + $0x44] sm:$0x1] }
 0x24d   : > { %v5784_v18 = vshll.u32 %v5562_v52, 16  ;;  %v5721_v10 = vsel %vm13464_vm4, %v5716_v5, %v5720_v31  ;;  %v5725_v47 = vor.u32 %v5724_v29, %v5720_v31  ;;  %v4884_v46 = vadd.f32 %v12647_v19, %v4414_v9  ;;  %12757 = vmatprep.subr.bf16.mxu1 %v13230_v15  ;;  %v5531_v31 = vld [vmem:[#allocation2 + $0xb0] sm:$0x1] }
 0x24e   : > { %v4882_v57 = vadd.f32 %v4839_v37, %v4412_v6  ;;  %v4952_v38 = vmax.f32 %v4920_v36, 0.0  ;;  %v4918_v55 = vadd.f32 %v16360_v62, %v4879_v41  ;;  %v16462_v16 = vrot.slane %v5781_v60, 4 }
 0x24f   : > { %v16464_v48 = vrot.slane %v5784_v18, 5  ;;  %v5726_v51 = vrot.slane %v5725_v47, 4  ;;  %v4923_v45 = vadd.f32 %v16360_v62, %v4884_v46  ;;  %v5794_v26 = vshrl.u32 %v16454_v30, 16  ;;  %v5524_v18 = vld [vmem:[#allocation2 + $0xa4] sm:$0x1] }
 0x250   : > { %v4921_v53 = vadd.f32 %v16360_v62, %v4882_v57  ;;  %v11952_v4 = vpack.c.bf16 %v4952_v38, %v4952_v38  ;;  %v4950_v7 = vmax.f32 %v4918_v55, 0.0  ;;  %v11542_v3 = vcombine.low %v5562_v52, %v16454_v30  ;;  %12758 = vmatpush3.bf16.msra.mxu1 %v13230_v15  ;;  %v5541_v46 = vld [vmem:[#allocation2 + $0xc0] sm:$0xf]  ;;  %v5574_v23 = vld [vmem:[#allocation2 + $0x9c] sm:$0xf] }
 0x251   : > { %v5739_v50 = vor.u32 %v16367_v13, %v16363_v39  ;;  %v5731_v35 = vsel %vm13464_vm4, %v5726_v51, %v5730_v8  ;;  %v4955_v28 = vmax.f32 %v4923_v45, 0.0  ;;  %v5742_v42 = vshll.u32 %v16350_v61, 16  ;;  %12759 = vmatprep.subr.bf16.mxu1 %v13234_v40  ;;  %v5534_v45 = vld [vmem:[#allocation2 + $0xb4] sm:$0xf] }
 0x252   : > { %v4953_v63 = vmax.f32 %v4921_v53, 0.0  ;;  %v5340_v19 = vshrl.u32 %v11952_v4, 16  ;;  %v5343_v58 = vshll.u32 %v11952_v4, 16  ;;  %v11515_v52 = vcombine.low %v5721_v10, %v5731_v35  ;;  %12726 = vmatmul.mubr.bf16.gmra.mxu0 %v11542_v3  ;;  %v5564_v53 = vld [vmem:[#allocation2 + $0x60] sm:$0xf]  ;;  %v12614_v4 = vpop.f32.mrf.mxu1 }
 0x253   : > { %v11950_v20 = vpack.c.bf16 %v4950_v7, %v4950_v7  ;;  %v11955_v39 = vpack.c.bf16 %v4955_v28, %v4955_v28  ;;  %v5740_v17 = vrot.slane %v5739_v50, 4  ;;  %v5744_v29 = vrot.slane %v5742_v42, 5  ;;  %v16502_v35 = vld [vmem:[#allocation2 + $0x64] sm:$0xf] }
 0x254   : > { %v11953_v13 = vpack.c.bf16 %v4953_v63, %v4953_v63  ;;  %v5342_v15 = vrot.slane %v5340_v19, 7  ;;  %12673 = vmatprep.mubr.bf16.mxu1 %v11515_v52  ;;  %v5748_v44 = vrot.slane %v5746_v11, 4  ;;  %12760 = vmatpush3.bf16.msra.mxu1 %v13234_v40  ;;  %v5752_v57 = vshll.u32 %v16480_v34, 16  ;;  %v16510_v19 = vld [vmem:[#allocation2 + $0x50] sm:$0x1] }
 0x255   : > { %v5323_v12 = vshrl.u32 %v11950_v20, 16  ;;  %v5326_v5 = vshll.u32 %v11950_v20, 16  ;;  %v5366_v9 = vshrl.u32 %v11955_v39, 16  ;;  %v5369_v6 = vshll.u32 %v11955_v39, 16  ;;  %12841 = vmatprep.subr.bf16.mxu1 %v16478_v0 }
 0x256   : > { %v5349_v60 = vshrl.u32 %v11953_v13, 16  ;;  %v5352_v36 = vshll.u32 %v11953_v13, 16  ;;  %v5345_v8 = vor.u32 %v5343_v58, %v5342_v15  ;;  %v5347_v41 = vrot.slane %v5342_v15, 4  ;;  %v4372_v15 = vpop.f32.mrf.mxu1 }
 0x257   : > { %v5325_v37 = vrot.slane %v5323_v12, 7  ;;  %v5745_v10 = vsel %vm13464_vm4, %v5740_v17, %v5744_v29  ;;  %v16487_v47 = vrot.slane %v5366_v9, 7  ;;  %v5749_v11 = vor.u32 %v5748_v44, %v5744_v29  ;;  %v12648_v29 = vpop.f32.mrf.mxu0  ;;  %v5566_v12 = vld [vmem:[#allocation2 + $0x6c] sm:$0xf]  ;;  %v16527_v9 = vld [vmem:[#allocation2 + $0x70] sm:$0xf] }
 0x258   : > { %v16489_v61 = vrot.slane %v5349_v60, 7  ;;  %v5346_v40 = vsel %vm16092_vm14, %v5338_v49, %v5345_v8  ;;  %v5532_v38 = vsel %vm16098_vm15, %v5347_v41, %v5531_v31  ;;  %v5754_v42 = vrot.slane %v5752_v57, 5  ;;  %v16536_v57 = vld [vmem:[#allocation2 + $0x5c] sm:$0x1] }
 0x259   : > { %v5328_v55 = vor.u32 %v5326_v5, %v5325_v37  ;;  %v5330_v51 = vrot.slane %v5325_v37, 4  ;;  %5530 = vst [vmem:[#allocation2 + $0xac] sm:$0xf] %v5346_v40  ;;  %5533 = vst [vmem:[#allocation2 + $0xb0] sm:$0x1] %v5532_v38  ;;  %v5371_v7 = vor.u32 %v5369_v6, %v16487_v47  ;;  %v5372_v3 = vrot.slane %v16487_v47, 4 }
 0x25a   : > { %v5354_v50 = vor.u32 %v5352_v36, %v16489_v61  ;;  %v5355_v2 = vrot.slane %v16489_v61, 4  ;;  %v5750_v63 = vrot.slane %v5749_v11, 4  ;;  %v5805_v20 = vshrl.u32 %v5564_v53, 16 }
 0x25b   : > { %v5329_v49 = vsel %vm16092_vm14, %v5321_v25, %v5328_v55  ;;  %v5525_v28 = vsel %vm16098_vm15, %v5330_v51, %v5524_v18  ;;  %v5542_v58 = vsel %vm16079_vm13, %v5371_v7, %v5541_v46  ;;  %v5808_v43 = vshll.u32 %v5564_v53, 16  ;;  %v4842_v46 = vpop.f32.mrf.mxu0  ;;  %v5568_v51 = vld [vmem:[#allocation2 + $0x78] sm:$0xf] }
 0x25c   : > { %5523 = vst [vmem:[#allocation2 + $0xa0] sm:$0xf] %v5329_v49  ;;  %5526 = vst [vmem:[#allocation2 + $0xa4] sm:$0x1] %v5525_v28  ;;  %v5535_v52 = vsel %vm16079_vm13, %v5354_v50, %v5534_v45  ;;  %v5755_v25 = vsel %vm13464_vm4, %v5750_v63, %v5754_v42  ;;  %v5818_v39 = vshrl.u32 %v16502_v35, 16  ;;  %v11543_v13 = vcombine.low %v5564_v53, %v16502_v35 }
 0x25d   : > { %5543 = vst [vmem:[#allocation2 + $0xc0] sm:$0xf] %v5542_v58  ;;  %5536 = vst [vmem:[#allocation2 + $0xb4] sm:$0xf] %v5535_v52  ;;  %v4415_v17 = vadd.f32 %v12614_v4, %v16019_v27  ;;  %v11516_v5 = vcombine.low %v5745_v10, %v5755_v25  ;;  %v16521_v44 = vrot.slane %v5805_v20, 4  ;;  %v16523_v33 = vrot.slane %v5808_v43, 5 }
 0x25e   : > { %v5763_v31 = vor.u32 %v16439_v21, %v16433_v14  ;;  %12729 = vmatprep.mubr.bf16.mxu0 %v11543_v13  ;;  %v5766_v60 = vshll.u32 %v16410_v32, 16  ;;  %v5772_v27 = vrot.slane %v5770_v1, 4  ;;  %v5776_v36 = vshll.u32 %v16510_v19, 16  ;;  %v16552_v63 = vld [vmem:[#allocation2 + $0x7c] sm:$0xf] }
 0x25f   : > { %v4885_v6 = vadd.f32 %v12648_v29, %v4415_v17  ;;  %12674 = vmatmul.mubr.bf16.gmra.mxu1 %v11516_v5  ;;  %v4413_v41 = vadd.f32 %v4372_v15, %v16070_v54  ;;  %v5829_v37 = vshrl.u32 %v5566_v12, 16  ;;  %v5832_v18 = vshll.u32 %v5566_v12, 16 }
 0x260   : > { %v5764_v8 = vrot.slane %v5763_v31, 4  ;;  %v5768_v14 = vrot.slane %v5766_v60, 5  ;;  %v5778_v21 = vrot.slane %v5776_v36, 5  ;;  %v5842_v11 = vshrl.u32 %v16527_v9, 16  ;;  %v16564_v36 = vld [vmem:[#allocation2 + $0x68] sm:$0x1] }
 0x261   : > { %v4924_v10 = vadd.f32 %v16360_v62, %v4885_v6  ;;  %v4883_v40 = vadd.f32 %v4842_v46, %v4413_v41  ;;  %v16538_v38 = vrot.slane %v5829_v37, 4  ;;  %v16540_v1 = vrot.slane %v5832_v18, 5 }
 0x262   : > { %v11544_v55 = vcombine.low %v5566_v12, %v16527_v9  ;;  %v5769_v45 = vsel %vm13464_vm4, %v5764_v8, %v5768_v14  ;;  %v5773_v53 = vor.u32 %v5772_v27, %v5768_v14  ;;  %v5787_v4 = vor.u32 %v16464_v48, %v16462_v16  ;;  %v5545_v8 = vld [vmem:[#allocation2 + $0xc8] sm:$0x1] }
 0x263   : > { %v4956_v54 = vmax.f32 %v4924_v10, 0.0  ;;  %v4922_v7 = vadd.f32 %v16360_v62, %v4883_v40  ;;  %v5790_v50 = vshll.u32 %v16454_v30, 16  ;;  %v5796_v49 = vrot.slane %v5794_v26, 4 }
 0x264   : > { %12730 = vmatmul.mubr.bf16.gmra.mxu0 %v11544_v55  ;;  %v5800_v28 = vshll.u32 %v16536_v57, 16  ;;  %v5774_v58 = vrot.slane %v5773_v53, 4  ;;  %v5788_v52 = vrot.slane %v5787_v4, 4  ;;  %v5853_v20 = vshrl.u32 %v5568_v51, 16  ;;  %v5570_v55 = vld [vmem:[#allocation2 + $0x84] sm:$0xf] }
 0x265   : > { %v11956_v42 = vpack.c.bf16 %v4956_v54, %v4956_v54  ;;  %v4954_v43 = vmax.f32 %v4922_v7, 0.0  ;;  %v5792_v25 = vrot.slane %v5790_v50, 5  ;;  %v5856_v16 = vshll.u32 %v5568_v51, 16  ;;  %v16574_v4 = vld [vmem:[#allocation2 + $0x88] sm:$0xf] }
 0x266   : > { %v5802_v13 = vrot.slane %v5800_v28, 5  ;;  %v5779_v17 = vsel %vm13464_vm4, %v5774_v58, %v5778_v21  ;;  %v16556_v29 = vrot.slane %v5853_v20, 4  ;;  %v5866_v60 = vshrl.u32 %v16552_v63, 16  ;;  %v5538_v7 = vld [vmem:[#allocation2 + $0xbc] sm:$0x1] }
 0x267   : > { %v5374_v48 = vshrl.u32 %v11956_v42, 16  ;;  %v5377_v62 = vshll.u32 %v11956_v42, 16  ;;  %v11517_v26 = vcombine.low %v5769_v45, %v5779_v17  ;;  %v11954_v15 = vpack.c.bf16 %v4954_v43, %v4954_v43  ;;  %v16585_v43 = vld [vmem:[#allocation2 + $0x74] sm:$0x1] }
 0x268   : > { %v5793_v12 = vsel %vm13464_vm4, %v5788_v52, %v5792_v25  ;;  %v5797_v5 = vor.u32 %v5796_v49, %v5792_v25  ;;  %v16560_v6 = vrot.slane %v5856_v16, 5  ;;  %v11545_v27 = vcombine.low %v5568_v51, %v16552_v63  ;;  %v5572_v25 = vld [vmem:[#allocation2 + $0x90] sm:$0xf]  ;;  %v16594_v17 = vld [vmem:[#allocation2 + $0x94] sm:$0xf] }
 0x269   : > { %v5376_v31 = vrot.slane %v5374_v48, 7  ;;  %12677 = vmatprep.mubr.bf16.mxu1 %v11517_v26  ;;  %v5357_v41 = vshrl.u32 %v11954_v15, 16  ;;  %v5360_v37 = vshll.u32 %v11954_v15, 16  ;;  %v5811_v10 = vor.u32 %v16523_v33, %v16521_v44 }
 0x26a   : > { %v5798_v18 = vrot.slane %v5797_v5, 4  ;;  %12733 = vmatprep.mubr.bf16.mxu0 %v11545_v27  ;;  %v5814_v46 = vshll.u32 %v16502_v35, 16  ;;  %v5820_v40 = vrot.slane %v5818_v39, 4  ;;  %v5824_v53 = vshll.u32 %v16564_v36, 16  ;;  %v16599_v5 = vld [vmem:[#allocation2 + $0x80] sm:$0x1] }
 0x26b   : > { %v5379_v14 = vor.u32 %v5377_v62, %v5376_v31  ;;  %v5381_v21 = vrot.slane %v5376_v31, 4  ;;  %v5359_v51 = vrot.slane %v5357_v41, 7  ;;  %v5812_v45 = vrot.slane %v5811_v10, 4 }
 0x26c   : > { %v5803_v54 = vsel %vm13464_vm4, %v5798_v18, %v5802_v13  ;;  %v5816_v50 = vrot.slane %v5814_v46, 5  ;;  %v5826_v42 = vrot.slane %v5824_v53, 5  ;;  %v5877_v58 = vshrl.u32 %v5570_v55, 16 }
 0x26d   : > { %v5380_v44 = vsel %vm16092_vm14, %v5372_v3, %v5379_v14  ;;  %v5546_v33 = vsel %vm16098_vm15, %v5381_v21, %v5545_v8  ;;  %v11518_v39 = vcombine.low %v5793_v12, %v5803_v54  ;;  %v5362_v49 = vor.u32 %v5360_v37, %v5359_v51 }
 0x26e   : > { %5544 = vst [vmem:[#allocation2 + $0xc4] sm:$0xf] %v5380_v44  ;;  %5547 = vst [vmem:[#allocation2 + $0xc8] sm:$0x1] %v5546_v33  ;;  %v5364_v28 = vrot.slane %v5359_v51, 4  ;;  %v5817_v52 = vsel %vm13464_vm4, %v5812_v45, %v5816_v50  ;;  %v5821_v47 = vor.u32 %v5820_v40, %v5816_v50  ;;  %v5880_v20 = vshll.u32 %v5570_v55, 16 }
 0x26f   : > { %12678 = vmatmul.mubr.bf16.gmra.mxu1 %v11518_v39  ;;  %v5890_v3 = vshrl.u32 %v16574_v4, 16  ;;  %v5363_v13 = vsel %vm16092_vm14, %v5355_v2, %v5362_v49  ;;  %v5879_v48 = vrot.slane %v5877_v58, 4  ;;  %v11546_v62 = vcombine.low %v5570_v55, %v16574_v4  ;;  %v16619_v50 = vld [vmem:[#allocation2 + $0x8c] sm:$0x1] }
 0x270   : > { %v5539_v16 = vsel %vm16098_vm15, %v5364_v28, %v5538_v7  ;;  %5537 = vst [vmem:[#allocation2 + $0xb8] sm:$0xf] %v5363_v13  ;;  %v5822_v26 = vrot.slane %v5821_v47, 4  ;;  %v5882_v15 = vrot.slane %v5880_v20, 5  ;;  %v5835_v12 = vor.u32 %v16540_v1, %v16538_v38  ;;  %v16607_v1 = vld [vmem:[#allocation2 + $0xa0] sm:$0xf] }
 0x271   : > { %5540 = vst [vmem:[#allocation2 + $0xbc] sm:$0x1] %v5539_v16  ;;  %v5838_v61 = vshll.u32 %v16527_v9, 16  ;;  %12734 = vmatmul.mubr.bf16.gmra.mxu0 %v11546_v62  ;;  %v5844_v22 = vrot.slane %v5842_v11, 4  ;;  %v5848_v2 = vshll.u32 %v16585_v43, 16  ;;  %v5901_v31 = vshrl.u32 %v5572_v25, 16 }
 0x272   : > { %v5904_v27 = vshll.u32 %v5572_v25, 16  ;;  %v5827_v8 = vsel %vm13464_vm4, %v5822_v26, %v5826_v42  ;;  %v5836_v41 = vrot.slane %v5835_v12, 4  ;;  %v5914_v38 = vshrl.u32 %v16594_v17, 16  ;;  %v5576_v42 = vld [vmem:[#allocation2 + $0xa8] sm:$0xf] }
 0x273   : > { %v5840_v37 = vrot.slane %v5838_v61, 5  ;;  %v11519_v18 = vcombine.low %v5817_v52, %v5827_v8  ;;  %v5850_v10 = vrot.slane %v5848_v2, 5  ;;  %v5903_v14 = vrot.slane %v5901_v31, 4  ;;  %v16627_v20 = vld [vmem:[#allocation2 + $0xac] sm:$0xf] }
 0x274   : > { %v5906_v21 = vrot.slane %v5904_v27, 5  ;;  %v11547_v40 = vcombine.low %v5572_v25, %v16594_v17  ;;  %v5859_v55 = vor.u32 %v16560_v6, %v16556_v29  ;;  %v5862_v51 = vshll.u32 %v16552_v63, 16  ;;  %v5578_v27 = vld [vmem:[#allocation2 + $0xb4] sm:$0xf] }
 0x275   : > { %v5841_v11 = vsel %vm13464_vm4, %v5836_v41, %v5840_v37  ;;  %v5845_v46 = vor.u32 %v5844_v22, %v5840_v37  ;;  %12681 = vmatprep.mubr.bf16.mxu1 %v11519_v18  ;;  %v5868_v54 = vrot.slane %v5866_v60, 4  ;;  %v5872_v45 = vshll.u32 %v16599_v5, 16  ;;  %v16632_v22 = vld [vmem:[#allocation2 + $0x98] sm:$0x1] }
 0x276   : > { %v5925_v53 = vshrl.u32 %v5574_v23, 16  ;;  %12737 = vmatprep.mubr.bf16.mxu0 %v11547_v40  ;;  %v5860_v33 = vrot.slane %v5859_v55, 4  ;;  %v5928_v7 = vshll.u32 %v5574_v23, 16  ;;  %v5938_v39 = vshrl.u32 %v16607_v1, 16 }
 0x277   : > { %v5846_v44 = vrot.slane %v5845_v46, 4  ;;  %v5864_v49 = vrot.slane %v5862_v51, 5  ;;  %v5874_v28 = vrot.slane %v5872_v45, 5  ;;  %v11548_v6 = vcombine.low %v5574_v23, %v16607_v1  ;;  %v16638_v18 = vld [vmem:[#allocation2 + $0xb8] sm:$0xf] }
 0x278   : > { %v16621_v29 = vrot.slane %v5925_v53, 4  ;;  %v5930_v58 = vrot.slane %v5928_v7, 5  ;;  %v5883_v52 = vor.u32 %v5882_v15, %v5879_v48  ;;  %v5886_v47 = vshll.u32 %v16574_v4, 16 }
 0x279   : > { %v5851_v60 = vsel %vm13464_vm4, %v5846_v44, %v5850_v10  ;;  %v5865_v13 = vsel %vm13464_vm4, %v5860_v33, %v5864_v49  ;;  %v5869_v16 = vor.u32 %v5868_v54, %v5864_v49  ;;  %12738 = vmatmul.mubr.bf16.gmra.mxu0 %v11548_v6  ;;  %v5892_v62 = vrot.slane %v5890_v3, 4 }
 0x27a   : > { %v11520_v25 = vcombine.low %v5841_v11, %v5851_v60  ;;  %v5884_v26 = vrot.slane %v5883_v52, 4  ;;  %v5888_v12 = vrot.slane %v5886_v47, 5  ;;  %v5896_v61 = vshll.u32 %v16619_v50, 16  ;;  %v13232_v47 = vld [vmem:[#allocation2 + $0xc] sm:$0xff]  }
 0x27b   : > { %v5949_v23 = vshrl.u32 %v5576_v42, 16  ;;  %v5870_v48 = vrot.slane %v5869_v16, 4  ;;  %v5952_v15 = vshll.u32 %v5576_v42, 16  ;;  %v5962_v2 = vshrl.u32 %v16627_v20, 16 }
 0x27c   : > { %12682 = vmatmul.mubr.bf16.gmra.mxu1 %v11520_v25  ;;  %v11549_v31 = vcombine.low %v5576_v42, %v16627_v20  ;;  %v5889_v8 = vsel %vm13464_vm4, %v5884_v26, %v5888_v12  ;;  %v5893_v41 = vor.u32 %v5892_v62, %v5888_v12  ;;  %v5898_v3 = vrot.slane %v5896_v61, 5  ;;  %v16652_v25 = vld [vmem:[#allocation2 + $0xb0] sm:$0x1] }
 0x27d   : > { %v5951_v37 = vrot.slane %v5949_v23, 4  ;;  %v5875_v10 = vsel %vm13464_vm4, %v5870_v48, %v5874_v28  ;;  %v5954_v11 = vrot.slane %v5952_v15, 5  ;;  %v5907_v46 = vor.u32 %v5906_v21, %v5903_v14  ;;  %v16648_v21 = vld [vmem:[#allocation2 + $0xa4] sm:$0x1] }
 0x27e   : > { %12741 = vmatprep.mubr.bf16.mxu0 %v11549_v31  ;;  %v5910_v40 = vshll.u32 %v16594_v17, 16  ;;  %v11521_v55 = vcombine.low %v5865_v13, %v5875_v10  ;;  %v5894_v51 = vrot.slane %v5893_v41, 4  ;;  %v5916_v54 = vrot.slane %v5914_v38, 4  ;;  %v6591_v41 = vld [vmem:[#allocation2] sm:$0xe] }
 0x27f   : > { %v5920_v45 = vshll.u32 %v16632_v22, 16  ;;  %v5908_v53 = vrot.slane %v5907_v46, 4  ;;  %v5973_v33 = vshrl.u32 %v5578_v27, 16  ;;  %v5976_v7 = vshll.u32 %v5578_v27, 16  ;;  %v16661_v10 = vld [vmem:[#allocation2 + $0xbc] sm:$0x1] }
 0x280   : > { %v5912_v44 = vrot.slane %v5910_v40, 5  ;;  %12685 = vmatprep.mubr.bf16.mxu1 %v11521_v55  ;;  %v5899_v49 = vsel %vm13464_vm4, %v5894_v51, %v5898_v3  ;;  %v5986_v28 = vshrl.u32 %v16638_v18, 16  ;;  %v11550_v14 = vcombine.low %v5578_v27, %v16638_v18 }
 0x281   : > { %v5922_v6 = vrot.slane %v5920_v45, 5  ;;  %v11522_v42 = vcombine.low %v5889_v8, %v5899_v49  ;;  %v5975_v52 = vrot.slane %v5973_v33, 4  ;;  %v5978_v13 = vrot.slane %v5976_v7, 5  ;;  %v6592_v45 = vld [vmem:[#allocation2 + $0xc] sm:$0xe] }
 0x282   : > { %v5913_v38 = vsel %vm13464_vm4, %v5908_v53, %v5912_v44  ;;  %v5917_v60 = vor.u32 %v5916_v54, %v5912_v44  ;;  %12742 = vmatmul.mubr.bf16.gmra.mxu0 %v11550_v14  ;;  %v5931_v16 = vor.u32 %v5930_v58, %v16621_v29  ;;  %v5934_v62 = vshll.u32 %v16607_v1, 16  ;;  %v13235_v44 = vld [vmem:[#allocation2 + $0x18] sm:$0xff]  }
 0x283   : > { %v5940_v26 = vrot.slane %v5938_v39, 4  ;;  %v5944_v61 = vshll.u32 %v16648_v21, 16  ;;  %12809 = vmatprep.mubr.bf16.mxu0 %v13232_v47  ;;  %v5955_v23 = vor.u32 %v5954_v11, %v5951_v37  ;;  %v5958_v48 = vshll.u32 %v16627_v20, 16 }
 0x284   : > { %12686 = vmatmul.mubr.bf16.gmra.mxu1 %v11522_v42  ;;  %v5918_v12 = vrot.slane %v5917_v60, 4  ;;  %v5932_v15 = vrot.slane %v5931_v16, 4  ;;  %v5936_v31 = vrot.slane %v5934_v62, 5  ;;  %v5964_v27 = vrot.slane %v5962_v2, 4  ;;  %v13326_v60 = vld [vmem:[#allocation2 + $0x4] sm:$0xf] }
 0x285   : > { %v5968_v8 = vshll.u32 %v16652_v25, 16  ;;  %v5946_v58 = vrot.slane %v5944_v61, 5  ;;  %v5956_v3 = vrot.slane %v5955_v23, 4  ;;  %v5960_v39 = vrot.slane %v5958_v48, 5  ;;  %v13327_v62 = vld [vmem:[#allocation2 + $0x8] sm:$0x1] }
 0x286   : > { %v5923_v29 = vsel %vm13464_vm4, %v5918_v12, %v5922_v6  ;;  %v5937_v37 = vsel %vm13464_vm4, %v5932_v15, %v5936_v31  ;;  %v5941_v11 = vor.u32 %v5940_v26, %v5936_v31  ;;  %v5979_v51 = vor.u32 %v5978_v13, %v5975_v52  ;;  %v13244_v52 = vld [vmem:[%s18668_s3 + $0x170] sm:$0xff]   ;;  %v6593_v12 = vld [vmem:[#allocation2 + $0x18] sm:$0xe] }
 0x287   : > { %v11523_v46 = vcombine.low %v5913_v38, %v5923_v29  ;;  %v5970_v40 = vrot.slane %v5968_v8, 5  ;;  %v5961_v2 = vsel %vm13464_vm4, %v5956_v3, %v5960_v39  ;;  %v5965_v55 = vor.u32 %v5964_v27, %v5960_v39  ;;  %v13236_v38 = vld [vmem:[#allocation2 + $0x24] sm:$0xff]   ;;  %v13328_v29 = vld [vmem:[#allocation2 + $0x10] sm:$0xf]  ;;  %v13329_v3 = vld [vmem:[%s18668_s3 + $0x178] sm:$0xff]  }
 0x288   : > { %v5982_v54 = vshll.u32 %v16638_v18, 16  ;;  %v5942_v53 = vrot.slane %v5941_v11, 4  ;;  %v5988_v33 = vrot.slane %v5986_v28, 4  ;;  %v5992_v7 = vshll.u32 %v16661_v10, 16  ;;  %v6594_v39 = vld [vmem:[#allocation2 + $0x24] sm:$0xe] }
 0x289   : > { %12689 = vmatprep.mubr.bf16.mxu1 %v11523_v46  ;;  %v11559_v49 = vrot.slane %v6591_v41, 9  ;;  %v5966_v6 = vrot.slane %v5965_v55, 4  ;;  %v5980_v14 = vrot.slane %v5979_v51, 4  ;;  %v6641_v47 = vrot.slane %v13326_v60, 5  ;;  %v13331_v55 = vld [vmem:[#allocation2 + $0x1c] sm:$0xf] }
 0x28a   : > { %v5984_v42 = vrot.slane %v5982_v54, 5  ;;  %v5947_v13 = vsel %vm13464_vm4, %v5942_v53, %v5946_v58  ;;  %12810 = vmatmul.mubr.bf16.vlgmr.msra.gmra.mxu0 %v13235_v44  ;;  %v5994_v16 = vrot.slane %v5992_v7, 5  ;;  %v6644_v28 = vrot.slane %v13327_v62, 5  ;;  %v13248_v51 = vld [vmem:[%s18668_s3 + $0x168] sm:$0xff]   ;;  %v13332_v44 = vld [vmem:[#allocation2 + $0x20] sm:$0x1] }
 0x28b   : > { %v11560_v26 = vrot.slane %v6592_v45, 9  ;;  %v11524_v61 = vcombine.low %v5937_v37, %v5947_v13  ;;  %v5971_v23 = vsel %vm13464_vm4, %v5966_v6, %v5970_v40  ;;  %12813 = vmatprep.mubr.bf16.mxu0 %v13236_v38  ;;  %v16680_v8 = vsel %vm13750_vm7, %v11559_v49, %v6641_v47  ;;  %12890 = vmatpush3.bf16.msra.mxu0 %v13329_v3  ;;  %v13330_v37 = vld [vmem:[#allocation2 + $0x14] sm:$0x1]  ;;  %v6595_v7 = vld [vmem:[#allocation2 + $0x30] sm:$0xe] }
 0x28c   : > { %v5985_v48 = vsel %vm13464_vm4, %v5980_v14, %v5984_v42  ;;  %v5989_v15 = vor.u32 %v5988_v33, %v5984_v42  ;;  %v11525_v31 = vcombine.low %v5961_v2, %v5971_v23  ;;  %v6643_v41 = vrot.slane %v6641_v47, 4  ;;  %12891 = vmatprep.subr.bf16.mxu0 %v13244_v52  ;;  %v13237_v60 = vld [vmem:[#allocation2 + $0x30] sm:$0xff]   ;;  %v13333_v62 = vld [vmem:[#allocation2 + $0x28] sm:$0xf] }
 0x28d   : > { %v6648_v58 = vrot.slane %v13328_v29, 5  ;;  %12690 = vmatmul.mubr.bf16.gmra.mxu1 %v11524_v61  ;;  %v6651_v11 = vrot.slane %v13330_v37, 5  ;;  %v11561_v40 = vrot.slane %v6593_v12, 9  ;;  %v6655_v2 = vrot.slane %v13331_v55, 5  ;;  %v13239_v12 = vld [vmem:[#allocation2 + $0x3c] sm:$0xff]  }
 0x28e   : > { %v5990_v46 = vrot.slane %v5989_v15, 4  ;;  %12693 = vmatprep.mubr.bf16.mxu1 %v11525_v31  ;;  %v6645_v54 = vsel %vm13750_vm7, %v6643_v41, %v6644_v28  ;;  %v6658_v33 = vrot.slane %v13332_v44, 5  ;;  %v11562_v13 = vrot.slane %v6594_v39, 9  ;;  %v6597_v15 = vld [vmem:[#allocation2 + $0x48] sm:$0xe]  ;;  %v13252_v31 = vld [vmem:[%s18668_s3 + $0x160] sm:$0xff]  }
 0x28f   : > { %v16692_v45 = vsel %vm13750_vm7, %v11560_v26, %v6648_v58  ;;  %v6650_v53 = vrot.slane %v6648_v58, 4  ;;  %v11591_v6 = vcombine.low %v16680_v8, %v6645_v54  ;;  %v16699_v14 = vsel %vm13750_vm7, %v11561_v40, %v6655_v2  ;;  %12892 = vmatpush3.bf16.msra.mxu0 %v13244_v52  ;;  %v6596_v26 = vld [vmem:[#allocation2 + $0x3c] sm:$0xe]  ;;  %v13334_v29 = vld [vmem:[#allocation2 + $0x34] sm:$0xf] }
 0x290   : > { %v5995_v49 = vsel %vm13464_vm4, %v5990_v46, %v5994_v16  ;;  %v6657_v42 = vrot.slane %v6655_v2, 4  ;;  %v6662_v28 = vrot.slane %v13333_v62, 5  ;;  %v6665_v23 = vrot.slane %v16383_v56, 5  ;;  %12893 = vmatprep.subr.bf16.mxu0 %v13248_v51  ;;  %v13335_v39 = vld [vmem:[#allocation2 + $0x40] sm:$0xf] }
 0x291   : > { %v11526_v38 = vcombine.low %v5985_v48, %v5995_v49  ;;  %v16703_v47 = vsel %vm13750_vm7, %v6650_v53, %v6651_v11  ;;  %v11563_v48 = vrot.slane %v6595_v7, 9  ;;  %v6669_v58 = vrot.slane %v13334_v29, 5  ;;  %v6598_v11 = vld [vmem:[#allocation2 + $0x54] sm:$0xe]  ;;  %v6600_v62 = vld [vmem:[#allocation2 + $0x6c] sm:$0xe] }
 0x292   : > { %v11592_v16 = vcombine.low %v16692_v45, %v16703_v47  ;;  %v16709_v61 = vsel %vm13750_vm7, %v6657_v42, %v6658_v33  ;;  %12814 = vmatmul.mubr.bf16.gmra.mxu0 %v13237_v60  ;;  %v16719_v8 = vsel %vm13750_vm7, %v11562_v13, %v6662_v28  ;;  %v6664_v41 = vrot.slane %v6662_v28, 4  ;;  %v13256_v33 = vld [vmem:[%s18668_s3 + $0x158] sm:$0xff]   ;;  %v13241_v28 = vld [vmem:[#allocation2 + $0x48] sm:$0xff]  }
 0x293   : > { %v11593_v52 = vcombine.low %v16699_v14, %v16709_v61  ;;  %12817 = vmatprep.mubr.bf16.mxu0 %v13239_v12  ;;  %v6672_v56 = vrot.slane %v16429_v24, 5  ;;  %v11564_v3 = vrot.slane %v6596_v26, 9  ;;  %v6676_v46 = vrot.slane %v13335_v39, 5  ;;  %12894 = vmatpush3.bf16.msra.mxu0 %v13248_v51  ;;  %v13243_v26 = vld [vmem:[#allocation2 + $0x54] sm:$0xff]  }
 0x294   : > { %v6679_v37 = vrot.slane %v16480_v34, 5  ;;  %v16725_v40 = vsel %vm13750_vm7, %v6664_v41, %v6665_v23  ;;  %v16729_v55 = vsel %vm13750_vm7, %v11563_v48, %v6669_v58  ;;  %v6671_v2 = vrot.slane %v6669_v58, 4  ;;  %12895 = vmatprep.subr.bf16.mxu0 %v13252_v31  ;;  %v6601_v58 = vld [vmem:[#allocation2 + $0x78] sm:$0xe] }
 0x295   : > { %v11565_v54 = vrot.slane %v6597_v15, 9  ;;  %12694 = vmatmul.mubr.bf16.gmra.mxu1 %v11526_v38  ;;  %v11594_v24 = vcombine.low %v16719_v8, %v16725_v40  ;;  %v16735_v53 = vsel %vm13750_vm7, %v11564_v3, %v6676_v46  ;;  %v6678_v34 = vrot.slane %v6676_v46, 4  ;;  %v6599_v38 = vld [vmem:[#allocation2 + $0x60] sm:$0xe] }
 0x296   : > { %v6683_v44 = vrot.slane %v16410_v32, 5  ;;  %12761 = vmatprep.mubr.bf16.mxu1 %v11591_v6  ;;  %v16743_v51 = vsel %vm13750_vm7, %v6671_v2, %v6672_v56  ;;  %v6686_v7 = vrot.slane %v16510_v19, 5  ;;  %v11566_v49 = vrot.slane %v6598_v11, 9  ;;  %v13260_v56 = vld [vmem:[%s18668_s3 + $0x150] sm:$0xff]  }
 0x297   : > { %v6690_v42 = vrot.slane %v16454_v30, 5  ;;  %v11595_v60 = vcombine.low %v16729_v55, %v16743_v51  ;;  %v16751_v32 = vsel %vm13750_vm7, %v6678_v34, %v6679_v37  ;;  %v6693_v23 = vrot.slane %v16536_v57, 5  ;;  %12896 = vmatpush3.bf16.msra.mxu0 %v13252_v31 }
 0x298   : > { %v16755_v6 = vsel %vm13750_vm7, %v11565_v54, %v6683_v44  ;;  %v6685_v13 = vrot.slane %v6683_v44, 4  ;;  %v11596_v19 = vcombine.low %v16735_v53, %v16751_v32  ;;  %v11567_v15 = vrot.slane %v6599_v38, 9  ;;  %12897 = vmatprep.subr.bf16.mxu0 %v13256_v33  ;;  %v6603_v38 = vld [vmem:[#allocation2 + $0x90] sm:$0xe] }
 0x299   : > { %v16761_v30 = vsel %vm13750_vm7, %v11566_v49, %v6690_v42  ;;  %v6692_v12 = vrot.slane %v6690_v42, 4  ;;  %v6697_v41 = vrot.slane %v16502_v35, 5  ;;  %v6700_v29 = vrot.slane %v16564_v36, 5  ;;  %v6602_v35 = vld [vmem:[#allocation2 + $0x84] sm:$0xe]  ;;  %v13242_v36 = vld [vmem:[%s18668_s3 + $0x130] sm:$0xff]  }
 0x29a   : > { %v16766_v48 = vsel %vm13750_vm7, %v6685_v13, %v6686_v7  ;;  %12818 = vmatmul.mubr.bf16.gmra.mxu0 %v13241_v28  ;;  %v11568_v3 = vrot.slane %v6600_v62, 9  ;;  %v6704_v39 = vrot.slane %v16527_v9, 5  ;;  %v6707_v2 = vrot.slane %v16585_v43, 5  ;;  %v16831_v62 = vld [vmem:[#allocation2 + $0x10] sm:$0xf]  ;;  %v13245_v28 = vld [vmem:[#allocation2 + $0x60] sm:$0xff]  }
 0x29b   : > { %v11597_v57 = vcombine.low %v16755_v6, %v16766_v48  ;;  %v16777_v31 = vsel %vm13750_vm7, %v6692_v12, %v6693_v23  ;;  %12821 = vmatprep.mubr.bf16.mxu0 %v13243_v26  ;;  %v16787_v37 = vsel %vm13750_vm7, %v11567_v15, %v6697_v41  ;;  %v6699_v11 = vrot.slane %v6697_v41, 4  ;;  %12898 = vmatpush3.bf16.msra.mxu0 %v13256_v33  ;;  %v8213_v33 = vld [vmem:[#allocation2 + $0xc] sm:$0xe]  ;;  %v16839_v41 = vld [vmem:[#allocation2 + $0x14] sm:$0x1] }
 0x29c   : > { %v11598_v46 = vcombine.low %v16761_v30, %v16777_v31  ;;  %v16792_v54 = vsel %vm13750_vm7, %v11568_v3, %v6704_v39  ;;  %v6706_v9 = vrot.slane %v6704_v39, 4  ;;  %v11569_v34 = vrot.slane %v6601_v58, 9  ;;  %12899 = vmatprep.subr.bf16.mxu0 %v13260_v56  ;;  %v17018_v31 = vld [vmem:[%s18668_s3 + $0x1b8] sm:$0xff]  }
 0x29d   : > { %v6711_v44 = vrot.slane %v16552_v63, 5  ;;  %12762 = vmatmul.mubr.bf16.vlgmr.msra.gmra.mxu1 %v11592_v16  ;;  %v16800_v7 = vsel %vm13750_vm7, %v6699_v11, %v6700_v29  ;;  %v6714_v49 = vrot.slane %v16599_v5, 5  ;;  %v11570_v43 = vrot.slane %v6602_v35, 9  ;;  %v13263_v63 = vld [vmem:[%s18668_s3 + $0x148] sm:$0xff]   ;;  %v6604_v16 = vld [vmem:[#allocation2 + $0x9c] sm:$0xe] }
 0x29e   : > { %v6718_v42 = vrot.slane %v16574_v4, 5  ;;  %12842 = vmatpush3.bf16.msra.mxu1 %v16478_v0  ;;  %12765 = vmatprep.mubr.bf16.mxu1 %v11593_v52  ;;  %v11599_v45 = vcombine.low %v16787_v37, %v16800_v7  ;;  %v16815_v5 = vsel %vm13750_vm7, %v6706_v9, %v6707_v2  ;;  %v13246_v0 = vld [vmem:[%s18668_s3 + $0x128] sm:$0xff]   ;;  %v6721_v13 = vrot.slane %v16619_v50, 5  ;;  %v8214_v9 = vld [vmem:[#allocation2 + $0x18] sm:$0xe] }
 0x29f   : > { %v16819_v4 = vsel %vm13750_vm7, %v11569_v34, %v6711_v44  ;;  %v6713_v47 = vrot.slane %v6711_v44, 4  ;;  %12843 = vmatprep.subr.bf16.mxu1 %v13242_v36  ;;  %v11600_v14 = vcombine.low %v16792_v54, %v16815_v5  ;;  %v11571_v12 = vrot.slane %v6603_v38, 9  ;;  %12900 = vmatpush3.bf16.msra.mxu0 %v13260_v56  ;;  %v13247_v29 = vld [vmem:[#allocation2 + $0x6c] sm:$0xff]   ;;  %v6605_v35 = vld [vmem:[#allocation2 + $0xa8] sm:$0xe] }
 0x2a0   : > { %v16828_v61 = vsel %vm13750_vm7, %v11570_v43, %v6718_v42  ;;  %v6720_v52 = vrot.slane %v6718_v42, 4  ;;  %v6725_v23 = vrot.slane %v16594_v17, 5  ;;  %v6728_v15 = vrot.slane %v16632_v22, 5  ;;  %12901 = vmatprep.subr.bf16.mxu0 %v13263_v63  ;;  %v13264_v17 = vld [vmem:[%s18668_s3 + $0x140] sm:$0xff]   ;;  %v16866_v43 = vld [vmem:[#allocation2 + $0x1c] sm:$0xf] }
 0x2a1   : > { %v16835_v26 = vsel %vm13750_vm7, %v6713_v47, %v6714_v49  ;;  %v11572_v3 = vrot.slane %v6604_v16, 9  ;;  %v6732_v39 = vrot.slane %v16607_v1, 5  ;;  %v6735_v2 = vrot.slane %v16648_v21, 5  ;;  %v13250_v1 = vld [vmem:[%s18668_s3 + $0x120] sm:$0xff]   ;;  %v17058_v54 = vld [vmem:[#allocation2 + $0x58] sm:$0xf] }
 0x2a2   : > { %v11601_v58 = vcombine.low %v16819_v4, %v16835_v26  ;;  %v16845_v50 = vsel %vm13750_vm7, %v6720_v52, %v6721_v13  ;;  %12844 = vmatpush3.bf16.msra.mxu1 %v13242_v36  ;;  %12822 = vmatmul.mubr.bf16.gmra.mxu0 %v13245_v28  ;;  %v16855_v56 = vsel %vm13750_vm7, %v11571_v12, %v6725_v23  ;;  %v6727_v11 = vrot.slane %v6725_v23, 4  ;;  %v16874_v16 = vld [vmem:[#allocation2 + $0x20] sm:$0x1]  ;;  %v16892_v28 = vld [vmem:[%s18668_s3 + $0x1f8] sm:$0xff]   ;;  %v8215_v23 = vld [vmem:[#allocation2 + $0x24] sm:$0xe] }
 0x2a3   : > { %v11602_v22 = vcombine.low %v16828_v61, %v16845_v50  ;;  %12845 = vmatprep.subr.bf16.mxu1 %v13246_v0  ;;  %12825 = vmatprep.mubr.bf16.mxu0 %v13247_v29  ;;  %v16863_v36 = vsel %vm13750_vm7, %v11572_v3, %v6732_v39  ;;  %v6734_v34 = vrot.slane %v6732_v39, 4  ;;  %v11695_v44 = vrot.slane %v8213_v33, 9  ;;  %v13254_v29 = vld [vmem:[%s18668_s3 + $0x118] sm:$0xff]   ;;  %v16913_v3 = vld [vmem:[#allocation2 + $0x28] sm:$0xf] }
 0x2a4   : > { %v8279_v49 = vrot.slane %v16831_v62, 5  ;;  %v16870_v21 = vsel %vm13750_vm7, %v6727_v11, %v6728_v15  ;;  %12902 = vmatpush3.bf16.msra.mxu0 %v13263_v63  ;;  %v8282_v42 = vrot.slane %v16839_v41, 5  ;;  %v11573_v38 = vrot.slane %v6605_v35, 9  ;;  %v7459_v15 = vld [vmem:[#allocation2 + $0xc] sm:$0xf]  ;;  %v13249_v39 = vld [vmem:[#allocation2 + $0x78] sm:$0xff]  }
 0x2a5   : > { %v6739_v47 = vrot.slane %v16627_v20, 5  ;;  %12766 = vmatmul.mubr.bf16.gmra.mxu1 %v11594_v24  ;;  %v16883_v52 = vsel %vm13750_vm7, %v6734_v34, %v6735_v2  ;;  %12903 = vmatprep.subr.bf16.mxu0 %v13264_v17  ;;  %v6606_v20 = vld [vmem:[#allocation2 + $0xb4] sm:$0xe]  ;;  %v6742_v12 = vrot.slane %v16652_v25, 5  ;;  %v11696_v51 = vrot.slane %v8214_v9, 9  ;;  %v13251_v9 = vld [vmem:[#allocation2 + $0x84] sm:$0xff]  }
 0x2a6   : > { %v16887_v63 = vsel %vm13750_vm7, %v11695_v44, %v8279_v49  ;;  %v8281_v13 = vrot.slane %v8279_v49, 4  ;;  %12769 = vmatprep.mubr.bf16.mxu1 %v11595_v60  ;;  %12846 = vmatpush3.bf16.msra.mxu1 %v13246_v0  ;;  %v8286_v60 = vrot.slane %v16866_v43, 5  ;;  %v8289_v0 = vrot.slane %v16874_v16, 5  ;;  %v16922_v34 = vld [vmem:[#allocation2 + $0x2c] sm:$0x1] }
 0x2a7   : > { %v16901_v40 = vsel %vm13750_vm7, %v11573_v38, %v6739_v47  ;;  %v6741_v24 = vrot.slane %v6739_v47, 4  ;;  %12847 = vmatprep.subr.bf16.mxu1 %v13250_v1  ;;  %v11574_v11 = vrot.slane %v6606_v20, 9  ;;  %v6746_v2 = vrot.slane %v16638_v18, 5  ;;  %v13258_v20 = vld [vmem:[%s18668_s3 + $0x110] sm:$0xff]  }
 0x2a8   : > { %v16909_v55 = vsel %vm13750_vm7, %v8281_v13, %v8282_v42  ;;  %12904 = vmatpush3.bf16.msra.mxu0 %v13264_v17  ;;  %v16928_v49 = vsel %vm13750_vm7, %v11696_v51, %v8286_v60  ;;  %v8288_v42 = vrot.slane %v8286_v60, 4  ;;  %v6749_v38 = vrot.slane %v16661_v10, 5  ;;  %v8216_v51 = vld [vmem:[#allocation2 + $0x30] sm:$0xe] }
 0x2a9   : > { %v11727_v25 = vcombine.low %v16887_v63, %v16909_v55  ;;  %v16919_v35 = vsel %vm13750_vm7, %v6741_v24, %v6742_v12  ;;  %12985 = vmatprep.subr.bf16.mxu0 %v16892_v28  ;;  %v16934_v18 = vsel %vm13750_vm7, %v11574_v11, %v6746_v2  ;;  %v6748_v17 = vrot.slane %v6746_v2, 4  ;;  %v16955_v2 = vld [vmem:[#allocation2 + $0x34] sm:$0xf] }
 0x2aa   : > { %12826 = vmatmul.mubr.bf16.gmra.mxu0 %v13249_v39  ;;  %12848 = vmatpush3.bf16.msra.mxu1 %v13250_v1  ;;  %v11697_v47 = vrot.slane %v8215_v23, 9  ;;  %v8293_v13 = vrot.slane %v16913_v3, 5  ;;  %v16942_v10 = vsel %vm13750_vm7, %v8288_v42, %v8289_v0  ;;  %v8296_v1 = vrot.slane %v16922_v34, 5  ;;  %v7462_v0 = vld [vmem:[#allocation2 + $0x18] sm:$0xf] }
 0x2ab   : > { %12829 = vmatprep.mubr.bf16.mxu0 %v13251_v9  ;;  %12849 = vmatprep.subr.bf16.mxu1 %v13254_v29  ;;  %v7508_v24 = vshrl.u32 %v7459_v15, 16  ;;  %v7511_v12 = vshll.u32 %v7459_v15, 16  ;;  %v16949_v60 = vsel %vm13750_vm7, %v6748_v17, %v6749_v38  ;;  %v7517_v38 = vshll.u32 %v16831_v62, 16  ;;  %v16963_v17 = vld [vmem:[#allocation2 + $0x38] sm:$0x1] }
 0x2ac   : > { %v16953_v39 = vsel %vm13750_vm7, %v11697_v47, %v8293_v13  ;;  %v8295_v11 = vrot.slane %v8293_v13, 4  ;;  %v7521_v53 = vshrl.u32 %v16831_v62, 16  ;;  %v7527_v32 = vshll.u32 %v16839_v41, 16  ;;  %v13262_v13 = vld [vmem:[%s18668_s3 + $0x108] sm:$0xff]   ;;  %v8217_v41 = vld [vmem:[#allocation2 + $0x3c] sm:$0xe] }
 0x2ad   : > { %12770 = vmatmul.mubr.bf16.gmra.mxu1 %v11596_v19  ;;  %v7510_v9 = vrot.slane %v7508_v24, 4  ;;  %v7513_v42 = vrot.slane %v7511_v12, 5  ;;  %v11698_v19 = vrot.slane %v8216_v51, 9  ;;  %v7519_v48 = vrot.slane %v7517_v38, 5  ;;  %v13255_v51 = vld [vmem:[#allocation2 + $0x9c] sm:$0xff]  }
 0x2ae   : > { %12773 = vmatprep.mubr.bf16.mxu1 %v11597_v57  ;;  %12850 = vmatpush3.bf16.msra.mxu1 %v13254_v29  ;;  %v16970_v47 = vsel %vm13750_vm7, %v8295_v11, %v8296_v1  ;;  %v8300_v57 = vrot.slane %v16955_v2, 5  ;;  %v13253_v29 = vld [vmem:[#allocation2 + $0x90] sm:$0xff]   ;;  %v7523_v1 = vrot.slane %v7521_v53, 4  ;;  %v7529_v12 = vrot.slane %v7527_v32, 5  ;;  %v7465_v24 = vld [vmem:[#allocation2 + $0x24] sm:$0xf] }
 0x2af   : > { %12851 = vmatprep.subr.bf16.mxu1 %v13258_v20  ;;  %v7514_v6 = vor.u32 %v7513_v42, %v7510_v9  ;;  %v8303_v62 = vrot.slane %v16963_v17, 5  ;;  %v7532_v11 = vshrl.u32 %v7462_v0, 16  ;;  %v7535_v23 = vshll.u32 %v7462_v0, 16  ;;  %v16987_v32 = vld [vmem:[#allocation2 + $0x40] sm:$0xf] }
 0x2b0   : > { %v16983_v44 = vsel %vm13750_vm7, %v11698_v19, %v8300_v57  ;;  %v8302_v8 = vrot.slane %v8300_v57, 4  ;;  %v7524_v9 = vor.u32 %v7523_v1, %v7519_v48  ;;  %v7541_v38 = vshll.u32 %v16866_v43, 16  ;;  %v13265_v19 = vld [vmem:[%s18668_s3 + $0x100] sm:$0xff]  }
 0x2b1   : > { %v7515_v15 = vrot.slane %v7514_v6, 4  ;;  %v7534_v42 = vrot.slane %v7532_v11, 4  ;;  %v7545_v53 = vshrl.u32 %v16866_v43, 16  ;;  %v7537_v6 = vrot.slane %v7535_v23, 5 }
 0x2b2   : > { %12830 = vmatmul.mubr.bf16.gmra.mxu0 %v13253_v29  ;;  %12852 = vmatpush3.bf16.msra.mxu1 %v13258_v20  ;;  %v16996_v20 = vsel %vm13750_vm7, %v8302_v8, %v8303_v62  ;;  %v7551_v57 = vshll.u32 %v16874_v16, 16  ;;  %v16999_v29 = vld [vmem:[#allocation2 + $0x44] sm:$0x1]  ;;  %v7525_v43 = vrot.slane %v7524_v9, 4  ;;  %v7543_v11 = vrot.slane %v7541_v38, 5 }
 0x2b3   : > { %12833 = vmatprep.mubr.bf16.mxu0 %v13255_v51  ;;  %12853 = vmatprep.subr.bf16.mxu1 %v13262_v13  ;;  %v7520_v0 = vsel %vm13464_vm4, %v7515_v15, %v7519_v48  ;;  %v11730_v1 = vcombine.low %v16983_v44, %v16996_v20  ;;  %v7547_v51 = vrot.slane %v7545_v53, 4  ;;  %v7538_v15 = vor.u32 %v7537_v6, %v7534_v42  ;;  %v8218_v38 = vld [vmem:[#allocation2 + $0x48] sm:$0xe]  ;;  %v13259_v6 = vld [vmem:[#allocation2 + $0xb4] sm:$0xff]  }
 0x2b4   : > { %v7553_v48 = vrot.slane %v7551_v57, 5  ;;  %v11699_v33 = vrot.slane %v8217_v41, 9  ;;  %v8307_v8 = vrot.slane %v16987_v32, 5  ;;  %v7530_v16 = vsel %vm13464_vm4, %v7525_v43, %v7529_v12  ;;  %v13257_v12 = vld [vmem:[#allocation2 + $0xa8] sm:$0xff]  }
 0x2b5   : > { %12774 = vmatmul.mubr.bf16.gmra.mxu1 %v11598_v46  ;;  %v7548_v23 = vor.u32 %v7547_v51, %v7543_v11  ;;  %v8310_v62 = vrot.slane %v16999_v29, 5  ;;  %v7556_v9 = vshrl.u32 %v7465_v24, 16  ;;  %v17013_v30 = vcombine.low %v7520_v0, %v7530_v16 }
 0x2b6   : > { %12777 = vmatprep.mubr.bf16.mxu1 %v11599_v45  ;;  %12854 = vmatpush3.bf16.msra.mxu1 %v13262_v13  ;;  %v7539_v46 = vrot.slane %v7538_v15, 4  ;;  %v17022_v37 = vsel %vm13750_vm7, %v11699_v33, %v8307_v8  ;;  %v8309_v7 = vrot.slane %v8307_v8, 4  ;;  %v17024_v45 = vld [vmem:[#allocation2 + $0x4c] sm:$0xf]  ;;  %v7468_v13 = vld [vmem:[#allocation2 + $0x30] sm:$0xf] }
 0x2b7   : > { %12855 = vmatprep.subr.bf16.mxu1 %v13265_v19  ;;  %v7549_v41 = vrot.slane %v7548_v23, 4  ;;  %v7558_v42 = vrot.slane %v7556_v9, 4  ;;  %v7559_v53 = vshll.u32 %v7465_v24, 16  ;;  %v7565_v0 = vshll.u32 %v16913_v3, 16  ;;  %v17035_v15 = vld [vmem:[#allocation2 + $0x50] sm:$0x1] }
 0x2b8   : > { %v7544_v57 = vsel %vm13464_vm4, %v7539_v46, %v7543_v11  ;;  %v17031_v43 = vsel %vm13750_vm7, %v8309_v7, %v8310_v62  ;;  %v7569_v33 = vshrl.u32 %v16913_v3, 16  ;;  %v7575_v51 = vshll.u32 %v16922_v34, 16 }
 0x2b9   : > { %v7554_v24 = vsel %vm13464_vm4, %v7549_v41, %v7553_v48  ;;  %v11731_v8 = vcombine.low %v17022_v37, %v17031_v43  ;;  %v7561_v16 = vrot.slane %v7559_v53, 5  ;;  %v7567_v11 = vrot.slane %v7565_v0, 5  ;;  %v8219_v0 = vld [vmem:[#allocation2 + $0x54] sm:$0xe]  ;;  %v13275_v37 = vld [vmem:[%s18668_s3 + $0x1d8] sm:$0xff]  }
 0x2ba   : > { %12834 = vmatmul.mubr.bf16.gmra.mxu0 %v13257_v12  ;;  %12856 = vmatpush3.bf16.msra.mxu1 %v13265_v19  ;;  %v17042_v23 = vcombine.low %v7544_v57, %v7554_v24  ;;  %v7571_v3 = vrot.slane %v7569_v33, 4  ;;  %v7577_v62 = vrot.slane %v7575_v51, 5  ;;  %v11700_v34 = vrot.slane %v8218_v38, 9  ;;  %v17060_v51 = vld [vmem:[#allocation2 + $0x5c] sm:$0x1] }
 0x2bb   : > { %12837 = vmatprep.mubr.bf16.mxu0 %v13259_v6  ;;  %12937 = vmatprep.subr.bf16.mxu1 %v17018_v31  ;;  %v7562_v9 = vor.u32 %v7561_v16, %v7558_v42  ;;  %v8314_v46 = vrot.slane %v17024_v45, 5  ;;  %v8317_v19 = vrot.slane %v17035_v15, 5  ;;  %v7580_v7 = vshrl.u32 %v7468_v13, 16  ;;  %v7471_v16 = vld [vmem:[#allocation2 + $0x3c] sm:$0xf] }
 0x2bc   : > { %v7572_v48 = vor.u32 %v7571_v3, %v7567_v11  ;;  %v7583_v12 = vshll.u32 %v7468_v13, 16  ;;  %v7589_v41 = vshll.u32 %v16955_v2, 16  ;;  %v7593_v53 = vshrl.u32 %v16955_v2, 16  ;;  %v13261_v2 = vld [vmem:[#allocation2 + $0xc0] sm:$0xff]  }
 0x2bd   : > { %12778 = vmatmul.mubr.bf16.gmra.mxu1 %v11600_v14  ;;  %v7563_v38 = vrot.slane %v7562_v9, 4  ;;  %v17056_v42 = vsel %vm13750_vm7, %v11700_v34, %v8314_v46  ;;  %v8316_v6 = vrot.slane %v8314_v46, 4  ;;  %v7582_v57 = vrot.slane %v7580_v7, 4 }
 0x2be   : > { %12781 = vmatprep.mubr.bf16.mxu1 %v11601_v58  ;;  %v7573_v5 = vrot.slane %v7572_v48, 4  ;;  %v7585_v14 = vrot.slane %v7583_v12, 5  ;;  %v7591_v13 = vrot.slane %v7589_v41, 5  ;;  %v7595_v33 = vrot.slane %v7593_v53, 4  ;;  %v7474_v53 = vld [vmem:[#allocation2 + $0x48] sm:$0xf] }
 0x2bf   : > { %v7568_v4 = vsel %vm13464_vm4, %v7563_v38, %v7567_v11  ;;  %v17066_v26 = vsel %vm13750_vm7, %v8316_v6, %v8317_v19  ;;  %v7599_v58 = vshll.u32 %v16963_v17, 16  ;;  %v11701_v24 = vrot.slane %v8219_v0, 9 }
 0x2c0   : > { %v7578_v3 = vsel %vm13464_vm4, %v7573_v5, %v7577_v62  ;;  %v11732_v34 = vcombine.low %v17056_v42, %v17066_v26  ;;  %v7586_v9 = vor.u32 %v7585_v14, %v7582_v57  ;;  %v7596_v46 = vor.u32 %v7595_v33, %v7591_v13  ;;  %v8220_v5 = vld [vmem:[#allocation2 + $0x60] sm:$0xe]  ;;  %v17093_v33 = vld [vmem:[#allocation2 + $0x64] sm:$0xf]  ;;  %v17241_v26 = vld [vmem:[#allocation2 + $0x94] sm:$0xf] }
 0x2c1   : > { %v17073_v7 = vcombine.low %v7568_v4, %v7578_v3  ;;  %v7601_v11 = vrot.slane %v7599_v58, 5  ;;  %v8321_v48 = vrot.slane %v17058_v54, 5  ;;  %v8324_v19 = vrot.slane %v17060_v51, 5 }
 0x2c2   : > { %12838 = vmatmul.mubr.bf16.gmra.mxu0 %v13261_v2  ;;  %v7587_v17 = vrot.slane %v7586_v9, 4  ;;  %v7597_v12 = vrot.slane %v7596_v46, 4  ;;  %v7604_v62 = vshrl.u32 %v7471_v16, 16  ;;  %v7607_v41 = vshll.u32 %v7471_v16, 16  ;;  %v17095_v2 = vld [vmem:[#allocation2 + $0x68] sm:$0x1] }
 0x2c3   : > { %12905 = vmatprep.mubr.bf16.mxu0 %v11727_v25  ;;  %v17082_v0 = vsel %vm13750_vm7, %v11701_v24, %v8321_v48  ;;  %v8323_v38 = vrot.slane %v8321_v48, 4  ;;  %v7613_v6 = vshll.u32 %v16987_v32, 16  ;;  %v7617_v57 = vshrl.u32 %v16987_v32, 16 }
 0x2c4   : > { %v7592_v63 = vsel %vm13464_vm4, %v7587_v17, %v7591_v13  ;;  %v7602_v55 = vsel %vm13464_vm4, %v7597_v12, %v7601_v11  ;;  %v7606_v25 = vrot.slane %v7604_v62, 4  ;;  %v7609_v14 = vrot.slane %v7607_v41, 5  ;;  %v8221_v12 = vld [vmem:[#allocation2 + $0x6c] sm:$0xe]  ;;  %v7477_v62 = vld [vmem:[#allocation2 + $0x54] sm:$0xf] }
 0x2c5   : > { %12782 = vmatmul.mubr.bf16.gmra.mxu1 %v11602_v22  ;;  %v18957_v32 = vcombine.low %v16855_v56, %v16870_v21  ;;  %v17100_v4 = vcombine.low %v7592_v63, %v7602_v55  ;;  %v17104_v61 = vsel %vm13750_vm7, %v8323_v38, %v8324_v19  ;;  %v7615_v50 = vrot.slane %v7613_v6, 5  ;;  %v13269_v56 = vld [vmem:[%s18668_s3 + $0x1f0] sm:$0xff]  }
 0x2c6   : > { %v7619_v22 = vrot.slane %v7617_v57, 4  ;;  %v11733_v13 = vcombine.low %v17082_v0, %v17104_v61  ;;  %v7610_v58 = vor.u32 %v7609_v14, %v7606_v25  ;;  %v7623_v24 = vshll.u32 %v16999_v29, 16  ;;  %v17131_v25 = vld [vmem:[#allocation2 + $0x74] sm:$0x1]  ;;  %v7486_v0 = vld [vmem:[#allocation2 + $0x78] sm:$0xf] }
 0x2c7   : > { %12785 = vmatprep.mubr.bf16.mxu1 %v18957_v32  ;;  %v11702_v16 = vrot.slane %v8220_v5, 9  ;;  %v8328_v21 = vrot.slane %v17093_v33, 5  ;;  %v8331_v9 = vrot.slane %v17095_v2, 5  ;;  %v7628_v46 = vshrl.u32 %v7474_v53, 16  ;;  %v17122_v5 = vld [vmem:[#allocation2 + $0x70] sm:$0xf] }
 0x2c8   : > { %v7620_v3 = vor.u32 %v7619_v22, %v7615_v50  ;;  %v7611_v11 = vrot.slane %v7610_v58, 4  ;;  %v7625_v48 = vrot.slane %v7623_v24, 5  ;;  %v7631_v19 = vshll.u32 %v7474_v53, 16  ;;  %v13279_v61 = vld [vmem:[%s18668_s3 + $0x1c8] sm:$0xff]  }
 0x2c9   : > { %v7637_v17 = vshll.u32 %v17024_v45, 16  ;;  %v18958_v29 = vcombine.low %v16928_v49, %v16942_v10  ;;  %v17120_v38 = vsel %vm13750_vm7, %v11702_v16, %v8328_v21  ;;  %v8330_v6 = vrot.slane %v8328_v21, 4 }
 0x2ca   : > { %v7621_v41 = vrot.slane %v7620_v3, 4  ;;  %v7630_v57 = vrot.slane %v7628_v46, 4  ;;  %v18959_v53 = vcombine.low %v16953_v39, %v16970_v47  ;;  %v7616_v63 = vsel %vm13464_vm4, %v7611_v11, %v7615_v50  ;;  %v13271_v47 = vld [vmem:[%s18668_s3 + $0x1e8] sm:$0xff]  }
 0x2cb   : > { %12906 = vmatmul.mubr.bf16.vlgmr.msra.gmra.mxu0 %v18958_v29  ;;  %v7633_v49 = vrot.slane %v7631_v19, 5  ;;  %v7639_v10 = vrot.slane %v7637_v17, 5  ;;  %v7641_v55 = vshrl.u32 %v17024_v45, 16  ;;  %v17137_v32 = vsel %vm13750_vm7, %v8330_v6, %v8331_v9 }
 0x2cc   : > { %12909 = vmatprep.mubr.bf16.mxu0 %v18959_v53  ;;  %12986 = vmatpush3.bf16.msra.mxu0 %v16892_v28  ;;  %v7626_v14 = vsel %vm13464_vm4, %v7621_v41, %v7625_v48  ;;  %v7647_v39 = vshll.u32 %v17035_v15, 16  ;;  %v11703_v28 = vrot.slane %v8221_v12, 9  ;;  %v18960_v45 = vcombine.low %v16863_v36, %v16883_v52  ;;  %v8222_v48 = vld [vmem:[#allocation2 + $0x78] sm:$0xe]  ;;  %v17161_v12 = vld [vmem:[#allocation2 + $0x7c] sm:$0xf] }
 0x2cd   : > { %12987 = vmatprep.subr.bf16.mxu0 %v13269_v56  ;;  %v17146_v50 = vcombine.low %v7616_v63, %v7626_v14  ;;  %v11734_v22 = vcombine.low %v17120_v38, %v17137_v32  ;;  %v7634_v58 = vor.u32 %v7633_v49, %v7630_v57  ;;  %v7643_v24 = vrot.slane %v7641_v55, 4  ;;  %v17168_v57 = vld [vmem:[#allocation2 + $0x80] sm:$0x1] }
 0x2ce   : > { %12786 = vmatmul.mubr.bf16.gmra.mxu1 %v18960_v45  ;;  %v18961_v16 = vcombine.low %v16901_v40, %v16919_v35  ;;  %v7649_v15 = vrot.slane %v7647_v39, 5  ;;  %v8335_v3 = vrot.slane %v17122_v5, 5  ;;  %v8338_v21 = vrot.slane %v17131_v25, 5  ;;  %v7480_v55 = vld [vmem:[#allocation2 + $0x60] sm:$0xf] }
 0x2cf   : > { %v7652_v9 = vshrl.u32 %v7477_v62, 16  ;;  %v7635_v36 = vrot.slane %v7634_v58, 4  ;;  %v7644_v52 = vor.u32 %v7643_v24, %v7639_v10  ;;  %v7655_v46 = vshll.u32 %v7477_v62, 16  ;;  %v8223_v24 = vld [vmem:[#allocation2 + $0x84] sm:$0xe] }
 0x2d0   : > { %12789 = vmatprep.mubr.bf16.mxu1 %v18961_v16  ;;  %12988 = vmatpush3.bf16.msra.mxu0 %v13269_v56  ;;  %v7661_v11 = vshll.u32 %v17058_v54, 16  ;;  %v17158_v19 = vsel %vm13750_vm7, %v11703_v28, %v8335_v3  ;;  %v8337_v17 = vrot.slane %v8335_v3, 4  ;;  %v7665_v35 = vshrl.u32 %v17058_v54, 16  ;;  %v13273_v56 = vld [vmem:[%s18668_s3 + $0x1e0] sm:$0xff]  }
 0x2d1   : > { %v7654_v40 = vrot.slane %v7652_v9, 4  ;;  %12989 = vmatprep.subr.bf16.mxu0 %v13271_v47  ;;  %v7640_v62 = vsel %vm13464_vm4, %v7635_v36, %v7639_v10  ;;  %v7645_v29 = vrot.slane %v7644_v52, 4  ;;  %v7657_v41 = vrot.slane %v7655_v46, 5  ;;  %v7483_v9 = vld [vmem:[#allocation2 + $0x6c] sm:$0xf] }
 0x2d2   : > { %v7663_v6 = vrot.slane %v7661_v11, 5  ;;  %v17175_v54 = vsel %vm13750_vm7, %v8337_v17, %v8338_v21  ;;  %v7667_v53 = vrot.slane %v7665_v35, 4  ;;  %v7671_v63 = vshll.u32 %v17060_v51, 16  ;;  %v17209_v46 = vld [vmem:[#allocation2 + $0x88] sm:$0xf] }
 0x2d3   : > { %12910 = vmatmul.mubr.bf16.gmra.mxu0 %v11730_v1  ;;  %v11704_v49 = vrot.slane %v8222_v48, 9  ;;  %v7650_v10 = vsel %vm13464_vm4, %v7645_v29, %v7649_v15  ;;  %v11735_v44 = vcombine.low %v17158_v19, %v17175_v54  ;;  %v7658_v20 = vor.u32 %v7657_v41, %v7654_v40  ;;  %v13277_v40 = vld [vmem:[%s18668_s3 + $0x1d0] sm:$0xff]   ;;  %v17310_v19 = vld [vmem:[%s18671_s6] sm:$0x3] }
 0x2d4   : > { %12913 = vmatprep.mubr.bf16.mxu0 %v11731_v8  ;;  %12990 = vmatpush3.bf16.msra.mxu0 %v13271_v47  ;;  %v8342_v1 = vrot.slane %v17161_v12, 5  ;;  %v17186_v14 = vcombine.low %v7640_v62, %v7650_v10  ;;  %v7668_v39 = vor.u32 %v7667_v53, %v7663_v6  ;;  %v7673_v51 = vrot.slane %v7671_v63, 5 }
 0x2d5   : > { %v8345_v28 = vrot.slane %v17168_v57, 5  ;;  %12991 = vmatprep.subr.bf16.mxu0 %v13273_v56  ;;  %v18962_v43 = vcombine.low %v16934_v18, %v16949_v60  ;;  %v7659_v8 = vrot.slane %v7658_v20, 4  ;;  %v7676_v58 = vshrl.u32 %v7480_v55, 16 }
 0x2d6   : > { %v17197_v47 = vsel %vm13750_vm7, %v11704_v49, %v8342_v1  ;;  %v8344_v45 = vrot.slane %v8342_v1, 4  ;;  %v7669_v16 = vrot.slane %v7668_v39, 4  ;;  %v7679_v15 = vshll.u32 %v7480_v55, 16  ;;  %v13268_v49 = vld [vmem:[%s18668_s3 + $0x1b0] sm:$0xff]  }
 0x2d7   : > { %12790 = vmatmul.mubr.bf16.gmra.mxu1 %v18962_v43  ;;  %v7685_v3 = vshll.u32 %v17093_v33, 16  ;;  %v7689_v21 = vshrl.u32 %v17093_v33, 16  ;;  %v7664_v18 = vsel %vm13464_vm4, %v7659_v8, %v7663_v6  ;;  %v7678_v36 = vrot.slane %v7676_v58, 4 }
 0x2d8   : > { %12857 = vmatprep.mubr.bf16.mxu1 %v17013_v30  ;;  %v17206_v60 = vsel %vm13750_vm7, %v8344_v45, %v8345_v28  ;;  %v7695_v52 = vshll.u32 %v17095_v2, 16  ;;  %v17211_v30 = vld [vmem:[#allocation2 + $0x8c] sm:$0x1]  ;;  %12992 = vmatpush3.bf16.msra.mxu0 %v13273_v56  ;;  %v7674_v11 = vsel %vm13464_vm4, %v7669_v16, %v7673_v51  ;;  %v7681_v48 = vrot.slane %v7679_v15, 5  ;;  %v8224_v56 = vld [vmem:[#allocation2 + $0x90] sm:$0xe] }
 0x2d9   : > { %v11736_v33 = vcombine.low %v17197_v47, %v17206_v60  ;;  %v7687_v17 = vrot.slane %v7685_v3, 5  ;;  %12993 = vmatprep.subr.bf16.mxu0 %v13275_v37  ;;  %v17221_v2 = vcombine.low %v7664_v18, %v7674_v11  ;;  %v7691_v35 = vrot.slane %v7689_v21, 4  ;;  %v8225_v18 = vld [vmem:[#allocation2 + $0x9c] sm:$0xe] }
 0x2da   : > { %v7697_v62 = vrot.slane %v7695_v52, 5  ;;  %v11705_v29 = vrot.slane %v8223_v24, 9  ;;  %v7682_v41 = vor.u32 %v7681_v48, %v7678_v36  ;;  %v8349_v6 = vrot.slane %v17209_v46, 5 }
 0x2db   : > { %12914 = vmatmul.mubr.bf16.gmra.mxu0 %v11732_v34  ;;  %v8352_v53 = vrot.slane %v17211_v30, 5  ;;  %v7700_v63 = vshrl.u32 %v7483_v9, 16  ;;  %v7692_v55 = vor.u32 %v7691_v35, %v7687_v17  ;;  %v7703_v10 = vshll.u32 %v7483_v9, 16  ;;  %v17243_v34 = vld [vmem:[#allocation2 + $0x98] sm:$0x1] }
 0x2dc   : > { %12917 = vmatprep.mubr.bf16.mxu0 %v11733_v13  ;;  %v7709_v20 = vshll.u32 %v17122_v5, 16  ;;  %v7713_v42 = vshrl.u32 %v17122_v5, 16  ;;  %12994 = vmatpush3.bf16.msra.mxu0 %v13275_v37  ;;  %v7683_v1 = vrot.slane %v7682_v41, 4  ;;  %v17247_v39 = vsel %vm13750_vm7, %v11705_v29, %v8349_v6  ;;  %v17275_v35 = vld [vmem:[#allocation2 + $0xa4] sm:$0x1] }
 0x2dd   : > { %v8351_v51 = vrot.slane %v8349_v6, 4  ;;  %v7702_v28 = vrot.slane %v7700_v63, 4  ;;  %12995 = vmatprep.subr.bf16.mxu0 %v13277_v40  ;;  %v7693_v13 = vrot.slane %v7692_v55, 4  ;;  %v7705_v5 = vrot.slane %v7703_v10, 5  ;;  %v13280_v29 = vld [vmem:[%s18668_s3 + $0x1c0] sm:$0xff]  }
 0x2de   : > { %v7711_v43 = vrot.slane %v7709_v20, 5  ;;  %v7715_v8 = vrot.slane %v7713_v42, 4  ;;  %v7688_v37 = vsel %vm13464_vm4, %v7683_v1, %v7687_v17  ;;  %v7719_v58 = vshll.u32 %v17131_v25, 16  ;;  %v17273_v17 = vld [vmem:[#allocation2 + $0xa0] sm:$0xf] }
 0x2df   : > { %12858 = vmatmul.mubr.bf16.vlgmr.msra.gmra.mxu1 %v17042_v23  ;;  %v17259_v45 = vsel %vm13750_vm7, %v8351_v51, %v8352_v53  ;;  %v11706_v24 = vrot.slane %v8224_v56, 9  ;;  %v13270_v23 = vld [vmem:[%s18668_s3 + $0x1a8] sm:$0xff]   ;;  %v7706_v16 = vor.u32 %v7705_v5, %v7702_v28  ;;  %v8356_v9 = vrot.slane %v17241_v26, 5 }
 0x2e0   : > { %12938 = vmatpush3.bf16.msra.mxu1 %v17018_v31  ;;  %12861 = vmatprep.mubr.bf16.mxu1 %v17073_v7  ;;  %v7698_v31 = vsel %vm13464_vm4, %v7693_v13, %v7697_v62  ;;  %v11737_v7 = vcombine.low %v17247_v39, %v17259_v45  ;;  %v7716_v15 = vor.u32 %v7715_v8, %v7711_v43  ;;  %v7721_v21 = vrot.slane %v7719_v58, 5  ;;  %v7489_v62 = vld [vmem:[#allocation2 + $0x84] sm:$0xf]  ;;  %v8226_v51 = vld [vmem:[#allocation2 + $0xa8] sm:$0xe] }
 0x2e1   : > { %12939 = vmatprep.subr.bf16.mxu1 %v13268_v49  ;;  %v17269_v3 = vcombine.low %v7688_v37, %v7698_v31  ;;  %v8359_v25 = vrot.slane %v17243_v34, 5  ;;  %12996 = vmatpush3.bf16.msra.mxu0 %v13277_v40  ;;  %v7707_v36 = vrot.slane %v7706_v16, 4  ;;  %v7724_v11 = vshrl.u32 %v7486_v0, 16  ;;  %v13272_v40 = vld [vmem:[%s18668_s3 + $0x1a0] sm:$0xff]   ;;  %v17323_v37 = vld [vmem:[#allocation2 + $0xac] sm:$0xf] }
 0x2e2   : > { %v7717_v52 = vrot.slane %v7716_v15, 4  ;;  %v7727_v48 = vshll.u32 %v7486_v0, 16  ;;  %12997 = vmatprep.subr.bf16.mxu0 %v13279_v61  ;;  %v17288_v56 = vsel %vm13750_vm7, %v11706_v24, %v8356_v9  ;;  %v8358_v41 = vrot.slane %v8356_v9, 4 }
 0x2e3   : > { %12918 = vmatmul.mubr.bf16.gmra.mxu0 %v11734_v22  ;;  %v7733_v6 = vshll.u32 %v17161_v12, 16  ;;  %v7737_v53 = vshrl.u32 %v17161_v12, 16  ;;  %v7712_v38 = vsel %vm13464_vm4, %v7707_v36, %v7711_v43  ;;  %v7726_v22 = vrot.slane %v7724_v11, 4 }
 0x2e4   : > { %12940 = vmatpush3.bf16.msra.mxu1 %v13268_v49  ;;  %12921 = vmatprep.mubr.bf16.mxu0 %v11735_v44  ;;  %v7722_v32 = vsel %vm13464_vm4, %v7717_v52, %v7721_v21  ;;  %v7729_v63 = vrot.slane %v7727_v48, 5  ;;  %v17299_v49 = vpop.f32.mrf.mxu0  ;;  %v17305_v12 = vsel %vm13750_vm7, %v8358_v41, %v8359_v25  ;;  %v7743_v42 = vshll.u32 %v17168_v57, 16 }
 0x2e5   : > { %12941 = vmatprep.subr.bf16.mxu1 %v13270_v23  ;;  %v17301_v55 = vcombine.low %v7712_v38, %v7722_v32  ;;  %v7735_v10 = vrot.slane %v7733_v6, 5  ;;  %v7739_v20 = vrot.slane %v7737_v53, 4  ;;  %12998 = vmatpush3.bf16.msra.mxu0 %v13279_v61  ;;  %v11738_v54 = vcombine.low %v17288_v56, %v17305_v12  ;;  %v7498_v56 = vld [vmem:[#allocation2 + $0xa8] sm:$0xf]  ;;  %v13281_v12 = vld [vmem:[%s18668_s3 + $0x180] sm:$0xff]  }
 0x2e6   : > { %v7730_v44 = vor.u32 %v7729_v63, %v7726_v22  ;;  %v11707_v1 = vrot.slane %v8225_v18, 9  ;;  %12999 = vmatprep.subr.bf16.mxu0 %v13280_v29  ;;  %v8363_v0 = vrot.slane %v17273_v17, 5  ;;  %v8366_v61 = vrot.slane %v17275_v35, 5  ;;  %v17325_v58 = vpop.f32.mrf.mxu0  ;;  %v17334_v18 = vld [vmem:[#allocation2 + $0xb0] sm:$0x1] }
 0x2e7   : > { %12862 = vmatmul.mubr.bf16.gmra.mxu1 %v17100_v4  ;;  %v7740_v28 = vor.u32 %v7739_v20, %v7735_v10  ;;  %v7748_v13 = vshrl.u32 %v7489_v62, 16  ;;  %v13274_v4 = vld [vmem:[%s18668_s3 + $0x198] sm:$0xff]   ;;  %v7745_v43 = vrot.slane %v7743_v42, 5  ;;  %v7751_v57 = vshll.u32 %v7489_v62, 16  ;;  %v13276_v62 = vld [vmem:[%s18668_s3 + $0x190] sm:$0xff]  }
 0x2e8   : > { %12865 = vmatprep.mubr.bf16.mxu1 %v17146_v50  ;;  %12942 = vmatpush3.bf16.msra.mxu1 %v13270_v23  ;;  %v7731_v5 = vrot.slane %v7730_v44, 4  ;;  %v7757_v8 = vshll.u32 %v17209_v46, 16  ;;  %v7492_v50 = vld [vmem:[#allocation2 + $0x90] sm:$0xf]  ;;  %v17329_v23 = vsel %vm13750_vm7, %v11707_v1, %v8363_v0  ;;  %v8365_v31 = vrot.slane %v8363_v0, 4 }
 0x2e9   : > { %12943 = vmatprep.subr.bf16.mxu1 %v13272_v40  ;;  %v7741_v24 = vrot.slane %v7740_v28, 4  ;;  %v7750_v16 = vrot.slane %v7748_v13, 4  ;;  %13000 = vmatpush3.bf16.msra.mxu0 %v13280_v29  ;;  %v7753_v21 = vrot.slane %v7751_v57, 5  ;;  %v7761_v25 = vshrl.u32 %v17209_v46, 16  ;;  %v8227_v29 = vld [vmem:[#allocation2 + $0xb4] sm:$0xe] }
 0x2ea   : > { %v7736_v15 = vsel %vm13464_vm4, %v7731_v5, %v7735_v10  ;;  %v7759_v9 = vrot.slane %v7757_v8, 5  ;;  %13127 = vmatprep.subr.msk.bf16.mxu0 %vm862_vm0, %v17310_v19  ;;  %v8367_v52 = vsel %vm13750_vm7, %v8365_v31, %v8366_v61  ;;  %v7767_v11 = vshll.u32 %v17211_v30, 16  ;;  %v7495_v44 = vld [vmem:[#allocation2 + $0x9c] sm:$0xf] }
 0x2eb   : > { %12922 = vmatmul.mubr.bf16.gmra.mxu0 %v11736_v33  ;;  %v7746_v36 = vsel %vm13464_vm4, %v7741_v24, %v7745_v43  ;;  %v11708_v48 = vrot.slane %v8226_v51, 9  ;;  %v11739_v47 = vcombine.low %v17329_v23, %v8367_v52  ;;  %v7754_v60 = vor.u32 %v7753_v21, %v7750_v16  ;;  %v17371_v28 = vld [vmem:[#allocation2 + $0xbc] sm:$0x1] }
 0x2ec   : > { %12944 = vmatpush3.bf16.msra.mxu1 %v13272_v40  ;;  %12925 = vmatprep.mubr.bf16.mxu0 %v11737_v7  ;;  %v17349_v46 = vcombine.low %v7736_v15, %v7746_v36  ;;  %v7763_v33 = vrot.slane %v7761_v25, 4  ;;  %v17355_v40 = vpop.f32.mrf.mxu0  ;;  %v7769_v30 = vrot.slane %v7767_v11, 5  ;;  %v8370_v41 = vrot.slane %v17323_v37, 5  ;;  %v17359_v7 = vld [vmem:[#allocation2 + $0xb8] sm:$0xf] }
 0x2ed   : > { %12945 = vmatprep.subr.bf16.mxu1 %v13274_v4  ;;  %v8373_v39 = vrot.slane %v17334_v18, 5  ;;  %v7772_v45 = vshrl.u32 %v7492_v50, 16  ;;  %v7755_v6 = vrot.slane %v7754_v60, 4  ;;  %v7775_v38 = vshll.u32 %v7492_v50, 16  ;;  %v17393_v25 = vld [vmem:[#allocation2 + $0xc4] sm:$0xf] }
 0x2ee   : > { %v7764_v53 = vor.u32 %v7763_v33, %v7759_v9  ;;  %v7781_v32 = vshll.u32 %v17241_v26, 16  ;;  %v17366_v22 = vsel %vm13750_vm7, %v11708_v48, %v8370_v41  ;;  %v8372_v63 = vrot.slane %v8370_v41, 4  ;;  %v17376_v0 = vpop.f32.mrf.mxu0  ;;  %v17395_v36 = vld [vmem:[#allocation2 + $0xc8] sm:$0x1] }
 0x2ef   : > { %12866 = vmatmul.mubr.bf16.gmra.mxu1 %v17186_v14  ;;  %v7774_v10 = vrot.slane %v7772_v45, 4  ;;  %v7785_v20 = vshrl.u32 %v17241_v26, 16  ;;  %v7760_v14 = vsel %vm13464_vm4, %v7755_v6, %v7759_v9  ;;  %v7777_v1 = vrot.slane %v7775_v38, 5  ;;  %v17418_v38 = vld [vmem:[%s18668_s3 + $0x238] sm:$0xff]  }
 0x2f0   : > { %12869 = vmatprep.mubr.bf16.mxu1 %v17221_v2  ;;  %12946 = vmatpush3.bf16.msra.mxu1 %v13274_v4  ;;  %v7765_v42 = vrot.slane %v7764_v53, 4  ;;  %v7783_v51 = vrot.slane %v7781_v32, 5  ;;  %v13278_v2 = vld [vmem:[%s18668_s3 + $0x188] sm:$0xff]   ;;  %v8374_v61 = vsel %vm13750_vm7, %v8372_v63, %v8373_v39  ;;  %v7791_v13 = vshll.u32 %v17243_v34, 16  ;;  %v8228_v34 = vld [vmem:[#allocation2 + $0xc0] sm:$0xe] }
 0x2f1   : > { %12947 = vmatprep.subr.bf16.mxu1 %v13276_v62  ;;  %v7787_v26 = vrot.slane %v7785_v20, 4  ;;  %v11709_v4 = vrot.slane %v8227_v29, 9  ;;  %v11740_v43 = vcombine.low %v17366_v22, %v8374_v61  ;;  %v7778_v57 = vor.u32 %v7777_v1, %v7774_v10 }
 0x2f2   : > { %v7770_v5 = vsel %vm13464_vm4, %v7765_v42, %v7769_v30  ;;  %v8377_v8 = vrot.slane %v17359_v7, 5  ;;  %v7793_v23 = vrot.slane %v7791_v13, 5  ;;  %v8380_v31 = vrot.slane %v17371_v28, 5  ;;  %v9098_v42 = vld [vmem:[#allocation2 + $0x18] sm:$0xf] }
 0x2f3   : > { %12926 = vmatmul.mubr.bf16.gmra.mxu0 %v11738_v54  ;;  %v17388_v50 = vcombine.low %v7760_v14, %v7770_v5  ;;  %v7788_v24 = vor.u32 %v7787_v26, %v7783_v51  ;;  %v7779_v16 = vrot.slane %v7778_v57, 4  ;;  %v7796_v9 = vshrl.u32 %v7495_v44, 16  ;;  %v17400_v54 = vpop.f32.mrf.mxu0 }
 0x2f4   : > { %12948 = vmatpush3.bf16.msra.mxu1 %v13276_v62  ;;  %12929 = vmatprep.mubr.bf16.mxu0 %v11739_v47  ;;  %v8378_v15 = vsel %vm13750_vm7, %v11709_v4, %v8377_v8  ;;  %v8379_v21 = vrot.slane %v8377_v8, 4  ;;  %v7799_v11 = vshll.u32 %v7495_v44, 16  ;;  %v7805_v48 = vshll.u32 %v17273_v17, 16 }
 0x2f5   : > { %12949 = vmatprep.subr.bf16.mxu1 %v13278_v2  ;;  %v7789_v52 = vrot.slane %v7788_v24, 4  ;;  %v7809_v47 = vshrl.u32 %v17273_v17, 16  ;;  %v7784_v60 = vsel %vm13464_vm4, %v7779_v16, %v7783_v51  ;;  %v7798_v62 = vrot.slane %v7796_v9, 4  ;;  %v9099_v24 = vld [vmem:[#allocation2 + $0x1c] sm:$0xf] }
 0x2f6   : > { %v8381_v33 = vsel %vm13750_vm7, %v8379_v21, %v8380_v31  ;;  %v7815_v29 = vshll.u32 %v17275_v35, 16  ;;  %v7801_v39 = vrot.slane %v7799_v11, 5  ;;  %v7807_v45 = vrot.slane %v7805_v48, 5  ;;  %v17420_v35 = vpop.f32.mrf.mxu0  ;;  %v9100_v21 = vld [vmem:[#allocation2 + $0x20] sm:$0x1] }
 0x2f7   : > { %12870 = vmatmul.mubr.bf16.gmra.mxu1 %v17269_v3  ;;  %v7794_v30 = vsel %vm13464_vm4, %v7789_v52, %v7793_v23  ;;  %v11741_v41 = vcombine.low %v8378_v15, %v8381_v33  ;;  %v7811_v3 = vrot.slane %v7809_v47, 4  ;;  %v11710_v53 = vrot.slane %v8228_v34, 9  ;;  %v7501_v9 = vld [vmem:[#allocation2 + $0xb4] sm:$0xf]  ;;  %v17440_v33 = vpop.f32.mrf.mxu1 }
 0x2f8   : > { %12873 = vmatprep.mubr.bf16.mxu1 %v17301_v55  ;;  %12950 = vmatpush3.bf16.msra.mxu1 %v13278_v2  ;;  %v17413_v17 = vcombine.low %v7784_v60, %v7794_v30  ;;  %v7817_v6 = vrot.slane %v7815_v29, 5  ;;  %v7802_v55 = vor.u32 %v7801_v39, %v7798_v62  ;;  %v8384_v32 = vrot.slane %v17393_v25, 5  ;;  %v17429_v57 = vpop.f32.mrf.mxu0 }
 0x2f9   : > { %12951 = vmatprep.subr.bf16.mxu1 %v13281_v12  ;;  %v8387_v22 = vrot.slane %v17395_v36, 5  ;;  %v7820_v63 = vshrl.u32 %v7498_v56, 16  ;;  %v7812_v10 = vor.u32 %v7811_v3, %v7807_v45  ;;  %v7823_v20 = vshll.u32 %v7498_v56, 16 }
 0x2fa   : > { %v7829_v44 = vshll.u32 %v17323_v37, 16  ;;  %v7833_v14 = vshrl.u32 %v17323_v37, 16  ;;  %v7803_v1 = vrot.slane %v7802_v55, 4  ;;  %v8385_v51 = vsel %vm13750_vm7, %v11710_v53, %v8384_v32 }
 0x2fb   : > { %12930 = vmatmul.mubr.bf16.gmra.mxu0 %v11740_v43  ;;  %v8386_v2 = vrot.slane %v8384_v32, 4  ;;  %v7822_v61 = vrot.slane %v7820_v63, 4  ;;  %v7813_v26 = vrot.slane %v7812_v10, 4  ;;  %v7825_v13 = vrot.slane %v7823_v20, 5 }
 0x2fc   : > { %12952 = vmatpush3.bf16.msra.mxu1 %v13281_v12  ;;  %12933 = vmatprep.mubr.bf16.mxu0 %v11741_v41  ;;  %v7831_v4 = vrot.slane %v7829_v44, 5  ;;  %v7835_v5 = vrot.slane %v7833_v14, 4  ;;  %v7808_v37 = vsel %vm13464_vm4, %v7803_v1, %v7807_v45  ;;  %v7839_v8 = vshll.u32 %v17334_v18, 16  ;;  %v17450_v14 = vpop.f32.mrf.mxu1 }
 0x2fd   : > { %13033 = vmatprep.subr.bf16.mxu1 %v17418_v38  ;;  %v8388_v43 = vsel %vm13750_vm7, %v8386_v2, %v8387_v22  ;;  %v9147_v23 = vshrl.u32 %v9098_v42, 16  ;;  %v7818_v31 = vsel %vm13464_vm4, %v7813_v26, %v7817_v6  ;;  %v7826_v16 = vor.u32 %v7825_v13, %v7822_v61  ;;  %v9101_v6 = vld [vmem:[#allocation2 + $0x24] sm:$0xf]  ;;  %v17455_v2 = vld [vmem:[#allocation2 + $0x28] sm:$0xf] }
 0x2fe   : > { %v11742_v34 = vcombine.low %v8385_v51, %v8388_v43  ;;  %v7836_v15 = vor.u32 %v7835_v5, %v7831_v4  ;;  %v11683_v56 = vcombine.low %v7808_v37, %v7818_v31  ;;  %v7841_v12 = vrot.slane %v7839_v8, 5  ;;  %v17458_v43 = vld [vmem:[#allocation2 + $0x2c] sm:$0x1] }
 0x2ff   : > { %12874 = vmatmul.mubr.bf16.gmra.mxu1 %v17349_v46  ;;  %v9149_v52 = vrot.slane %v9147_v23, 4  ;;  %v9150_v11 = vshll.u32 %v9098_v42, 16  ;;  %v7827_v48 = vrot.slane %v7826_v16, 4  ;;  %v9156_v47 = vshll.u32 %v9099_v24, 16  ;;  %v17442_v46 = vpop.f32.mrf.mxu0 }
 0x300   : > { %12877 = vmatprep.mubr.bf16.mxu1 %v17388_v50  ;;  %v7837_v18 = vrot.slane %v7836_v15, 4  ;;  %v9160_v60 = vshrl.u32 %v9099_v24, 16  ;;  %18963 = vst [vmem:[#allocation12_spill] sm:$0xff] %v17442_v46  ;;  %v9166_v29 = vshll.u32 %v9100_v21, 16  ;;  %v7844_v30 = vshrl.u32 %v7501_v9, 16  ;;  %v17465_v15 = vpop.f32.mrf.mxu1 }
 0x301   : > { %v9152_v62 = vrot.slane %v9150_v11, 5  ;;  %v7847_v41 = vshll.u32 %v7501_v9, 16  ;;  %v7832_v39 = vsel %vm13464_vm4, %v7827_v48, %v7831_v4  ;;  %v9158_v45 = vrot.slane %v9156_v47, 5  ;;  %v17452_v42 = vpop.f32.mrf.mxu0 }
 0x302   : > { %v7842_v50 = vsel %vm13464_vm4, %v7837_v18, %v7841_v12  ;;  %v9162_v3 = vrot.slane %v9160_v60, 4  ;;  %v9168_v32 = vrot.slane %v9166_v29, 5  ;;  %v7846_v22 = vrot.slane %v7844_v30, 4 }
 0x303   : > { %12934 = vmatmul.mubr.bf16.gmra.mxu0 %v11742_v34  ;;  %v11684_v53 = vcombine.low %v7832_v39, %v7842_v50  ;;  %v9153_v55 = vor.u32 %v9152_v62, %v9149_v52  ;;  %v7849_v10 = vrot.slane %v7847_v41, 5  ;;  %v7853_v20 = vshll.u32 %v17359_v7, 16  ;;  %v17467_v21 = vpop.f32.mrf.mxu0  ;;  %v9104_v41 = vld [vmem:[#allocation2 + $0x30] sm:$0xf] }
 0x304   : > { %v9163_v63 = vor.u32 %v9162_v3, %v9158_v45  ;;  %v7857_v44 = vshrl.u32 %v17359_v7, 16  ;;  %v7863_v51 = vshll.u32 %v17371_v28, 16  ;;  %v9171_v61 = vshrl.u32 %v9101_v6, 16  ;;  %v7504_v28 = vld [vmem:[#allocation2 + $0xc0] sm:$0xf] }
 0x305   : > { %v9154_v1 = vrot.slane %v9153_v55, 4  ;;  %v9174_v26 = vshll.u32 %v9101_v6, 16  ;;  %v7850_v4 = vor.u32 %v7849_v10, %v7846_v22  ;;  %v7855_v5 = vrot.slane %v7853_v20, 5  ;;  %v17477_v6 = vld [vmem:[#allocation2 + $0x34] sm:$0xf]  ;;  %v17479_v55 = vpop.f32.mrf.mxu1 }
 0x306   : > { %v9164_v13 = vrot.slane %v9163_v63, 4  ;;  %v7859_v37 = vrot.slane %v7857_v44, 4  ;;  %v7865_v8 = vrot.slane %v7863_v51, 5  ;;  %v9173_v24 = vrot.slane %v9171_v61, 4 }
 0x307   : > { %12878 = vmatmul.mubr.bf16.gmra.mxu1 %v17413_v17  ;;  %v9159_v7 = vsel %vm13464_vm4, %v9154_v1, %v9158_v45  ;;  %v9176_v23 = vrot.slane %v9174_v26, 5  ;;  %v7851_v34 = vrot.slane %v7850_v4, 4  ;;  %v9180_v17 = vshll.u32 %v17455_v2, 16 }
 0x308   : > { %12881 = vmatprep.mubr.bf16.mxu1 %v11683_v56  ;;  %v9169_v31 = vsel %vm13464_vm4, %v9164_v13, %v9168_v32  ;;  %v7860_v16 = vor.u32 %v7859_v37, %v7855_v5  ;;  %v9184_v12 = vshrl.u32 %v17455_v2, 16  ;;  %v9190_v52 = vshll.u32 %v17458_v43, 16  ;;  %v17481_v32 = vpop.f32.mrf.mxu0  ;;  %v17486_v13 = vld [vmem:[#allocation2 + $0x38] sm:$0x1] }
 0x309   : > { %v11807_v9 = vcombine.low %v9159_v7, %v9169_v31  ;;  %v9177_v56 = vor.u32 %v9176_v23, %v9173_v24  ;;  %v7856_v11 = vsel %vm13464_vm4, %v7851_v34, %v7855_v5  ;;  %v9182_v18 = vrot.slane %v9180_v17, 5  ;;  %v9107_v23 = vld [vmem:[#allocation2 + $0x3c] sm:$0xf]  ;;  %v17496_v17 = vld [vmem:[#allocation2 + $0x40] sm:$0xf] }
 0x30a   : > { %v7861_v48 = vrot.slane %v7860_v16, 4  ;;  %v7868_v47 = vshrl.u32 %v7504_v28, 16  ;;  %v9186_v62 = vrot.slane %v9184_v12, 4  ;;  %v9192_v29 = vrot.slane %v9190_v52, 5 }
 0x30b   : > { %13001 = vmatprep.mubr.bf16.mxu0 %v11807_v9  ;;  %v9178_v60 = vrot.slane %v9177_v56, 4  ;;  %v7871_v30 = vshll.u32 %v7504_v28, 16  ;;  %v7877_v45 = vshll.u32 %v17393_v25, 16  ;;  %v7881_v3 = vshrl.u32 %v17393_v25, 16  ;;  %v17492_v28 = vpop.f32.mrf.mxu0 }
 0x30c   : > { %v7866_v39 = vsel %vm13464_vm4, %v7861_v48, %v7865_v8  ;;  %v7870_v50 = vrot.slane %v7868_v47, 4  ;;  %v9187_v10 = vor.u32 %v9186_v62, %v9182_v18  ;;  %v7887_v51 = vshll.u32 %v17395_v36, 16 }
 0x30d   : > { %v11685_v22 = vcombine.low %v7856_v11, %v7866_v39  ;;  %v9183_v63 = vsel %vm13464_vm4, %v9178_v60, %v9182_v18  ;;  %v7873_v20 = vrot.slane %v7871_v30, 5  ;;  %v7879_v44 = vrot.slane %v7877_v45, 5 }
 0x30e   : > { %v7883_v1 = vrot.slane %v7881_v3, 4  ;;  %v9195_v61 = vshrl.u32 %v9104_v41, 16  ;;  %v9188_v25 = vrot.slane %v9187_v10, 4  ;;  %v9198_v4 = vshll.u32 %v9104_v41, 16  ;;  %v9110_v41 = vld [vmem:[#allocation2 + $0x48] sm:$0xf] }
 0x30f   : > { %12882 = vmatmul.mubr.bf16.gmra.mxu1 %v11684_v53  ;;  %v7874_v26 = vor.u32 %v7873_v20, %v7870_v50  ;;  %v9204_v5 = vshll.u32 %v17477_v6, 16  ;;  %v7889_v7 = vrot.slane %v7887_v51, 5  ;;  %v9208_v24 = vshrl.u32 %v17477_v6, 16  ;;  %v17490_v53 = vpop.f32.mrf.mxu1 }
 0x310   : > { %12885 = vmatprep.mubr.bf16.mxu1 %v11685_v22  ;;  %v7884_v37 = vor.u32 %v7883_v1, %v7879_v44  ;;  %v9197_v8 = vrot.slane %v9195_v61, 4  ;;  %v9193_v36 = vsel %vm13464_vm4, %v9188_v25, %v9192_v29  ;;  %v9200_v34 = vrot.slane %v9198_v4, 5  ;;  %v17503_v29 = vld [vmem:[#allocation2 + $0x44] sm:$0x1]  ;;  %v13282_v22 = vld [vmem:[#allocation2 + $0x18] sm:$0xff]  }
 0x311   : > { %v7875_v31 = vrot.slane %v7874_v26, 4  ;;  %v9206_v16 = vrot.slane %v9204_v5, 5  ;;  %v11808_v9 = vcombine.low %v9183_v63, %v9193_v36  ;;  %v9210_v12 = vrot.slane %v9208_v24, 4  ;;  %v17506_v39 = vpop.f32.mrf.mxu1  ;;  %v17511_v61 = vld [vmem:[#allocation2 + $0x4c] sm:$0xf] }
 0x312   : > { %v7885_v56 = vrot.slane %v7884_v37, 4  ;;  %v9214_v52 = vshll.u32 %v17486_v13, 16  ;;  %v9201_v11 = vor.u32 %v9200_v34, %v9197_v8  ;;  %v9219_v48 = vshrl.u32 %v9107_v23, 16  ;;  %v17508_v50 = vpop.f32.mrf.mxu0 }
 0x313   : > { %v9222_v18 = vshll.u32 %v9107_v23, 16  ;;  %13002 = vmatmul.mubr.bf16.vlgmr.msra.gmra.mxu0 %v11808_v9  ;;  %v7880_v47 = vsel %vm13464_vm4, %v7875_v31, %v7879_v44  ;;  %v9211_v62 = vor.u32 %v9210_v12, %v9206_v16  ;;  %v9228_v30 = vshll.u32 %v17496_v17, 16  ;;  %v17522_v23 = vpop.f32.mrf.mxu1  ;;  %v17526_v9 = vld [vmem:[#allocation2 + $0x50] sm:$0x1] }
 0x314   : > { %v7890_v60 = vsel %vm13464_vm4, %v7885_v56, %v7889_v7  ;;  %v9202_v3 = vrot.slane %v9201_v11, 4  ;;  %v9221_v63 = vrot.slane %v9219_v48, 4  ;;  %v9216_v44 = vrot.slane %v9214_v52, 5  ;;  %v17524_v36 = vpop.f32.mrf.mxu0  ;;  %v9113_v52 = vld [vmem:[#allocation2 + $0x54] sm:$0xf] }
 0x315   : > { %v11686_v45 = vcombine.low %v7880_v47, %v7890_v60  ;;  %v9224_v10 = vrot.slane %v9222_v18, 5  ;;  %v9212_v20 = vrot.slane %v9211_v62, 4  ;;  %v9230_v1 = vrot.slane %v9228_v30, 5  ;;  %v17536_v60 = vld [vmem:[#allocation2 + $0x58] sm:$0xf] }
 0x316   : > { %v9232_v51 = vshrl.u32 %v17496_v17, 16  ;;  %v9238_v26 = vshll.u32 %v17503_v29, 16  ;;  %v17516_v4 = vadd.f32 %v17299_v49, %v17440_v33  ;;  %v9243_v5 = vshrl.u32 %v9110_v41, 16 }
 0x317   : > { %12886 = vmatmul.mubr.bf16.gmra.mxu1 %v11686_v45  ;;  %v9225_v25 = vor.u32 %v9224_v10, %v9221_v63  ;;  %v9207_v37 = vsel %vm13464_vm4, %v9202_v3, %v9206_v16  ;;  %v9217_v7 = vsel %vm13464_vm4, %v9212_v20, %v9216_v44  ;;  %v9246_v24 = vshll.u32 %v9110_v41, 16  ;;  %v17539_v3 = vpop.f32.mrf.mxu1  ;;  %v13286_v44 = vld [vmem:[%s18668_s3 + $0x230] sm:$0xff]  }
 0x318   : > { %12953 = vmatprep.mubr.bf16.mxu1 %v13282_v22  ;;  %v9234_v8 = vrot.slane %v9232_v51, 4  ;;  %v11809_v31 = vcombine.low %v9207_v37, %v9217_v7  ;;  %v9245_v49 = vrot.slane %v9243_v5, 4  ;;  %v9252_v33 = vshll.u32 %v17511_v61, 16  ;;  %18964 = vst [vmem:[#allocation21_spill] sm:$0xff] %v17539_v3  ;;  %v17541_v22 = vpop.f32.mrf.mxu0  ;;  %v13285_v5 = vld [vmem:[#allocation2 + $0x30] sm:$0xff]  }
 0x319   : > { %v9226_v34 = vrot.slane %v9225_v25, 4  ;;  %v9248_v12 = vrot.slane %v9246_v24, 5  ;;  %v9256_v16 = vshrl.u32 %v17511_v61, 16  ;;  %v9240_v11 = vrot.slane %v9238_v26, 5  ;;  %v9116_v37 = vld [vmem:[#allocation2 + $0x60] sm:$0xf] }
 0x31a   : > { %v9235_v56 = vor.u32 %v9234_v8, %v9230_v1  ;;  %13005 = vmatprep.mubr.bf16.mxu0 %v11809_v31  ;;  %v9254_v48 = vrot.slane %v9252_v33, 5  ;;  %v17532_v18 = vadd.f32 %v17325_v58, %v17450_v14  ;;  %v10512_v47 = vsel %vm862_vm0, %v17310_v19, 0  ;;  %v13284_v58 = vld [vmem:[#allocation2 + $0x24] sm:$0xff]   ;;  %v17549_v19 = vld [vmem:[#allocation2 + $0x5c] sm:$0x1] }
 0x31b   : > { %v9249_v30 = vor.u32 %v9248_v12, %v9245_v49  ;;  %v9258_v41 = vrot.slane %v9256_v16, 4  ;;  %v9262_v45 = vshll.u32 %v17526_v9, 16  ;;  %13082 = vmatpush3.bf16.msra.mxu0 %v10512_v47  ;;  %v9231_v63 = vsel %vm13464_vm4, %v9226_v34, %v9230_v1  ;;  %v17558_v24 = vld [vmem:[#allocation2 + $0x64] sm:$0xf]  ;;  %v17564_v12 = vpop.f32.mrf.mxu0  ;;  %v17570_v47 = vld [vmem:[#allocation2 + $0x68] sm:$0x1] }
 0x31c   : > { %v9236_v62 = vrot.slane %v9235_v56, 4  ;;  %v17547_v14 = vadd.f32 %v17355_v40, %v17465_v15  ;;  %v9267_v10 = vshrl.u32 %v9113_v52, 16  ;;  %v9270_v20 = vshll.u32 %v9113_v52, 16  ;;  %v9131_v3 = vld [vmem:[#allocation2 + $0x9c] sm:$0xf] }
 0x31d   : > { %v9250_v25 = vrot.slane %v9249_v30, 4  ;;  %v9259_v26 = vor.u32 %v9258_v41, %v9254_v48  ;;  %v9276_v1 = vshll.u32 %v17536_v60, 16  ;;  %v9280_v8 = vshrl.u32 %v17536_v60, 16 }
 0x31e   : > { %v9241_v51 = vsel %vm13464_vm4, %v9236_v62, %v9240_v11  ;;  %v9269_v40 = vrot.slane %v9267_v10, 4  ;;  %v9272_v15 = vrot.slane %v9270_v20, 5  ;;  %v9264_v34 = vrot.slane %v9262_v45, 5  ;;  %v9119_v20 = vld [vmem:[#allocation2 + $0x6c] sm:$0xf] }
 0x31f   : > { %v11810_v7 = vcombine.low %v9231_v63, %v9241_v51  ;;  %12954 = vmatmul.mubr.bf16.vlgmr.msra.gmra.mxu1 %v13284_v58  ;;  %v9260_v31 = vrot.slane %v9259_v26, 4  ;;  %v9278_v49 = vrot.slane %v9276_v1, 5  ;;  %v9286_v33 = vshll.u32 %v17549_v19, 16  ;;  %v17562_v56 = vpop.f32.mrf.mxu1 }
 0x320   : > { %13034 = vmatpush3.bf16.msra.mxu1 %v17418_v38  ;;  %12957 = vmatprep.mubr.bf16.mxu1 %v13285_v5  ;;  %v9273_v16 = vor.u32 %v9272_v15, %v9269_v40  ;;  %v9282_v52 = vrot.slane %v9280_v8, 4  ;;  %v17568_v11 = vadd.f32 %v17400_v54, %v17490_v53  ;;  %v9291_v62 = vshrl.u32 %v9116_v37, 16  ;;  %v13289_v38 = vld [vmem:[%s18668_s3 + $0x228] sm:$0xff]   ;;  %v13287_v15 = vld [vmem:[#allocation2 + $0x3c] sm:$0xff]  }
 0x321   : > { %13006 = vmatmul.mubr.bf16.gmra.mxu0 %v11810_v7  ;;  %13035 = vmatprep.subr.bf16.mxu1 %v13286_v44  ;;  %v9255_v30 = vsel %vm13464_vm4, %v9250_v25, %v9254_v48  ;;  %v9265_v41 = vsel %vm13464_vm4, %v9260_v31, %v9264_v34  ;;  %v9294_v45 = vshll.u32 %v9116_v37, 16  ;;  %v9300_v63 = vshll.u32 %v17558_v24, 16  ;;  %v17580_v51 = vpop.f32.mrf.mxu1  ;;  %v17584_v48 = vld [vmem:[#allocation2 + $0x70] sm:$0xf] }
 0x322   : > { %v11811_v58 = vcombine.low %v9255_v30, %v9265_v41  ;;  %v9274_v10 = vrot.slane %v9273_v16, 4  ;;  %v9283_v54 = vor.u32 %v9282_v52, %v9278_v49  ;;  %v9293_v53 = vrot.slane %v9291_v62, 4  ;;  %v13288_v62 = vld [vmem:[#allocation2 + $0x48] sm:$0xff]   ;;  %v17601_v30 = vld [vmem:[#allocation2 + $0x74] sm:$0x1] }
 0x323   : > { %v9296_v26 = vrot.slane %v9294_v45, 5  ;;  %v9302_v5 = vrot.slane %v9300_v63, 5  ;;  %v9304_v1 = vshrl.u32 %v17558_v24, 16  ;;  %v9310_v7 = vshll.u32 %v17570_v47, 16  ;;  %v12676_v45 = vpop.f32.mrf.mxu1 }
 0x324   : > { %13036 = vmatpush3.bf16.msra.mxu1 %v13286_v44  ;;  %v17586_v25 = vpop.f32.mrf.mxu0  ;;  %13009 = vmatprep.mubr.bf16.mxu0 %v11811_v58  ;;  %v9284_v37 = vrot.slane %v9283_v54, 4  ;;  %v9288_v40 = vrot.slane %v9286_v33, 5  ;;  %v17590_v8 = vadd.f32 %v17420_v35, %v17506_v39  ;;  %v17594_v31 = vadd.f32 %v17429_v57, %v17522_v23  ;;  %v13292_v44 = vld [vmem:[%s18668_s3 + $0x220] sm:$0xff]   ;;  %v9122_v54 = vld [vmem:[#allocation2 + $0x78] sm:$0xf] }
 0x325   : > { %13037 = vmatprep.subr.bf16.mxu1 %v13289_v38  ;;  %v9279_v34 = vsel %vm13464_vm4, %v9274_v10, %v9278_v49  ;;  %v9297_v16 = vor.u32 %v9296_v26, %v9293_v53  ;;  %v9306_v52 = vrot.slane %v9304_v1, 4  ;;  %v9312_v33 = vrot.slane %v9310_v7, 5  ;;  %v17609_v53 = vld [vmem:[#allocation2 + $0x7c] sm:$0xf] }
 0x326   : > { %18965 = vst [vmem:[#allocation32_spill] sm:$0xff] %v17590_v8  ;;  %18966 = vst [vmem:[#allocation33_spill] sm:$0xff] %v17594_v31  ;;  %v17603_v35 = vpop.f32.mrf.mxu0  ;;  %v9289_v57 = vsel %vm13464_vm4, %v9284_v37, %v9288_v40  ;;  %v9315_v39 = vshrl.u32 %v9119_v20, 16  ;;  %v9318_v23 = vshll.u32 %v9119_v20, 16  ;;  %v9324_v41 = vshll.u32 %v17584_v48, 16  ;;  %v13295_v20 = vld [vmem:[%s18668_s3 + $0x218] sm:$0xff]  }
 0x327   : > { %12958 = vmatmul.mubr.bf16.gmra.mxu1 %v13287_v15  ;;  %v11812_v63 = vcombine.low %v9279_v34, %v9289_v57  ;;  %v9298_v58 = vrot.slane %v9297_v16, 4  ;;  %v9307_v49 = vor.u32 %v9306_v52, %v9302_v5  ;;  %v9328_v10 = vshrl.u32 %v17584_v48, 16  ;;  %v17623_v57 = vld [vmem:[#allocation2 + $0x80] sm:$0x1] }
 0x328   : > { %12961 = vmatprep.mubr.bf16.mxu1 %v13288_v62  ;;  %13038 = vmatpush3.bf16.msra.mxu1 %v13289_v38  ;;  %v9317_v26 = vrot.slane %v9315_v39, 4  ;;  %v9320_v1 = vrot.slane %v9318_v23, 5  ;;  %v9326_v7 = vrot.slane %v9324_v41, 5  ;;  %v9334_v37 = vshll.u32 %v17601_v30, 16  ;;  %v17621_v38 = vpop.f32.mrf.mxu0  ;;  %v6194_v41 = vpop.f32.mrf.mxu1  ;;  %v17688_v8 = vld [vmem:[#allocation2 + $0xa0] sm:$0xf] }
 0x329   : > { %13039 = vmatprep.subr.bf16.mxu1 %v13292_v44  ;;  %13010 = vmatmul.mubr.bf16.gmra.mxu0 %v11812_v63  ;;  %v9303_v40 = vsel %vm13464_vm4, %v9298_v58, %v9302_v5  ;;  %v9308_v15 = vrot.slane %v9307_v49, 4  ;;  %v9330_v34 = vrot.slane %v9328_v10, 4  ;;  %v17619_v16 = vadd.f32 %v17452_v42, %v17562_v56  ;;  %v9125_v49 = vld [vmem:[#allocation2 + $0x84] sm:$0xf]  ;;  %v13290_v10 = vld [vmem:[#allocation2 + $0x54] sm:$0xff]  }
 0x32a   : > { %v9321_v52 = vor.u32 %v9320_v1, %v9317_v26  ;;  %v9336_v62 = vrot.slane %v9334_v37, 5  ;;  %v9339_v39 = vshrl.u32 %v9122_v54, 16  ;;  %v9342_v23 = vshll.u32 %v9122_v54, 16  ;;  %v13298_v54 = vld [vmem:[%s18668_s3 + $0x210] sm:$0xff]   ;;  %v17633_v46 = vpop.f32.mrf.mxu0 }
 0x32b   : > { %18967 = vst [vmem:[#allocation15_spill] sm:$0xff] %v17619_v16  ;;  %v9313_v63 = vsel %vm13464_vm4, %v9308_v15, %v9312_v33  ;;  %v9331_v31 = vor.u32 %v9330_v34, %v9326_v7  ;;  %v9348_v5 = vshll.u32 %v17609_v53, 16  ;;  %v9352_v58 = vshrl.u32 %v17609_v53, 16  ;;  %v13291_v34 = vld [vmem:[#allocation2 + $0x60] sm:$0xff]  }
 0x32c   : > { %13040 = vmatpush3.bf16.msra.mxu1 %v13292_v44  ;;  %v11813_v42 = vcombine.low %v9303_v40, %v9313_v63  ;;  %v9322_v56 = vrot.slane %v9321_v52, 4  ;;  %v9341_v26 = vrot.slane %v9339_v39, 4  ;;  %v9344_v1 = vrot.slane %v9342_v23, 5  ;;  %v17641_v39 = vld [vmem:[#allocation2 + $0x88] sm:$0xf] }
 0x32d   : > { %13041 = vmatprep.subr.bf16.mxu1 %v13295_v20  ;;  %v9332_v37 = vrot.slane %v9331_v31, 4  ;;  %v9350_v16 = vrot.slane %v9348_v5, 5  ;;  %v9354_v33 = vrot.slane %v9352_v58, 4  ;;  %v9358_v15 = vshll.u32 %v17623_v57, 16 }
 0x32e   : > { %13013 = vmatprep.mubr.bf16.mxu0 %v11813_v42  ;;  %v9327_v44 = vsel %vm13464_vm4, %v9322_v56, %v9326_v7  ;;  %v9345_v40 = vor.u32 %v9344_v1, %v9341_v26  ;;  %v17639_v52 = vadd.f32 %v17467_v21, %v17580_v51  ;;  %v9363_v31 = vshrl.u32 %v9125_v49, 16  ;;  %v17648_v7 = vld [vmem:[#allocation2 + $0x8c] sm:$0x1]  ;;  %v9128_v56 = vld [vmem:[#allocation2 + $0x90] sm:$0xf] }
 0x32f   : > { %12962 = vmatmul.mubr.bf16.gmra.mxu1 %v13290_v10  ;;  %v12679_v23 = vpop.f32.mrf.mxu1  ;;  %v9337_v63 = vsel %vm13464_vm4, %v9332_v37, %v9336_v62  ;;  %v9355_v5 = vor.u32 %v9354_v33, %v9350_v16  ;;  %v9360_v58 = vrot.slane %v9358_v15, 5  ;;  %v17646_v42 = vadd.f32 %v17481_v32, %v12676_v45  ;;  %v13301_v62 = vld [vmem:[%s18668_s3 + $0x208] sm:$0xff]  }
 0x330   : > { %18968 = vst [vmem:[#allocation6_spill] sm:$0xff] %v17639_v52  ;;  %12965 = vmatprep.mubr.bf16.mxu1 %v13291_v34  ;;  %13042 = vmatpush3.bf16.msra.mxu1 %v13295_v20  ;;  %v11814_v10 = vcombine.low %v9327_v44, %v9337_v63  ;;  %v9346_v21 = vrot.slane %v9345_v40, 4  ;;  %v17651_v51 = vadd.f32 %v17492_v28, %v6194_v41  ;;  %v9365_v26 = vrot.slane %v9363_v31, 4  ;;  %v17666_v34 = vld [vmem:[#allocation2 + $0x94] sm:$0xf] }
 0x331   : > { %18969 = vst [vmem:[#allocation22_spill] sm:$0xff] %v17646_v42  ;;  %v6207_v1 = vpop.f32.mrf.mxu1  ;;  %13043 = vmatprep.subr.bf16.mxu1 %v13298_v54  ;;  %v9356_v37 = vrot.slane %v9355_v5, 4  ;;  %v9366_v33 = vshll.u32 %v9125_v49, 16  ;;  %v9372_v32 = vshll.u32 %v17641_v39, 16  ;;  %v9376_v45 = vshrl.u32 %v17641_v39, 16  ;;  %v17658_v15 = vpop.f32.mrf.mxu0  ;;  %18972 = vst [vmem:[#allocation14_spill] sm:$0xff] %v17666_v34 }
 0x332   : > { %18970 = vst [vmem:[#allocation18_spill] sm:$0xff] %v17651_v51  ;;  %13014 = vmatmul.mubr.bf16.gmra.mxu0 %v11814_v10  ;;  %v9351_v28 = vsel %vm13464_vm4, %v9346_v21, %v9350_v16  ;;  %v9382_v20 = vshll.u32 %v17648_v7, 16  ;;  %v17664_v41 = vadd.f32 %v17508_v50, %v12679_v23  ;;  %v9387_v44 = vshrl.u32 %v9128_v56, 16  ;;  %v17670_v51 = vld [vmem:[#allocation2 + $0x98] sm:$0x1]  ;;  %v13293_v42 = vld [vmem:[#allocation2 + $0x6c] sm:$0xff]  }
 0x333   : > { %v12680_v40 = vpop.f32.mrf.mxu1  ;;  %v9361_v49 = vsel %vm13464_vm4, %v9356_v37, %v9360_v58  ;;  %v9368_v31 = vrot.slane %v9366_v33, 5  ;;  %v9374_v63 = vrot.slane %v9372_v32, 5  ;;  %v9378_v5 = vrot.slane %v9376_v45, 4  ;;  %18973 = vst [vmem:[#allocation26_spill] sm:$0xff] %v17670_v51  ;;  %v17672_v10 = vpop.f32.mrf.mxu0  ;;  %v13294_v32 = vld [vmem:[#allocation2 + $0x78] sm:$0xff]  }
 0x334   : > { %18971 = vst [vmem:[#allocation8_spill] sm:$0xff] %v17664_v41  ;;  %13044 = vmatpush3.bf16.msra.mxu1 %v13298_v54  ;;  %v11815_v16 = vcombine.low %v9351_v28, %v9361_v49  ;;  %v9384_v21 = vrot.slane %v9382_v20, 5  ;;  %v9389_v50 = vrot.slane %v9387_v44, 4  ;;  %v9390_v23 = vshll.u32 %v9128_v56, 16  ;;  %v13304_v41 = vld [vmem:[%s18668_s3 + $0x200] sm:$0xff]  }
 0x335   : > { %13045 = vmatprep.subr.bf16.mxu1 %v13301_v62  ;;  %v9369_v52 = vor.u32 %v9368_v31, %v9365_v26  ;;  %v9379_v58 = vor.u32 %v9378_v5, %v9374_v63  ;;  %v9396_v37 = vshll.u32 %v17666_v34, 16  ;;  %v9400_v33 = vshrl.u32 %v17666_v34, 16  ;;  %v6210_v45 = vpop.f32.mrf.mxu1  ;;  %v17679_v54 = vpop.f32.mrf.mxu0 }
 0x336   : > { %13017 = vmatprep.mubr.bf16.mxu0 %v11815_v16  ;;  %v9392_v28 = vrot.slane %v9390_v23, 5  ;;  %v9406_v56 = vshll.u32 %v17670_v51, 16  ;;  %v17683_v20 = vadd.f32 %v17524_v36, %v6207_v1  ;;  %v17686_v26 = vadd.f32 %v17541_v22, %v12680_v40  ;;  %v17695_v36 = vld [vmem:[#allocation2 + $0xa4] sm:$0x1] }
 0x337   : > { %12966 = vmatmul.mubr.bf16.gmra.mxu1 %v13293_v42  ;;  %v9370_v44 = vrot.slane %v9369_v52, 4  ;;  %v9380_v49 = vrot.slane %v9379_v58, 4  ;;  %v9398_v31 = vrot.slane %v9396_v37, 5  ;;  %v9402_v5 = vrot.slane %v9400_v33, 4  ;;  %v17690_v34 = vpop.f32.mrf.mxu0  ;;  %18977 = vst [vmem:[#allocation20_spill] sm:$0xff] %v17695_v36 }
 0x338   : > { %18974 = vst [vmem:[#allocation4_spill] sm:$0xff] %v17683_v20  ;;  %18975 = vst [vmem:[#allocation27_spill] sm:$0xff] %v17686_v26  ;;  %12969 = vmatprep.mubr.bf16.mxu1 %v13294_v32  ;;  %13046 = vmatpush3.bf16.msra.mxu1 %v13301_v62  ;;  %v9393_v42 = vor.u32 %v9392_v28, %v9389_v50  ;;  %v9408_v16 = vrot.slane %v9406_v56, 5  ;;  %v17693_v23 = vadd.f32 %v17564_v12, %v6210_v45  ;;  %v9134_v37 = vld [vmem:[#allocation2 + $0xa8] sm:$0xf]  ;;  %v13297_v20 = vld [vmem:[#allocation2 + $0x90] sm:$0xff]  }
 0x339   : > { %v9411_v1 = vshrl.u32 %v9131_v3, 16  ;;  %13047 = vmatprep.subr.bf16.mxu1 %v13304_v41  ;;  %v9375_v22 = vsel %vm13464_vm4, %v9370_v44, %v9374_v63  ;;  %v9385_v52 = vsel %vm13464_vm4, %v9380_v49, %v9384_v21  ;;  %v9403_v40 = vor.u32 %v9402_v5, %v9398_v31  ;;  %v17701_v33 = vpop.f32.mrf.mxu0  ;;  %v17706_v44 = vld [vmem:[#allocation2 + $0xac] sm:$0xf] }
 0x33a   : > { %18976 = vst [vmem:[#allocation13_spill] sm:$0xff] %v17693_v23  ;;  %v9414_v58 = vshll.u32 %v9131_v3, 16  ;;  %v11816_v62 = vcombine.low %v9375_v22, %v9385_v52  ;;  %v9394_v50 = vrot.slane %v9393_v42, 4  ;;  %v9420_v12 = vshll.u32 %v17688_v8, 16  ;;  %18978 = vst [vmem:[#allocation10_spill] sm:$0xff] %v17706_v44  ;;  %v13296_v42 = vld [vmem:[#allocation2 + $0x84] sm:$0xff]  }
 0x33b   : > { %v9413_v32 = vrot.slane %v9411_v1, 4  ;;  %v9404_v45 = vrot.slane %v9403_v40, 4  ;;  %v9424_v56 = vshrl.u32 %v17688_v8, 16  ;;  %v9430_v23 = vshll.u32 %v17695_v36, 16  ;;  %v17708_v21 = vpop.f32.mrf.mxu0  ;;  %v17715_v1 = vld [vmem:[#allocation2 + $0xb0] sm:$0x1] }
 0x33c   : > { %v9416_v28 = vrot.slane %v9414_v58, 5  ;;  %v12683_v63 = vpop.f32.mrf.mxu1  ;;  %13048 = vmatpush3.bf16.msra.mxu1 %v13304_v41  ;;  %13018 = vmatmul.mubr.bf16.gmra.mxu0 %v11816_v62  ;;  %v9399_v3 = vsel %vm13464_vm4, %v9394_v50, %v9398_v31  ;;  %v9422_v49 = vrot.slane %v9420_v12, 5  ;;  %18980 = vst [vmem:[#allocation5_spill] sm:$0xff] %v17715_v1  ;;  %v9435_v22 = vshrl.u32 %v9134_v37, 16 }
 0x33d   : > { %v17713_v5 = vadd.f32 %v17586_v25, %v12683_v63  ;;  %v9409_v52 = vsel %vm13464_vm4, %v9404_v45, %v9408_v16  ;;  %v9426_v58 = vrot.slane %v9424_v56, 4  ;;  %v9432_v26 = vrot.slane %v9430_v23, 5  ;;  %v17719_v62 = vpop.f32.mrf.mxu0 }
 0x33e   : > { %v9417_v40 = vor.u32 %v9416_v28, %v9413_v32  ;;  %v6223_v41 = vpop.f32.mrf.mxu1  ;;  %v11817_v36 = vcombine.low %v9399_v3, %v9409_v52  ;;  %v9437_v31 = vrot.slane %v9435_v22, 4  ;;  %v9438_v50 = vshll.u32 %v9134_v37, 16  ;;  %v9137_v32 = vld [vmem:[#allocation2 + $0xb4] sm:$0xf]  ;;  %v17732_v3 = vld [vmem:[#allocation2 + $0xb8] sm:$0xf] }
 0x33f   : > { %18979 = vst [vmem:[#allocation29_spill] sm:$0xff] %v17713_v5  ;;  %12970 = vmatmul.mubr.bf16.gmra.mxu1 %v13296_v42  ;;  %v9444_v25 = vshll.u32 %v17706_v44, 16  ;;  %v9427_v63 = vor.u32 %v9426_v58, %v9422_v49  ;;  %v9448_v5 = vshrl.u32 %v17706_v44, 16  ;;  %v9454_v51 = vshll.u32 %v17715_v1, 16  ;;  %v17724_v23 = vpop.f32.mrf.mxu0  ;;  %18983 = vst [vmem:[#allocation31_spill] sm:$0xff] %v17732_v3 }
 0x340   : > { %v9418_v12 = vrot.slane %v9417_v40, 4  ;;  %12973 = vmatprep.mubr.bf16.mxu1 %v13297_v20  ;;  %v12684_v16 = vpop.f32.mrf.mxu1  ;;  %13021 = vmatprep.mubr.bf16.mxu0 %v11817_v36  ;;  %v9440_v45 = vrot.slane %v9438_v50, 5  ;;  %v17727_v56 = vadd.f32 %v17603_v35, %v6223_v41  ;;  %v17739_v50 = vld [vmem:[#allocation2 + $0xbc] sm:$0x1]  ;;  %v9459_v35 = vshrl.u32 %v9137_v32, 16 }
 0x341   : > { %v9446_v28 = vrot.slane %v9444_v25, 5  ;;  %v17730_v37 = vadd.f32 %v17621_v38, %v12684_v16  ;;  %v9428_v22 = vrot.slane %v9427_v63, 4  ;;  %v9450_v20 = vrot.slane %v9448_v5, 4  ;;  %18985 = vst [vmem:[#allocation9_spill] sm:$0xff] %v17739_v50 }
 0x342   : > { %18981 = vst [vmem:[#allocation23_spill] sm:$0xff] %v17727_v56  ;;  %v9423_v42 = vsel %vm13464_vm4, %v9418_v12, %v9422_v49  ;;  %v9456_v52 = vrot.slane %v9454_v51, 5  ;;  %v6226_v40 = vpop.f32.mrf.mxu1  ;;  %v9441_v58 = vor.u32 %v9440_v45, %v9437_v31  ;;  %v9462_v41 = vshll.u32 %v9137_v32, 16  ;;  %v17741_v25 = vpop.f32.mrf.mxu0  ;;  %v9140_v12 = vld [vmem:[#allocation2 + $0xc0] sm:$0xf] }
 0x343   : > { %18982 = vst [vmem:[#allocation25_spill] sm:$0xff] %v17730_v37  ;;  %v17737_v36 = vadd.f32 %v17633_v46, %v6226_v40  ;;  %v9433_v38 = vsel %vm13464_vm4, %v9428_v22, %v9432_v26  ;;  %v9451_v16 = vor.u32 %v9450_v20, %v9446_v28  ;;  %v9468_v49 = vshll.u32 %v17732_v3, 16  ;;  %v13299_v40 = vld [vmem:[#allocation2 + $0x9c] sm:$0xff]   ;;  %v17750_v22 = vld [vmem:[#allocation2 + $0xc4] sm:$0xf] }
 0x344   : > { %v9472_v5 = vshrl.u32 %v17732_v3, 16  ;;  %v12687_v51 = vpop.f32.mrf.mxu1  ;;  %v11818_v31 = vcombine.low %v9423_v42, %v9433_v38  ;;  %v9442_v63 = vrot.slane %v9441_v58, 4  ;;  %v9461_v46 = vrot.slane %v9459_v35, 4  ;;  %v17747_v37 = vpop.f32.mrf.mxu0 }
 0x345   : > { %18984 = vst [vmem:[#allocation7_spill] sm:$0xff] %v17737_v36  ;;  %v9464_v45 = vrot.slane %v9462_v41, 5  ;;  %v13300_v36 = vld [vmem:[#allocation2 + $0xa8] sm:$0xff]   ;;  %v9452_v32 = vrot.slane %v9451_v16, 4  ;;  %v9470_v1 = vrot.slane %v9468_v49, 5  ;;  %v9478_v26 = vshll.u32 %v17739_v50, 16 }
 0x346   : > { %v9474_v56 = vrot.slane %v9472_v5, 4  ;;  %v6239_v20 = vpop.f32.mrf.mxu1  ;;  %13022 = vmatmul.mubr.bf16.gmra.mxu0 %v11818_v31  ;;  %v17753_v3 = vadd.f32 %v17658_v15, %v12687_v51  ;;  %v9483_v42 = vshrl.u32 %v9140_v12, 16  ;;  %v17755_v58 = vpop.f32.mrf.mxu0  ;;  %v9447_v35 = vsel %vm13464_vm4, %v9442_v63, %v9446_v28  ;;  %v17761_v16 = vld [vmem:[#allocation2 + $0xc8] sm:$0x1] }
 0x347   : > { %v9465_v44 = vor.u32 %v9464_v45, %v9461_v46  ;;  %12974 = vmatmul.mubr.bf16.gmra.mxu1 %v13299_v40  ;;  %v9457_v41 = vsel %vm13464_vm4, %v9452_v32, %v9456_v52  ;;  %18987 = vst [vmem:[#allocation11_spill] sm:$0xff] %v17761_v16  ;;  %v9486_v49 = vshll.u32 %v9140_v12, 16  ;;  %v9492_v51 = vshll.u32 %v17750_v22, 16  ;;  %v9143_v52 = vld [vmem:[#allocation2 + $0xcc] sm:$0xf] }
 0x348   : > { %18986 = vst [vmem:[#allocation17_spill] sm:$0xff] %v17753_v3  ;;  %v9475_v38 = vor.u32 %v9474_v56, %v9470_v1  ;;  %12977 = vmatprep.mubr.bf16.mxu1 %v13300_v36  ;;  %v12688_v5 = vpop.f32.mrf.mxu1  ;;  %v11819_v31 = vcombine.low %v9447_v35, %v9457_v41  ;;  %v9485_v15 = vrot.slane %v9483_v42, 4  ;;  %v17764_v45 = vpop.f32.mrf.mxu0  ;;  %v9480_v3 = vrot.slane %v9478_v26, 5  ;;  %v17774_v32 = vld [vmem:[#allocation2 + $0xd0] sm:$0xf] }
 0x349   : > { %v9466_v46 = vrot.slane %v9465_v44, 4  ;;  %v9488_v50 = vrot.slane %v9486_v49, 5  ;;  %v9496_v28 = vshrl.u32 %v17750_v22, 16  ;;  %v9494_v56 = vrot.slane %v9492_v51, 5  ;;  %v17782_v49 = vld [vmem:[#allocation2 + $0xd4] sm:$0x1] }
 0x34a   : > { %v9476_v40 = vrot.slane %v9475_v38, 4  ;;  %v6242_v63 = vpop.f32.mrf.mxu1  ;;  %13025 = vmatprep.mubr.bf16.mxu0 %v11819_v31  ;;  %v9502_v12 = vshll.u32 %v17761_v16, 16  ;;  %v17769_v36 = vadd.f32 %v17672_v10, %v6239_v20  ;;  %v17772_v44 = vadd.f32 %v17679_v54, %v12688_v5  ;;  %v17776_v42 = vpop.f32.mrf.mxu0  ;;  %v13302_v54 = vld [vmem:[#allocation2 + $0xb4] sm:$0xff]  }
 0x34b   : > { %v9471_v26 = vsel %vm13464_vm4, %v9466_v46, %v9470_v1  ;;  %v9489_v41 = vor.u32 %v9488_v50, %v9485_v15  ;;  %v9498_v38 = vrot.slane %v9496_v28, 4  ;;  %v17785_v10 = vadd.f32 %v17690_v34, %v6242_v63  ;;  %v13303_v1 = vld [vmem:[#allocation2 + $0xc0] sm:$0xff]  }
 0x34c   : > { %18988 = vst [vmem:[#allocation19_spill] sm:$0xff] %v17769_v36  ;;  %18989 = vst [vmem:[#allocation28_spill] sm:$0xff] %v17772_v44  ;;  %v9481_v35 = vsel %vm13464_vm4, %v9476_v40, %v9480_v3  ;;  %v9507_v20 = vshrl.u32 %v9143_v52, 16  ;;  %v9510_v5 = vshll.u32 %v9143_v52, 16  ;;  %v17787_v51 = vpop.f32.mrf.mxu0  ;;  %v9516_v46 = vshll.u32 %v17774_v32, 16 }
 0x34d   : > { %v11820_v31 = vcombine.low %v9471_v26, %v9481_v35  ;;  %v9490_v44 = vrot.slane %v9489_v41, 4  ;;  %v9499_v16 = vor.u32 %v9498_v38, %v9494_v56  ;;  %v12691_v36 = vpop.f32.mrf.mxu1  ;;  %v9520_v3 = vshrl.u32 %v17774_v32, 16  ;;  %v9852_v38 = vld [vmem:[#allocation2 + $0x18] sm:$0xe] }
 0x34e   : > { %v17792_v50 = vadd.f32 %v17701_v33, %v12691_v36  ;;  %v9509_v34 = vrot.slane %v9507_v20, 4  ;;  %v9512_v15 = vrot.slane %v9510_v5, 5  ;;  %v9526_v40 = vshll.u32 %v17782_v49, 16  ;;  %v17795_v28 = vpop.f32.mrf.mxu0 }
 0x34f   : > { %13026 = vmatmul.mubr.bf16.gmra.mxu0 %v11820_v31  ;;  %12978 = vmatmul.mubr.bf16.gmra.mxu1 %v13302_v54  ;;  %v9500_v63 = vrot.slane %v9499_v16, 4  ;;  %v9504_v52 = vrot.slane %v9502_v12, 5  ;;  %v6255_v26 = vpop.f32.mrf.mxu1  ;;  %v9518_v35 = vrot.slane %v9516_v46, 5  ;;  %v9522_v41 = vrot.slane %v9520_v3, 4  ;;  %v13336_v46 = vld [vmem:[#allocation2 + $0x1c] sm:$0xf] }
 0x350   : > { %18990 = vst [vmem:[#allocation24_spill] sm:$0xff] %v17792_v50  ;;  %12981 = vmatprep.mubr.bf16.mxu1 %v13303_v1  ;;  %v17799_v31 = vadd.f32 %v17376_v0, %v17479_v55  ;;  %v9495_v33 = vsel %vm13464_vm4, %v9490_v44, %v9494_v56  ;;  %v17804_v36 = vadd.f32 %v17708_v21, %v6255_v26  ;;  %v17806_v20 = vpop.f32.mrf.mxu0  ;;  %v9528_v1 = vrot.slane %v9526_v40, 5  ;;  %v9853_v50 = vld [vmem:[#allocation2 + $0x24] sm:$0xe]  ;;  %v13305_v44 = vld [vmem:[#allocation2 + $0xcc] sm:$0xff]  }
 0x351   : > { %v9513_v54 = vor.u32 %v9512_v15, %v9509_v34  ;;  %v9505_v16 = vsel %vm13464_vm4, %v9500_v63, %v9504_v52  ;;  %v12692_v12 = vpop.f32.mrf.mxu1  ;;  %v9523_v5 = vor.u32 %v9522_v41, %v9518_v35  ;;  %v9918_v3 = vrot.slane %v13336_v46, 5  ;;  %v13337_v63 = vld [vmem:[#allocation2 + $0x20] sm:$0x1] }
 0x352   : > { %18991 = vst [vmem:[#allocation30_spill] sm:$0xff] %v17804_v36  ;;  %v11821_v0 = vcombine.low %v9495_v33, %v9505_v16  ;;  %v17811_v55 = vadd.f32 %v17719_v62, %v12692_v12  ;;  %v11831_v21 = vrot.slane %v9852_v38, 9  ;;  %v17813_v26 = vpop.f32.mrf.mxu0  ;;  %v9921_v52 = vrot.slane %v13337_v63, 5  ;;  %v9854_v16 = vld [vmem:[#allocation2 + $0x30] sm:$0xe]  ;;  %v13306_v46 = vld [vmem:[%s17226_s10] sm:$0xff]  }
 0x353   : > { %v9514_v56 = vrot.slane %v9513_v54, 4  ;;  %v9524_v34 = vrot.slane %v9523_v5, 4  ;;  %v6258_v15 = vpop.f32.mrf.mxu1  ;;  %v9920_v36 = vrot.slane %v9918_v3, 4  ;;  %v9925_v40 = vrot.slane %v17455_v2, 5 }
 0x354   : > { %13029 = vmatprep.mubr.bf16.mxu0 %v11821_v0  ;;  %v17819_v62 = vadd.f32 %v17724_v23, %v6258_v15  ;;  %v9919_v38 = vsel %vm13750_vm7, %v11831_v21, %v9918_v3  ;;  %v11832_v33 = vrot.slane %v9853_v50, 9  ;;  %v17823_v54 = vpop.f32.mrf.mxu0  ;;  %v9855_v23 = vld [vmem:[#allocation2 + $0x3c] sm:$0xe]  ;;  %v9932_v3 = vrot.slane %v17477_v6, 5 }
 0x355   : > { %v9519_v41 = vsel %vm13464_vm4, %v9514_v56, %v9518_v35  ;;  %v9529_v12 = vsel %vm13464_vm4, %v9524_v34, %v9528_v1  ;;  %v12695_v5 = vpop.f32.mrf.mxu1  ;;  %v9922_v2 = vsel %vm13750_vm7, %v9920_v36, %v9921_v52  ;;  %v9927_v0 = vrot.slane %v9925_v40, 4 }
 0x356   : > { %18992 = vst [vmem:[#allocation34_spill] sm:$0xff] %v17819_v62  ;;  %v9928_v35 = vrot.slane %v17458_v43, 5  ;;  %v11822_v56 = vcombine.low %v9519_v41, %v9529_v12  ;;  %v17832_v15 = vadd.f32 %v17741_v25, %v12695_v5  ;;  %v11863_v50 = vcombine.low %v9919_v38, %v9922_v2  ;;  %v17835_v21 = vpop.f32.mrf.mxu0  ;;  %v9856_v41 = vld [vmem:[#allocation2 + $0x48] sm:$0xe] }
 0x357   : > { %12982 = vmatmul.mubr.bf16.gmra.mxu1 %v13305_v44  ;;  %v6271_v59 = vpop.f32.mrf.mxu1  ;;  %v9926_v1 = vsel %vm13750_vm7, %v11832_v33, %v9925_v40  ;;  %v11833_v34 = vrot.slane %v9854_v16, 9  ;;  %v9939_v43 = vrot.slane %v17496_v17, 5  ;;  %v9934_v44 = vrot.slane %v9932_v3, 4 }
 0x358   : > { %18993 = vst [vmem:[#allocation3_spill] sm:$0xff] %v17832_v15  ;;  %v9929_v36 = vsel %vm13750_vm7, %v9927_v0, %v9928_v35  ;;  %13030 = vmatmul.mubr.bf16.gmra.mxu0 %v11822_v56  ;;  %13049 = vmatprep.mubr.bf16.mxu1 %v11863_v50  ;;  %v17843_v25 = vadd.f32 %v17747_v37, %v6271_v59  ;;  %v9935_v6 = vrot.slane %v17486_v13, 5  ;;  %v17846_v63 = vpop.f32.mrf.mxu0  ;;  %v11834_v52 = vrot.slane %v9855_v23, 9  ;;  %v9857_v37 = vld [vmem:[#allocation2 + $0x54] sm:$0xe]  ;;  %v13307_v50 = vld [vmem:[%s17226_s10 + $0x8] sm:$0xff]  }
 0x359   : > { %13083 = vmatprep.mubr.msk.bf16.mxu0 %vm813_vm3, %v13306_v46  ;;  %v12696_v40 = vpop.f32.mrf.mxu1  ;;  %v11864_v38 = vcombine.low %v9926_v1, %v9929_v36  ;;  %v9933_v17 = vsel %vm13750_vm7, %v11833_v34, %v9932_v3  ;;  %v9941_v33 = vrot.slane %v9939_v43, 4  ;;  %v9942_v16 = vrot.slane %v17503_v29, 5  ;;  %v9858_v56 = vld [vmem:[#allocation2 + $0x60] sm:$0xe]  ;;  %v9859_v34 = vld [vmem:[#allocation2 + $0x6c] sm:$0xe] }
 0x35a   : > { %18994 = vst [vmem:[#allocation35_spill] sm:$0xff] %v17843_v25  ;;  %v17853_v12 = vadd.f32 %v17755_v58, %v12696_v40  ;;  %v9936_v13 = vsel %vm13750_vm7, %v9934_v44, %v9935_v6  ;;  %v17857_v5 = vpop.f32.mrf.mxu0  ;;  %v17861_v2 = vsel %vm13750_vm7, %v11834_v52, %v9939_v43  ;;  %v9946_v46 = vrot.slane %v17511_v61, 5  ;;  %v13308_v44 = vld [vmem:[%s17226_s10 + $0x10] sm:$0xff]   ;;  %v19006_v15 = vld [vmem:[#allocation15_spill] sm:$0xff] }
 0x35b   : > { %v6274_v0 = vpop.f32.mrf.mxu1  ;;  %v17866_v29 = vsel %vm13750_vm7, %v9941_v33, %v9942_v16  ;;  %v11835_v35 = vrot.slane %v9856_v41, 9  ;;  %v9949_v58 = vrot.slane %v17526_v9, 5  ;;  %v9953_v23 = vrot.slane %v17536_v60, 5 }
 0x35c   : > { %18995 = vst [vmem:[#allocation36_spill] sm:$0xff] %v17853_v12  ;;  %v17872_v3 = vadd.f32 %v17764_v45, %v6274_v0  ;;  %v11865_v59 = vcombine.low %v9933_v17, %v9936_v13  ;;  %v17874_v1 = vpop.f32.mrf.mxu0  ;;  %v9948_v36 = vrot.slane %v9946_v46, 4  ;;  %v11836_v61 = vrot.slane %v9857_v37, 9  ;;  %v9860_v13 = vld [vmem:[#allocation2 + $0x78] sm:$0xe] }
 0x35d   : > { %v12763_v43 = vpop.f32.mrf.mxu1  ;;  %v11866_v6 = vcombine.low %v17861_v2, %v17866_v29  ;;  %v9947_v9 = vsel %vm13750_vm7, %v11835_v35, %v9946_v46  ;;  %v9955_v60 = vrot.slane %v9953_v23, 4  ;;  %v9956_v52 = vrot.slane %v17549_v19, 5 }
 0x35e   : > { %18996 = vst [vmem:[#allocation37_spill] sm:$0xff] %v17872_v3  ;;  %v17883_v45 = vadd.f32 %v12763_v43, %v17516_v4  ;;  %v17885_v41 = vpop.f32.mrf.mxu0  ;;  %v17889_v40 = vsel %vm13750_vm7, %v11836_v61, %v9953_v23  ;;  %v11837_v17 = vrot.slane %v9858_v56, 9  ;;  %v9960_v33 = vrot.slane %v17558_v24, 5  ;;  %v9861_v56 = vld [vmem:[#allocation2 + $0x84] sm:$0xe] }
 0x35f   : > { %13050 = vmatmul.mubr.bf16.vlgmr.msra.gmra.mxu1 %v11864_v38  ;;  %v6914_v16 = vpop.f32.mrf.mxu1  ;;  %v9950_v37 = vsel %vm13750_vm7, %v9948_v36, %v9949_v58  ;;  %v17896_v19 = vsel %vm13750_vm7, %v9955_v60, %v9956_v52  ;;  %v11838_v4 = vrot.slane %v9859_v34, 9  ;;  %v9967_v38 = vrot.slane %v17584_v48, 5  ;;  %v13309_v60 = vld [vmem:[%s17226_s10 + $0x18] sm:$0xff]  }
 0x360   : > { %13053 = vmatprep.mubr.bf16.mxu1 %v11865_v59  ;;  %13084 = vmatmul.mubr.msk.bf16.vlgmr.msra.gmra.mxu0 %vm813_vm3, %v13307_v50  ;;  %v17901_v2 = vadd.f32 %v6914_v16, %v17532_v18  ;;  %v17903_v46 = vpop.f32.mrf.mxu0  ;;  %v9962_v0 = vrot.slane %v9960_v33, 4  ;;  %v9963_v29 = vrot.slane %v17570_v47, 5  ;;  %v17911_v48 = vsel %vm13750_vm7, %v11837_v17, %v9960_v33 }
 0x361   : > { %13087 = vmatprep.mubr.msk.bf16.mxu0 %vm813_vm3, %v13308_v44  ;;  %v12764_v35 = vpop.f32.mrf.mxu1  ;;  %v17915_v18 = vsel %vm13750_vm7, %v11838_v4, %v9967_v38  ;;  %v9969_v58 = vrot.slane %v9967_v38, 4  ;;  %v9970_v23 = vrot.slane %v17601_v30, 5  ;;  %v11839_v36 = vrot.slane %v9860_v13, 9  ;;  %v9862_v4 = vld [vmem:[#allocation2 + $0x90] sm:$0xe] }
 0x362   : > { %v17919_v50 = vadd.f32 %v12764_v35, %v17547_v14  ;;  %v17921_v47 = vpop.f32.mrf.mxu0  ;;  %v17925_v59 = vsel %vm13750_vm7, %v9962_v0, %v9963_v29  ;;  %v9974_v61 = vrot.slane %v17609_v53, 5  ;;  %v9977_v14 = vrot.slane %v17623_v57, 5  ;;  %v13310_v0 = vld [vmem:[%s17226_s10 + $0x20] sm:$0xff]  }
 0x363   : > { %v6917_v34 = vpop.f32.mrf.mxu1  ;;  %v17932_v30 = vsel %vm13750_vm7, %v9969_v58, %v9970_v23  ;;  %v9981_v44 = vrot.slane %v17641_v39, 5  ;;  %v11840_v16 = vrot.slane %v9861_v56, 9  ;;  %v11867_v13 = vcombine.low %v9947_v9, %v9950_v37  ;;  %v18997_v37 = vld [vmem:[#allocation14_spill] sm:$0xff]  ;;  %v9863_v56 = vld [vmem:[#allocation2 + $0x9c] sm:$0xe] }
 0x364   : > { %v17938_v52 = vadd.f32 %v6917_v34, %v17799_v31  ;;  %v17940_v17 = vpop.f32.mrf.mxu0  ;;  %v9976_v33 = vrot.slane %v9974_v61, 4  ;;  %v17947_v57 = vsel %vm13750_vm7, %v11839_v36, %v9974_v61  ;;  %v9984_v29 = vrot.slane %v17648_v7, 5  ;;  %v18998_v34 = vld [vmem:[#allocation32_spill] sm:$0xff] }
 0x365   : > { %v12767_v38 = vpop.f32.mrf.mxu1  ;;  %v9983_v39 = vrot.slane %v9981_v44, 4  ;;  %v17961_v9 = vsel %vm13750_vm7, %v11840_v16, %v9981_v44  ;;  %v9988_v23 = vrot.slane %v18997_v37, 5  ;;  %v9995_v61 = vrot.slane %v17688_v8, 5  ;;  %v19000_v37 = vld [vmem:[#allocation20_spill] sm:$0xff] }
 0x366   : > { %v17951_v31 = vadd.f32 %v12767_v38, %v17568_v11  ;;  %v17953_v35 = vpop.f32.mrf.mxu0  ;;  %v17957_v58 = vsel %vm13750_vm7, %v9976_v33, %v9977_v14  ;;  %v18999_v38 = vld [vmem:[#allocation26_spill] sm:$0xff]  ;;  %v9998_v8 = vrot.slane %v19000_v37, 5  ;;  %v19001_v11 = vld [vmem:[#allocation21_spill] sm:$0xff] }
 0x367   : > { %13054 = vmatmul.mubr.bf16.gmra.mxu1 %v11866_v6  ;;  %v6930_v36 = vpop.f32.mrf.mxu1  ;;  %v17968_v7 = vsel %vm13750_vm7, %v9983_v39, %v9984_v29  ;;  %v11841_v6 = vrot.slane %v9862_v4, 9  ;;  %v9990_v16 = vrot.slane %v9988_v23, 4  ;;  %v11842_v29 = vrot.slane %v9863_v56, 9  ;;  %v9865_v56 = vld [vmem:[#allocation2 + $0xb4] sm:$0xe] }
 0x368   : > { %13057 = vmatprep.mubr.bf16.mxu1 %v11867_v13  ;;  %13088 = vmatmul.mubr.msk.bf16.gmra.mxu0 %vm813_vm3, %v13309_v60  ;;  %v7045_v14 = vadd.f32 %v6930_v36, %v18998_v34  ;;  %v17973_v44 = vpop.f32.mrf.mxu0  ;;  %v9991_v13 = vrot.slane %v18999_v38, 5  ;;  %v9997_v4 = vrot.slane %v9995_v61, 4  ;;  %v19002_v60 = vld [vmem:[#allocation12_spill] sm:$0xff]  ;;  %v19003_v36 = vld [vmem:[#allocation33_spill] sm:$0xff]  ;;  %v13312_v37 = vld [vmem:[%s17226_s10 + $0x30] sm:$0xff]   ;;  %v11844_v12 = vrot.slane %v9865_v56, 9 }
 0x369   : > { %13091 = vmatprep.mubr.msk.bf16.mxu0 %vm813_vm3, %v13310_v0  ;;  %v12768_v39 = vpop.f32.mrf.mxu1  ;;  %v6484_v53 = vadd.f32 %v19002_v60, %v19001_v11  ;;  %v17987_v33 = vsel %vm13750_vm7, %v11841_v6, %v9988_v23  ;;  %v17997_v11 = vsel %vm13750_vm7, %v11842_v29, %v9995_v61  ;;  %v19004_v60 = vld [vmem:[#allocation31_spill] sm:$0xff]  ;;  %v13311_v6 = vld [vmem:[%s17226_s10 + $0x28] sm:$0xff]  }
 0x36a   : > { %v7048_v34 = vadd.f32 %v12768_v39, %v19003_v36  ;;  %v17983_v43 = vpop.f32.mrf.mxu0  ;;  %v17991_v0 = vsel %vm13750_vm7, %v9990_v16, %v9991_v13  ;;  %v18001_v39 = vsel %vm13750_vm7, %v9997_v4, %v9998_v8  ;;  %v10009_v23 = vrot.slane %v19004_v60, 5  ;;  %v9867_v13 = vld [vmem:[#allocation2 + $0xcc] sm:$0xe] }
 0x36b   : > { %v6933_v38 = vpop.f32.mrf.mxu1  ;;  %v11874_v16 = vcombine.low %v17997_v11, %v18001_v39  ;;  %v19005_v61 = vld [vmem:[#allocation9_spill] sm:$0xff]  ;;  %v19007_v4 = vcombine.low %v17889_v40, %v17896_v19  ;;  %v19009_v40 = vld [vmem:[#allocation6_spill] sm:$0xff] }
 0x36c   : > { %v7046_v36 = vadd.f32 %v6933_v38, %v6484_v53  ;;  %v18005_v24 = vpop.f32.mrf.mxu0  ;;  %v10011_v25 = vrot.slane %v10009_v23, 4  ;;  %v10012_v29 = vrot.slane %v19005_v61, 5  ;;  %v19008_v53 = vcombine.low %v17911_v48, %v17925_v59 }
 0x36d   : > { %v12771_v3 = vpop.f32.mrf.mxu1  ;;  %v18022_v60 = vsel %vm13750_vm7, %v11844_v12, %v10009_v23  ;;  %v18043_v23 = vadd.f32 %v17776_v42, %v17883_v45  ;;  %v18062_v42 = vadd.f32 %v17806_v20, %v17938_v52  ;;  %v18066_v45 = vadd.f32 %v17813_v26, %v17951_v31  ;;  %v13314_v52 = vld [vmem:[%s17226_s10 + $0x40] sm:$0xff]  }
 0x36e   : > { %v7051_v62 = vadd.f32 %v12771_v3, %v19006_v15  ;;  %v18015_v8 = vpop.f32.mrf.mxu0  ;;  %v18026_v56 = vsel %vm13750_vm7, %v10011_v25, %v10012_v29  ;;  %v11846_v15 = vrot.slane %v9867_v13, 9  ;;  %v10023_v3 = vrot.slane %v17774_v32, 5 }
 0x36f   : > { %13058 = vmatmul.mubr.bf16.gmra.mxu1 %v19007_v4  ;;  %v6946_v38 = vpop.f32.mrf.mxu1  ;;  %v11876_v48 = vcombine.low %v18022_v60, %v18026_v56  ;;  %v10026_v32 = vrot.slane %v17782_v49, 5  ;;  %v18054_v4 = vadd.f32 %v17795_v28, %v17919_v50  ;;  %v18075_v50 = vadd.f32 %v17823_v54, %v7045_v14 }
 0x370   : > { %13061 = vmatprep.mubr.bf16.mxu1 %v19008_v53  ;;  %13092 = vmatmul.mubr.msk.bf16.gmra.mxu0 %vm813_vm3, %v13311_v6  ;;  %v7049_v19 = vadd.f32 %v6946_v38, %v19009_v40  ;;  %v18031_v61 = vpop.f32.mrf.mxu0  ;;  %v18038_v25 = vsel %vm13750_vm7, %v11846_v15, %v10023_v3  ;;  %v10025_v59 = vrot.slane %v10023_v3, 4  ;;  %v19010_v6 = vld [vmem:[#allocation22_spill] sm:$0xff]  ;;  %v13313_v38 = vld [vmem:[%s17226_s10 + $0x38] sm:$0xff]   ;;  %v18078_v3 = vadd.f32 %v17835_v21, %v7048_v34 }
 0x371   : > { %13095 = vmatprep.mubr.msk.bf16.mxu0 %vm813_vm3, %v13312_v37  ;;  %v12772_v12 = vpop.f32.mrf.mxu1  ;;  %v18050_v37 = vadd.f32 %v17787_v51, %v17901_v2  ;;  %v19011_v51 = vld [vmem:[#allocation18_spill] sm:$0xff]  ;;  %v18082_v40 = vadd.f32 %v17846_v63, %v7046_v36  ;;  %v18085_v26 = vadd.f32 %v17857_v5, %v7051_v62  ;;  %v19013_v21 = vcombine.low %v17915_v18, %v17932_v30 }
 0x372   : > { %v7052_v13 = vadd.f32 %v12772_v12, %v19010_v6  ;;  %v18046_v29 = vpop.f32.mrf.mxu0  ;;  %v18058_v49 = vsel %vm13750_vm7, %v10025_v59, %v10026_v32  ;;  %v18088_v31 = vadd.f32 %v17874_v1, %v7049_v19  ;;  %v19012_v59 = vld [vmem:[#allocation8_spill] sm:$0xff]  ;;  %v19014_v62 = vcombine.low %v17947_v57, %v17957_v58  ;;  %v19017_v57 = vld [vmem:[#allocation10_spill] sm:$0xff] }
 0x373   : > { %v6949_v53 = vpop.f32.mrf.mxu1  ;;  %v11878_v28 = vcombine.low %v18038_v25, %v18058_v49  ;;  %v19015_v1 = vld [vmem:[#allocation4_spill] sm:$0xff]  ;;  %v10002_v58 = vrot.slane %v19017_v57, 5 }
 0x374   : > { %v7050_v2 = vadd.f32 %v6949_v53, %v19011_v51  ;;  %v18070_v15 = vpop.f32.mrf.mxu0  ;;  %v18091_v12 = vadd.f32 %v17885_v41, %v7052_v13  ;;  %v13315_v13 = vld [vmem:[%s17226_s10 + $0x48] sm:$0xff]  }
 0x375   : > { %v12775_v20 = vpop.f32.mrf.mxu1  ;;  %v19018_v53 = vld [vmem:[#allocation13_spill] sm:$0xff] }
 0x376   : > { %v7055_v54 = vadd.f32 %v12775_v20, %v19012_v59  ;;  %v18097_v14 = vpop.f32.mrf.mxu0  ;;  %v18100_v63 = vadd.f32 %v17903_v46, %v7050_v2  ;;  %v19016_v46 = vld [vmem:[#allocation27_spill] sm:$0xff]  ;;  %v13316_v20 = vld [vmem:[%s17226_s10 + $0x50] sm:$0xff]  }
 0x377   : > { %13062 = vmatmul.mubr.bf16.gmra.mxu1 %v19013_v21  ;;  %v6962_v5 = vpop.f32.mrf.mxu1  ;;  %v9864_v21 = vld [vmem:[#allocation2 + $0xa8] sm:$0xe] }
 0x378   : > { %13065 = vmatprep.mubr.bf16.mxu1 %v19014_v62  ;;  %13096 = vmatmul.mubr.msk.bf16.gmra.mxu0 %vm813_vm3, %v13313_v38  ;;  %v7053_v41 = vadd.f32 %v6962_v5, %v19015_v1  ;;  %v18107_v34 = vpop.f32.mrf.mxu0  ;;  %v18110_v18 = vadd.f32 %v17921_v47, %v7055_v54  ;;  %v19020_v54 = vcombine.low %v17961_v9, %v17968_v7  ;;  %v11843_v57 = vrot.slane %v9864_v21, 9 }
 0x379   : > { %13099 = vmatprep.mubr.msk.bf16.mxu0 %vm813_vm3, %v13314_v52  ;;  %v12776_v30 = vpop.f32.mrf.mxu1  ;;  %v19019_v52 = vld [vmem:[#allocation29_spill] sm:$0xff]  ;;  %v19021_v1 = vcombine.low %v17987_v33, %v17991_v0 }
 0x37a   : > { %v7056_v36 = vadd.f32 %v12776_v30, %v19016_v46  ;;  %v18114_v19 = vpop.f32.mrf.mxu0  ;;  %v18118_v32 = vadd.f32 %v17940_v17, %v7053_v41  ;;  %v10004_v17 = vrot.slane %v10002_v58, 4  ;;  %v19022_v41 = vld [vmem:[#allocation23_spill] sm:$0xff]  ;;  %v19023_v46 = vld [vmem:[#allocation5_spill] sm:$0xff] }
 0x37b   : > { %v6965_v6 = vpop.f32.mrf.mxu1  ;;  %v10005_v9 = vrot.slane %v19023_v46, 5  ;;  %v19024_v33 = vld [vmem:[#allocation25_spill] sm:$0xff] }
 0x37c   : > { %v7054_v38 = vadd.f32 %v6965_v6, %v19018_v53  ;;  %v18122_v51 = vpop.f32.mrf.mxu0  ;;  %v18125_v47 = vadd.f32 %v17953_v35, %v7056_v36  ;;  %v10016_v53 = vrot.slane %v17750_v22, 5 }
 0x37d   : > { %v12779_v2 = vpop.f32.mrf.mxu1  ;;  %v10006_v6 = vsel %vm13750_vm7, %v10004_v17, %v10005_v9  ;;  %v19027_v9 = vld [vmem:[#allocation19_spill] sm:$0xff] }
 0x37e   : > { %v7059_v59 = vadd.f32 %v12779_v2, %v19019_v52  ;;  %v18132_v62 = vpop.f32.mrf.mxu0  ;;  %v18135_v5 = vadd.f32 %v17973_v44, %v7054_v38  ;;  %v19025_v52 = vld [vmem:[#allocation7_spill] sm:$0xff] }
 0x37f   : > { %13066 = vmatmul.mubr.bf16.gmra.mxu1 %v19020_v54  ;;  %v6978_v35 = vpop.f32.mrf.mxu1 }
 0x380   : > { %13069 = vmatprep.mubr.bf16.mxu1 %v19021_v1  ;;  %13100 = vmatmul.mubr.msk.bf16.gmra.mxu0 %vm813_vm3, %v13315_v13  ;;  %v7057_v30 = vadd.f32 %v6978_v35, %v19022_v41  ;;  %v18143_v7 = vpop.f32.mrf.mxu0  ;;  %v18146_v36 = vadd.f32 %v17983_v43, %v7059_v59  ;;  %v13317_v43 = vld [vmem:[%s17226_s10 + $0x58] sm:$0xff]   ;;  %v13318_v35 = vld [vmem:[%s17226_s10 + $0x60] sm:$0xff]   ;;  %v19026_v41 = vld [vmem:[#allocation17_spill] sm:$0xff] }
 0x381   : > { %13103 = vmatprep.mubr.msk.bf16.mxu0 %vm813_vm3, %v13316_v20  ;;  %v12780_v44 = vpop.f32.mrf.mxu1  ;;  %v10003_v20 = vsel %vm13750_vm7, %v11843_v57, %v10002_v58  ;;  %v19028_v57 = vld [vmem:[#allocation11_spill] sm:$0xff] }
 0x382   : > { %v7060_v0 = vadd.f32 %v12780_v44, %v19024_v33  ;;  %v18152_v13 = vpop.f32.mrf.mxu0  ;;  %v18156_v38 = vadd.f32 %v18005_v24, %v7057_v30  ;;  %v11875_v1 = vcombine.low %v10003_v20, %v10006_v6  ;;  %v10018_v24 = vrot.slane %v10016_v53, 4  ;;  %v13319_v20 = vld [vmem:[%s17226_s10 + $0x68] sm:$0xff]  }
 0x383   : > { %v6981_v2 = vpop.f32.mrf.mxu1  ;;  %v10019_v33 = vrot.slane %v19028_v57, 5 }
 0x384   : > { %v7058_v59 = vadd.f32 %v6981_v2, %v19025_v52  ;;  %v18162_v54 = vpop.f32.mrf.mxu0  ;;  %v18165_v21 = vadd.f32 %v18015_v8, %v7060_v0  ;;  %v9866_v8 = vld [vmem:[#allocation2 + $0xc0] sm:$0xe] }
 0x385   : > { %v12783_v17 = vpop.f32.mrf.mxu1  ;;  %v11845_v6 = vrot.slane %v9866_v8, 9  ;;  %v10020_v2 = vsel %vm13750_vm7, %v10018_v24, %v10019_v33  ;;  %v19030_v8 = vld [vmem:[#allocation24_spill] sm:$0xff]  ;;  %v13321_v33 = vld [vmem:[%s17226_s10 + $0x78] sm:$0xff]  }
 0x386   : > { %v7063_v22 = vadd.f32 %v12783_v17, %v19026_v41  ;;  %v18172_v30 = vpop.f32.mrf.mxu0  ;;  %v18175_v46 = vadd.f32 %v18031_v61, %v7058_v59 }
 0x387   : > { %13070 = vmatmul.mubr.bf16.gmra.mxu1 %v11874_v16  ;;  %v6994_v58 = vpop.f32.mrf.mxu1  ;;  %v19029_v16 = vld [vmem:[#allocation28_spill] sm:$0xff] }
 0x388   : > { %13073 = vmatprep.mubr.bf16.mxu1 %v11875_v1  ;;  %13104 = vmatmul.mubr.msk.bf16.gmra.mxu0 %vm813_vm3, %v13317_v43  ;;  %v7061_v44 = vadd.f32 %v6994_v58, %v19027_v9  ;;  %v7415_v0 = vpop.f32.mrf.mxu0  ;;  %v18181_v11 = vadd.f32 %v18046_v29, %v7063_v22  ;;  %v10017_v29 = vsel %vm13750_vm7, %v11845_v6, %v10016_v53  ;;  %v13320_v58 = vld [vmem:[%s17226_s10 + $0x70] sm:$0xff]  }
 0x389   : > { %13107 = vmatprep.mubr.msk.bf16.mxu0 %vm813_vm3, %v13318_v35  ;;  %v12784_v39 = vpop.f32.mrf.mxu1  ;;  %v11877_v22 = vcombine.low %v10017_v29, %v10020_v2 }
 0x38a   : > { %v7064_v61 = vadd.f32 %v12784_v39, %v19029_v16  ;;  %v18188_v43 = vadd.f32 %v18070_v15, %v7061_v44  ;;  %v19032_v39 = vld [vmem:[#allocation34_spill] sm:$0xff] }
 0x38b   : > { %v12907_v52 = vpop.f32.mrf.mxu0  ;;  %v6997_v59 = vpop.f32.mrf.mxu1 }
 0x38c   : > { %v7062_v17 = vadd.f32 %v6997_v59, %v17785_v10  ;;  %v18195_v35 = vadd.f32 %v18097_v14, %v7064_v61  ;;  %v19031_v14 = vld [vmem:[#allocation30_spill] sm:$0xff] }
 0x38d   : > { %v8552_v1 = vpop.f32.mrf.mxu0 }
 0x38e   : > { %v12787_v41 = vpop.f32.mrf.mxu1  ;;  %v18203_v10 = vadd.f32 %v18107_v34, %v7062_v17  ;;  %v19034_v17 = vld [vmem:[#allocation35_spill] sm:$0xff] }
 0x38f   : > { %v7067_v24 = vadd.f32 %v12787_v41, %v19030_v8  ;;  %13074 = vmatmul.mubr.bf16.gmra.mxu1 %v11876_v48  ;;  %v12908_v15 = vpop.f32.mrf.mxu0 }
 0x390   : > { %13077 = vmatprep.mubr.bf16.mxu1 %v11877_v22  ;;  %v7010_v27 = vpop.f32.mrf.mxu1  ;;  %13108 = vmatmul.mubr.msk.bf16.gmra.mxu0 %vm813_vm3, %v13319_v20 }
 0x391   : > { %v7065_v53 = vadd.f32 %v7010_v27, %v19031_v14  ;;  %v8555_v9 = vpop.f32.mrf.mxu0  ;;  %v18208_v44 = vadd.f32 %v18114_v19, %v7067_v24  ;;  %13111 = vmatprep.mubr.msk.bf16.mxu0 %vm813_vm3, %v13320_v58  ;;  %v19033_v19 = vld [vmem:[#allocation3_spill] sm:$0xff]  ;;  %v19035_v58 = vld [vmem:[#allocation36_spill] sm:$0xff] }
 0x392   : > { %v12788_v57 = vpop.f32.mrf.mxu1 }
 0x393   : > { %v7068_v60 = vadd.f32 %v12788_v57, %v17811_v55  ;;  %v12911_v56 = vpop.f32.mrf.mxu0  ;;  %v18213_v48 = vadd.f32 %v18122_v51, %v7065_v53 }
 0x394   : > { %v7013_v34 = vpop.f32.mrf.mxu1 }
 0x395   : > { %v7066_v16 = vadd.f32 %v7013_v34, %v19032_v39  ;;  %v8568_v61 = vpop.f32.mrf.mxu0  ;;  %v18218_v6 = vadd.f32 %v18132_v62, %v7068_v60 }
 0x397   : > { %v12791_v2 = vpop.f32.mrf.mxu1  ;;  %13078 = vmatmul.mubr.bf16.gmra.mxu1 %v11878_v28  ;;  %v12912_v55 = vpop.f32.mrf.mxu0  ;;  %v18225_v20 = vadd.f32 %v18143_v7, %v7066_v16  ;;  %v19036_v28 = vld [vmem:[#allocation37_spill] sm:$0xff] }
 0x398   : > { %v7071_v59 = vadd.f32 %v12791_v2, %v19033_v19  ;;  %13112 = vmatmul.mubr.msk.bf16.gmra.mxu0 %vm813_vm3, %v13321_v33 }
 0x399   : > { %v7026_v51 = vpop.f32.mrf.mxu1  ;;  %v8571_v41 = vpop.f32.mrf.mxu0 }
 0x39a   : > { %v7069_v29 = vadd.f32 %v7026_v51, %v19034_v17  ;;  %v18230_v62 = vadd.f32 %v18152_v13, %v7071_v59 }
 0x39b   : > { %v12792_v22 = vpop.f32.mrf.mxu1  ;;  %v12915_v24 = vpop.f32.mrf.mxu0 }
 0x39c   : > { %v7072_v8 = vadd.f32 %v12792_v22, %v19035_v58  ;;  %v18234_v25 = vadd.f32 %v18162_v54, %v7069_v29 }
 0x39d   : > { %v7029_v49 = vpop.f32.mrf.mxu1  ;;  %v8584_v27 = vpop.f32.mrf.mxu0 }
 0x39e   : > { %v7070_v7 = vadd.f32 %v7029_v49, %v19036_v28  ;;  %v18238_v14 = vadd.f32 %v18172_v30, %v7072_v8 }
 0x39f   : > { %v12859_v53 = vpop.f32.mrf.mxu1  ;;  %v12916_v60 = vpop.f32.mrf.mxu0 }
 0x3a0   : > { %v8183_v57 = vadd.f32 %v12859_v53, %v18043_v23  ;;  %v18241_v13 = vadd.f32 %v7415_v0, %v7070_v7 }
 0x3a1   : > { %v8054_v34 = vpop.f32.mrf.mxu1  ;;  %v8587_v39 = vpop.f32.mrf.mxu0 }
 0x3a2   : > { %v8181_v33 = vadd.f32 %v8054_v34, %v18050_v37  ;;  %v18244_v16 = vadd.f32 %v12907_v52, %v8183_v57 }
 0x3a3   : > { %v12860_v54 = vpop.f32.mrf.mxu1  ;;  %v12919_v19 = vpop.f32.mrf.mxu0 }
 0x3a4   : > { %v8184_v2 = vadd.f32 %v12860_v54, %v18054_v4  ;;  %v18247_v59 = vadd.f32 %v8552_v1, %v8181_v33 }
 0x3a5   : > { %v8057_v30 = vpop.f32.mrf.mxu1  ;;  %v8600_v17 = vpop.f32.mrf.mxu0 }
 0x3a6   : > { %v8182_v51 = vadd.f32 %v8057_v30, %v18062_v42  ;;  %v18250_v23 = vadd.f32 %v12908_v15, %v8184_v2 }
 0x3a7   : > { %v12863_v0 = vpop.f32.mrf.mxu1  ;;  %v12920_v22 = vpop.f32.mrf.mxu0 }
 0x3a8   : > { %v8187_v29 = vadd.f32 %v12863_v0, %v18066_v45  ;;  %v18253_v37 = vadd.f32 %v8555_v9, %v8182_v51 }
 0x3a9   : > { %v8070_v52 = vpop.f32.mrf.mxu1  ;;  %v8603_v8 = vpop.f32.mrf.mxu0 }
 0x3aa   : > { %v8185_v58 = vadd.f32 %v8070_v52, %v18075_v50  ;;  %v18256_v4 = vadd.f32 %v12911_v56, %v8187_v29 }
 0x3ab   : > { %v12864_v1 = vpop.f32.mrf.mxu1  ;;  %v12923_v28 = vpop.f32.mrf.mxu0 }
 0x3ac   : > { %v8188_v49 = vadd.f32 %v12864_v1, %v18078_v3  ;;  %v18259_v42 = vadd.f32 %v8568_v61, %v8185_v58 }
 0x3ad   : > { %v8073_v15 = vpop.f32.mrf.mxu1  ;;  %v8616_v53 = vpop.f32.mrf.mxu0 }
 0x3ae   : > { %v8186_v7 = vadd.f32 %v8073_v15, %v18082_v40  ;;  %v18262_v45 = vadd.f32 %v12912_v55, %v8188_v49 }
 0x3af   : > { %v12867_v9 = vpop.f32.mrf.mxu1  ;;  %v12924_v34 = vpop.f32.mrf.mxu0 }
 0x3b0   : > { %v8191_v57 = vadd.f32 %v12867_v9, %v18085_v26  ;;  %v18265_v50 = vadd.f32 %v8571_v41, %v8186_v7 }
 0x3b1   : > { %v8086_v56 = vpop.f32.mrf.mxu1  ;;  %v8619_v54 = vpop.f32.mrf.mxu0 }
 0x3b2   : > { %v8189_v33 = vadd.f32 %v8086_v56, %v18088_v31  ;;  %v18268_v3 = vadd.f32 %v12915_v24, %v8191_v57 }
 0x3b3   : > { %v12868_v61 = vpop.f32.mrf.mxu1  ;;  %v12927_v30 = vpop.f32.mrf.mxu0 }
 0x3b4   : > { %v8192_v2 = vadd.f32 %v12868_v61, %v18091_v12  ;;  %v18271_v40 = vadd.f32 %v8584_v27, %v8189_v33 }
 0x3b5   : > { %v8089_v55 = vpop.f32.mrf.mxu1  ;;  %v8632_v0 = vpop.f32.mrf.mxu0 }
 0x3b6   : > { %v8190_v51 = vadd.f32 %v8089_v55, %v18100_v63  ;;  %v18274_v26 = vadd.f32 %v12916_v60, %v8192_v2 }
 0x3b7   : > { %v12871_v41 = vpop.f32.mrf.mxu1  ;;  %v12928_v52 = vpop.f32.mrf.mxu0 }
 0x3b8   : > { %v8195_v29 = vadd.f32 %v12871_v41, %v18110_v18  ;;  %v18277_v31 = vadd.f32 %v8587_v39, %v8190_v51 }
 0x3b9   : > { %v8102_v24 = vpop.f32.mrf.mxu1  ;;  %v8635_v1 = vpop.f32.mrf.mxu0 }
 0x3ba   : > { %v8193_v58 = vadd.f32 %v8102_v24, %v18118_v32  ;;  %v18280_v12 = vadd.f32 %v12919_v19, %v8195_v29 }
 0x3bb   : > { %v12872_v27 = vpop.f32.mrf.mxu1  ;;  %v12931_v15 = vpop.f32.mrf.mxu0 }
 0x3bc   : > { %v8196_v49 = vadd.f32 %v12872_v27, %v18125_v47  ;;  %v18283_v63 = vadd.f32 %v8600_v17, %v8193_v58 }
 0x3bd   : > { %v8105_v60 = vpop.f32.mrf.mxu1  ;;  %v8648_v9 = vpop.f32.mrf.mxu0 }
 0x3be   : > { %v8194_v7 = vadd.f32 %v8105_v60, %v18135_v5  ;;  %v18286_v18 = vadd.f32 %v12920_v22, %v8196_v49 }
 0x3bf   : > { %v12875_v39 = vpop.f32.mrf.mxu1  ;;  %v12932_v56 = vpop.f32.mrf.mxu0 }
 0x3c0   : > { %v8199_v57 = vadd.f32 %v12875_v39, %v18146_v36  ;;  %v18289_v32 = vadd.f32 %v8603_v8, %v8194_v7 }
 0x3c1   : > { %v8118_v19 = vpop.f32.mrf.mxu1  ;;  %v8651_v61 = vpop.f32.mrf.mxu0 }
 0x3c2   : > { %v8197_v33 = vadd.f32 %v8118_v19, %v18156_v38  ;;  %v18292_v47 = vadd.f32 %v12923_v28, %v8199_v57 }
 0x3c3   : > { %v12876_v17 = vpop.f32.mrf.mxu1  ;;  %v12935_v22 = vpop.f32.mrf.mxu0 }
 0x3c4   : > { %v8200_v2 = vadd.f32 %v12876_v17, %v18165_v21  ;;  %v18295_v55 = vadd.f32 %v8616_v53, %v8197_v33 }
 0x3c5   : > { %v8121_v5 = vpop.f32.mrf.mxu1  ;;  %v8664_v24 = vpop.f32.mrf.mxu0 }
 0x3c6   : > { %v8198_v51 = vadd.f32 %v8121_v5, %v18175_v46  ;;  %v18298_v41 = vadd.f32 %v12924_v34, %v8200_v2 }
 0x3c7   : > { %v12879_v36 = vpop.f32.mrf.mxu1  ;;  %v12936_v46 = vpop.f32.mrf.mxu0 }
 0x3c8   : > { %v8203_v8 = vadd.f32 %v12879_v36, %v18181_v11  ;;  %v18301_v29 = vadd.f32 %v8619_v54, %v8198_v51 }
 0x3c9   : > { %v8134_v38 = vpop.f32.mrf.mxu1 }
 0x3ca   : > { %19037 = vst [vmem:[#allocation16_spill] sm:$0xff] %v18301_v29  ;;  %v8201_v28 = vadd.f32 %v8134_v38, %v18188_v43  ;;  %v18304_v58 = vadd.f32 %v12927_v30, %v8203_v8  ;;  %v8667_v43 = vpop.f32.mrf.mxu0 }
 0x3cb   : > { %v12880_v21 = vpop.f32.mrf.mxu1 }
 0x3cc   : > { %19038 = vst [vmem:[#allocation14_spill] sm:$0xff] %v18304_v58  ;;  %v8204_v53 = vadd.f32 %v12880_v21, %v18195_v35  ;;  %v18307_v27 = vadd.f32 %v8632_v0, %v8201_v28 }
 0x3cd   : > { %v8137_v49 = vpop.f32.mrf.mxu1 }
 0x3ce   : > { %19039 = vst [vmem:[#allocation32_spill] sm:$0xff] %v18307_v27  ;;  %v8202_v34 = vadd.f32 %v8137_v49, %v18203_v10  ;;  %v18310_v60 = vadd.f32 %v12928_v52, %v8204_v53 }
 0x3cf   : > { %v12883_v11 = vpop.f32.mrf.mxu1 }
 0x3d0   : > { %19040 = vst [vmem:[#allocation26_spill] sm:$0xff] %v18310_v60  ;;  %v8207_v54 = vadd.f32 %v12883_v11, %v18208_v44  ;;  %v18313_v7 = vadd.f32 %v8635_v1, %v8202_v34 }
 0x3d1   : > { %v8150_v39 = vpop.f32.mrf.mxu1 }
 0x3d2   : > { %19041 = vst [vmem:[#allocation20_spill] sm:$0xff] %v18313_v7  ;;  %v8205_v30 = vadd.f32 %v8150_v39, %v18213_v48  ;;  %v18316_v57 = vadd.f32 %v12931_v15, %v8207_v54 }
 0x3d3   : > { %v12884_v35 = vpop.f32.mrf.mxu1  ;;  %v18321_v10 = vpop.f32.mrf.mxu0 }
 0x3d4   : > { %19042 = vst [vmem:[#allocation21_spill] sm:$0xff] %v18316_v57  ;;  %v8208_v0 = vadd.f32 %v12884_v35, %v18218_v6  ;;  %v18319_v19 = vadd.f32 %v8648_v9, %v8205_v30 }
 0x3d5   : > { %v8153_v33 = vpop.f32.mrf.mxu1  ;;  %v18326_v44 = vpop.f32.mrf.mxu0 }
 0x3d6   : > { %19043 = vst [vmem:[#allocation12_spill] sm:$0xff] %v18319_v19  ;;  %v8206_v52 = vadd.f32 %v8153_v33, %v18225_v20  ;;  %v18324_v17 = vadd.f32 %v12932_v56, %v8208_v0 }
 0x3d7   : > { %v12887_v1 = vpop.f32.mrf.mxu1  ;;  %v18331_v5 = vpop.f32.mrf.mxu0 }
 0x3d8   : > { %19044 = vst [vmem:[#allocation33_spill] sm:$0xff] %v18324_v17  ;;  %v18328_v2 = vadd.f32 %v8651_v61, %v8206_v52  ;;  %v8211_v48 = vadd.f32 %v12887_v1, %v18230_v62 }
 0x3d9   : > { %v8166_v15 = vpop.f32.mrf.mxu1  ;;  %v18339_v56 = vpop.f32.mrf.mxu0 }
 0x3da   : > { %19045 = vst [vmem:[#allocation31_spill] sm:$0xff] %v18328_v2  ;;  %v8209_v6 = vadd.f32 %v8166_v15, %v18234_v25  ;;  %v18334_v9 = vadd.f32 %v12935_v22, %v8211_v48 }
 0x3db   : > { %v12888_v51 = vpop.f32.mrf.mxu1 }
 0x3dc   : > { %19046 = vst [vmem:[#allocation9_spill] sm:$0xff] %v18334_v9  ;;  %v8212_v36 = vadd.f32 %v12888_v51, %v18238_v14  ;;  %v18337_v20 = vadd.f32 %v8664_v24, %v8209_v6 }
 0x3dd   : > { %v8169_v8 = vpop.f32.mrf.mxu1 }
 0x3de   : > { %19047 = vst [vmem:[#allocation15_spill] sm:$0xff] %v18337_v20  ;;  %v8210_v61 = vadd.f32 %v8169_v8, %v18241_v13  ;;  %v18342_v38 = vadd.f32 %v12936_v46, %v8212_v36 }
 0x3df   : > { %v12955_v62 = vpop.f32.mrf.mxu1 }
 0x3e0   : > { %19048 = vst [vmem:[#allocation6_spill] sm:$0xff] %v18342_v38  ;;  %v18344_v28 = vadd.f32 %v8667_v43, %v8210_v61 }
 0x3e1   : > { %v18346_v21 = vpop.f32.mrf.mxu0  ;;  %v8939_v25 = vpop.f32.mrf.mxu1 }
 0x3e2   : > { %19049 = vst [vmem:[#allocation22_spill] sm:$0xff] %v18344_v28 }
 0x3e3   : > { %v18348_v22 = vpop.f32.mrf.mxu0  ;;  %v12956_v53 = vpop.f32.mrf.mxu1 }
 0x3e5   : > { %v18350_v49 = vpop.f32.mrf.mxu0  ;;  %v8942_v14 = vpop.f32.mrf.mxu1 }
 0x3e7   : > { %v18352_v24 = vpop.f32.mrf.mxu0  ;;  %v18354_v34 = vpop.f32.mrf.mxu1 }
 0x3e9   : > { %v18356_v11 = vpop.f32.mrf.mxu1  ;;  %v18358_v13 = vpop.f32.mrf.mxu0 }
 0x3eb   : > { %v18360_v46 = vpop.f32.mrf.mxu1  ;;  %v18362_v54 = vpop.f32.mrf.mxu0 }
 0x3ed   : > { %v18364_v39 = vpop.f32.mrf.mxu1  ;;  %v18366_v43 = vpop.f32.mrf.mxu0 }
 0x3ef   : > { %v18368_v30 = vpop.f32.mrf.mxu1  ;;  %v18370_v35 = vpop.f32.mrf.mxu0 }
 0x3f1   : > { %v18372_v0 = vpop.f32.mrf.mxu1 }
 0x3f2   : > { %v18374_v33 = vpop.f32.mrf.mxu0 }
 0x3f3   : > { %v18376_v52 = vpop.f32.mrf.mxu1 }
 0x3f4   : > { %v18378_v1 = vpop.f32.mrf.mxu0 }
 0x3f5   : > { %v18380_v48 = vpop.f32.mrf.mxu1 }
 0x3f6   : > { %v18382_v15 = vpop.f32.mrf.mxu0 }
 0x3f7   : > { %v18384_v6 = vpop.f32.mrf.mxu1 }
 0x3f8   : > { %v18386_v51 = vpop.f32.mrf.mxu0 }
 0x3f9   : > { %v18388_v36 = vpop.f32.mrf.mxu1 }
 0x3fb   : > { %v18390_v8 = vpop.f32.mrf.mxu1 }
 0x3fc   : > { %v18392_v61 = vpop.f32.mrf.mxu0 }
 0x3fd   : > { %19050 = vst [vmem:[#allocation18_spill] sm:$0xff] %v18392_v61  ;;  %v18394_v28 = vpop.f32.mrf.mxu1 }
 0x3fe   : > { %v18396_v38 = vpop.f32.mrf.mxu0 }
 0x3ff   : > { %19051 = vst [vmem:[#allocation8_spill] sm:$0xff] %v18396_v38  ;;  %v18398_v20 = vpop.f32.mrf.mxu1 }
 0x400   : > { %v18400_v9 = vpop.f32.mrf.mxu0 }
 0x401   : > { %19052 = vst [vmem:[#allocation4_spill] sm:$0xff] %v18400_v9  ;;  %v18402_v2 = vpop.f32.mrf.mxu1 }
 0x402   : > { %v18404_v17 = vpop.f32.mrf.mxu0 }
 0x403   : > { %19053 = vst [vmem:[#allocation27_spill] sm:$0xff] %v18404_v17  ;;  %v18406_v19 = vpop.f32.mrf.mxu1 }
 0x404   : > { %19054 = vst [vmem:[#allocation10_spill] sm:$0xff] %v18406_v19 }
 0x405   : > { %v18408_v57 = vpop.f32.mrf.mxu1 }
 0x406   : > { %19055 = vst [vmem:[#allocation13_spill] sm:$0xff] %v18408_v57  ;;  %v18410_v7 = vpop.f32.mrf.mxu0 }
 0x407   : > { %19056 = vst [vmem:[#allocation29_spill] sm:$0xff] %v18410_v7  ;;  %v18412_v60 = vpop.f32.mrf.mxu1 }
 0x408   : > { %19057 = vst [vmem:[#allocation23_spill] sm:$0xff] %v18412_v60  ;;  %v18414_v27 = vpop.f32.mrf.mxu0 }
 0x409   : > { %19058 = vst [vmem:[#allocation5_spill] sm:$0xff] %v18414_v27  ;;  %v18416_v58 = vpop.f32.mrf.mxu1 }
 0x40a   : > { %19059 = vst [vmem:[#allocation25_spill] sm:$0xff] %v18416_v58  ;;  %v18418_v29 = vpop.f32.mrf.mxu0 }
 0x40b   : > { %19060 = vst [vmem:[#allocation7_spill] sm:$0xff] %v18418_v29  ;;  %v18420_v38 = vpop.f32.mrf.mxu1 }
 0x40c   : > { %19061 = vst [vmem:[#allocation17_spill] sm:$0xff] %v18420_v38  ;;  %v18422_v9 = vpop.f32.mrf.mxu0 }
 0x40d   : > { %19062 = vst [vmem:[#allocation19_spill] sm:$0xff] %v18422_v9  ;;  %v18424_v61 = vpop.f32.mrf.mxu1 }
 0x40e   : > { %19063 = vst [vmem:[#allocation11_spill] sm:$0xff] %v18424_v61 }
 0x40f   : > { %v18426_v17 = vpop.f32.mrf.mxu0  ;;  %v18428_v19 = vpop.f32.mrf.mxu1 }
 0x410   : > { %19064 = vst [vmem:[#allocation28_spill] sm:$0xff] %v18426_v17  ;;  %19065 = vst [vmem:[#allocation24_spill] sm:$0xff] %v18428_v19  ;;  %v9068_v17 = vadd.f32 %v12955_v62, %v18244_v16  ;;  %v9067_v16 = vadd.f32 %v8942_v14, %v18253_v37  ;;  %v9070_v37 = vadd.f32 %v18356_v11, %v18259_v42 }
 0x411   : > { %v18430_v57 = vpop.f32.mrf.mxu0  ;;  %v18432_v7 = vpop.f32.mrf.mxu1 }
 0x412   : > { %19066 = vst [vmem:[#allocation30_spill] sm:$0xff] %v18430_v57  ;;  %19067 = vst [vmem:[#allocation34_spill] sm:$0xff] %v18432_v7 }
 0x413   : > { %v18434_v60 = vpop.f32.mrf.mxu0  ;;  %v18436_v27 = vpop.f32.mrf.mxu1 }
 0x414   : > { %19068 = vst [vmem:[#allocation3_spill] sm:$0xff] %v18434_v60  ;;  %19069 = vst [vmem:[#allocation35_spill] sm:$0xff] %v18436_v27  ;;  %v9066_v60 = vadd.f32 %v8939_v25, %v18247_v59  ;;  %v18467_v59 = vld [vmem:[%s18669_s4] ss:$0 sm:$0xff] }
 0x415   : > { %v18438_v58 = vpop.f32.mrf.mxu1  ;;  %v18440_v29 = vpop.f32.mrf.mxu0 }
 0x416   : > { %19070 = vst [vmem:[#allocation36_spill] sm:$0xff] %v18438_v58  ;;  %19071 = vst [vmem:[#allocation37_spill] sm:$0xff] %v18440_v29  ;;  %v9069_v29 = vadd.f32 %v12956_v53, %v18250_v23 }
 0x417   : > { %v18442_v38 = vpop.f32.mrf.mxu1 }
 0x418   : > { %19072 = vst [vmem:[#allocation38_spill] sm:$0xff] %v18442_v38  ;;  %v18444_v9 = vpop.f32.mrf.mxu0  ;;  %v9822_v38 = vadd.f32 %v18321_v10, %v9068_v17  ;;  %v9823_v10 = vadd.f32 %v18331_v5, %v9069_v29  ;;  %v9072_v17 = vadd.f32 %v18354_v34, %v18256_v4  ;;  %v9821_v29 = vadd.f32 %v18339_v56, %v9067_v16 }
 0x419   : > { %19073 = vst [vmem:[#allocation39_spill] sm:$0xff] %v18444_v9  ;;  %v18446_v61 = vpop.f32.mrf.mxu1  ;;  %v9073_v4 = vadd.f32 %v18360_v46, %v18262_v45  ;;  %v9824_v46 = vadd.f32 %v18348_v22, %v9070_v37 }
 0x41a   : > { %v18449_v19 = vpop.f32.mrf.mxu0  ;;  %v9826_v45 = vadd.f32 %v18346_v21, %v9072_v17 }
 0x41b   : > { %19074 = vst [vmem:[#allocation40_spill] sm:$0xff] %v18449_v19  ;;  %v18451_v57 = vpop.f32.mrf.mxu1  ;;  %v9820_v19 = vadd.f32 %v18326_v44, %v9066_v60  ;;  %v18477_v60 = vld [vmem:[%s18672_s7] ss:$0 sm:$0xff] }
 0x41c   : > { %19075 = vst [vmem:[#allocation41_spill] sm:$0xff] %v18451_v57  ;;  %v18454_v7 = vpop.f32.mrf.mxu0 }
 0x41d   : > { %19076 = vst [vmem:[#allocation42_spill] sm:$0xff] %v18454_v7  ;;  %v18456_v27 = vpop.f32.mrf.mxu1 }
 0x41e   : > { %v18460_v58 = vpop.f32.mrf.mxu0 }
 0x41f   : > { %v13051_v9 = vpop.f32.mrf.mxu1 }
 0x420   : > { %v10320_v62 = vadd.f32 %v13051_v9, %v9822_v38  ;;  %v13085_v57 = vpop.f32.mrf.mxu0 }
 0x421   : > { %v10191_v25 = vpop.f32.mrf.mxu1 }
 0x422   : > { %v10677_v7 = vadd.f32 %v13085_v57, %v10320_v62  ;;  %v10318_v23 = vadd.f32 %v10191_v25, %v9820_v19  ;;  %v10548_v9 = vpop.f32.mrf.mxu0  ;;  %v9071_v62 = vadd.f32 %v18364_v39, %v18265_v50  ;;  %v9076_v50 = vadd.f32 %v18368_v30, %v18268_v3 }
 0x423   : > { %v13052_v44 = vpop.f32.mrf.mxu1 }
 0x424   : > { %v10716_v38 = vadd.f32 %v18467_v59, %v10677_v7  ;;  %v10675_v57 = vadd.f32 %v10548_v9, %v10318_v23  ;;  %v10321_v19 = vadd.f32 %v13052_v44, %v9823_v10  ;;  %v13086_v5 = vpop.f32.mrf.mxu0 }
 0x425   : > { %v10194_v53 = vpop.f32.mrf.mxu1 }
 0x426   : > { %v10755_v42 = vadd.f32 %v18477_v60, %v10716_v38  ;;  %v10714_v14 = vadd.f32 %v18467_v59, %v10675_v57  ;;  %v10678_v34 = vadd.f32 %v13086_v5, %v10321_v19  ;;  %v10319_v11 = vadd.f32 %v10194_v53, %v9821_v29  ;;  %v10551_v7 = vpop.f32.mrf.mxu0 }
 0x427   : > { %v13055_v56 = vpop.f32.mrf.mxu1  ;;  %v9827_v38 = vadd.f32 %v18350_v49, %v9073_v4  ;;  %v9825_v5 = vadd.f32 %v18352_v24, %v9071_v62  ;;  %v9074_v49 = vadd.f32 %v18372_v0, %v18271_v40  ;;  %v9077_v4 = vadd.f32 %v18376_v52, %v18274_v26 }
 0x428   : > { %v10787_v16 = vmax.f32 %v10755_v42, 0.0  ;;  %v10753_v25 = vadd.f32 %v18477_v60, %v10714_v14  ;;  %v10717_v23 = vadd.f32 %v18467_v59, %v10678_v34  ;;  %v10676_v10 = vadd.f32 %v10551_v7, %v10319_v11  ;;  %v13089_v39 = vpop.f32.mrf.mxu0 }
 0x429   : > { %v10324_v9 = vadd.f32 %v13055_v56, %v9826_v45  ;;  %v10207_v44 = vpop.f32.mrf.mxu1  ;;  %v9830_v7 = vadd.f32 %v18358_v13, %v9076_v50 }
 0x42a   : > { %10819 = vst [vmem:[%s18491_s14 + $0x10] sm:$0xff] %v10787_v16  ;;  %v10785_v21 = vmax.f32 %v10753_v25, 0.0  ;;  %v10756_v17 = vadd.f32 %v18477_v60, %v10717_v23  ;;  %v10715_v22 = vadd.f32 %v18467_v59, %v10676_v10  ;;  %v10322_v37 = vadd.f32 %v10207_v44, %v9824_v46  ;;  %v10564_v57 = vpop.f32.mrf.mxu0 }
 0x42b   : > { %v10681_v19 = vadd.f32 %v13089_v39, %v10324_v9  ;;  %v13056_v29 = vpop.f32.mrf.mxu1  ;;  %v9075_v46 = vadd.f32 %v18380_v48, %v18277_v31  ;;  %v9080_v23 = vadd.f32 %v18384_v6, %v18280_v12  ;;  %v9828_v31 = vadd.f32 %v18362_v54, %v9074_v49 }
 0x42c   : > { %10817 = vst [vmem:[%s18491_s14] sm:$0xff] %v10785_v21  ;;  %v10788_v3 = vmax.f32 %v10756_v17, 0.0  ;;  %v10754_v30 = vadd.f32 %v18477_v60, %v10715_v22  ;;  %v10679_v53 = vadd.f32 %v10564_v57, %v10322_v37  ;;  %v10325_v42 = vadd.f32 %v13056_v29, %v9827_v38  ;;  %v13090_v34 = vpop.f32.mrf.mxu0 }
 0x42d   : > { %v10720_v14 = vadd.f32 %v18467_v59, %v10681_v19  ;;  %v10210_v11 = vpop.f32.mrf.mxu1  ;;  %v9831_v39 = vadd.f32 %v18366_v43, %v9077_v4  ;;  %v9078_v17 = vadd.f32 %v18388_v36, %v18283_v63  ;;  %v9829_v37 = vadd.f32 %v18370_v35, %v9075_v46 }
 0x42e   : > { %10820 = vst [vmem:[%s18491_s14 + $0x18] sm:$0xff] %v10788_v3  ;;  %v10786_v24 = vmax.f32 %v10754_v30, 0.0  ;;  %v10718_v62 = vadd.f32 %v18467_v59, %v10679_v53  ;;  %v10682_v45 = vadd.f32 %v13090_v34, %v10325_v42  ;;  %v10323_v56 = vadd.f32 %v10210_v11, %v9825_v5  ;;  %v10567_v0 = vpop.f32.mrf.mxu0 }
 0x42f   : > { %v10759_v40 = vadd.f32 %v18477_v60, %v10720_v14  ;;  %v13059_v16 = vpop.f32.mrf.mxu1  ;;  %v9834_v30 = vadd.f32 %v18374_v33, %v9080_v23  ;;  %v9081_v35 = vadd.f32 %v18390_v8, %v18286_v18  ;;  %v9079_v49 = vadd.f32 %v18394_v28, %v18289_v32 }
 0x430   : > { %10818 = vst [vmem:[%s18491_s14 + $0x8] sm:$0xff] %v10786_v24  ;;  %v10757_v26 = vadd.f32 %v18477_v60, %v10718_v62  ;;  %v10721_v52 = vadd.f32 %v18467_v59, %v10682_v45  ;;  %v10680_v13 = vadd.f32 %v10567_v0, %v10323_v56  ;;  %v10328_v25 = vadd.f32 %v13059_v16, %v9830_v7  ;;  %v13093_v50 = vpop.f32.mrf.mxu0 }
 0x431   : > { %v10791_v10 = vmax.f32 %v10759_v40, 0.0  ;;  %v10223_v48 = vpop.f32.mrf.mxu1  ;;  %v9832_v11 = vadd.f32 %v18378_v1, %v9078_v17  ;;  %v9084_v45 = vadd.f32 %v18398_v20, %v18292_v47  ;;  %v9082_v40 = vadd.f32 %v18402_v2, %v18295_v55 }
 0x432   : > { %v10789_v9 = vmax.f32 %v10757_v26, 0.0  ;;  %v10760_v44 = vadd.f32 %v18477_v60, %v10721_v52  ;;  %v10719_v38 = vadd.f32 %v18467_v59, %v10680_v13  ;;  %v10685_v21 = vadd.f32 %v13093_v50, %v10328_v25  ;;  %v10580_v12 = vpop.f32.mrf.mxu0 }
 0x433   : > { %10823 = vst [vmem:[%s18491_s14 + $0x30] sm:$0xff] %v10791_v10  ;;  %v10326_v6 = vadd.f32 %v10223_v48, %v9828_v31  ;;  %v13060_v22 = vpop.f32.mrf.mxu1  ;;  %v9835_v47 = vadd.f32 %v18382_v15, %v9081_v35  ;;  %v9833_v26 = vadd.f32 %v18386_v51, %v9079_v49  ;;  %v19077_v10 = vld [vmem:[#allocation10_spill] sm:$0xff] }
 0x434   : > { %10821 = vst [vmem:[%s18491_s14 + $0x20] sm:$0xff] %v10789_v9  ;;  %v10792_v54 = vmax.f32 %v10760_v44, 0.0  ;;  %v10758_v43 = vadd.f32 %v18477_v60, %v10719_v38  ;;  %v10724_v57 = vadd.f32 %v18467_v59, %v10685_v21  ;;  %v10329_v19 = vadd.f32 %v13060_v22, %v9831_v39  ;;  %v13094_v29 = vpop.f32.mrf.mxu0  ;;  %v19078_v48 = vld [vmem:[#allocation18_spill] sm:$0xff] }
 0x435   : > { %v10683_v5 = vadd.f32 %v10580_v12, %v10326_v6  ;;  %v10226_v3 = vpop.f32.mrf.mxu1  ;;  %v9085_v50 = vadd.f32 %v19077_v10, %v18298_v41  ;;  %v9838_v39 = vadd.f32 %v19078_v48, %v9084_v45  ;;  %v19079_v12 = vld [vmem:[#allocation8_spill] sm:$0xff] }
 0x436   : > { %10824 = vst [vmem:[%s18491_s14 + $0x38] sm:$0xff] %v10792_v54  ;;  %v10790_v63 = vmax.f32 %v10758_v43, 0.0  ;;  %v10763_v36 = vadd.f32 %v18477_v60, %v10724_v57  ;;  %v10686_v53 = vadd.f32 %v13094_v29, %v10329_v19  ;;  %v10327_v42 = vadd.f32 %v10226_v3, %v9829_v37  ;;  %v10583_v14 = vpop.f32.mrf.mxu0  ;;  %v19080_v43 = vld [vmem:[#allocation16_spill] sm:$0xff]  ;;  %v19081_v57 = vld [vmem:[#allocation13_spill] sm:$0xff]  ;;  %v19082_v29 = vld [vmem:[#allocation14_spill] sm:$0xff] }
 0x437   : > { %v10722_v4 = vadd.f32 %v18467_v59, %v10683_v5  ;;  %v13063_v34 = vpop.f32.mrf.mxu1  ;;  %v9836_v6 = vadd.f32 %v19079_v12, %v9082_v40  ;;  %v9083_v19 = vadd.f32 %v19081_v57, %v19080_v43  ;;  %v19083_v5 = vld [vmem:[#allocation23_spill] sm:$0xff]  ;;  %v19091_v10 = vld [vmem:[#allocation20_spill] sm:$0xff]  ;;  %v19095_v57 = vld [vmem:[#allocation21_spill] sm:$0xff] }
 0x438   : > { %10822 = vst [vmem:[%s18491_s14 + $0x28] sm:$0xff] %v10790_v63  ;;  %v10795_v33 = vmax.f32 %v10763_v36, 0.0  ;;  %v10725_v7 = vadd.f32 %v18467_v59, %v10686_v53  ;;  %v10684_v24 = vadd.f32 %v10583_v14, %v10327_v42  ;;  %v10332_v62 = vadd.f32 %v13063_v34, %v9834_v30  ;;  %v13097_v8 = vpop.f32.mrf.mxu0  ;;  %v19084_v53 = vld [vmem:[#allocation4_spill] sm:$0xff] }
 0x439   : > { %v10761_v18 = vadd.f32 %v18477_v60, %v10722_v4  ;;  %v10239_v56 = vpop.f32.mrf.mxu1  ;;  %v9088_v3 = vadd.f32 %v19083_v5, %v19082_v29  ;;  %v9839_v42 = vadd.f32 %v19084_v53, %v9085_v50  ;;  %v19085_v34 = vld [vmem:[#allocation32_spill] sm:$0xff]  ;;  %v19092_v50 = vld [vmem:[#allocation11_spill] sm:$0xff] }
 0x43a   : > { %10827 = vst [vmem:[%s18491_s14 + $0x50] sm:$0xff] %v10795_v33  ;;  %v10764_v32 = vadd.f32 %v18477_v60, %v10725_v7  ;;  %v10723_v28 = vadd.f32 %v18467_v59, %v10684_v24  ;;  %v10689_v1 = vadd.f32 %v13097_v8, %v10332_v62  ;;  %v10330_v46 = vadd.f32 %v10239_v56, %v9832_v11  ;;  %v10596_v16 = vpop.f32.mrf.mxu0  ;;  %v19086_v11 = vld [vmem:[#allocation25_spill] sm:$0xff]  ;;  %v19097_v5 = vld [vmem:[#allocation12_spill] sm:$0xff] }
 0x43b   : > { %v10793_v0 = vmax.f32 %v10761_v18, 0.0  ;;  %v13064_v20 = vpop.f32.mrf.mxu1  ;;  %v9086_v33 = vadd.f32 %v19086_v11, %v19085_v34  ;;  %v19100_v11 = vld [vmem:[#allocation33_spill] sm:$0xff] }
 0x43c   : > { %v10796_v52 = vmax.f32 %v10764_v32, 0.0  ;;  %v10762_v13 = vadd.f32 %v18477_v60, %v10723_v28  ;;  %v10728_v25 = vadd.f32 %v18467_v59, %v10689_v1  ;;  %v10687_v23 = vadd.f32 %v10596_v16, %v10330_v46  ;;  %v13098_v55 = vpop.f32.mrf.mxu0  ;;  %v19087_v32 = vld [vmem:[#allocation26_spill] sm:$0xff]  ;;  %v19088_v28 = vld [vmem:[#allocation17_spill] sm:$0xff] }
 0x43d   : > { %10825 = vst [vmem:[%s18491_s14 + $0x40] sm:$0xff] %v10793_v0  ;;  %v10333_v2 = vadd.f32 %v13064_v20, %v9835_v47  ;;  %v10242_v31 = vpop.f32.mrf.mxu1  ;;  %v9089_v1 = vadd.f32 %v19088_v28, %v19087_v32  ;;  %v19089_v0 = vld [vmem:[#allocation27_spill] sm:$0xff]  ;;  %v19090_v20 = vld [vmem:[#allocation29_spill] sm:$0xff] }
 0x43e   : > { %10828 = vst [vmem:[%s18491_s14 + $0x58] sm:$0xff] %v10796_v52  ;;  %v10794_v15 = vmax.f32 %v10762_v13, 0.0  ;;  %v10767_v51 = vadd.f32 %v18477_v60, %v10728_v25  ;;  %v10726_v9 = vadd.f32 %v18467_v59, %v10687_v23  ;;  %v10331_v44 = vadd.f32 %v10242_v31, %v9833_v26  ;;  %v10599_v38 = vpop.f32.mrf.mxu0  ;;  %v19102_v28 = vld [vmem:[#allocation31_spill] sm:$0xff] }
 0x43f   : > { %v10690_v21 = vadd.f32 %v13098_v55, %v10333_v2  ;;  %v13067_v17 = vpop.f32.mrf.mxu1  ;;  %v9837_v16 = vadd.f32 %v19089_v0, %v9083_v19  ;;  %v9842_v26 = vadd.f32 %v19090_v20, %v9088_v3  ;;  %v9087_v55 = vadd.f32 %v19092_v50, %v19091_v10  ;;  %v19096_v19 = vld [vmem:[#allocation24_spill] sm:$0xff]  ;;  %v19098_v3 = vld [vmem:[#allocation34_spill] sm:$0xff]  ;;  %v19106_v50 = vld [vmem:[#allocation9_spill] sm:$0xff] }
 0x440   : > { %10826 = vst [vmem:[%s18491_s14 + $0x48] sm:$0xff] %v10794_v15  ;;  %v10799_v41 = vmax.f32 %v10767_v51, 0.0  ;;  %v10765_v22 = vadd.f32 %v18477_v60, %v10726_v9  ;;  %v10688_v37 = vadd.f32 %v10599_v38, %v10331_v44  ;;  %v10336_v54 = vadd.f32 %v13067_v17, %v9838_v39  ;;  %v13101_v63 = vpop.f32.mrf.mxu0  ;;  %v19093_v39 = vld [vmem:[#allocation5_spill] sm:$0xff] }
 0x441   : > { %v10729_v30 = vadd.f32 %v18467_v59, %v10690_v21  ;;  %v10255_v36 = vpop.f32.mrf.mxu1  ;;  %v9840_v15 = vadd.f32 %v19093_v39, %v9086_v33  ;;  %v9092_v29 = vadd.f32 %v19096_v19, %v19095_v57  ;;  %v19101_v33 = vld [vmem:[#allocation35_spill] sm:$0xff] }
 0x442   : > { %10831 = vst [vmem:[%s18491_s14 + $0x70] sm:$0xff] %v10799_v41  ;;  %v10797_v35 = vmax.f32 %v10765_v22, 0.0  ;;  %v10727_v49 = vadd.f32 %v18467_v59, %v10688_v37  ;;  %v10693_v4 = vadd.f32 %v13101_v63, %v10336_v54  ;;  %v10334_v14 = vadd.f32 %v10255_v36, %v9836_v6  ;;  %v10612_v24 = vpop.f32.mrf.mxu0  ;;  %v19094_v6 = vld [vmem:[#allocation7_spill] sm:$0xff] }
 0x443   : > { %v10768_v7 = vadd.f32 %v18477_v60, %v10729_v30  ;;  %v13068_v62 = vpop.f32.mrf.mxu1  ;;  %v9843_v41 = vadd.f32 %v19094_v6, %v9089_v1  ;;  %v9090_v30 = vadd.f32 %v19098_v3, %v19097_v5  ;;  %v19103_v1 = vld [vmem:[#allocation36_spill] sm:$0xff]  ;;  %v19110_v19 = vld [vmem:[#allocation15_spill] sm:$0xff]  ;;  %v19111_v5 = vld [vmem:[#allocation6_spill] sm:$0xff] }
 0x444   : > { %10829 = vst [vmem:[%s18491_s14 + $0x60] sm:$0xff] %v10797_v35  ;;  %v10766_v45 = vadd.f32 %v18477_v60, %v10727_v49  ;;  %v10732_v18 = vadd.f32 %v18467_v59, %v10693_v4  ;;  %v10691_v8 = vadd.f32 %v10612_v24, %v10334_v14  ;;  %v10337_v56 = vadd.f32 %v13068_v62, %v9839_v42  ;;  %v13102_v40 = vpop.f32.mrf.mxu0  ;;  %v19099_v42 = vld [vmem:[#allocation19_spill] sm:$0xff]  ;;  %v19112_v3 = vld [vmem:[#allocation41_spill] sm:$0xff] }
 0x445   : > { %v10800_v46 = vmax.f32 %v10768_v7, 0.0  ;;  %v10258_v47 = vpop.f32.mrf.mxu1  ;;  %v9841_v35 = vadd.f32 %v19099_v42, %v9087_v55  ;;  %v9093_v7 = vadd.f32 %v19101_v33, %v19100_v11  ;;  %v19107_v55 = vld [vmem:[#allocation38_spill] sm:$0xff]  ;;  %v19113_v42 = vld [vmem:[#allocation39_spill] sm:$0xff] }
 0x446   : > { %v10798_v52 = vmax.f32 %v10766_v45, 0.0  ;;  %v10771_v13 = vadd.f32 %v18477_v60, %v10732_v18  ;;  %v10730_v25 = vadd.f32 %v18467_v59, %v10691_v8  ;;  %v10694_v23 = vadd.f32 %v13102_v40, %v10337_v56  ;;  %v10615_v2 = vpop.f32.mrf.mxu0  ;;  %v19114_v11 = vld [vmem:[#allocation22_spill] sm:$0xff] }
 0x447   : > { %10832 = vst [vmem:[%s18491_s14 + $0x78] sm:$0xff] %v10800_v46  ;;  %v10335_v31 = vadd.f32 %v10258_v47, %v9837_v16  ;;  %v13071_v48 = vpop.f32.mrf.mxu1  ;;  %v9091_v46 = vadd.f32 %v19103_v1, %v19102_v28  ;;  %v19104_v16 = vld [vmem:[#allocation28_spill] sm:$0xff]  ;;  %v9095_v33 = vadd.f32 %v18456_v27, %v19114_v11 }
 0x448   : > { %10830 = vst [vmem:[%s18491_s14 + $0x68] sm:$0xff] %v10798_v52  ;;  %v10803_v51 = vmax.f32 %v10771_v13, 0.0  ;;  %v10769_v9 = vadd.f32 %v18477_v60, %v10730_v25  ;;  %v10733_v44 = vadd.f32 %v18467_v59, %v10694_v23  ;;  %v10340_v38 = vadd.f32 %v13071_v48, %v9842_v26  ;;  %v13105_v21 = vpop.f32.mrf.mxu0  ;;  %v19105_v26 = vld [vmem:[#allocation30_spill] sm:$0xff]  ;;  %v19115_v28 = vld [vmem:[#allocation40_spill] sm:$0xff] }
 0x449   : > { %v10692_v17 = vadd.f32 %v10615_v2, %v10335_v31  ;;  %v10271_v12 = vpop.f32.mrf.mxu1  ;;  %v9846_v47 = vadd.f32 %v19104_v16, %v9092_v29  ;;  %v9844_v52 = vadd.f32 %v19105_v26, %v9090_v30  ;;  %v9096_v2 = vadd.f32 %v19107_v55, %v19106_v50 }
 0x44a   : > { %10835 = vst [vmem:[%s18491_s14 + $0x90] sm:$0xff] %v10803_v51  ;;  %v10801_v22 = vmax.f32 %v10769_v9, 0.0  ;;  %v10772_v37 = vadd.f32 %v18477_v60, %v10733_v44  ;;  %v10697_v54 = vadd.f32 %v13105_v21, %v10340_v38  ;;  %v10338_v43 = vadd.f32 %v10271_v12, %v9840_v15  ;;  %v10628_v36 = vpop.f32.mrf.mxu0  ;;  %v19108_v15 = vld [vmem:[#allocation3_spill] sm:$0xff] }
 0x44b   : > { %v10731_v63 = vadd.f32 %v18467_v59, %v10692_v17  ;;  %v13072_v53 = vpop.f32.mrf.mxu1  ;;  %v9847_v51 = vadd.f32 %v19108_v15, %v9093_v7  ;;  %v9094_v29 = vadd.f32 %v18446_v61, %v19110_v19  ;;  %v9097_v30 = vadd.f32 %v19112_v3, %v19111_v5 }
 0x44c   : > { %10833 = vst [vmem:[%s18491_s14 + $0x80] sm:$0xff] %v10801_v22  ;;  %v10804_v49 = vmax.f32 %v10772_v37, 0.0  ;;  %v10736_v4 = vadd.f32 %v18467_v59, %v10697_v54  ;;  %v10695_v14 = vadd.f32 %v10628_v36, %v10338_v43  ;;  %v10341_v34 = vadd.f32 %v13072_v53, %v9843_v41  ;;  %v13106_v62 = vpop.f32.mrf.mxu0  ;;  %v19109_v41 = vld [vmem:[#allocation37_spill] sm:$0xff] }
 0x44d   : > { %v10770_v24 = vadd.f32 %v18477_v60, %v10731_v63  ;;  %v10274_v45 = vpop.f32.mrf.mxu1  ;;  %v9845_v22 = vadd.f32 %v19109_v41, %v9091_v46  ;;  %v9848_v1 = vadd.f32 %v19115_v28, %v9094_v29 }
 0x44e   : > { %10836 = vst [vmem:[%s18491_s14 + $0x98] sm:$0xff] %v10804_v49  ;;  %v10775_v18 = vadd.f32 %v18477_v60, %v10736_v4  ;;  %v10734_v8 = vadd.f32 %v18467_v59, %v10695_v14  ;;  %v10698_v56 = vadd.f32 %v13106_v62, %v10341_v34  ;;  %v10339_v32 = vadd.f32 %v10274_v45, %v9841_v35  ;;  %v10631_v0 = vpop.f32.mrf.mxu0 }
 0x44f   : > { %v10802_v40 = vmax.f32 %v10770_v24, 0.0  ;;  %v13075_v20 = vpop.f32.mrf.mxu1  ;;  %v9850_v35 = vadd.f32 %v19113_v42, %v9096_v2 }
 0x450   : > { %v10807_v13 = vmax.f32 %v10775_v18, 0.0  ;;  %v10773_v25 = vadd.f32 %v18477_v60, %v10734_v8  ;;  %v10737_v23 = vadd.f32 %v18467_v59, %v10698_v56  ;;  %v10696_v10 = vadd.f32 %v10631_v0, %v10339_v32  ;;  %v13109_v31 = vpop.f32.mrf.mxu0 }
 0x451   : > { %10834 = vst [vmem:[%s18491_s14 + $0x88] sm:$0xff] %v10802_v40  ;;  %v10344_v48 = vadd.f32 %v13075_v20, %v9846_v47  ;;  %v10287_v39 = vpop.f32.mrf.mxu1  ;;  %v19116_v40 = vld [vmem:[#allocation42_spill] sm:$0xff] }
 0x452   : > { %10839 = vst [vmem:[%s18491_s14 + $0xb0] sm:$0xff] %v10807_v13  ;;  %v10805_v9 = vmax.f32 %v10773_v25, 0.0  ;;  %v10776_v44 = vadd.f32 %v18477_v60, %v10737_v23  ;;  %v10735_v38 = vadd.f32 %v18467_v59, %v10696_v10  ;;  %v10342_v21 = vadd.f32 %v10287_v39, %v9844_v52  ;;  %v10644_v17 = vpop.f32.mrf.mxu0 }
 0x453   : > { %v10701_v12 = vadd.f32 %v13109_v31, %v10344_v48  ;;  %v13076_v6 = vpop.f32.mrf.mxu1  ;;  %v9851_v27 = vadd.f32 %v19116_v40, %v9097_v30  ;;  %v9849_v25 = vadd.f32 %v18460_v58, %v9095_v33 }
 0x454   : > { %10837 = vst [vmem:[%s18491_s14 + $0xa0] sm:$0xff] %v10805_v9  ;;  %v10808_v37 = vmax.f32 %v10776_v44, 0.0  ;;  %v10774_v54 = vadd.f32 %v18477_v60, %v10735_v38  ;;  %v10699_v43 = vadd.f32 %v10644_v17, %v10342_v21  ;;  %v10345_v57 = vadd.f32 %v13076_v6, %v9847_v51  ;;  %v13110_v36 = vpop.f32.mrf.mxu0 }
 0x455   : > { %v10740_v63 = vadd.f32 %v18467_v59, %v10701_v12  ;;  %v10290_v53 = vpop.f32.mrf.mxu1 }
 0x456   : > { %10840 = vst [vmem:[%s18491_s14 + $0xb8] sm:$0xff] %v10808_v37  ;;  %v10806_v49 = vmax.f32 %v10774_v54, 0.0  ;;  %v10738_v4 = vadd.f32 %v18467_v59, %v10699_v43  ;;  %v10702_v14 = vadd.f32 %v13110_v36, %v10345_v57  ;;  %v10343_v34 = vadd.f32 %v10290_v53, %v9845_v22  ;;  %v10647_v7 = vpop.f32.mrf.mxu0 }
 0x457   : > { %v10779_v61 = vadd.f32 %v18477_v60, %v10740_v63  ;;  %v13079_v24 = vpop.f32.mrf.mxu1 }
 0x458   : > { %10838 = vst [vmem:[%s18491_s14 + $0xa8] sm:$0xff] %v10806_v49  ;;  %v10777_v62 = vadd.f32 %v18477_v60, %v10738_v4  ;;  %v10741_v45 = vadd.f32 %v18467_v59, %v10702_v14  ;;  %v10700_v18 = vadd.f32 %v10647_v7, %v10343_v34  ;;  %v10348_v8 = vadd.f32 %v13079_v24, %v9850_v35  ;;  %v13113_v32 = vpop.f32.mrf.mxu0 }
 0x459   : > { %v10811_v56 = vmax.f32 %v10779_v61, 0.0  ;;  %v10303_v46 = vpop.f32.mrf.mxu1 }
 0x45a   : > { %v10809_v0 = vmax.f32 %v10777_v62, 0.0  ;;  %v10780_v16 = vadd.f32 %v18477_v60, %v10741_v45  ;;  %v10739_v47 = vadd.f32 %v18467_v59, %v10700_v18  ;;  %v10705_v20 = vadd.f32 %v13113_v32, %v10348_v8  ;;  %v10660_v26 = vpop.f32.mrf.mxu0 }
 0x45b   : > { %10843 = vst [vmem:[%s18491_s14 + $0xd0] sm:$0xff] %v10811_v56  ;;  %v10346_v52 = vadd.f32 %v10303_v46, %v9848_v1  ;;  %v13080_v13 = vpop.f32.mrf.mxu1 }
 0x45c   : > { %10841 = vst [vmem:[%s18491_s14 + $0xc0] sm:$0xff] %v10809_v0  ;;  %v10812_v23 = vmax.f32 %v10780_v16, 0.0  ;;  %v10778_v10 = vadd.f32 %v18477_v60, %v10739_v47  ;;  %v10744_v50 = vadd.f32 %v18467_v59, %v10705_v20  ;;  %v10349_v55 = vadd.f32 %v13080_v13, %v9851_v27  ;;  %v13114_v2 = vpop.f32.mrf.mxu0 }
 0x45d   : > { %v10703_v31 = vadd.f32 %v10660_v26, %v10346_v52  ;;  %v10306_v48 = vpop.f32.mrf.mxu1 }
 0x45e   : > { %10844 = vst [vmem:[%s18491_s14 + $0xd8] sm:$0xff] %v10812_v23  ;;  %v10810_v39 = vmax.f32 %v10778_v10, 0.0  ;;  %v10783_v15 = vadd.f32 %v18477_v60, %v10744_v50  ;;  %v10706_v51 = vadd.f32 %v13114_v2, %v10349_v55  ;;  %v10347_v58 = vadd.f32 %v10306_v48, %v9849_v25  ;;  %v10663_v44 = vpop.f32.mrf.mxu0 }
 0x45f   : > { %v10742_v9 = vadd.f32 %v18467_v59, %v10703_v31 }
 0x460   : > { %10842 = vst [vmem:[%s18491_s14 + $0xc8] sm:$0xff] %v10810_v39  ;;  %v10815_v38 = vmax.f32 %v10783_v15, 0.0  ;;  %v10745_v21 = vadd.f32 %v18467_v59, %v10706_v51  ;;  %v10704_v17 = vadd.f32 %v10663_v44, %v10347_v58 }
 0x461   : > { %v10781_v12 = vadd.f32 %v18477_v60, %v10742_v9 }
 0x462   : > { %10847 = vst [vmem:[%s18491_s14 + $0xf0] sm:$0xff] %v10815_v38  ;;  %v10784_v6 = vadd.f32 %v18477_v60, %v10745_v21  ;;  %v10743_v41 = vadd.f32 %v18467_v59, %v10704_v17 }
 0x463   : > { %v10813_v22 = vmax.f32 %v10781_v12, 0.0 }
 0x464   : > { %v10816_v37 = vmax.f32 %v10784_v6, 0.0  ;;  %v10782_v54 = vadd.f32 %v18477_v60, %v10743_v41 }
 0x465   : > { %10845 = vst [vmem:[%s18491_s14 + $0xe0] sm:$0xff] %v10813_v22 }
 0x466   : > { %10848 = vst [vmem:[%s18491_s14 + $0xf8] sm:$0xff] %v10816_v37  ;;  %v10814_v43 = vmax.f32 %v10782_v54, 0.0 }
 0x468   : > { %10846 = vst [vmem:[%s18491_s14 + $0xe8] sm:$0xff] %v10814_v43 }
 0x469 PF: > { %s18_s27 = sadd.s32 1, %s13344_s27  }
 0x46a   : > { %p15_p4 = scmp.ge.s32.totalorder %s18_s27, 4  }
 0x46c   :  { %17 = sbr.rel (!%p15_p4) target bundleno = 1 (0x1), region = 105 }

</bundles_post_ra>
